<compile_context>
chip_gen: v7x
topology: tpu7x:2x2x1
jax: 0.10.0
libtpu: 0.0.40
codegen_flags: <defaults>
</compile_context>

<pallas_src>
import jax
import jax.numpy as jnp
import numpy as np
from jax.experimental import pallas as pl
from jax.experimental.pallas import tpu as pltpu

MEAN = 0.1307
STANDARD_DEVIATION = 0.3081


# ---------------------------------------------------------------------------
# The single fused kernel (one grid step = one image)
# ---------------------------------------------------------------------------
def fused_forward_kernel(x_ref, p_ref, q_ref, a_ref, b1_ref,
                         be_ref, bo_ref, b2_ref, sele_ref, selo_ref,
                         fc1w_ref, fc1b_ref, fc2w_ref, fc2b_ref,
                         out_ref):
    # ---- 10x10 avg-pool + /255 + standardize (scales folded into P / Q) ----
    x = x_ref[0]                                                             # (280, 280) bf16
    t = jnp.dot(p_ref[...], x, preferred_element_type=jnp.float32)          # (28, 280)
    xn = jnp.dot(t.astype(jnp.bfloat16), q_ref[...],
                 preferred_element_type=jnp.float32) \
        - (MEAN / STANDARD_DEVIATION)                                        # (28, 28)

    # ---- conv1 (1 -> 32, 3x3, valid) + ReLU, planar (H, W*C) layout ---------
    xnb = xn.astype(jnp.bfloat16)
    acc1 = jnp.zeros((26, 832), jnp.float32)
    for ky in range(3):
        acc1 = acc1 + jnp.dot(xnb[ky:ky + 26, :], a_ref[ky],
                              preferred_element_type=jnp.float32)
    y1 = jnp.maximum(acc1 + b1_ref[...], 0.0)                                # (26, 832) f32
    y1b = y1.astype(jnp.bfloat16)                                            # cast ONCE

    # ---- conv2 (32 -> 64, 3x3, valid) + ReLU + width half of 2x2 max-pool ---
    # 3 width-groups of 8 output columns share ONE (320, 256) band per ky and
    # even/odd phase; the group is selected by a 128-aligned lane slice of y1.
    groups = []
    for g in range(3):
        acc_e = jnp.zeros((24, 256), jnp.float32)
        acc_o = jnp.zeros((24, 256), jnp.float32)
        for ky in range(3):
            lhs = y1b[ky:ky + 24, 256 * g:256 * g + 320]                     # (24, 320) bf16
            acc_e = acc_e + jnp.dot(lhs, be_ref[ky], preferred_element_type=jnp.float32)
            acc_o = acc_o + jnp.dot(lhs, bo_ref[ky], preferred_element_type=jnp.float32)
        ye = jnp.maximum(acc_e + b2_ref[...], 0.0)                           # even widths
        yo = jnp.maximum(acc_o + b2_ref[...], 0.0)                           # odd widths
        groups.append(jnp.maximum(ye, yo))                                   # width-pooled (24, 256)
    cmax = jnp.concatenate(groups, axis=1)                                   # (24, 768)

    # ---- height half of the 2x2 max-pool (host-built row selectors) ---------
    pooled = jnp.maximum(
        jnp.dot(sele_ref[...], cmax, preferred_element_type=jnp.float32),
        jnp.dot(selo_ref[...], cmax, preferred_element_type=jnp.float32))    # (12, 768)

    # dropout1 / dropout2 are identity at inference.
    # TODO(synk): training-mode dropout RNG masks are not implemented (eval semantics).

    # ---- fc1 + ReLU: one (12,768)x(768,1536) matmul, diagonal blocks summed -
    hmat = jnp.dot(pooled.astype(jnp.bfloat16), fc1w_ref[...],
                   preferred_element_type=jnp.float32)                       # (12, 1536)
    parts = [hmat[i:i + 1, 128 * i:128 * (i + 1)] for i in range(12)]        # 12 x (1, 128)
    while len(parts) > 1:                                                    # tree-sum on the VPU
        nxt = [parts[j] + parts[j + 1] for j in range(0, len(parts) - 1, 2)]
        if len(parts) % 2:
            nxt.append(parts[-1])
        parts = nxt
    h = jnp.maximum(parts[0] + fc1b_ref[...], 0.0)                           # (1, 128)

    # ---- fc2 + softmax(dim=1) ------------------------------------------------
    logits = jnp.dot(h, fc2w_ref[...], preferred_element_type=jnp.float32) + fc2b_ref[...]
    m = jnp.max(logits, axis=-1, keepdims=True)
    e = jnp.exp(logits - m)
    out_ref[0] = e / jnp.sum(e, axis=-1, keepdims=True)                      # (1, 10)


# ---------------------------------------------------------------------------
# Host-side one-time weight repacking (NOT inside the per-call forward)
# ---------------------------------------------------------------------------
def prepare_params(params):
    w1 = np.asarray(params["conv1_w"], dtype=np.float32)      # (32, 1, 3, 3)
    b1 = np.asarray(params["conv1_b"], dtype=np.float32)      # (32,)
    w2 = np.asarray(params["conv2_w"], dtype=np.float32)      # (64, 32, 3, 3)
    b2 = np.asarray(params["conv2_b"], dtype=np.float32)      # (64,)
    fw1 = np.asarray(params["fc1_w"], dtype=np.float32)       # (128, 9216)
    fb1 = np.asarray(params["fc1_b"], dtype=np.float32)       # (128,)
    fw2 = np.asarray(params["fc2_w"], dtype=np.float32)       # (10, 128)
    fb2 = np.asarray(params["fc2_b"], dtype=np.float32)       # (10,)

    # Pooling matrices with 1/100 (avg), /255 and 1/std folded in.  Channel
    # selection happens in the wrapper, so Q is only (280, 28).
    P = np.repeat(np.eye(28, dtype=np.float32), 10, axis=1) * 0.1                         # (28, 280)
    Q = np.repeat(np.eye(28, dtype=np.float32), 10, axis=0) * \
        (0.1 / (255.0 * STANDARD_DEVIATION))                                              # (280, 28)

    # conv1 band matrices: A[ky][wx, w*32+co] = w1[co, 0, ky, wx-w].
    A = np.zeros((3, 28, 26, 32), np.float32)
    for ky in range(3):
        for kx in range(3):
            for w in range(26):
                A[ky, w + kx, w, :] = w1[:, 0, ky, kx]
    A = A.reshape(3, 28, 832)

    # Dedup'd conv2 band matrices shared by the 3 output-width groups:
    #   Be[ky][dwx*32+c, k*64+co] = w2[co, c, ky, dwx-2k]    (even widths 8g+2k)
    #   Bo[ky][dwx*32+c, k*64+co] = w2[co, c, ky, dwx-2k-1]  (odd  widths 8g+2k+1)
    w2t = w2.transpose(2, 3, 1, 0)                                           # (ky, kx, c, co)
    Be = np.zeros((3, 10, 32, 4, 64), np.float32)
    Bo = np.zeros((3, 10, 32, 4, 64), np.float32)
    for ky in range(3):
        for kx in range(3):
            for k in range(4):
                Be[ky, 2 * k + kx, :, k, :] = w2t[ky, kx]
                Bo[ky, 2 * k + 1 + kx, :, k, :] = w2t[ky, kx]
    Be = Be.reshape(3, 320, 256)
    Bo = Bo.reshape(3, 320, 256)

    # 2x2 max-pool row selectors (host constants; no per-call iota/compare).
    sel_e = np.zeros((12, 24), np.float32)
    sel_o = np.zeros((12, 24), np.float32)
    sel_e[np.arange(12), 2 * np.arange(12)] = 1.0
    sel_o[np.arange(12), 2 * np.arange(12) + 1] = 1.0

    # fc1 weight permuted from PyTorch's NCHW flatten order (co*144 + ph*12 + pw)
    # into one (768, 1536) slab: row = pw*64 + co, col = ph*128 + out.  The
    # kernel then needs a single matmul + a 12-term diagonal-block sum.
    fw1p = fw1.reshape(128, 64, 12, 12).transpose(2, 3, 1, 0)                # (ph, pw, co, out)
    fc1w2 = fw1p.reshape(12, 768, 128).transpose(1, 0, 2).reshape(768, 1536)

    return {
        "P": jnp.asarray(P, dtype=jnp.bfloat16),
        "Q": jnp.asarray(Q, dtype=jnp.bfloat16),
        "A": jnp.asarray(A, dtype=jnp.bfloat16),
        "b1": jnp.asarray(np.tile(b1, 26)[None, :]),                         # (1, 832) f32
        "Be": jnp.asarray(Be, dtype=jnp.bfloat16),                           # (3, 320, 256)
        "Bo": jnp.asarray(Bo, dtype=jnp.bfloat16),                           # (3, 320, 256)
        "b2": jnp.asarray(np.tile(b2, 4)[None, :]),                          # (1, 256) f32
        "sel_e": jnp.asarray(sel_e),                                         # (12, 24) f32
        "sel_o": jnp.asarray(sel_o),                                         # (12, 24) f32
        "fc1_w2": jnp.asarray(fc1w2, dtype=jnp.bfloat16),                    # (768, 1536)
        "fc1_b": jnp.asarray(fb1[None, :]),                                  # (1, 128)
        "fc2_w": jnp.asarray(fw2.T),                                         # (128, 10)
        "fc2_b": jnp.asarray(fb2[None, :]),                                  # (1, 10)
    }


def init_params(key):
    ks = jax.random.split(key, 8)

    def unif(k, shape, fan_in):
        bound = 1.0 / jnp.sqrt(jnp.float32(fan_in))
        return jax.random.uniform(k, shape, jnp.float32, -bound, bound)

    return {
        "conv1_w": unif(ks[0], (32, 1, 3, 3), 1 * 9),
        "conv1_b": unif(ks[1], (32,), 1 * 9),
        "conv2_w": unif(ks[2], (64, 32, 3, 3), 32 * 9),
        "conv2_b": unif(ks[3], (64,), 32 * 9),
        "fc1_w": unif(ks[4], (128, 9216), 9216),
        "fc1_b": unif(ks[5], (128,), 9216),
        "fc2_w": unif(ks[6], (10, 128), 128),
        "fc2_b": unif(ks[7], (10,), 128),
    }


# ---------------------------------------------------------------------------
# Forward = one pallas_call over a batch grid; weights stay VMEM-resident
# ---------------------------------------------------------------------------
def forward(prepped, xb):
    # Per-image semantics of the PyTorch forward: reshape(280, 280, 4) then
    # torch.narrow(dim=2, start=3) -> slice channel 3 here in the wrapper.
    B = xb.shape[0]
    x = xb.reshape(B, 280, 280, 4)[:, :, :, 3].astype(jnp.bfloat16)   # 0..255 ints: exact in bf16

    const2 = lambda shape: pl.BlockSpec(shape, lambda b: (0, 0))
    const3 = lambda shape: pl.BlockSpec(shape, lambda b: (0, 0, 0))

    out = pl.pallas_call(
        fused_forward_kernel,
        out_shape=jax.ShapeDtypeStruct((B, 1, 10), jnp.float32),
        grid=(B,),
        in_specs=[
            pl.BlockSpec((1, 280, 280), lambda b: (b, 0, 0)),  # image: streams per grid step
            const2((28, 280)),      # P
            const2((280, 28)),      # Q
            const3((3, 28, 832)),   # conv1 bands
            const2((1, 832)),       # conv1 bias (tiled)
            const3((3, 320, 256)),  # conv2 even bands (dedup'd)
            const3((3, 320, 256)),  # conv2 odd bands (dedup'd)
            const2((1, 256)),       # conv2 bias (tiled)
            const2((12, 24)),       # max-pool even-row selector
            const2((12, 24)),       # max-pool odd-row selector
            const2((768, 1536)),    # fc1 weight (row-blocked)
            const2((1, 128)),       # fc1 bias
            const2((128, 10)),      # fc2 weight
            const2((1, 10)),        # fc2 bias
        ],
        out_specs=pl.BlockSpec((1, 1, 10), lambda b: (b, 0, 0)),
        compiler_params=pltpu.CompilerParams(
            dimension_semantics=("parallel",),
            vmem_limit_bytes=32 * 1024 * 1024),
    )(x, prepped["P"], prepped["Q"], prepped["A"], prepped["b1"],
      prepped["Be"], prepped["Bo"], prepped["b2"],
      prepped["sel_e"], prepped["sel_o"],
      prepped["fc1_w2"], prepped["fc1_b"], prepped["fc2_w"], prepped["fc2_b"])
    return out.reshape(B, 10)


# ---------------------------------------------------------------------------
# Pure-JAX reference (f32, HIGHEST precision) for a correctness sanity check
# ---------------------------------------------------------------------------
def forward_reference(params, xb):
    x = xb.reshape(280, 280, 4)[:, :, 3].astype(jnp.float32)
    x = x.reshape(28, 10, 28, 10).mean(axis=(1, 3))
    x = (x / 255.0 - MEAN) / STANDARD_DEVIATION
    x = x[None, None]                                                        # (1, 1, 28, 28)
    y = jax.lax.conv_general_dilated(
        x, params["conv1_w"], (1, 1), "VALID",
        dimension_numbers=("NCHW", "OIHW", "NCHW"),
        precision=jax.lax.Precision.HIGHEST)
    y = jax.nn.relu(y + params["conv1_b"][None, :, None, None])
    y = jax.lax.conv_general_dilated(
        y, params["conv2_w"], (1, 1), "VALID",
        dimension_numbers=("NCHW", "OIHW", "NCHW"),
        precision=jax.lax.Precision.HIGHEST)
    y = jax.nn.relu(y + params["conv2_b"][None, :, None, None])
    y = y.reshape(1, 64, 12, 2, 12, 2).max(axis=(3, 5))                      # 2x2 max-pool
    flat = y.reshape(1, 9216)                                                # NCHW flatten (torch order)
    h = jax.nn.relu(jnp.dot(flat, params["fc1_w"].T,
                            precision=jax.lax.Precision.HIGHEST) + params["fc1_b"])
    logits = jnp.dot(h, params["fc2_w"].T,
                     precision=jax.lax.Precision.HIGHEST) + params["fc2_b"]
    return jax.nn.softmax(logits, axis=-1)


if __name__ == "__main__":
    key = jax.random.PRNGKey(0)
    pkey, xkey = jax.random.split(key)
    params = init_params(pkey)
    prepped = prepare_params(params)     # one-time weight repack, outside the hot path

    # The module's forward hardcodes reshape(280, 280, 4); batch of 2 images.
    # Integer 0..255 pixel values (MNIST-style) so the bf16 image cast is exact.
    B = 2
    x = jax.random.randint(xkey, (B, 280, 280, 4), 0, 256).astype(jnp.float32)

    out = jax.block_until_ready(jax.jit(forward)(prepped, x))

    assert out.shape == (B, 10), out.shape
    assert bool(jnp.all(jnp.isfinite(out)))
    assert float(jnp.max(jnp.abs(jnp.sum(out, axis=1) - 1.0))) < 1e-4        # softmax rows sum to 1

    ref = jnp.concatenate([forward_reference(params, x[i]) for i in range(B)], axis=0)
    max_diff = float(jnp.max(jnp.abs(out - ref)))
    # bf16 weights + bf16 activations on the MXU (f32 accumulation) leave only
    # ~1e-3-level deviations on the probabilities; 1e-2 still catches any real
    # indexing / repacking bug (those shift probabilities by >0.05).
    assert max_diff < 1e-2, max_diff

    print("KERNEL_OK")
</pallas_src>

<mosaic_0001>
module attributes {stable_mosaic.version = 11 : i64} {
  func.func @fused_forward_kernel(%arg0: i32, %arg1: memref<1x280x280xbf16, #tpu.memory_space<vmem>>, %arg2: memref<28x280xbf16, #tpu.memory_space<vmem>>, %arg3: memref<280x28xbf16, #tpu.memory_space<vmem>>, %arg4: memref<3x28x832xbf16, #tpu.memory_space<vmem>>, %arg5: memref<1x832xf32, #tpu.memory_space<vmem>>, %arg6: memref<3x320x256xbf16, #tpu.memory_space<vmem>>, %arg7: memref<3x320x256xbf16, #tpu.memory_space<vmem>>, %arg8: memref<1x256xf32, #tpu.memory_space<vmem>>, %arg9: memref<12x24xf32, #tpu.memory_space<vmem>>, %arg10: memref<12x24xf32, #tpu.memory_space<vmem>>, %arg11: memref<768x1536xbf16, #tpu.memory_space<vmem>>, %arg12: memref<1x128xf32, #tpu.memory_space<vmem>>, %arg13: memref<128x10xf32, #tpu.memory_space<vmem>>, %arg14: memref<1x10xf32, #tpu.memory_space<vmem>>, %arg15: memref<1x1x10xf32, #tpu.memory_space<vmem>>) attributes {dimension_semantics = [#tpu.dimension_semantics<parallel>], iteration_bounds = array<i64: 2>, scalar_prefetch = 0 : i64, scratch_operands = 0 : i64, tpu.core_type = #tpu.core_type<tc>, window_params = [{transform_indices = @transform_0, window_bounds = array<i64: 1, 280, 280>}, {pipeline_mode = #tpu.pipeline_mode<synchronous>, transform_indices = @transform_1, window_bounds = array<i64: 28, 280>}, {pipeline_mode = #tpu.pipeline_mode<synchronous>, transform_indices = @transform_2, window_bounds = array<i64: 280, 28>}, {pipeline_mode = #tpu.pipeline_mode<synchronous>, transform_indices = @transform_3, window_bounds = array<i64: 3, 28, 832>}, {pipeline_mode = #tpu.pipeline_mode<synchronous>, transform_indices = @transform_4, window_bounds = array<i64: 1, 832>}, {pipeline_mode = #tpu.pipeline_mode<synchronous>, transform_indices = @transform_5, window_bounds = array<i64: 3, 320, 256>}, {pipeline_mode = #tpu.pipeline_mode<synchronous>, transform_indices = @transform_6, window_bounds = array<i64: 3, 320, 256>}, {pipeline_mode = #tpu.pipeline_mode<synchronous>, transform_indices = @transform_7, window_bounds = array<i64: 1, 256>}, {pipeline_mode = #tpu.pipeline_mode<synchronous>, transform_indices = @transform_8, window_bounds = array<i64: 12, 24>}, {pipeline_mode = #tpu.pipeline_mode<synchronous>, transform_indices = @transform_9, window_bounds = array<i64: 12, 24>}, {pipeline_mode = #tpu.pipeline_mode<synchronous>, transform_indices = @transform_10, window_bounds = array<i64: 768, 1536>}, {pipeline_mode = #tpu.pipeline_mode<synchronous>, transform_indices = @transform_11, window_bounds = array<i64: 1, 128>}, {pipeline_mode = #tpu.pipeline_mode<synchronous>, transform_indices = @transform_12, window_bounds = array<i64: 128, 10>}, {pipeline_mode = #tpu.pipeline_mode<synchronous>, transform_indices = @transform_13, window_bounds = array<i64: 1, 10>}, {transform_indices = @transform_14, window_bounds = array<i64: 1, 1, 10>}]} {
    %c0 = arith.constant 0 : index
    %c0_0 = arith.constant 0 : index
    %c0_1 = arith.constant 0 : index
    %0 = vector.load %arg1[%c0, %c0_0, %c0_1] : memref<1x280x280xbf16, #tpu.memory_space<vmem>>, vector<1x280x280xbf16>
    %1 = vector.shape_cast %0 : vector<1x280x280xbf16> to vector<280x280xbf16>
    %c0_2 = arith.constant 0 : index
    %c0_3 = arith.constant 0 : index
    %2 = vector.load %arg2[%c0_2, %c0_3] : memref<28x280xbf16, #tpu.memory_space<vmem>>, vector<28x280xbf16>
    %cst = arith.constant dense<0.000000e+00> : vector<28x280xf32>
    %3 = tpu.matmul %2, %1, %cst {dimension_numbers = #tpu.dot_dimension_numbers<[1], [0], [0], [1], [0, 0, 1, 1], [], []>} : vector<28x280xbf16>, vector<280x280xbf16>, vector<28x280xf32> -> vector<28x280xf32>
    %4 = arith.truncf %3 : vector<28x280xf32> to vector<28x280xbf16>
    %c0_4 = arith.constant 0 : index
    %c0_5 = arith.constant 0 : index
    %5 = vector.load %arg3[%c0_4, %c0_5] : memref<280x28xbf16, #tpu.memory_space<vmem>>, vector<280x28xbf16>
    %cst_6 = arith.constant dense<0.000000e+00> : vector<28x28xf32>
    %6 = tpu.matmul %4, %5, %cst_6 {dimension_numbers = #tpu.dot_dimension_numbers<[1], [0], [0], [1], [0, 0, 1, 1], [], []>} : vector<28x280xbf16>, vector<280x28xbf16>, vector<28x28xf32> -> vector<28x28xf32>
    %cst_7 = arith.constant 0.424212933 : f32
    %7 = vector.broadcast %cst_7 : f32 to vector<28x28xf32>
    %8 = arith.subf %6, %7 : vector<28x28xf32>
    %9 = arith.truncf %8 : vector<28x28xf32> to vector<28x28xbf16>
    %cst_8 = arith.constant 0.000000e+00 : f32
    %10 = vector.broadcast %cst_8 : f32 to vector<26x832xf32>
    %11 = vector.extract_strided_slice %9 {offsets = [0, 0], sizes = [26, 28], strides = [1, 1]} : vector<28x28xbf16> to vector<26x28xbf16>
    %c0_9 = arith.constant 0 : index
    %c0_10 = arith.constant 0 : index
    %c0_11 = arith.constant 0 : index
    %12 = vector.load %arg4[%c0_9, %c0_10, %c0_11] : memref<3x28x832xbf16, #tpu.memory_space<vmem>>, vector<1x28x832xbf16>
    %13 = vector.shape_cast %12 : vector<1x28x832xbf16> to vector<28x832xbf16>
    %cst_12 = arith.constant dense<0.000000e+00> : vector<26x832xf32>
    %14 = tpu.matmul %11, %13, %cst_12 {dimension_numbers = #tpu.dot_dimension_numbers<[1], [0], [0], [1], [0, 0, 1, 1], [], []>} : vector<26x28xbf16>, vector<28x832xbf16>, vector<26x832xf32> -> vector<26x832xf32>
    %15 = arith.addf %10, %14 : vector<26x832xf32>
    %16 = vector.extract_strided_slice %9 {offsets = [1, 0], sizes = [26, 28], strides = [1, 1]} : vector<28x28xbf16> to vector<26x28xbf16>
    %c1 = arith.constant 1 : index
    %c0_13 = arith.constant 0 : index
    %c0_14 = arith.constant 0 : index
    %17 = vector.load %arg4[%c1, %c0_13, %c0_14] : memref<3x28x832xbf16, #tpu.memory_space<vmem>>, vector<1x28x832xbf16>
    %18 = vector.shape_cast %17 : vector<1x28x832xbf16> to vector<28x832xbf16>
    %cst_15 = arith.constant dense<0.000000e+00> : vector<26x832xf32>
    %19 = tpu.matmul %16, %18, %cst_15 {dimension_numbers = #tpu.dot_dimension_numbers<[1], [0], [0], [1], [0, 0, 1, 1], [], []>} : vector<26x28xbf16>, vector<28x832xbf16>, vector<26x832xf32> -> vector<26x832xf32>
    %20 = arith.addf %15, %19 : vector<26x832xf32>
    %21 = vector.extract_strided_slice %9 {offsets = [2, 0], sizes = [26, 28], strides = [1, 1]} : vector<28x28xbf16> to vector<26x28xbf16>
    %c2 = arith.constant 2 : index
    %c0_16 = arith.constant 0 : index
    %c0_17 = arith.constant 0 : index
    %22 = vector.load %arg4[%c2, %c0_16, %c0_17] : memref<3x28x832xbf16, #tpu.memory_space<vmem>>, vector<1x28x832xbf16>
    %23 = vector.shape_cast %22 : vector<1x28x832xbf16> to vector<28x832xbf16>
    %cst_18 = arith.constant dense<0.000000e+00> : vector<26x832xf32>
    %24 = tpu.matmul %21, %23, %cst_18 {dimension_numbers = #tpu.dot_dimension_numbers<[1], [0], [0], [1], [0, 0, 1, 1], [], []>} : vector<26x28xbf16>, vector<28x832xbf16>, vector<26x832xf32> -> vector<26x832xf32>
    %25 = arith.addf %20, %24 : vector<26x832xf32>
    %c0_19 = arith.constant 0 : index
    %c0_20 = arith.constant 0 : index
    %26 = vector.load %arg5[%c0_19, %c0_20] : memref<1x832xf32, #tpu.memory_space<vmem>>, vector<1x832xf32>
    %27 = vector.broadcast %26 : vector<1x832xf32> to vector<26x832xf32>
    %28 = arith.addf %25, %27 : vector<26x832xf32>
    %cst_21 = arith.constant 0.000000e+00 : f32
    %29 = vector.broadcast %cst_21 : f32 to vector<26x832xf32>
    %30 = arith.maximumf %28, %29 : vector<26x832xf32>
    %31 = arith.truncf %30 : vector<26x832xf32> to vector<26x832xbf16>
    %cst_22 = arith.constant 0.000000e+00 : f32
    %32 = vector.broadcast %cst_22 : f32 to vector<24x256xf32>
    %cst_23 = arith.constant 0.000000e+00 : f32
    %33 = vector.broadcast %cst_23 : f32 to vector<24x256xf32>
    %34 = vector.extract_strided_slice %31 {offsets = [0, 0], sizes = [24, 320], strides = [1, 1]} : vector<26x832xbf16> to vector<24x320xbf16>
    %c0_24 = arith.constant 0 : index
    %c0_25 = arith.constant 0 : index
    %c0_26 = arith.constant 0 : index
    %35 = vector.load %arg6[%c0_24, %c0_25, %c0_26] : memref<3x320x256xbf16, #tpu.memory_space<vmem>>, vector<1x320x256xbf16>
    %36 = vector.shape_cast %35 : vector<1x320x256xbf16> to vector<320x256xbf16>
    %cst_27 = arith.constant dense<0.000000e+00> : vector<24x256xf32>
    %37 = tpu.matmul %34, %36, %cst_27 {dimension_numbers = #tpu.dot_dimension_numbers<[1], [0], [0], [1], [0, 0, 1, 1], [], []>} : vector<24x320xbf16>, vector<320x256xbf16>, vector<24x256xf32> -> vector<24x256xf32>
    %38 = arith.addf %32, %37 : vector<24x256xf32>
    %c0_28 = arith.constant 0 : index
    %c0_29 = arith.constant 0 : index
    %c0_30 = arith.constant 0 : index
    %39 = vector.load %arg7[%c0_28, %c0_29, %c0_30] : memref<3x320x256xbf16, #tpu.memory_space<vmem>>, vector<1x320x256xbf16>
    %40 = vector.shape_cast %39 : vector<1x320x256xbf16> to vector<320x256xbf16>
    %cst_31 = arith.constant dense<0.000000e+00> : vector<24x256xf32>
    %41 = tpu.matmul %34, %40, %cst_31 {dimension_numbers = #tpu.dot_dimension_numbers<[1], [0], [0], [1], [0, 0, 1, 1], [], []>} : vector<24x320xbf16>, vector<320x256xbf16>, vector<24x256xf32> -> vector<24x256xf32>
    %42 = arith.addf %33, %41 : vector<24x256xf32>
    %43 = vector.extract_strided_slice %31 {offsets = [1, 0], sizes = [24, 320], strides = [1, 1]} : vector<26x832xbf16> to vector<24x320xbf16>
    %c1_32 = arith.constant 1 : index
    %c0_33 = arith.constant 0 : index
    %c0_34 = arith.constant 0 : index
    %44 = vector.load %arg6[%c1_32, %c0_33, %c0_34] : memref<3x320x256xbf16, #tpu.memory_space<vmem>>, vector<1x320x256xbf16>
    %45 = vector.shape_cast %44 : vector<1x320x256xbf16> to vector<320x256xbf16>
    %cst_35 = arith.constant dense<0.000000e+00> : vector<24x256xf32>
    %46 = tpu.matmul %43, %45, %cst_35 {dimension_numbers = #tpu.dot_dimension_numbers<[1], [0], [0], [1], [0, 0, 1, 1], [], []>} : vector<24x320xbf16>, vector<320x256xbf16>, vector<24x256xf32> -> vector<24x256xf32>
    %47 = arith.addf %38, %46 : vector<24x256xf32>
    %c1_36 = arith.constant 1 : index
    %c0_37 = arith.constant 0 : index
    %c0_38 = arith.constant 0 : index
    %48 = vector.load %arg7[%c1_36, %c0_37, %c0_38] : memref<3x320x256xbf16, #tpu.memory_space<vmem>>, vector<1x320x256xbf16>
    %49 = vector.shape_cast %48 : vector<1x320x256xbf16> to vector<320x256xbf16>
    %cst_39 = arith.constant dense<0.000000e+00> : vector<24x256xf32>
    %50 = tpu.matmul %43, %49, %cst_39 {dimension_numbers = #tpu.dot_dimension_numbers<[1], [0], [0], [1], [0, 0, 1, 1], [], []>} : vector<24x320xbf16>, vector<320x256xbf16>, vector<24x256xf32> -> vector<24x256xf32>
    %51 = arith.addf %42, %50 : vector<24x256xf32>
    %52 = vector.extract_strided_slice %31 {offsets = [2, 0], sizes = [24, 320], strides = [1, 1]} : vector<26x832xbf16> to vector<24x320xbf16>
    %c2_40 = arith.constant 2 : index
    %c0_41 = arith.constant 0 : index
    %c0_42 = arith.constant 0 : index
    %53 = vector.load %arg6[%c2_40, %c0_41, %c0_42] : memref<3x320x256xbf16, #tpu.memory_space<vmem>>, vector<1x320x256xbf16>
    %54 = vector.shape_cast %53 : vector<1x320x256xbf16> to vector<320x256xbf16>
    %cst_43 = arith.constant dense<0.000000e+00> : vector<24x256xf32>
    %55 = tpu.matmul %52, %54, %cst_43 {dimension_numbers = #tpu.dot_dimension_numbers<[1], [0], [0], [1], [0, 0, 1, 1], [], []>} : vector<24x320xbf16>, vector<320x256xbf16>, vector<24x256xf32> -> vector<24x256xf32>
    %56 = arith.addf %47, %55 : vector<24x256xf32>
    %c2_44 = arith.constant 2 : index
    %c0_45 = arith.constant 0 : index
    %c0_46 = arith.constant 0 : index
    %57 = vector.load %arg7[%c2_44, %c0_45, %c0_46] : memref<3x320x256xbf16, #tpu.memory_space<vmem>>, vector<1x320x256xbf16>
    %58 = vector.shape_cast %57 : vector<1x320x256xbf16> to vector<320x256xbf16>
    %cst_47 = arith.constant dense<0.000000e+00> : vector<24x256xf32>
    %59 = tpu.matmul %52, %58, %cst_47 {dimension_numbers = #tpu.dot_dimension_numbers<[1], [0], [0], [1], [0, 0, 1, 1], [], []>} : vector<24x320xbf16>, vector<320x256xbf16>, vector<24x256xf32> -> vector<24x256xf32>
    %60 = arith.addf %51, %59 : vector<24x256xf32>
    %c0_48 = arith.constant 0 : index
    %c0_49 = arith.constant 0 : index
    %61 = vector.load %arg8[%c0_48, %c0_49] : memref<1x256xf32, #tpu.memory_space<vmem>>, vector<1x256xf32>
    %62 = vector.broadcast %61 : vector<1x256xf32> to vector<24x256xf32>
    %63 = arith.addf %56, %62 : vector<24x256xf32>
    %cst_50 = arith.constant 0.000000e+00 : f32
    %64 = vector.broadcast %cst_50 : f32 to vector<24x256xf32>
    %65 = arith.maximumf %63, %64 : vector<24x256xf32>
    %c0_51 = arith.constant 0 : index
    %c0_52 = arith.constant 0 : index
    %66 = vector.load %arg8[%c0_51, %c0_52] : memref<1x256xf32, #tpu.memory_space<vmem>>, vector<1x256xf32>
    %67 = vector.broadcast %66 : vector<1x256xf32> to vector<24x256xf32>
    %68 = arith.addf %60, %67 : vector<24x256xf32>
    %cst_53 = arith.constant 0.000000e+00 : f32
    %69 = vector.broadcast %cst_53 : f32 to vector<24x256xf32>
    %70 = arith.maximumf %68, %69 : vector<24x256xf32>
    %71 = arith.maximumf %65, %70 : vector<24x256xf32>
    %cst_54 = arith.constant 0.000000e+00 : f32
    %72 = vector.broadcast %cst_54 : f32 to vector<24x256xf32>
    %cst_55 = arith.constant 0.000000e+00 : f32
    %73 = vector.broadcast %cst_55 : f32 to vector<24x256xf32>
    %74 = vector.extract_strided_slice %31 {offsets = [0, 256], sizes = [24, 320], strides = [1, 1]} : vector<26x832xbf16> to vector<24x320xbf16>
    %c0_56 = arith.constant 0 : index
    %c0_57 = arith.constant 0 : index
    %c0_58 = arith.constant 0 : index
    %75 = vector.load %arg6[%c0_56, %c0_57, %c0_58] : memref<3x320x256xbf16, #tpu.memory_space<vmem>>, vector<1x320x256xbf16>
    %76 = vector.shape_cast %75 : vector<1x320x256xbf16> to vector<320x256xbf16>
    %cst_59 = arith.constant dense<0.000000e+00> : vector<24x256xf32>
    %77 = tpu.matmul %74, %76, %cst_59 {dimension_numbers = #tpu.dot_dimension_numbers<[1], [0], [0], [1], [0, 0, 1, 1], [], []>} : vector<24x320xbf16>, vector<320x256xbf16>, vector<24x256xf32> -> vector<24x256xf32>
    %78 = arith.addf %72, %77 : vector<24x256xf32>
    %c0_60 = arith.constant 0 : index
    %c0_61 = arith.constant 0 : index
    %c0_62 = arith.constant 0 : index
    %79 = vector.load %arg7[%c0_60, %c0_61, %c0_62] : memref<3x320x256xbf16, #tpu.memory_space<vmem>>, vector<1x320x256xbf16>
    %80 = vector.shape_cast %79 : vector<1x320x256xbf16> to vector<320x256xbf16>
    %cst_63 = arith.constant dense<0.000000e+00> : vector<24x256xf32>
    %81 = tpu.matmul %74, %80, %cst_63 {dimension_numbers = #tpu.dot_dimension_numbers<[1], [0], [0], [1], [0, 0, 1, 1], [], []>} : vector<24x320xbf16>, vector<320x256xbf16>, vector<24x256xf32> -> vector<24x256xf32>
    %82 = arith.addf %73, %81 : vector<24x256xf32>
    %83 = vector.extract_strided_slice %31 {offsets = [1, 256], sizes = [24, 320], strides = [1, 1]} : vector<26x832xbf16> to vector<24x320xbf16>
    %c1_64 = arith.constant 1 : index
    %c0_65 = arith.constant 0 : index
    %c0_66 = arith.constant 0 : index
    %84 = vector.load %arg6[%c1_64, %c0_65, %c0_66] : memref<3x320x256xbf16, #tpu.memory_space<vmem>>, vector<1x320x256xbf16>
    %85 = vector.shape_cast %84 : vector<1x320x256xbf16> to vector<320x256xbf16>
    %cst_67 = arith.constant dense<0.000000e+00> : vector<24x256xf32>
    %86 = tpu.matmul %83, %85, %cst_67 {dimension_numbers = #tpu.dot_dimension_numbers<[1], [0], [0], [1], [0, 0, 1, 1], [], []>} : vector<24x320xbf16>, vector<320x256xbf16>, vector<24x256xf32> -> vector<24x256xf32>
    %87 = arith.addf %78, %86 : vector<24x256xf32>
    %c1_68 = arith.constant 1 : index
    %c0_69 = arith.constant 0 : index
    %c0_70 = arith.constant 0 : index
    %88 = vector.load %arg7[%c1_68, %c0_69, %c0_70] : memref<3x320x256xbf16, #tpu.memory_space<vmem>>, vector<1x320x256xbf16>
    %89 = vector.shape_cast %88 : vector<1x320x256xbf16> to vector<320x256xbf16>
    %cst_71 = arith.constant dense<0.000000e+00> : vector<24x256xf32>
    %90 = tpu.matmul %83, %89, %cst_71 {dimension_numbers = #tpu.dot_dimension_numbers<[1], [0], [0], [1], [0, 0, 1, 1], [], []>} : vector<24x320xbf16>, vector<320x256xbf16>, vector<24x256xf32> -> vector<24x256xf32>
    %91 = arith.addf %82, %90 : vector<24x256xf32>
    %92 = vector.extract_strided_slice %31 {offsets = [2, 256], sizes = [24, 320], strides = [1, 1]} : vector<26x832xbf16> to vector<24x320xbf16>
    %c2_72 = arith.constant 2 : index
    %c0_73 = arith.constant 0 : index
    %c0_74 = arith.constant 0 : index
    %93 = vector.load %arg6[%c2_72, %c0_73, %c0_74] : memref<3x320x256xbf16, #tpu.memory_space<vmem>>, vector<1x320x256xbf16>
    %94 = vector.shape_cast %93 : vector<1x320x256xbf16> to vector<320x256xbf16>
    %cst_75 = arith.constant dense<0.000000e+00> : vector<24x256xf32>
    %95 = tpu.matmul %92, %94, %cst_75 {dimension_numbers = #tpu.dot_dimension_numbers<[1], [0], [0], [1], [0, 0, 1, 1], [], []>} : vector<24x320xbf16>, vector<320x256xbf16>, vector<24x256xf32> -> vector<24x256xf32>
    %96 = arith.addf %87, %95 : vector<24x256xf32>
    %c2_76 = arith.constant 2 : index
    %c0_77 = arith.constant 0 : index
    %c0_78 = arith.constant 0 : index
    %97 = vector.load %arg7[%c2_76, %c0_77, %c0_78] : memref<3x320x256xbf16, #tpu.memory_space<vmem>>, vector<1x320x256xbf16>
    %98 = vector.shape_cast %97 : vector<1x320x256xbf16> to vector<320x256xbf16>
    %cst_79 = arith.constant dense<0.000000e+00> : vector<24x256xf32>
    %99 = tpu.matmul %92, %98, %cst_79 {dimension_numbers = #tpu.dot_dimension_numbers<[1], [0], [0], [1], [0, 0, 1, 1], [], []>} : vector<24x320xbf16>, vector<320x256xbf16>, vector<24x256xf32> -> vector<24x256xf32>
    %100 = arith.addf %91, %99 : vector<24x256xf32>
    %c0_80 = arith.constant 0 : index
    %c0_81 = arith.constant 0 : index
    %101 = vector.load %arg8[%c0_80, %c0_81] : memref<1x256xf32, #tpu.memory_space<vmem>>, vector<1x256xf32>
    %102 = vector.broadcast %101 : vector<1x256xf32> to vector<24x256xf32>
    %103 = arith.addf %96, %102 : vector<24x256xf32>
    %cst_82 = arith.constant 0.000000e+00 : f32
    %104 = vector.broadcast %cst_82 : f32 to vector<24x256xf32>
    %105 = arith.maximumf %103, %104 : vector<24x256xf32>
    %c0_83 = arith.constant 0 : index
    %c0_84 = arith.constant 0 : index
    %106 = vector.load %arg8[%c0_83, %c0_84] : memref<1x256xf32, #tpu.memory_space<vmem>>, vector<1x256xf32>
    %107 = vector.broadcast %106 : vector<1x256xf32> to vector<24x256xf32>
    %108 = arith.addf %100, %107 : vector<24x256xf32>
    %cst_85 = arith.constant 0.000000e+00 : f32
    %109 = vector.broadcast %cst_85 : f32 to vector<24x256xf32>
    %110 = arith.maximumf %108, %109 : vector<24x256xf32>
    %111 = arith.maximumf %105, %110 : vector<24x256xf32>
    %cst_86 = arith.constant 0.000000e+00 : f32
    %112 = vector.broadcast %cst_86 : f32 to vector<24x256xf32>
    %cst_87 = arith.constant 0.000000e+00 : f32
    %113 = vector.broadcast %cst_87 : f32 to vector<24x256xf32>
    %114 = vector.extract_strided_slice %31 {offsets = [0, 512], sizes = [24, 320], strides = [1, 1]} : vector<26x832xbf16> to vector<24x320xbf16>
    %c0_88 = arith.constant 0 : index
    %c0_89 = arith.constant 0 : index
    %c0_90 = arith.constant 0 : index
    %115 = vector.load %arg6[%c0_88, %c0_89, %c0_90] : memref<3x320x256xbf16, #tpu.memory_space<vmem>>, vector<1x320x256xbf16>
    %116 = vector.shape_cast %115 : vector<1x320x256xbf16> to vector<320x256xbf16>
    %cst_91 = arith.constant dense<0.000000e+00> : vector<24x256xf32>
    %117 = tpu.matmul %114, %116, %cst_91 {dimension_numbers = #tpu.dot_dimension_numbers<[1], [0], [0], [1], [0, 0, 1, 1], [], []>} : vector<24x320xbf16>, vector<320x256xbf16>, vector<24x256xf32> -> vector<24x256xf32>
    %118 = arith.addf %112, %117 : vector<24x256xf32>
    %c0_92 = arith.constant 0 : index
    %c0_93 = arith.constant 0 : index
    %c0_94 = arith.constant 0 : index
    %119 = vector.load %arg7[%c0_92, %c0_93, %c0_94] : memref<3x320x256xbf16, #tpu.memory_space<vmem>>, vector<1x320x256xbf16>
    %120 = vector.shape_cast %119 : vector<1x320x256xbf16> to vector<320x256xbf16>
    %cst_95 = arith.constant dense<0.000000e+00> : vector<24x256xf32>
    %121 = tpu.matmul %114, %120, %cst_95 {dimension_numbers = #tpu.dot_dimension_numbers<[1], [0], [0], [1], [0, 0, 1, 1], [], []>} : vector<24x320xbf16>, vector<320x256xbf16>, vector<24x256xf32> -> vector<24x256xf32>
    %122 = arith.addf %113, %121 : vector<24x256xf32>
    %123 = vector.extract_strided_slice %31 {offsets = [1, 512], sizes = [24, 320], strides = [1, 1]} : vector<26x832xbf16> to vector<24x320xbf16>
    %c1_96 = arith.constant 1 : index
    %c0_97 = arith.constant 0 : index
    %c0_98 = arith.constant 0 : index
    %124 = vector.load %arg6[%c1_96, %c0_97, %c0_98] : memref<3x320x256xbf16, #tpu.memory_space<vmem>>, vector<1x320x256xbf16>
    %125 = vector.shape_cast %124 : vector<1x320x256xbf16> to vector<320x256xbf16>
    %cst_99 = arith.constant dense<0.000000e+00> : vector<24x256xf32>
    %126 = tpu.matmul %123, %125, %cst_99 {dimension_numbers = #tpu.dot_dimension_numbers<[1], [0], [0], [1], [0, 0, 1, 1], [], []>} : vector<24x320xbf16>, vector<320x256xbf16>, vector<24x256xf32> -> vector<24x256xf32>
    %127 = arith.addf %118, %126 : vector<24x256xf32>
    %c1_100 = arith.constant 1 : index
    %c0_101 = arith.constant 0 : index
    %c0_102 = arith.constant 0 : index
    %128 = vector.load %arg7[%c1_100, %c0_101, %c0_102] : memref<3x320x256xbf16, #tpu.memory_space<vmem>>, vector<1x320x256xbf16>
    %129 = vector.shape_cast %128 : vector<1x320x256xbf16> to vector<320x256xbf16>
    %cst_103 = arith.constant dense<0.000000e+00> : vector<24x256xf32>
    %130 = tpu.matmul %123, %129, %cst_103 {dimension_numbers = #tpu.dot_dimension_numbers<[1], [0], [0], [1], [0, 0, 1, 1], [], []>} : vector<24x320xbf16>, vector<320x256xbf16>, vector<24x256xf32> -> vector<24x256xf32>
    %131 = arith.addf %122, %130 : vector<24x256xf32>
    %132 = vector.extract_strided_slice %31 {offsets = [2, 512], sizes = [24, 320], strides = [1, 1]} : vector<26x832xbf16> to vector<24x320xbf16>
    %c2_104 = arith.constant 2 : index
    %c0_105 = arith.constant 0 : index
    %c0_106 = arith.constant 0 : index
    %133 = vector.load %arg6[%c2_104, %c0_105, %c0_106] : memref<3x320x256xbf16, #tpu.memory_space<vmem>>, vector<1x320x256xbf16>
    %134 = vector.shape_cast %133 : vector<1x320x256xbf16> to vector<320x256xbf16>
    %cst_107 = arith.constant dense<0.000000e+00> : vector<24x256xf32>
    %135 = tpu.matmul %132, %134, %cst_107 {dimension_numbers = #tpu.dot_dimension_numbers<[1], [0], [0], [1], [0, 0, 1, 1], [], []>} : vector<24x320xbf16>, vector<320x256xbf16>, vector<24x256xf32> -> vector<24x256xf32>
    %136 = arith.addf %127, %135 : vector<24x256xf32>
    %c2_108 = arith.constant 2 : index
    %c0_109 = arith.constant 0 : index
    %c0_110 = arith.constant 0 : index
    %137 = vector.load %arg7[%c2_108, %c0_109, %c0_110] : memref<3x320x256xbf16, #tpu.memory_space<vmem>>, vector<1x320x256xbf16>
    %138 = vector.shape_cast %137 : vector<1x320x256xbf16> to vector<320x256xbf16>
    %cst_111 = arith.constant dense<0.000000e+00> : vector<24x256xf32>
    %139 = tpu.matmul %132, %138, %cst_111 {dimension_numbers = #tpu.dot_dimension_numbers<[1], [0], [0], [1], [0, 0, 1, 1], [], []>} : vector<24x320xbf16>, vector<320x256xbf16>, vector<24x256xf32> -> vector<24x256xf32>
    %140 = arith.addf %131, %139 : vector<24x256xf32>
    %c0_112 = arith.constant 0 : index
    %c0_113 = arith.constant 0 : index
    %141 = vector.load %arg8[%c0_112, %c0_113] : memref<1x256xf32, #tpu.memory_space<vmem>>, vector<1x256xf32>
    %142 = vector.broadcast %141 : vector<1x256xf32> to vector<24x256xf32>
    %143 = arith.addf %136, %142 : vector<24x256xf32>
    %cst_114 = arith.constant 0.000000e+00 : f32
    %144 = vector.broadcast %cst_114 : f32 to vector<24x256xf32>
    %145 = arith.maximumf %143, %144 : vector<24x256xf32>
    %c0_115 = arith.constant 0 : index
    %c0_116 = arith.constant 0 : index
    %146 = vector.load %arg8[%c0_115, %c0_116] : memref<1x256xf32, #tpu.memory_space<vmem>>, vector<1x256xf32>
    %147 = vector.broadcast %146 : vector<1x256xf32> to vector<24x256xf32>
    %148 = arith.addf %140, %147 : vector<24x256xf32>
    %cst_117 = arith.constant 0.000000e+00 : f32
    %149 = vector.broadcast %cst_117 : f32 to vector<24x256xf32>
    %150 = arith.maximumf %148, %149 : vector<24x256xf32>
    %151 = arith.maximumf %145, %150 : vector<24x256xf32>
    %152 = tpu.concatenate %71, %111, %151 in 1 : vector<24x256xf32>, vector<24x256xf32>, vector<24x256xf32> -> vector<24x768xf32>
    %c0_118 = arith.constant 0 : index
    %c0_119 = arith.constant 0 : index
    %153 = vector.load %arg9[%c0_118, %c0_119] : memref<12x24xf32, #tpu.memory_space<vmem>>, vector<12x24xf32>
    %cst_120 = arith.constant dense<0.000000e+00> : vector<12x768xf32>
    %154 = tpu.matmul %153, %152, %cst_120 {dimension_numbers = #tpu.dot_dimension_numbers<[1], [0], [0], [1], [0, 0, 1, 1], [], []>} : vector<12x24xf32>, vector<24x768xf32>, vector<12x768xf32> -> vector<12x768xf32>
    %c0_121 = arith.constant 0 : index
    %c0_122 = arith.constant 0 : index
    %155 = vector.load %arg10[%c0_121, %c0_122] : memref<12x24xf32, #tpu.memory_space<vmem>>, vector<12x24xf32>
    %cst_123 = arith.constant dense<0.000000e+00> : vector<12x768xf32>
    %156 = tpu.matmul %155, %152, %cst_123 {dimension_numbers = #tpu.dot_dimension_numbers<[1], [0], [0], [1], [0, 0, 1, 1], [], []>} : vector<12x24xf32>, vector<24x768xf32>, vector<12x768xf32> -> vector<12x768xf32>
    %157 = arith.maximumf %154, %156 : vector<12x768xf32>
    %158 = arith.truncf %157 : vector<12x768xf32> to vector<12x768xbf16>
    %c0_124 = arith.constant 0 : index
    %c0_125 = arith.constant 0 : index
    %159 = vector.load %arg11[%c0_124, %c0_125] : memref<768x1536xbf16, #tpu.memory_space<vmem>>, vector<768x1536xbf16>
    %cst_126 = arith.constant dense<0.000000e+00> : vector<12x1536xf32>
    %160 = tpu.matmul %158, %159, %cst_126 {dimension_numbers = #tpu.dot_dimension_numbers<[1], [0], [0], [1], [0, 0, 1, 1], [], []>} : vector<12x768xbf16>, vector<768x1536xbf16>, vector<12x1536xf32> -> vector<12x1536xf32>
    %161 = vector.extract_strided_slice %160 {offsets = [0, 0], sizes = [1, 128], strides = [1, 1]} : vector<12x1536xf32> to vector<1x128xf32>
    %162 = vector.extract_strided_slice %160 {offsets = [1, 128], sizes = [1, 128], strides = [1, 1]} : vector<12x1536xf32> to vector<1x128xf32>
    %163 = vector.extract_strided_slice %160 {offsets = [2, 256], sizes = [1, 128], strides = [1, 1]} : vector<12x1536xf32> to vector<1x128xf32>
    %164 = vector.extract_strided_slice %160 {offsets = [3, 384], sizes = [1, 128], strides = [1, 1]} : vector<12x1536xf32> to vector<1x128xf32>
    %165 = vector.extract_strided_slice %160 {offsets = [4, 512], sizes = [1, 128], strides = [1, 1]} : vector<12x1536xf32> to vector<1x128xf32>
    %166 = vector.extract_strided_slice %160 {offsets = [5, 640], sizes = [1, 128], strides = [1, 1]} : vector<12x1536xf32> to vector<1x128xf32>
    %167 = vector.extract_strided_slice %160 {offsets = [6, 768], sizes = [1, 128], strides = [1, 1]} : vector<12x1536xf32> to vector<1x128xf32>
    %168 = vector.extract_strided_slice %160 {offsets = [7, 896], sizes = [1, 128], strides = [1, 1]} : vector<12x1536xf32> to vector<1x128xf32>
    %169 = vector.extract_strided_slice %160 {offsets = [8, 1024], sizes = [1, 128], strides = [1, 1]} : vector<12x1536xf32> to vector<1x128xf32>
    %170 = vector.extract_strided_slice %160 {offsets = [9, 1152], sizes = [1, 128], strides = [1, 1]} : vector<12x1536xf32> to vector<1x128xf32>
    %171 = vector.extract_strided_slice %160 {offsets = [10, 1280], sizes = [1, 128], strides = [1, 1]} : vector<12x1536xf32> to vector<1x128xf32>
    %172 = vector.extract_strided_slice %160 {offsets = [11, 1408], sizes = [1, 128], strides = [1, 1]} : vector<12x1536xf32> to vector<1x128xf32>
    %173 = arith.addf %161, %162 : vector<1x128xf32>
    %174 = arith.addf %163, %164 : vector<1x128xf32>
    %175 = arith.addf %165, %166 : vector<1x128xf32>
    %176 = arith.addf %167, %168 : vector<1x128xf32>
    %177 = arith.addf %169, %170 : vector<1x128xf32>
    %178 = arith.addf %171, %172 : vector<1x128xf32>
    %179 = arith.addf %173, %174 : vector<1x128xf32>
    %180 = arith.addf %175, %176 : vector<1x128xf32>
    %181 = arith.addf %177, %178 : vector<1x128xf32>
    %182 = arith.addf %179, %180 : vector<1x128xf32>
    %183 = arith.addf %182, %181 : vector<1x128xf32>
    %c0_127 = arith.constant 0 : index
    %c0_128 = arith.constant 0 : index
    %184 = vector.load %arg12[%c0_127, %c0_128] : memref<1x128xf32, #tpu.memory_space<vmem>>, vector<1x128xf32>
    %185 = arith.addf %183, %184 : vector<1x128xf32>
    %cst_129 = arith.constant 0.000000e+00 : f32
    %186 = vector.broadcast %cst_129 : f32 to vector<1x128xf32>
    %187 = arith.maximumf %185, %186 : vector<1x128xf32>
    %c0_130 = arith.constant 0 : index
    %c0_131 = arith.constant 0 : index
    %188 = vector.load %arg13[%c0_130, %c0_131] : memref<128x10xf32, #tpu.memory_space<vmem>>, vector<128x10xf32>
    %cst_132 = arith.constant dense<0.000000e+00> : vector<1x10xf32>
    %189 = tpu.matmul %187, %188, %cst_132 {dimension_numbers = #tpu.dot_dimension_numbers<[1], [0], [0], [1], [0, 0, 1, 1], [], []>} : vector<1x128xf32>, vector<128x10xf32>, vector<1x10xf32> -> vector<1x10xf32>
    %c0_133 = arith.constant 0 : index
    %c0_134 = arith.constant 0 : index
    %190 = vector.load %arg14[%c0_133, %c0_134] : memref<1x10xf32, #tpu.memory_space<vmem>>, vector<1x10xf32>
    %191 = arith.addf %189, %190 : vector<1x10xf32>
    %cst_135 = arith.constant dense<0xFF800000> : vector<1xf32>
    %192 = vector.multi_reduction <maximumf>, %191, %cst_135 [1] : vector<1x10xf32> to vector<1xf32>
    %193 = vector.shape_cast %192 : vector<1xf32> to vector<1x1xf32>
    %194 = vector.broadcast %193 : vector<1x1xf32> to vector<1x10xf32>
    %195 = arith.subf %191, %194 : vector<1x10xf32>
    %196 = math.exp %195 : vector<1x10xf32>
    %cst_136 = arith.constant dense<0.000000e+00> : vector<1xf32>
    %197 = vector.multi_reduction <add>, %196, %cst_136 [1] : vector<1x10xf32> to vector<1xf32>
    %198 = vector.shape_cast %197 : vector<1xf32> to vector<1x1xf32>
    %199 = vector.broadcast %198 : vector<1x1xf32> to vector<1x10xf32>
    %200 = arith.divf %196, %199 : vector<1x10xf32>
    %c0_137 = arith.constant 0 : index
    %c0_138 = arith.constant 0 : index
    %c0_139 = arith.constant 0 : index
    %201 = vector.load %arg15[%c0_137, %c0_138, %c0_139] : memref<1x1x10xf32, #tpu.memory_space<vmem>>, vector<1x1x10xf32>
    %202 = vector.shape_cast %201 : vector<1x1x10xf32> to vector<1x10xf32>
    %203 = vector.shape_cast %200 : vector<1x10xf32> to vector<1x1x10xf32>
    tpu.vector_store %arg15[%c0_137, %c0_138, %c0_139], %203 {strides = array<i32>} : memref<1x1x10xf32, #tpu.memory_space<vmem>>, vector<1x1x10xf32>,
    return
  }
  func.func @transform_0(%arg0: i32) -> (i32, i32, i32) {
    %c0_i32 = arith.constant 0 : i32
    %c0_i32_0 = arith.constant 0 : i32
    %c0_i32_1 = arith.constant 0 : i32
    return %arg0, %c0_i32, %c0_i32_0 : i32, i32, i32
  }
  func.func @transform_1(%arg0: i32) -> (i32, i32) {
    %c0_i32 = arith.constant 0 : i32
    %c0_i32_0 = arith.constant 0 : i32
    %c0_i32_1 = arith.constant 0 : i32
    return %c0_i32, %c0_i32_0 : i32, i32
  }
  func.func @transform_2(%arg0: i32) -> (i32, i32) {
    %c0_i32 = arith.constant 0 : i32
    %c0_i32_0 = arith.constant 0 : i32
    %c0_i32_1 = arith.constant 0 : i32
    return %c0_i32, %c0_i32_0 : i32, i32
  }
  func.func @transform_3(%arg0: i32) -> (i32, i32, i32) {
    %c0_i32 = arith.constant 0 : i32
    %c0_i32_0 = arith.constant 0 : i32
    %c0_i32_1 = arith.constant 0 : i32
    %c0_i32_2 = arith.constant 0 : i32
    return %c0_i32, %c0_i32_0, %c0_i32_1 : i32, i32, i32
  }
  func.func @transform_4(%arg0: i32) -> (i32, i32) {
    %c0_i32 = arith.constant 0 : i32
    %c0_i32_0 = arith.constant 0 : i32
    %c0_i32_1 = arith.constant 0 : i32
    return %c0_i32, %c0_i32_0 : i32, i32
  }
  func.func @transform_5(%arg0: i32) -> (i32, i32, i32) {
    %c0_i32 = arith.constant 0 : i32
    %c0_i32_0 = arith.constant 0 : i32
    %c0_i32_1 = arith.constant 0 : i32
    %c0_i32_2 = arith.constant 0 : i32
    return %c0_i32, %c0_i32_0, %c0_i32_1 : i32, i32, i32
  }
  func.func @transform_6(%arg0: i32) -> (i32, i32, i32) {
    %c0_i32 = arith.constant 0 : i32
    %c0_i32_0 = arith.constant 0 : i32
    %c0_i32_1 = arith.constant 0 : i32
    %c0_i32_2 = arith.constant 0 : i32
    return %c0_i32, %c0_i32_0, %c0_i32_1 : i32, i32, i32
  }
  func.func @transform_7(%arg0: i32) -> (i32, i32) {
    %c0_i32 = arith.constant 0 : i32
    %c0_i32_0 = arith.constant 0 : i32
    %c0_i32_1 = arith.constant 0 : i32
    return %c0_i32, %c0_i32_0 : i32, i32
  }
  func.func @transform_8(%arg0: i32) -> (i32, i32) {
    %c0_i32 = arith.constant 0 : i32
    %c0_i32_0 = arith.constant 0 : i32
    %c0_i32_1 = arith.constant 0 : i32
    return %c0_i32, %c0_i32_0 : i32, i32
  }
  func.func @transform_9(%arg0: i32) -> (i32, i32) {
    %c0_i32 = arith.constant 0 : i32
    %c0_i32_0 = arith.constant 0 : i32
    %c0_i32_1 = arith.constant 0 : i32
    return %c0_i32, %c0_i32_0 : i32, i32
  }
  func.func @transform_10(%arg0: i32) -> (i32, i32) {
    %c0_i32 = arith.constant 0 : i32
    %c0_i32_0 = arith.constant 0 : i32
    %c0_i32_1 = arith.constant 0 : i32
    return %c0_i32, %c0_i32_0 : i32, i32
  }
  func.func @transform_11(%arg0: i32) -> (i32, i32) {
    %c0_i32 = arith.constant 0 : i32
    %c0_i32_0 = arith.constant 0 : i32
    %c0_i32_1 = arith.constant 0 : i32
    return %c0_i32, %c0_i32_0 : i32, i32
  }
  func.func @transform_12(%arg0: i32) -> (i32, i32) {
    %c0_i32 = arith.constant 0 : i32
    %c0_i32_0 = arith.constant 0 : i32
    %c0_i32_1 = arith.constant 0 : i32
    return %c0_i32, %c0_i32_0 : i32, i32
  }
  func.func @transform_13(%arg0: i32) -> (i32, i32) {
    %c0_i32 = arith.constant 0 : i32
    %c0_i32_0 = arith.constant 0 : i32
    %c0_i32_1 = arith.constant 0 : i32
    return %c0_i32, %c0_i32_0 : i32, i32
  }
  func.func @transform_14(%arg0: i32) -> (i32, i32, i32) {
    %c0_i32 = arith.constant 0 : i32
    %c0_i32_0 = arith.constant 0 : i32
    %c0_i32_1 = arith.constant 0 : i32
    return %arg0, %c0_i32, %c0_i32_0 : i32, i32, i32
  }
}

</mosaic_0001>

<bundles_post_ra>
// kernel: forward.1
= control target key start
LH: loop header
LB: loop body
LE: loop exit
PB: predicated region body
PF: predicated region fallthrough
CT: control target
= control target key end

     0   :  { %s19523_s0 = inlined_call_operand.vmem [shape: bf16[2,280,280], index: 0, kind: input, shape index: {}]   ;;  %s19524_s1 = inlined_call_operand.hbm [shape: bf16[28,280], index: 1, kind: input, shape index: {}]   ;;  %s19525_s2 = inlined_call_operand.vmem [shape: bf16[280,28], index: 2, kind: input, shape index: {}]   ;;  %s19526_s3 = inlined_call_operand.hbm [shape: bf16[3,28,832], index: 3, kind: input, shape index: {}]   ;;  %s19527_s4 = inlined_call_operand.hbm [shape: f32[1,832], index: 4, kind: input, shape index: {}]   ;;  %s19528_s5 = inlined_call_operand.vmem [shape: bf16[3,320,256], index: 5, kind: input, shape index: {}]   ;;  %s19529_s6 = inlined_call_operand.hbm [shape: bf16[3,320,256], index: 6, kind: input, shape index: {}]   ;;  %s19530_s7 = inlined_call_operand.hbm [shape: f32[1,256], index: 7, kind: input, shape index: {}]   ;;  %s19531_s8 = inlined_call_operand.hbm [shape: f32[12,24], index: 8, kind: input, shape index: {}]   ;;  %s19532_s9 = inlined_call_operand.hbm [shape: f32[12,24], index: 9, kind: input, shape index: {}]   ;;  %s19533_s10 = inlined_call_operand.vmem [shape: bf16[768,1536], index: 10, kind: input, shape index: {}]   ;;  %s19534_s11 = inlined_call_operand.hbm [shape: f32[1,128], index: 11, kind: input, shape index: {}]   ;;  %s19535_s12 = inlined_call_operand.vmem [shape: f32[128,10], index: 12, kind: input, shape index: {}]   ;;  %s19536_s13 = inlined_call_operand.hbm [shape: f32[1,10], index: 13, kind: input, shape index: {}]   ;;  %s19537_s14 = inlined_call_operand.hbm [shape: f32[2,1,10], index: 14, kind: output, shape index: {}]  }
   0x1   :  { %19762 = sst [smem:[#allocation232_spill]] %s19526_s3 }
   0x2   :  { %19763 = sst [smem:[#allocation233_spill]] %s19529_s6 }
   0x3   :  { %19764 = sst [smem:[#allocation234_spill]] %s19531_s8 }
   0x4   :  { %19765 = sst [smem:[#allocation235_spill]] %s19537_s14 }
   0x5   :  { %19 = vsyncpa [#allocation3], 0 }
   0x6   :  { %20 = vsyncpa [#allocation6], 0 }
   0x7   :  { %21 = vsyncpa [#allocation9], 0 }
   0x8   :  { %22 = vsyncpa [#allocation12], 0 }
   0x9   :  { %23 = vsyncpa [#allocation15], 0 }
   0xa   :  { %24 = vsyncpa [#allocation4], 0 }
   0xb   :  { %26 = vsyncpa [#allocation4 + $0x1], 0  ;;  %s14921_s29 = smov 0   ;;  %s14923_s30 = smov 0  }
   0xc   :  { %s14925_s15 = smov 0   ;;  %s14927_s16 = smov 0  }
   0xd LB: > { %19766 = sst [smem:[#allocation24_spill]] %s14812_s29  ;;  %s14942_s17 = sadd.s32 4294967295, %s14824_s16   ;;  %s14824_s16 = sphi %s14927_s16, %s20206_s16   ;;  %s14820_s15 = sphi %s14925_s15, %s20209_s15   ;;  %s14816_s30 = sphi %s14923_s30, %s20208_s30   ;;  %s14812_s29 = sphi %s14921_s29, %s20207_s29  }
   0xe   : > { %19767 = sst [smem:[#allocation25_spill]] %s14816_s30  ;;  %s11185_s18 = sadd.s32 4294967294, %s14824_s16  }
   0xf   : > { %19768 = sst [smem:[#allocation26_spill]] %s14820_s15  ;;  %s14946_s19 = sadd.s32 1, %s14824_s16  }
  0x10   : > { %19769 = sst [smem:[#allocation27_spill]] %s14824_s16  ;;  %s338_s20 = sadd.s32 1, %s14820_s15 }
  0x11   : > { %19770 = sst [smem:[#allocation28_spill]] %s14946_s19  ;;  %s335_s21 = ssub.s32 %s14824_s16, %s14946_s19 }
  0x12   : > { %p348_p0 = scmp.ne.s32.totalorder %s14820_s15, %s14816_s30  ;;  %p336_p1 = scmp.eq.s32.totalorder %s335_s21, 0 }
  0x13   : > { %p349_p2 = scmp.eq.s32.totalorder %s14942_s17, 1  ;;  %p354_p3 = scmp.ne.s32.totalorder %s14816_s30, %s14812_s29 }
  0x14   : > { %p355_p4 = scmp.eq.s32.totalorder %s11185_s18, 1  ;;  %p11186_p7 = scmp.ge.s32.totalorder %s14824_s16, 1 }
  0x15   : > { %s14957_s22 = scalar_select %p336_p1, %s14820_s15, %s338_s20  }
  0x16   : > { %p14959_p5 = por %p349_p2, %p348_p0  ;;  %p14963_p6 = por %p355_p4, %p354_p3 }
  0x17   : > { %19771 = sst [smem:[#allocation29_spill]] %s14957_s22  ;;  %p362_p8 = scmp.lt.s32.totalorder %s14824_s16, 3 }
  0x18   : > { %s19772_s23 = scalar_select %p14959_p5, 1, 0 }
  0x19   : > { %s19774_s24 = scalar_select %p14963_p6, 1, 0 }
  0x1a   : > { %19773 = sst [smem:[#allocation30_spill]] %s19772_s23  ;;  %p19543_p9 = scmp.eq.s32.totalorder %s14942_s17, 0 }
  0x1b   : > { %19775 = sst [smem:[#allocation31_spill]] %s19774_s24  ;;  %p14970_p10 = pnand %p11186_p7, %p362_p8 }
  0x1c   : > { %s14826_s26 = smov [#allocation5]   ;;  %s14827_s18 = smov [#allocation8]  }
  0x1d   : > { %s19776_s25 = scalar_select %p14970_p10, 1, 0 }
  0x1e   : > { %s390_s27 = sshll.u32 %s14826_s26, 4  ;;  %p12763_p11 = pneg %p14970_p10  ;;  %s391_s27 = int_to_ptr.vmem [resolvable:$true] %s390_s27 }
  0x1f   : > { %s417_s20 = sshll.u32 %s14827_s18, 4  ;;  %s19778_s3 = sld [smem:[#allocation232_spill]]  ;;  %s14982_s20 = int_to_ptr.vmem [resolvable:$true] %s417_s20 }
  0x20   : > { %p14978_p12 = pnand %p19543_p9, %p12763_p11 }
  0x22   : > { %p14992_p0 = pneg %p14978_p12 }
  0x25   : > { %s14490_s15 = scalar_lea.hbm %s19778_s3, 5376 }
  0x26   : > { %p14491_p13 = scmp.ne.s32.totalorder %s19778_s3, %s14490_s15  ;;  %p14497_p3 = scmp.lt.u32.totalorder %s14490_s15, %s19778_s3 }
  0x28   : > { %p14493_p1 = pnand %p14992_p0, %p14491_p13 }
  0x2a   : > { %p14494_p2 = pneg %p14493_p1 }
  0x2c   : > { %p14499_p4 = pnand %p14497_p3, %p14494_p2 }
  0x2e   : > { %14502 = shalt.err (!%p14499_p4)
}
  0x2f   : > { %s14503_s22 = scalar_lea.vmem %s391_s27, 5376  ;;  %p14511_p9 = scmp.lt.s32.totalorder %s391_s27, %s391_s27 }
  0x30   : > { %p14504_p7 = scmp.ne.s32.totalorder %s391_s27, %s14503_s22  ;;  %p14512_p6 = scmp.lt.s32.totalorder %s14503_s22, %s14503_s22 }
  0x32   : > { %p14506_p8 = pnand %p14504_p7, %p14992_p0  ;;  %p14513_p5 = por %p14512_p6, %p14511_p9 }
  0x34   : > { %p14507_p11 = pneg %p14506_p8 }
  0x36   : > { %p14514_p10 = pnand %p14513_p5, %p14507_p11 }
  0x38   : > { %14517 = shalt.err (!%p14514_p10)
}
  0x39   : > { %s14828_s19 = smov 448   ;;  %s14829_s24 = smov 28  }
  0x3a   : > { %12769 = dma.hbm_to_vmem [thread:$0]  (!%p14978_p12), %s19778_s3, 5376, %s391_s27, [#allocation6], %s14828_s19, %s14828_s19, %s14829_s24  }
  0x3b   : > { %s19780_s6 = sld [smem:[#allocation233_spill]] }
  0x41   : > { %s14518_s16 = scalar_lea.hbm %s19780_s6, 15360 }
  0x42   : > { %p14519_p13 = scmp.ne.s32.totalorder %s19780_s6, %s14518_s16  ;;  %p14525_p9 = scmp.lt.u32.totalorder %s14518_s16, %s19780_s6 }
  0x44   : > { %p14521_p5 = pnand %p14519_p13, %p14992_p0 }
  0x46   : > { %p14522_p6 = pneg %p14521_p5 }
  0x48   : > { %p14527_p10 = pnand %p14525_p9, %p14522_p6 }
  0x4a   : > { %14530 = shalt.err (!%p14527_p10)
}
  0x4b   : > { %s14531_s27 = scalar_lea.vmem %s14982_s20, 15360  ;;  %p14539_p4 = scmp.lt.s32.totalorder %s14982_s20, %s14982_s20 }
  0x4c   : > { %p14532_p1 = scmp.ne.s32.totalorder %s14982_s20, %s14531_s27  ;;  %p14540_p7 = scmp.lt.s32.totalorder %s14531_s27, %s14531_s27 }
  0x4e   : > { %p14534_p2 = pnand %p14532_p1, %p14992_p0  ;;  %p14541_p8 = por %p14540_p7, %p14539_p4 }
  0x50   : > { %p14535_p3 = pneg %p14534_p2 }
  0x52   : > { %p14542_p11 = pnand %p14541_p8, %p14535_p3 }
  0x54   : > { %14545 = shalt.err (!%p14542_p11)
}
  0x55   : > { %s19551_s14 = smov 128   ;;  %s19552_s30 = smov 8  }
  0x56   : > { %12775 = dma.hbm_to_vmem [thread:$0]  (!%p14978_p12), %s19780_s6, 15360, %s14982_s20, [#allocation9], %s19551_s14, %s19551_s14, %s19552_s30  }
  0x57   : > { %s14832_s19 = smov [#allocation11]   ;;  %s14833_s29 = smov [#allocation14]  }
  0x58   : > { %s441_s24 = sshll.u32 %s14832_s19, 4  ;;  %s471_s15 = sshll.u32 %s14833_s29, 4  ;;  %s442_s24 = int_to_ptr.vmem [resolvable:$true] %s441_s24  ;;  %s15034_s15 = int_to_ptr.vmem [resolvable:$true] %s471_s15 }
  0x59   : > { %s19781_s8 = sld [smem:[#allocation234_spill]] }
  0x5f   : > { %s14546_s22 = scalar_lea.hbm %s19781_s8, 256 }
  0x60   : > { %p14547_p13 = scmp.ne.s32.totalorder %s19781_s8, %s14546_s22  ;;  %p14553_p9 = scmp.lt.u32.totalorder %s14546_s22, %s19781_s8 }
  0x62   : > { %p14549_p5 = pnand %p14547_p13, %p14992_p0 }
  0x64   : > { %p14550_p6 = pneg %p14549_p5 }
  0x66   : > { %p14555_p10 = pnand %p14553_p9, %p14550_p6 }
  0x68   : > { %14558 = shalt.err (!%p14555_p10)
}
  0x69   : > { %s14559_s23 = scalar_lea.vmem %s442_s24, 256  ;;  %p14567_p4 = scmp.lt.s32.totalorder %s442_s24, %s442_s24 }
  0x6a   : > { %p14560_p1 = scmp.ne.s32.totalorder %s442_s24, %s14559_s23  ;;  %p14568_p7 = scmp.lt.s32.totalorder %s14559_s23, %s14559_s23 }
  0x6c   : > { %p14562_p2 = pnand %p14560_p1, %p14992_p0  ;;  %p14569_p8 = por %p14568_p7, %p14567_p4 }
  0x6e   : > { %p14563_p3 = pneg %p14562_p2 }
  0x70   : > { %p14570_p11 = pnand %p14569_p8, %p14563_p3 }
  0x72   : > { %14573 = shalt.err (!%p14570_p11)
}
  0x73   : > { %12781 = dma.hbm_to_vmem [thread:$0]  (!%p14978_p12), %s19781_s8, 256, %s442_s24, [#allocation12], %s19551_s14, %s19551_s14, %s19552_s30  }
  0x74   : > { %s14574_s18 = scalar_lea.hbm %s19534_s11, 16 }
  0x75   : > { %p14575_p13 = scmp.ne.s32.totalorder %s19534_s11, %s14574_s18  ;;  %p14581_p9 = scmp.lt.u32.totalorder %s14574_s18, %s19534_s11 }
  0x77   : > { %p14577_p5 = pnand %p14575_p13, %p14992_p0 }
  0x79   : > { %p14578_p6 = pneg %p14577_p5 }
  0x7b   : > { %p14583_p10 = pnand %p14581_p9, %p14578_p6 }
  0x7d   : > { %14586 = shalt.err (!%p14583_p10)
}
  0x7e   : > { %s14587_s24 = scalar_lea.vmem %s15034_s15, 16  ;;  %s14594_s23 = scalar_lea.vmem %s15034_s15, 32 }
  0x7f   : > { %p14588_p1 = scmp.ne.s32.totalorder %s15034_s15, %s14587_s24  ;;  %p14595_p4 = scmp.lt.s32.totalorder %s15034_s15, %s15034_s15 }
  0x80   : > { %p14596_p7 = scmp.lt.s32.totalorder %s14594_s23, %s14587_s24 }
  0x81   : > { %p14590_p2 = pnand %p14588_p1, %p14992_p0 }
  0x82   : > { %p14597_p8 = por %p14596_p7, %p14595_p4 }
  0x83   : > { %p14591_p3 = pneg %p14590_p2 }
  0x85   : > { %p14598_p11 = pnand %p14597_p8, %p14591_p3 }
  0x87   : > { %14601 = shalt.err (!%p14598_p11)
}
  0x88   : > { %12787 = dma.hbm_to_vmem [thread:$0]  (!%p14978_p12), %s19534_s11, 16, %s15034_s15, [#allocation15]  }
  0x89   : > { %s14834_s29 = smov [#allocation2]   ;;  %s14602_s27 = scalar_lea.hbm %s19524_s1, 768 }
  0x8a   : > { %s374_s21 = sshll.u32 %s14834_s29, 4  ;;  %p14603_p13 = scmp.ne.s32.totalorder %s19524_s1, %s14602_s27  ;;  %s375_s21 = int_to_ptr.vmem [resolvable:$true] %s374_s21 }
  0x8b   : > { %p14609_p9 = scmp.lt.u32.totalorder %s14602_s27, %s19524_s1 }
  0x8c   : > { %p14605_p5 = pnand %p14603_p13, %p14992_p0 }
  0x8e   : > { %p14606_p6 = pneg %p14605_p5 }
  0x90   : > { %p14611_p10 = pnand %p14609_p9, %p14606_p6 }
  0x92   : > { %14614 = shalt.err (!%p14611_p10)
}
  0x93   : > { %s14615_s15 = scalar_lea.vmem %s375_s21, 768  ;;  %p14623_p4 = scmp.lt.s32.totalorder %s375_s21, %s375_s21 }
  0x94   : > { %p14616_p1 = scmp.ne.s32.totalorder %s375_s21, %s14615_s15  ;;  %p14624_p7 = scmp.lt.s32.totalorder %s14615_s15, %s14615_s15 }
  0x96   : > { %p14618_p2 = pnand %p14616_p1, %p14992_p0  ;;  %p14625_p8 = por %p14624_p7, %p14623_p4 }
  0x98   : > { %p14619_p3 = pneg %p14618_p2 }
  0x9a   : > { %p14626_p11 = pnand %p14625_p8, %p14619_p3 }
  0x9c   : > { %14629 = shalt.err (!%p14626_p11)
}
  0x9d   : > { %s14835_s3 = smov 192   ;;  %s14836_s19 = smov 12  }
  0x9e   : > { %12766 = dma.hbm_to_vmem [thread:$0]  (!%p14978_p12), %s19524_s1, 768, %s375_s21, [#allocation3], %s14835_s3, %s14835_s3, %s14836_s19  }
  0x9f   : > { %s14837_s22 = smov [#allocation7]   ;;  %s14838_s16 = smov [#allocation10]  }
  0xa0   : > { %s404_s27 = sshll.u32 %s14837_s22, 4  ;;  %s431_s20 = sshll.u32 %s14838_s16, 4  ;;  %s405_s27 = int_to_ptr.vmem [resolvable:$true] %s404_s27  ;;  %s432_s20 = int_to_ptr.vmem [resolvable:$true] %s431_s20 }
  0xa1   : > { %s14630_s15 = scalar_lea.hbm %s19527_s4, 112 }
  0xa2   : > { %p14631_p13 = scmp.ne.s32.totalorder %s19527_s4, %s14630_s15  ;;  %p14637_p9 = scmp.lt.u32.totalorder %s14630_s15, %s19527_s4 }
  0xa4   : > { %p14633_p5 = pnand %p14631_p13, %p14992_p0 }
  0xa6   : > { %p14634_p6 = pneg %p14633_p5 }
  0xa8   : > { %p14639_p10 = pnand %p14637_p9, %p14634_p6 }
  0xaa   : > { %14642 = shalt.err (!%p14639_p10)
}
  0xab   : > { %s14643_s21 = scalar_lea.vmem %s405_s27, 112  ;;  %s14650_s3 = scalar_lea.vmem %s405_s27, 128 }
  0xac   : > { %p14644_p1 = scmp.ne.s32.totalorder %s405_s27, %s14643_s21  ;;  %p14651_p4 = scmp.lt.s32.totalorder %s405_s27, %s405_s27 }
  0xad   : > { %p14652_p7 = scmp.lt.s32.totalorder %s14650_s3, %s14643_s21 }
  0xae   : > { %p14646_p2 = pnand %p14644_p1, %p14992_p0 }
  0xaf   : > { %p14653_p8 = por %p14652_p7, %p14651_p4 }
  0xb0   : > { %p14647_p3 = pneg %p14646_p2 }
  0xb2   : > { %p14654_p11 = pnand %p14653_p8, %p14647_p3 }
  0xb4   : > { %14657 = shalt.err (!%p14654_p11)
}
  0xb5   : > { %12772 = dma.hbm_to_vmem [thread:$0]  (!%p14978_p12), %s19527_s4, 112, %s405_s27, [#allocation6]  }
  0xb6   : > { %s14658_s19 = scalar_lea.hbm %s19530_s7, 32 }
  0xb7   : > { %p14659_p13 = scmp.ne.s32.totalorder %s19530_s7, %s14658_s19  ;;  %p14665_p9 = scmp.lt.u32.totalorder %s14658_s19, %s19530_s7 }
  0xb9   : > { %p14661_p5 = pnand %p14659_p13, %p14992_p0 }
  0xbb   : > { %p14662_p6 = pneg %p14661_p5 }
  0xbd   : > { %p14667_p10 = pnand %p14665_p9, %p14662_p6 }
  0xbf   : > { %14670 = shalt.err (!%p14667_p10)
}
  0xc0   : > { %s14671_s24 = scalar_lea.vmem %s432_s20, 32  ;;  %p14679_p4 = scmp.lt.s32.totalorder %s432_s20, %s432_s20 }
  0xc1   : > { %p14672_p1 = scmp.ne.s32.totalorder %s432_s20, %s14671_s24  ;;  %p14680_p7 = scmp.lt.s32.totalorder %s14671_s24, %s14671_s24 }
  0xc3   : > { %p14674_p2 = pnand %p14672_p1, %p14992_p0  ;;  %p14681_p8 = por %p14680_p7, %p14679_p4 }
  0xc5   : > { %p14675_p3 = pneg %p14674_p2 }
  0xc7   : > { %p14682_p11 = pnand %p14681_p8, %p14675_p3 }
  0xc9   : > { %14685 = shalt.err (!%p14682_p11)
}
  0xca   : > { %12778 = dma.hbm_to_vmem [thread:$0]  (!%p14978_p12), %s19530_s7, 32, %s432_s20, [#allocation9]  }
  0xcb   : > { %s14839_s15 = smov [#allocation13]   ;;  %s14840_s3 = smov [#allocation16]  }
  0xcc   : > { %s454_s21 = sshll.u32 %s14839_s15, 4  ;;  %s485_s14 = sshll.u32 %s14840_s3, 4  ;;  %s455_s21 = int_to_ptr.vmem [resolvable:$true] %s454_s21  ;;  %s486_s14 = int_to_ptr.vmem [resolvable:$true] %s485_s14 }
  0xcd   : > { %s14686_s8 = scalar_lea.hbm %s19532_s9, 256 }
  0xce   : > { %p14687_p13 = scmp.ne.s32.totalorder %s19532_s9, %s14686_s8  ;;  %p14693_p9 = scmp.lt.u32.totalorder %s14686_s8, %s19532_s9 }
  0xd0   : > { %p14689_p5 = pnand %p14687_p13, %p14992_p0 }
  0xd2   : > { %p14690_p6 = pneg %p14689_p5 }
  0xd4   : > { %p14695_p10 = pnand %p14693_p9, %p14690_p6 }
  0xd6   : > { %14698 = shalt.err (!%p14695_p10)
}
  0xd7   : > { %s14699_s20 = scalar_lea.vmem %s455_s21, 256  ;;  %p14707_p4 = scmp.lt.s32.totalorder %s455_s21, %s455_s21 }
  0xd8   : > { %p14700_p1 = scmp.ne.s32.totalorder %s455_s21, %s14699_s20  ;;  %p14708_p7 = scmp.lt.s32.totalorder %s14699_s20, %s14699_s20 }
  0xda   : > { %p14702_p2 = pnand %p14700_p1, %p14992_p0  ;;  %p14709_p8 = por %p14708_p7, %p14707_p4 }
  0xdc   : > { %p14703_p3 = pneg %p14702_p2 }
  0xde   : > { %p14710_p11 = pnand %p14709_p8, %p14703_p3 }
  0xe0   : > { %14713 = shalt.err (!%p14710_p11)
}
  0xe1   : > { %s19782_s16 = smov 8   ;;  %s19783_s24 = smov 128  }
  0xe2   : > { %12784 = dma.hbm_to_vmem [thread:$0]  (!%p14978_p12), %s19532_s9, 256, %s455_s21, [#allocation12], %s19783_s24, %s19783_s24, %s19782_s16  }
  0xe3   : > { %s14714_s30 = scalar_lea.hbm %s19536_s13, 16 }
  0xe4   : > { %p14715_p13 = scmp.ne.s32.totalorder %s19536_s13, %s14714_s30  ;;  %p14721_p9 = scmp.lt.u32.totalorder %s14714_s30, %s19536_s13 }
  0xe6   : > { %p14717_p5 = pnand %p14715_p13, %p14992_p0 }
  0xe8   : > { %p14718_p6 = pneg %p14717_p5 }
  0xea   : > { %p14723_p10 = pnand %p14721_p9, %p14718_p6 }
  0xec   : > { %14726 = shalt.err (!%p14723_p10)
}
  0xed   : > { %s14727_s18 = scalar_lea.vmem %s486_s14, 16  ;;  %s14734_s21 = scalar_lea.vmem %s486_s14, 32 }
  0xee   : > { %p14728_p1 = scmp.ne.s32.totalorder %s486_s14, %s14727_s18  ;;  %p14735_p4 = scmp.lt.s32.totalorder %s486_s14, %s486_s14 }
  0xef   : > { %p14736_p7 = scmp.lt.s32.totalorder %s14734_s21, %s14727_s18 }
  0xf0   : > { %p14730_p2 = pnand %p14728_p1, %p14992_p0 }
  0xf1   : > { %p14737_p8 = por %p14736_p7, %p14735_p4 }
  0xf2   : > { %p14731_p3 = pneg %p14730_p2 }
  0xf4   : > { %p14738_p11 = pnand %p14737_p8, %p14731_p3 }
  0xf6   : > { %14741 = shalt.err (!%p14738_p11)
}
  0xf7   : > { %12790 = dma.hbm_to_vmem [thread:$0]  (!%p14978_p12), %s19536_s13, 16, %s486_s14, [#allocation15]  }
  0xf8   : > { %p19784_p13 = scmp.ne.s32.totalorder %s19776_s25, 0 }
  0xfa   : > { %506 = sbr.rel (%p19784_p13) target bundleno = 3536 (0xdd0), region = 76 }
 0x101   : > { %p19785_p5 = scmp.eq.s32.totalorder %s14942_s17, 0 }
 0x103   : > { %14787 = dma.done.wait (%p19785_p5), [#allocation3], 768   ;;  %p19786_p0 = pmov %p19785_p5 }
 0x105   : > { %14789 = vsyncadd (%p19786_p0), [#allocation3], 4294966528  ;;  %p19787_p6 = pmov %p19786_p0 }
 0x106   : > { %p19788_p9 = pmov %p19786_p0 }
 0x107   : > { %14791 = dma.done.wait (%p19787_p6), [#allocation6], 5488  }
 0x108   : > { %14793 = vsyncadd (%p19788_p9), [#allocation6], 4294961808  ;;  %p19789_p10 = pmov %p19786_p0 }
 0x109   : > { %p19790_p12 = pmov %p19786_p0 }
 0x10a   : > { %14795 = dma.done.wait (%p19789_p10), [#allocation9], 15392  }
 0x10b   : > { %14797 = vsyncadd (%p19790_p12), [#allocation9], 4294951904  ;;  %p19791_p1 = pmov %p19786_p0 }
 0x10c   : > { %p19792_p2 = pmov %p19786_p0 }
 0x10d   : > { %14799 = dma.done.wait (%p19791_p1), [#allocation12], 512  }
 0x10e   : > { %14801 = vsyncadd (%p19792_p2), [#allocation12], 4294966784  ;;  %p19793_p3 = pmov %p19786_p0 }
 0x10f   : > { %p19794_p4 = pmov %p19786_p0 }
 0x110   : > { %14803 = dma.done.wait (%p19793_p3), [#allocation15], 32  }
 0x111   : > { %14805 = vsyncadd (%p19794_p4), [#allocation15], 4294967264  ;;  %p583_p7 = scmp.lt.s32.totalorder %s14942_s17, 1  ;;  %v12921_v23 = vld [vmem:[#allocation2 + $0x4] ss:$12 sps:$4 sm:$0xff]   ;;  %v12946_v49 = vld [vmem:[%s19525_s2 + $0x48] sm:$0xff]  }
 0x112   : > { %1026 = vmatprep.mubr.bf16.mxu0 %v12921_v23  ;;  %1132 = vmatprep.mubr.bf16.mxu1 %v12921_v23  ;;  %v12944_v44 = vld [vmem:[%s19525_s2 + $0x40] sm:$0xff]   ;;  %v12929_v47 = vld [vmem:[#allocation2 + $0x1c] ss:$12 sps:$4 sm:$0x3f]   ;;  %v12948_v53 = vld [vmem:[%s19525_s2 + $0x50] sm:$0xff]   ;;  %vm984_vm0 = vcmask 1043456  }
 0x113   : > { %s584_s25 = scalar_select %p583_p7, %s14942_s17, 1  ;;  %v12919_v46 = vld [vmem:[#allocation2] ss:$12 sps:$4 sm:$0xff]   ;;  %v12931_v56 = vld [vmem:[#allocation2 + $0x18] ss:$12 sps:$4 sm:$0x3f]  }
 0x114   : > { %v12945_v48 = vld [vmem:[%s19525_s2] sm:$0xff]   ;;  %v12947_v52 = vld [vmem:[%s19525_s2 + $0x8] sm:$0xff]   ;;  %v12949_v57 = vld [vmem:[%s19525_s2 + $0x10] sm:$0xff]   ;;  %vm977_vm1 = vcmask 195584   ;;  %vm1578_vm2 = vcmask 1045504   ;;  %vm2125_vm3 = vcmask 1046528  }
 0x115   : > { %s12724_s28 = smul.u32 420, %s584_s25  ;;  %v12950_v59 = vld [vmem:[%s19525_s2 + $0x58] sm:$0xff]   ;;  %v12952_v63 = vld [vmem:[%s19525_s2 + $0x60] sm:$0xff]   ;;  %vm1490_vm4 = vsmask.f32 7424  ;;  %vm1571_vm5 = vcmask 228352  }
 0x116   : > { %v12951_v61 = vld [vmem:[%s19525_s2 + $0x18] sm:$0xff]   ;;  %vm2934_vm6 = vcmask 523264   ;;  %vm14844_vm7 = vmmov 0   ;;  %s20198_s29 = sld [smem:[#allocation25_spill]]  ;;  %vm11016_vm8 = vcmask 73728   ;;  %s20199_s18 = sld [smem:[#allocation30_spill]] }
 0x117   : > { %s15201_s16 = scalar_lea.vmem %s19523_s0, %s12724_s28  ;;  %s12316_s22 = sshll.u32 %s14942_s17, 4 }
 0x118   : > { %v12865_v0 = vld [vmem:[%s15201_s16 + $0x4] ss:$12 sps:$4 sm:$0xff]   ;;  %v12867_v1 = vld [vmem:[%s15201_s16] ss:$12 sps:$4 sm:$0xff]   ;;  %v12868_v2 = vld [vmem:[%s15201_s16 + $0x1c] ss:$12 sps:$4 sm:$0xff]  }
 0x119   : > { %994 = vmatprep.subr.bf16.mxu0 %v12865_v0  ;;  %v12870_v3 = vld [vmem:[%s15201_s16 + $0x18] ss:$12 sps:$4 sm:$0xff]   ;;  %v12871_v4 = vld [vmem:[%s15201_s16 + $0x34] ss:$12 sps:$4 sm:$0xff]   ;;  %v12873_v5 = vld [vmem:[%s15201_s16 + $0x30] ss:$12 sps:$4 sm:$0xff]  }
 0x11a   : > { %995 = vmatpush1.bf16.msra.mxu0 %v12867_v1  ;;  %v12874_v6 = vld [vmem:[%s15201_s16 + $0x4c] ss:$12 sps:$4 sm:$0xff]   ;;  %v12876_v7 = vld [vmem:[%s15201_s16 + $0x48] ss:$12 sps:$4 sm:$0xff]   ;;  %v12877_v8 = vld [vmem:[%s15201_s16 + $0x64] ss:$12 sps:$4 sm:$0xff]  }
 0x11b   : > { %996 = vmatprep.subr.bf16.mxu0 %v12868_v2  ;;  %v12879_v9 = vld [vmem:[%s15201_s16 + $0x60] ss:$12 sps:$4 sm:$0xff]   ;;  %v12880_v10 = vld [vmem:[%s15201_s16 + $0x7c] ss:$12 sps:$4 sm:$0xff]   ;;  %v12882_v11 = vld [vmem:[%s15201_s16 + $0x78] ss:$12 sps:$4 sm:$0xff]  }
 0x11c   : > { %v12883_v12 = vld [vmem:[%s15201_s16 + $0x94] ss:$12 sps:$4 sm:$0xff]   ;;  %v12885_v15 = vld [vmem:[%s15201_s16 + $0x90] ss:$12 sps:$4 sm:$0xff]   ;;  %v12886_v18 = vld [vmem:[%s15201_s16 + $0xac] ss:$12 sps:$4 sm:$0xff]  }
 0x11d   : > { %v12906_v13 = vld [vmem:[%s15201_s16 + $0xc8] ss:$12 sps:$4 sm:$0xff]   ;;  %v12911_v16 = vld [vmem:[%s15201_s16 + $0xe0] ss:$12 sps:$4 sm:$0xff]   ;;  %v12916_v19 = vld [vmem:[%s15201_s16 + $0xf8] ss:$12 sps:$4 sm:$0xff]  }
 0x11e   : > { %997 = vmatpush1.bf16.msra.mxu0 %v12870_v3  ;;  %v12908_v14 = vld [vmem:[%s15201_s16 + $0x8] ss:$12 sps:$4 sm:$0xff]   ;;  %12319 = vmatprep.subr.bf16.mxu1 %v12906_v13  ;;  %v12913_v17 = vld [vmem:[%s15201_s16 + $0x20] ss:$12 sps:$4 sm:$0xff]   ;;  %v12918_v21 = vld [vmem:[%s15201_s16 + $0x38] ss:$12 sps:$4 sm:$0xff]  }
 0x11f   : > { %998 = vmatprep.subr.bf16.mxu0 %v12871_v4  ;;  %12320 = vmatpush3.bf16.msra.mxu1 %v12908_v14  ;;  %v12888_v20 = vld [vmem:[%s15201_s16 + $0xa8] ss:$12 sps:$4 sm:$0xff]   ;;  %v12889_v22 = vld [vmem:[%s15201_s16 + $0xc4] ss:$12 sps:$4 sm:$0xff]   ;;  %v12891_v24 = vld [vmem:[%s15201_s16 + $0xc0] ss:$12 sps:$4 sm:$0xff]  }
 0x120   : > { %12321 = vmatprep.subr.bf16.mxu1 %v12911_v16  ;;  %v12922_v25 = vld [vmem:[%s15201_s16 + $0x110] ss:$12 sps:$4 sm:$0xff]   ;;  %v12924_v27 = vld [vmem:[%s15201_s16 + $0x128] ss:$12 sps:$4 sm:$0xff]   ;;  %v12894_v30 = vld [vmem:[%s15201_s16 + $0xd8] ss:$12 sps:$4 sm:$0xff]  }
 0x121   : > { %v12923_v26 = vld [vmem:[%s15201_s16 + $0x50] ss:$12 sps:$4 sm:$0xff]   ;;  %v12925_v29 = vld [vmem:[%s15201_s16 + $0x68] ss:$12 sps:$4 sm:$0xff]   ;;  %v12932_v32 = vld [vmem:[%s15201_s16 + $0x140] ss:$12 sps:$4 sm:$0xff]  }
 0x122   : > { %999 = vmatpush1.bf16.msra.mxu0 %v12873_v5  ;;  %v12892_v28 = vld [vmem:[%s15201_s16 + $0xdc] ss:$12 sps:$4 sm:$0xff]   ;;  %v12895_v31 = vld [vmem:[%s15201_s16 + $0xf4] ss:$12 sps:$4 sm:$0xff]   ;;  %v12935_v35 = vld [vmem:[%s15201_s16 + $0x158] ss:$12 sps:$4 sm:$0xff]  }
 0x123   : > { %1000 = vmatprep.subr.bf16.mxu0 %v12874_v6  ;;  %12322 = vmatpush3.bf16.msra.mxu1 %v12913_v17  ;;  %v12897_v33 = vld [vmem:[%s15201_s16 + $0xf0] ss:$12 sps:$4 sm:$0xff]   ;;  %v12933_v34 = vld [vmem:[%s15201_s16 + $0x80] ss:$12 sps:$4 sm:$0xff]   ;;  %v12900_v37 = vld [vmem:[%s15201_s16 + $0x108] ss:$12 sps:$4 sm:$0xff]  }
 0x124   : > { %12323 = vmatprep.subr.bf16.mxu1 %v12916_v19  ;;  %v12898_v36 = vld [vmem:[%s15201_s16 + $0x10c] ss:$12 sps:$4 sm:$0xff]   ;;  %v12901_v38 = vld [vmem:[%s15201_s16 + $0x124] ss:$12 sps:$4 sm:$0xff]   ;;  %v12904_v43 = vld [vmem:[%s15201_s16 + $0x13c] ss:$12 sps:$4 sm:$0xff]  }
 0x125   : > { %v12937_v39 = vld [vmem:[%s15201_s16 + $0x98] ss:$12 sps:$4 sm:$0xff]   ;;  %v12939_v40 = vld [vmem:[%s15201_s16 + $0x170] ss:$12 sps:$4 sm:$0xff]   ;;  %v12903_v41 = vld [vmem:[%s15201_s16 + $0x120] ss:$12 sps:$4 sm:$0xff]  }
 0x126   : > { %1001 = vmatpush1.bf16.msra.mxu0 %v12876_v7  ;;  %v12940_v42 = vld [vmem:[%s15201_s16 + $0xb0] ss:$12 sps:$4 sm:$0xff]   ;;  %v12907_v45 = vld [vmem:[%s15201_s16 + $0x138] ss:$12 sps:$4 sm:$0xff]   ;;  %v12909_v50 = vld [vmem:[%s15201_s16 + $0x154] ss:$12 sps:$4 sm:$0xff]  }
 0x127   : > { %1002 = vmatprep.subr.bf16.mxu0 %v12877_v8  ;;  %12324 = vmatpush3.bf16.msra.mxu1 %v12918_v21  ;;  %v12912_v51 = vld [vmem:[%s15201_s16 + $0x150] ss:$12 sps:$4 sm:$0xff]   ;;  %v12914_v54 = vld [vmem:[%s15201_s16 + $0x16c] ss:$12 sps:$4 sm:$0xff]   ;;  %v12917_v55 = vld [vmem:[%s15201_s16 + $0x168] ss:$12 sps:$4 sm:$0xff]  }
 0x128   : > { %12325 = vmatprep.subr.bf16.mxu1 %v12922_v25  ;;  %v12928_v58 = vld [vmem:[%s15201_s16 + $0x184] ss:$12 sps:$4 sm:$0xff]   ;;  %v657_v60 = vld [vmem:[%s15201_s16 + $0x198] sm:$0xff]  ;;  %v12926_v62 = vld [vmem:[%s15201_s16 + $0x180] ss:$12 sps:$4 sm:$0xff]   ;;  %v19555_v8 = vmov 0  }
 0x129   : > { %v11266_v0 = vcombine.high %v657_v60, %v657_v60  ;;  %v11265_v1 = vcombine.low %v657_v60, %v657_v60  ;;  %v12953_v2 = vld [vmem:[%s19525_s2 + $0x20] sm:$0xff]   ;;  %v12954_v3 = vld [vmem:[%s19525_s2 + $0x68] sm:$0xff]   ;;  %v12956_v7 = vld [vmem:[%s19525_s2 + $0x70] sm:$0xff]   ;;  %s581_s21 = sand.u32 1, %s20198_s29   ;;  %s20200_s14 = sld [smem:[#allocation235_spill]] }
 0x12a   : > { %1003 = vmatpush1.bf16.msra.mxu0 %v12879_v9  ;;  %v12941_v4 = vld [vmem:[%s15201_s16 + $0x188] ss:$12 sps:$4 sm:$0xff]   ;;  %v12958_v14 = vld [vmem:[%s19525_s2 + $0x78] sm:$0xff]   ;;  %v12960_v16 = vld [vmem:[%s19525_s2 + $0x80] sm:$0xff]   ;;  %s582_s20 = scalar_lea.vmem [#allocation17], %s581_s21  ;;  %s11030_s27 = scalar_lea.sflag [#allocation4], %s581_s21 }
 0x12b   : > { %1004 = vmatprep.subr.bf16.mxu0 %v12880_v10  ;;  %12326 = vmatpush3.bf16.msra.mxu1 %v12923_v26  ;;  %v986_v5 = vsel %vm984_vm0, %v11265_v1, 0  ;;  %v12955_v6 = vld [vmem:[%s19525_s2 + $0x28] sm:$0xff]   ;;  %v12943_v10 = vld [vmem:[%s15201_s16 + $0x1a0] ss:$0 sps:$4 sm:$0xff]   ;;  %v12957_v13 = vld [vmem:[%s19525_s2 + $0x30] sm:$0xff]   ;;  %s11042_s25 = sshll.u32 %s582_s20, 4  ;;  %s19482_s25 = int_to_ptr.vmem [resolvable:$true] %s11042_s25 }
 0x12c   : > { %12327 = vmatprep.subr.bf16.mxu1 %v12924_v27  ;;  %v12938_v9 = vld [vmem:[#allocation2 + $0x8] ss:$12 sps:$4 sm:$0xff]   ;;  %v12973_v60 = vld [vmem:[#allocation5 + $0xb0] ss:$28 sps:$4 sm:$0x3f]   ;;  %s14742_s23 = scalar_lea.vmem %s19482_s25, 16 }
 0x12d   : > { %v12961_v17 = vld [vmem:[%s19525_s2 + $0x88] ss:$0 sps:$4 sm:$0xff]   ;;  %p14743_p8 = scmp.ne.s32.totalorder %s19482_s25, %s14742_s23  ;;  %p20201_p11 = scmp.ne.s32.totalorder %s20199_s18, 0 }
 0x12e   : > { %1005 = vmatpush1.bf16.msra.mxu0 %v12882_v11  ;;  %v12942_v11 = vld [vmem:[#allocation2 + $0x20] ss:$12 sps:$4 sm:$0x3f]   ;;  %s14845_s17 = smov [#allocation17]  }
 0x12f   : > { %1006 = vmatprep.subr.bf16.mxu0 %v12883_v12  ;;  %12328 = vmatpush3.bf16.msra.mxu1 %v12925_v29  ;;  %v992_v12 = vsel %vm984_vm0, %v12943_v10, 0  ;;  %s19480_s24 = scalar_lea.hbm %s20200_s14, %s12316_s22  ;;  %p14744_p13 = pnand %p14743_p8, %p20201_p11 }
 0x130   : > { %12329 = vmatprep.subr.bf16.mxu1 %v12932_v32  ;;  %s14746_s15 = sshll.u32 %s14845_s17, 4  ;;  %s14747_s15 = int_to_ptr.vmem [resolvable:$false] %s14746_s15 }
 0x131   : > { %p14745_p5 = pneg %p14744_p13  ;;  %s14748_s3 = scalar_lea.vmem %s14747_s15, 32 }
 0x132   : > { %1007 = vmatpush1.bf16.msra.mxu0 %v12885_v15  ;;  %v12959_v15 = vld [vmem:[%s19525_s2 + $0x38] sm:$0xff]   ;;  %p14749_p0 = scmp.lt.s32.totalorder %s19482_s25, %s14747_s15  ;;  %p14750_p6 = scmp.lt.s32.totalorder %s14748_s3, %s14742_s23 }
 0x133   : > { %1008 = vmatprep.subr.bf16.mxu0 %v12886_v18  ;;  %12330 = vmatpush3.bf16.msra.mxu1 %v12933_v34  ;;  %v1351_v18 = vsel %vm984_vm0, %v12961_v17, 0 }
 0x134   : > { %12331 = vmatprep.subr.bf16.mxu1 %v12935_v35  ;;  %p14751_p9 = por %p14750_p6, %p14749_p0 }
 0x136   : > { %1009 = vmatpush1.bf16.msra.mxu0 %v12888_v20  ;;  %p14752_p10 = pnand %p14751_p9, %p14745_p5 }
 0x137   : > { %1010 = vmatprep.subr.bf16.mxu0 %v12889_v22  ;;  %12332 = vmatpush3.bf16.msra.mxu1 %v12937_v39 }
 0x138   : > { %12333 = vmatprep.subr.bf16.mxu1 %v12939_v40 }
 0x13a   : > { %1011 = vmatpush1.bf16.msra.mxu0 %v12891_v24 }
 0x13b   : > { %1012 = vmatprep.subr.bf16.mxu0 %v12892_v28  ;;  %12334 = vmatpush3.bf16.msra.mxu1 %v12940_v42 }
 0x13c   : > { %12351 = vmatprep.subr.bf16.mxu1 %v12944_v44 }
 0x13e   : > { %1013 = vmatpush1.bf16.msra.mxu0 %v12894_v30  ;;  %1133 = vmatmul.mubr.bf16.vlgmr.msra.gmra.mrb[0].mxu1 %v12919_v46 }
 0x13f   : > { %1014 = vmatprep.subr.bf16.mxu0 %v12895_v31  ;;  %1140 = vmatprep.mubr.bf16.mxu1 %v12929_v47 }
 0x140   : > { %12352 = vmatpush3.bf16.msra.mxu1 %v12945_v48 }
 0x141   : > { %12353 = vmatprep.subr.bf16.mxu1 %v12946_v49 }
 0x142   : > { %1015 = vmatpush1.bf16.msra.mxu0 %v12897_v33 }
 0x143   : > { %1016 = vmatprep.subr.bf16.mxu0 %v12898_v36 }
 0x144   : > { %12354 = vmatpush3.bf16.msra.mxu1 %v12947_v52 }
 0x145   : > { %12355 = vmatprep.subr.bf16.mxu1 %v12948_v53  ;;  %v12964_v53 = vld [vmem:[#allocation5 + $0x74] ss:$28 sps:$4 sm:$0xff]  }
 0x146   : > { %1017 = vmatpush1.bf16.msra.mxu0 %v12900_v37  ;;  %1141 = vmatmul.mubr.bf16.gmra.mrb[4].mxu1 %v12931_v56 }
 0x147   : > { %1018 = vmatprep.subr.bf16.mxu0 %v12901_v38 }
 0x148   : > { %12356 = vmatpush3.bf16.msra.mxu1 %v12949_v57  ;;  %v12968_v57 = vld [vmem:[#allocation5 + $0xac] ss:$28 sps:$4 sm:$0x3f]  }
 0x149   : > { %12357 = vmatprep.subr.bf16.mxu1 %v12950_v59  ;;  %v12972_v59 = vld [vmem:[#allocation5 + $0xa8] ss:$28 sps:$4 sm:$0x3f]  }
 0x14a   : > { %1019 = vmatpush1.bf16.msra.mxu0 %v12903_v41 }
 0x14b   : > { %1020 = vmatprep.subr.bf16.mxu0 %v12904_v43 }
 0x14c   : > { %12358 = vmatpush3.bf16.msra.mxu1 %v12951_v61  ;;  %v1580_v61 = vsel %vm1578_vm2, %v12972_v59, 0 }
 0x14d   : > { %12359 = vmatprep.subr.bf16.mxu1 %v12952_v63  ;;  %v12976_v63 = vld [vmem:[#allocation5 + $0x84] ss:$28 sps:$4 sm:$0xff]  }
 0x14e   : > { %1021 = vmatpush1.bf16.msra.mxu0 %v12907_v45 }
 0x14f   : > { %1022 = vmatprep.subr.bf16.mxu0 %v12909_v50 }
 0x150   : > { %12360 = vmatpush3.bf16.msra.mxu1 %v12953_v2 }
 0x151   : > { %12361 = vmatprep.subr.bf16.mxu1 %v12954_v3 }
 0x152   : > { %1023 = vmatpush1.bf16.msra.mxu0 %v12912_v51 }
 0x153   : > { %1024 = vmatprep.subr.bf16.mxu0 %v12914_v54  ;;  %v12967_v54 = vld [vmem:[#allocation5 + $0x7c] ss:$28 sps:$4 sm:$0xff]  }
 0x154   : > { %12362 = vmatpush3.bf16.msra.mxu1 %v12955_v6 }
 0x155   : > { %12363 = vmatprep.subr.bf16.mxu1 %v12956_v7 }
 0x156   : > { %1025 = vmatpush1.bf16.msra.mxu0 %v12917_v55  ;;  %v12962_v55 = vld [vmem:[#allocation5 + $0x70] ss:$28 sps:$4 sm:$0xff]  }
 0x157   : > { %1047 = vmatprep.subr.bf16.mxu0 %v12928_v58  ;;  %v12970_v58 = vld [vmem:[#allocation5 + $0xb4] ss:$28 sps:$4 sm:$0x3f]  }
 0x158   : > { %12364 = vmatpush3.bf16.msra.mxu1 %v12957_v13 }
 0x159   : > { %1027 = vmatmul.mubr.bf16.vlgmr.msra.gmra.mrb[0].mxu0 %v12919_v46  ;;  %12365 = vmatprep.subr.bf16.mxu1 %v12958_v14 }
 0x15a   : > { %1036 = vmatprep.mubr.bf16.mxu0 %v12929_v47  ;;  %1048 = vmatpush1.bf16.msra.mxu0 %v12926_v62  ;;  %v1586_v62 = vsel %vm1578_vm2, %v12973_v60, 0  ;;  %v13001_v60 = vld [vmem:[#allocation5 + $0xec] ss:$28 sps:$4 sm:$0xff]  }
 0x15b   : > { %11268 = vmatprep.subr.msk.bf16.mxu0 %vm984_vm0, %v11266_v0  ;;  %v12977_v0 = vld [vmem:[#allocation5 + $0x88] ss:$28 sps:$4 sm:$0xff]  }
 0x15c   : > { %12366 = vmatpush3.bf16.msra.mxu1 %v12959_v15 }
 0x15d   : > { %1600 = vmatprep.subr.bf16.mxu1 %v12964_v53  ;;  %v12993_v53 = vld [vmem:[#allocation5 + $0x38] ss:$28 sps:$4 sm:$0x3f]  }
 0x15e   : > { %1050 = vmatpush1.bf16.msra.mxu0 %v986_v5 }
 0x15f   : > { %12412 = vmatprep.subr.bf16.mxu0 %v12941_v4 }
 0x161   : > { %1037 = vmatmul.mubr.bf16.gmra.mrb[4].mxu0 %v12931_v56  ;;  %v12965_v56 = vld [vmem:[#allocation5 + $0x78] ss:$28 sps:$4 sm:$0xff]  }
 0x162   : > { %1079 = vmatprep.mubr.bf16.mxu0 %v19555_v8 }
 0x169   : > { %11269 = vmatmul.mubr.msk.bf16.vlgmr.msra.gmra.mrb[0].mxu0 %vm977_vm1, %v12938_v9 }
 0x16a   : > { %1089 = vmatprep.mubr.bf16.mxu0 %v19555_v8  ;;  %12413 = vmatpush3.bf16.msra.mxu0 %v12941_v4 }
 0x16b   : > { %12719 = vmatprep.subr.msk.bf16.mxu0 %vm984_vm0, %v12943_v10 }
 0x16e   : > { %12415 = vmatpush3.bf16.msra.mxu0 %v992_v12 }
 0x16f   : > { %12420 = vmatprep.subr.bf16.mxu0 %v12960_v16 }
 0x171   : > { %11270 = vmatmul.mubr.msk.bf16.gmra.mrb[4].mxu0 %vm977_vm1, %v12942_v11 }
 0x172   : > { %12416 = vmatprep.mubr.msk.bf16.mxu0 %vm977_vm1, %v12938_v9 }
 0x179   : > { %12417 = vmatmul.mubr.msk.bf16.vlgmr.msra.gmra.mrb[8].mxu0 %vm977_vm1, %v12942_v11 }
 0x17a   : > { %12421 = vmatpush3.bf16.msra.mxu0 %v12960_v16 }
 0x17b   : > { %12720 = vmatprep.subr.msk.bf16.mxu0 %vm984_vm0, %v12961_v17 }
 0x17e   : > { %12423 = vmatpush3.bf16.msra.mxu0 %v1351_v18 }
 0x17f   : > { %1653 = vmatprep.subr.bf16.mxu0 %v12967_v54 }
 0x211   : > { %v12335_v19 = vpop.f32.mrb[0].mxu1 }
 0x212   : > { %v12336_v20 = vpop.f32.mrb[1].mxu1 }
 0x213   : > { %v12337_v21 = vadd.f32 %v12336_v20, %v12335_v19  ;;  %v12338_v22 = vpop.f32.mrb[2].mxu1 }
 0x214   : > { %v12339_v23 = vpop.f32.mrb[3].mxu1 }
 0x215   : > { %v12340_v24 = vadd.f32 %v12339_v23, %v12338_v22 }
 0x219   : > { %v12341_v25 = vpop.f32.mrb[4].mxu1 }
 0x21a   : > { %v12342_v26 = vpop.f32.mrb[5].mxu1 }
 0x21b   : > { %v12343_v27 = vadd.f32 %v12342_v26, %v12341_v25  ;;  %v12344_v28 = vpop.f32.mrb[6].mxu1 }
 0x21c   : > { %v12345_v29 = vpop.f32.mrb[7].mxu1 }
 0x21d   : > { %v12346_v30 = vadd.f32 %v12345_v29, %v12344_v28 }
 0x23c   : > { %v1081_v31 = vpop.f32.mrb[0].mxu0 }
 0x23d   : > { %v1083_v32 = vpop.f32.mrb[1].mxu0 }
 0x23e   : > { %v1085_v33 = vpop.f32.mrb[2].mxu0 }
 0x23f   : > { %v1198_v34 = vpack.c.bf16 %v1085_v33, %v1081_v31  ;;  %v1087_v35 = vpop.f32.mrb[3].mxu0 }
 0x240   : > { %v1199_v36 = vpack.c.bf16 %v1087_v35, %v1083_v32 }
 0x242   : > { %1385 = vmatprep.mubr.bf16.mxu1 %v1199_v36 }
 0x243   : > { %1386 = vmatmul.mubr.bf16.vlgmr.msra.gmra.mrb[8].mxu1 %v1198_v34 }
 0x244   : > { %v1091_v37 = vpop.f32.mrb[4].mxu0  ;;  %1601 = vmatpush1.bf16.msra.mxu1 %v12962_v55  ;;  %v12994_v55 = vld [vmem:[#allocation5 + $0x18] ss:$28 sps:$4 sm:$0xff]  }
 0x245   : > { %v1093_v38 = vpop.f32.mrb[5].mxu0  ;;  %11311 = vmatprep.subr.msk.bf16.mxu1 %vm1578_vm2, %v12968_v57  ;;  %v12998_v57 = vld [vmem:[#allocation5 + $0x14] ss:$28 sps:$4 sm:$0xff]  }
 0x246   : > { %v1095_v39 = vpop.f32.mrb[6].mxu0 }
 0x247   : > { %v1201_v40 = vpack.c.bf16 %v1095_v39, %v1091_v37  ;;  %v1097_v41 = vpop.f32.mrb[7].mxu0  ;;  %v12974_v37 = vld [vmem:[#allocation5 + $0x80] ss:$28 sps:$4 sm:$0xff]  }
 0x248   : > { %v1202_v42 = vpack.c.bf16 %v1097_v41, %v1093_v38  ;;  %1603 = vmatpush1.bf16.msra.mxu1 %v1580_v61  ;;  %v12978_v38 = vld [vmem:[#allocation5 + $0xbc] ss:$28 sps:$4 sm:$0x3f]   ;;  %v12996_v61 = vld [vmem:[#allocation5 + $0x10] ss:$28 sps:$4 sm:$0xff]  }
 0x249   : > { %1706 = vmatprep.subr.bf16.mxu1 %v12976_v63  ;;  %v12981_v41 = vld [vmem:[#allocation5 + $0xb8] ss:$28 sps:$4 sm:$0x3f]   ;;  %v13006_v63 = vld [vmem:[#allocation5 + $0x48] ss:$28 sps:$4 sm:$0x3f]  }
 0x24a   : > { %1393 = vmatprep.mubr.bf16.mxu1 %v1202_v42  ;;  %v1592_v42 = vsel %vm1578_vm2, %v12981_v41, 0  ;;  %v13043_v41 = vld [vmem:[#allocation8 + $0x170] ss:$8 sps:$4 sm:$0xff]  }
 0x24b   : > { %1394 = vmatmul.mubr.bf16.gmra.mrb[12].mxu1 %v1201_v40  ;;  %v12980_v40 = vld [vmem:[#allocation5 + $0xc0] ss:$28 sps:$4 sm:$0x3f]  }
 0x24c   : > { %v12418_v43 = vpop.f32.mrb[8].mxu0  ;;  %1632 = vmatprep.mubr.bf16.mxu1 %v19555_v8 }
 0x24d   : > { %v1192_v44 = vadd.f32 %v12418_v43, %v12343_v27  ;;  %v1183_v45 = vpop.f32.mrb[9].mxu0  ;;  %v1598_v43 = vsel %vm1578_vm2, %v12980_v40, 0 }
 0x24e   : > { %v1184_v46 = vadd.f32 %v12337_v21, %v1183_v45  ;;  %v12419_v47 = vpop.f32.mrb[10].mxu0  ;;  %v12990_v45 = vld [vmem:[#allocation5 + $0x4] ss:$28 sps:$4 sm:$0xff]  }
 0x24f   : > { %v1195_v48 = vadd.f32 %v12419_v47, %v12346_v30  ;;  %v1186_v49 = vpop.f32.mrb[11].mxu0 }
 0x250   : > { %v1187_v50 = vadd.f32 %v12340_v24, %v1186_v49  ;;  %v12985_v49 = vld [vmem:[#allocation5 + $0x44] ss:$28 sps:$4 sm:$0x3f]  }
 0x251   : > { %v1203_v51 = vpack.c.bf16 %v1195_v48, %v1192_v44  ;;  %v12984_v44 = vld [vmem:[#allocation5 + $0xc] ss:$28 sps:$4 sm:$0xff]  }
 0x252   : > { %v1200_v52 = vpack.c.bf16 %v1187_v50, %v1184_v46  ;;  %v12982_v48 = vld [vmem:[#allocation5 + $0x8] ss:$28 sps:$4 sm:$0xff]   ;;  %v12987_v50 = vld [vmem:[#allocation5 + $0x40] ss:$28 sps:$4 sm:$0x3f]  }
 0x253   : > { %v1884_v54 = vsel %vm1578_vm2, %v12987_v50, 0 }
 0x254   : > { %12424 = vmatprep.mubr.msk.bf16.mxu0 %vm977_vm1, %v1200_v52  ;;  %v12991_v52 = vld [vmem:[#allocation5 + $0x3c] ss:$28 sps:$4 sm:$0x3f]  }
 0x255   : > { %12425 = vmatmul.mubr.msk.bf16.vlgmr.msra.gmra.mrb[12].mxu0 %vm977_vm1, %v1203_v51  ;;  %v12988_v51 = vld [vmem:[#allocation5] ss:$28 sps:$4 sm:$0xff]  }
 0x256   : > { %1685 = vmatprep.mubr.bf16.mxu0 %v19555_v8  ;;  %1654 = vmatpush1.bf16.msra.mxu0 %v12965_v56  ;;  %v1878_v56 = vsel %vm1578_vm2, %v12993_v53, 0  ;;  %v13069_v53 = vld [vmem:[#allocation8 + $0x1b4] ss:$8 sps:$4 sm:$0xff]  }
 0x257   : > { %11314 = vmatprep.subr.msk.bf16.mxu0 %vm1578_vm2, %v12970_v58  ;;  %v12995_v58 = vld [vmem:[#allocation5 + $0x50] ss:$28 sps:$4 sm:$0x3f]  }
 0x258   : > { %v1896_v59 = vsel %vm1578_vm2, %v12995_v58, 0 }
 0x25a   : > { %1656 = vmatpush1.bf16.msra.mxu0 %v1586_v62  ;;  %v13002_v62 = vld [vmem:[#allocation5 + $0x4c] ss:$28 sps:$4 sm:$0x3f]  }
 0x25b   : > { %12428 = vmatprep.subr.bf16.mxu0 %v12977_v0 }
 0x316   : > { %v12367_v1 = vpop.f32.mrb[8].mxu1 }
 0x317   : > { %v12368_v2 = vpop.f32.mrb[9].mxu1 }
 0x318   : > { %v12369_v3 = vadd.f32 %v12368_v2, %v12367_v1  ;;  %v12370_v4 = vpop.f32.mrb[10].mxu1  ;;  %v13010_v1 = vld [vmem:[#allocation5 + $0xe4] ss:$28 sps:$4 sm:$0xff]  }
 0x319   : > { %v12371_v5 = vpop.f32.mrb[11].mxu1  ;;  %v12999_v2 = vld [vmem:[#allocation5 + $0xe8] ss:$28 sps:$4 sm:$0xff]  }
 0x31a   : > { %v12372_v6 = vadd.f32 %v12371_v5, %v12370_v4  ;;  %v13007_v4 = vld [vmem:[#allocation5 + $0x120] ss:$28 sps:$4 sm:$0x3f]  }
 0x31b   : > { %v2207_v5 = vsel %vm1578_vm2, %v13007_v4, 0  ;;  %v13085_v4 = vld [vmem:[#allocation8 + $0x1e0] ss:$8 sps:$4 sm:$0xff]  }
 0x31e   : > { %v12373_v7 = vpop.f32.mrb[12].mxu1 }
 0x31f   : > { %v12374_v9 = vpop.f32.mrb[13].mxu1 }
 0x320   : > { %v12375_v10 = vadd.f32 %v12374_v9, %v12373_v7  ;;  %v12376_v11 = vpop.f32.mrb[14].mxu1  ;;  %v13008_v7 = vld [vmem:[#allocation5 + $0xe0] ss:$28 sps:$4 sm:$0xff]   ;;  %v13015_v9 = vld [vmem:[#allocation5 + $0x118] ss:$28 sps:$4 sm:$0x3f]  }
 0x321   : > { %v12377_v12 = vpop.f32.mrb[15].mxu1 }
 0x322   : > { %v12378_v13 = vadd.f32 %v12377_v12, %v12376_v11  ;;  %v13014_v11 = vld [vmem:[#allocation5 + $0x130] ss:$28 sps:$4 sm:$0x3f]   ;;  %v2201_v12 = vsel %vm1578_vm2, %v13015_v9, 0  ;;  %v13088_v9 = vld [vmem:[%s19528_s5 + $0x1f0] ss:$8 sps:$4 sm:$0xff]  }
 0x328   : > { %v12426_v14 = vpop.f32.mrb[12].mxu0 }
 0x329   : > { %v1445_v15 = vadd.f32 %v12426_v14, %v12375_v10  ;;  %v1436_v16 = vpop.f32.mrb[13].mxu0  ;;  %v13012_v10 = vld [vmem:[#allocation5 + $0x11c] ss:$28 sps:$4 sm:$0x3f]   ;;  %v2219_v14 = vsel %vm1578_vm2, %v13014_v11, 0 }
 0x32a   : > { %v1437_v17 = vadd.f32 %v12369_v3, %v1436_v16  ;;  %v12427_v18 = vpop.f32.mrb[14].mxu0  ;;  %v13004_v3 = vld [vmem:[#allocation5 + $0x124] ss:$28 sps:$4 sm:$0x3f]   ;;  %v13016_v16 = vld [vmem:[#allocation5 + $0xf0] ss:$28 sps:$4 sm:$0xff]  }
 0x32b   : > { %v1448_v19 = vadd.f32 %v12427_v18, %v12378_v13  ;;  %v1439_v20 = vpop.f32.mrb[15].mxu0  ;;  %v11295_v22 = vadd.f32 -0.42421293, %v1445_v15  ;;  %v13018_v13 = vld [vmem:[#allocation5 + $0xf4] ss:$28 sps:$4 sm:$0xff]  }
 0x32c   : > { %v1440_v21 = vadd.f32 %v12372_v6, %v1439_v20  ;;  %v11293_v24 = vadd.f32 -0.42421293, %v1437_v17  ;;  %v13011_v6 = vld [vmem:[#allocation5 + $0xf8] ss:$28 sps:$4 sm:$0xff]   ;;  %v13030_v20 = vld [vmem:[%s19528_s5 + $0x154] ss:$8 sps:$4 sm:$0xff]  }
 0x32d   : > { %v11296_v23 = vadd.f32 -0.42421293, %v1448_v19  ;;  %v13024_v15 = vld [vmem:[%s19528_s5 + $0x144] ss:$8 sps:$4 sm:$0xff]   ;;  %v13022_v19 = vld [vmem:[%s19528_s5 + $0x140] ss:$8 sps:$4 sm:$0xff]  }
 0x32e   : > { %v11294_v25 = vadd.f32 -0.42421293, %v1440_v21  ;;  %v13019_v17 = vld [vmem:[#allocation5 + $0x12c] ss:$28 sps:$4 sm:$0x3f]  }
 0x32f   : > { %v15330_v26 = vpack.c.bf16 %v11296_v23, %v11295_v22  ;;  %v13021_v18 = vld [vmem:[#allocation5 + $0x128] ss:$28 sps:$4 sm:$0x3f]  }
 0x330   : > { %v15332_v27 = vpack.c.bf16 %v11294_v25, %v11293_v24  ;;  %v2213_v21 = vsel %vm1578_vm2, %v13021_v18, 0  ;;  %v13027_v22 = vld [vmem:[#allocation8 + $0x144] ss:$8 sps:$4 sm:$0xff]   ;;  %v13028_v23 = vld [vmem:[%s19528_s5 + $0x150] ss:$8 sps:$4 sm:$0xff]  }
 0x331   : > { %v15335_v28 = vrot.slane %v15330_v26, 1  ;;  %v1499_v30 = vshll.u32 %v15330_v26, 16  ;;  %v1503_v46 = vshrl.u32 %v15330_v26, 16  ;;  %v13036_v24 = vld [vmem:[%s19528_s5 + $0x164] ss:$8 sps:$4 sm:$0xff]  }
 0x332   : > { %v1494_v29 = vshll.u32 %v15332_v27, 16  ;;  %v2126_v31 = vrot.slane %v15332_v27, 1  ;;  %v1492_v32 = vshrl.u32 %v15332_v27, 16  ;;  %v13034_v25 = vld [vmem:[%s19528_s5 + $0x160] ss:$8 sps:$4 sm:$0xff]  }
 0x333   : > { %v1501_v36 = vrot.slane %v1499_v30, 1  ;;  %v13025_v30 = vld [vmem:[#allocation8 + $0x140] ss:$8 sps:$4 sm:$0xff]   ;;  %v13103_v18 = vld [vmem:[#allocation8 + $0x210] ss:$8 sps:$4 sm:$0xff]  }
 0x334   : > { %v1496_v33 = vrot.slane %v1494_v29, 1  ;;  %v15343_v34 = vsel %vm2125_vm3, %v2126_v31, %v15335_v28  ;;  %v13048_v29 = vld [vmem:[%s19528_s5 + $0x184] ss:$8 sps:$4 sm:$0xff]  }
 0x335   : > { %v1505_v47 = vor.u32 %v1503_v46, %v1501_v36  ;;  %v13033_v31 = vld [vmem:[#allocation8 + $0x154] ss:$8 sps:$4 sm:$0xff]   ;;  %v13063_v46 = vld [vmem:[#allocation8 + $0x1a4] ss:$8 sps:$4 sm:$0xff]  }
 0x336   : > { %v1497_v35 = vor.u32 %v1496_v33, %v1492_v32  ;;  %v13046_v32 = vld [vmem:[%s19528_s5 + $0x180] ss:$8 sps:$4 sm:$0xff]   ;;  %v13054_v33 = vld [vmem:[%s19528_s5 + $0x194] ss:$8 sps:$4 sm:$0xff]  }
 0x338   : > { %v1502_v39 = vsel %vm1490_vm4, %v1497_v35, %v1501_v36  ;;  %v13031_v35 = vld [vmem:[#allocation8 + $0x150] ss:$8 sps:$4 sm:$0xff]   ;;  %v13039_v36 = vld [vmem:[#allocation8 + $0x164] ss:$8 sps:$4 sm:$0xff]  }
 0x339   : > { %11312 = vmatmul.mubr.msk.bf16.vlgmr.msra.gmra.mrb[16].mxu1 %vm1571_vm5, %v1502_v39  ;;  %11315 = vmatmul.mubr.msk.bf16.vlgmr.msra.gmra.mrb[16].mxu0 %vm1571_vm5, %v1502_v39 }
 0x33a   : > { %1642 = vmatprep.mubr.bf16.mxu1 %v19555_v8  ;;  %1695 = vmatprep.mubr.bf16.mxu0 %v19555_v8 }
 0x33b   : > { %1707 = vmatpush1.bf16.msra.mxu1 %v12974_v37  ;;  %12429 = vmatpush3.bf16.msra.mxu0 %v12977_v0  ;;  %v1890_v0 = vsel %vm1578_vm2, %v13006_v63, 0  ;;  %v13052_v37 = vld [vmem:[%s19528_s5 + $0x190] ss:$8 sps:$4 sm:$0xff]  }
 0x33c   : > { %11317 = vmatprep.subr.msk.bf16.mxu1 %vm1578_vm2, %v12978_v38  ;;  %12721 = vmatprep.subr.msk.bf16.mxu0 %vm1578_vm2, %v12980_v40  ;;  %v13060_v38 = vld [vmem:[%s19528_s5 + $0x1a4] ss:$8 sps:$4 sm:$0xff]   ;;  %v13058_v40 = vld [vmem:[%s19528_s5 + $0x1a0] ss:$8 sps:$4 sm:$0xff]  }
 0x33d   : > { %v13079_v63 = vld [vmem:[#allocation8 + $0x1d0] ss:$8 sps:$4 sm:$0xff]  }
 0x33f   : > { %1709 = vmatpush1.bf16.msra.mxu1 %v1592_v42  ;;  %12431 = vmatpush3.bf16.msra.mxu0 %v1598_v43  ;;  %v13051_v42 = vld [vmem:[#allocation8 + $0x184] ss:$8 sps:$4 sm:$0xff]   ;;  %v13049_v43 = vld [vmem:[#allocation8 + $0x180] ss:$8 sps:$4 sm:$0xff]  }
 0x340   : > { %1951 = vmatprep.subr.bf16.mxu0 %v12984_v44  ;;  %1898 = vmatprep.subr.bf16.mxu1 %v12990_v45  ;;  %v13057_v44 = vld [vmem:[#allocation8 + $0x194] ss:$8 sps:$4 sm:$0xff]   ;;  %v13055_v45 = vld [vmem:[#allocation8 + $0x190] ss:$8 sps:$4 sm:$0xff]  }
 0x341   : > { %11313 = vmatmul.mubr.msk.bf16.gmra.mrb[20].mxu1 %vm1571_vm5, %v1505_v47  ;;  %11316 = vmatmul.mubr.msk.bf16.gmra.mrb[20].mxu0 %vm1571_vm5, %v1505_v47 }
 0x342   : > { %12432 = vmatprep.mubr.msk.bf16.mxu0 %vm1571_vm5, %v1502_v39  ;;  %1738 = vmatprep.mubr.bf16.mxu1 %v19555_v8 }
 0x349   : > { %11318 = vmatmul.mubr.msk.bf16.vlgmr.msra.gmra.mrb[24].mxu1 %vm1571_vm5, %v1502_v39  ;;  %12433 = vmatmul.mubr.msk.bf16.vlgmr.msra.gmra.mrb[24].mxu0 %vm1571_vm5, %v1505_v47  ;;  %v13037_v39 = vld [vmem:[#allocation8 + $0x160] ss:$8 sps:$4 sm:$0xff]  }
 0x34a   : > { %1952 = vmatpush1.bf16.msra.mxu0 %v12982_v48  ;;  %1748 = vmatprep.mubr.bf16.mxu1 %v19555_v8  ;;  %v2459_v48 = vlaneseq }
 0x34b   : > { %11339 = vmatprep.subr.msk.bf16.mxu0 %vm1578_vm2, %v12985_v49  ;;  %1899 = vmatpush1.bf16.msra.mxu1 %v12988_v51 }
 0x34c   : > { %1983 = vmatprep.mubr.bf16.mxu0 %v19555_v8  ;;  %11336 = vmatprep.subr.msk.bf16.mxu1 %vm1578_vm2, %v12991_v52  ;;  %v15465_v49 = vshrl.u32 %v2459_v48, 7  ;;  %v13066_v52 = vld [vmem:[%s19528_s5 + $0x1b4] ss:$8 sps:$4 sm:$0xff]  }
 0x34e   : > { %1954 = vmatpush1.bf16.msra.mxu0 %v1884_v54  ;;  %19795 = vst [vmem:[#allocation32_spill] sm:$0xff] %v15465_v49  ;;  %v2473_v50 = vsub.s32 3, %v15465_v49  ;;  %v13064_v54 = vld [vmem:[%s19528_s5 + $0x1b0] ss:$8 sps:$4 sm:$0xff]  }
 0x34f   : > { %1901 = vmatpush1.bf16.msra.mxu1 %v1878_v56  ;;  %12436 = vmatprep.subr.bf16.mxu0 %v12994_v55  ;;  %v13072_v56 = vld [vmem:[%s19528_s5 + $0x1c4] ss:$8 sps:$4 sm:$0xff]  }
 0x350   : > { %2004 = vmatprep.subr.bf16.mxu1 %v12998_v57  ;;  %v13075_v57 = vld [vmem:[#allocation8 + $0x1c4] ss:$8 sps:$4 sm:$0xff]  }
 0x351   : > { %11319 = vmatmul.mubr.msk.bf16.gmra.mrb[28].mxu1 %vm1571_vm5, %v1505_v47  ;;  %11340 = vmatmul.mubr.msk.bf16.vlgmr.msra.gmra.mrb[16].mxu0 %vm1571_vm5, %v15332_v27  ;;  %v13061_v47 = vld [vmem:[#allocation8 + $0x1a0] ss:$8 sps:$4 sm:$0xff]  }
 0x352   : > { %1930 = vmatprep.mubr.bf16.mxu1 %v19555_v8  ;;  %1993 = vmatprep.mubr.bf16.mxu0 %v19555_v8 }
 0x353   : > { %12437 = vmatpush3.bf16.msra.mxu0 %v12994_v55  ;;  %v13067_v55 = vld [vmem:[#allocation8 + $0x1b0] ss:$8 sps:$4 sm:$0xff]  }
 0x354   : > { %12722 = vmatprep.subr.msk.bf16.mxu0 %vm1578_vm2, %v12995_v58  ;;  %v13070_v58 = vld [vmem:[%s19528_s5 + $0x1c0] ss:$8 sps:$4 sm:$0xff]  }
 0x357   : > { %12439 = vmatpush3.bf16.msra.mxu0 %v1896_v59  ;;  %v13073_v59 = vld [vmem:[#allocation8 + $0x1c0] ss:$8 sps:$4 sm:$0xff]  }
 0x358   : > { %2274 = vmatprep.subr.bf16.mxu0 %v13001_v60  ;;  %v13078_v60 = vld [vmem:[%s19528_s5 + $0x1d4] ss:$8 sps:$4 sm:$0xff]  }
 0x359   : > { %11337 = vmatmul.mubr.msk.bf16.vlgmr.msra.gmra.mrb[16].mxu1 %vm1571_vm5, %v15332_v27  ;;  %11341 = vmatmul.mubr.msk.bf16.gmra.mrb[20].mxu0 %vm1571_vm5, %v15330_v26 }
 0x35a   : > { %12440 = vmatprep.mubr.msk.bf16.mxu0 %vm1571_vm5, %v15332_v27  ;;  %1940 = vmatprep.mubr.bf16.mxu1 %v19555_v8 }
 0x35b   : > { %2005 = vmatpush1.bf16.msra.mxu1 %v12996_v61  ;;  %v13081_v61 = vld [vmem:[#allocation8 + $0x1d4] ss:$8 sps:$4 sm:$0xff]  }
 0x35c   : > { %11342 = vmatprep.subr.msk.bf16.mxu1 %vm1578_vm2, %v13002_v62  ;;  %v13076_v62 = vld [vmem:[%s19528_s5 + $0x1d0] ss:$8 sps:$4 sm:$0xff]  }
 0x35f   : > { %2007 = vmatpush1.bf16.msra.mxu1 %v1890_v0  ;;  %v13084_v0 = vld [vmem:[%s19528_s5 + $0x1e4] ss:$8 sps:$4 sm:$0xff]  }
 0x360   : > { %2221 = vmatprep.subr.bf16.mxu1 %v13010_v1  ;;  %v13087_v1 = vld [vmem:[#allocation8 + $0x1e4] ss:$8 sps:$4 sm:$0xff]  }
 0x361   : > { %11338 = vmatmul.mubr.msk.bf16.gmra.mrb[20].mxu1 %vm1571_vm5, %v15330_v26  ;;  %12441 = vmatmul.mubr.msk.bf16.vlgmr.msra.gmra.mrb[24].mxu0 %vm1571_vm5, %v15330_v26 }
 0x362   : > { %2275 = vmatpush1.bf16.msra.mxu0 %v12999_v2  ;;  %2036 = vmatprep.mubr.bf16.mxu1 %v19555_v8  ;;  %v2485_v2 = vsub.s32 6, %v15465_v49 }
 0x363   : > { %11364 = vmatprep.subr.msk.bf16.mxu0 %vm1578_vm2, %v13004_v3  ;;  %2306 = vmatprep.mubr.bf16.mxu0 %v19555_v8  ;;  %v13082_v3 = vld [vmem:[%s19528_s5 + $0x1e0] ss:$8 sps:$4 sm:$0xff]  }
 0x366   : > { %2277 = vmatpush1.bf16.msra.mxu0 %v2207_v5 }
 0x367   : > { %12444 = vmatprep.subr.bf16.mxu0 %v13011_v6 }
 0x369   : > { %11343 = vmatmul.mubr.msk.bf16.vlgmr.msra.gmra.mrb[24].mxu1 %vm1571_vm5, %v15332_v27  ;;  %11365 = vmatmul.mubr.msk.bf16.vlgmr.msra.gmra.mrb[16].mxu0 %vm1571_vm5, %v15343_v34  ;;  %v13040_v27 = vld [vmem:[%s19528_s5 + $0x170] ss:$8 sps:$4 sm:$0xff]  }
 0x36a   : > { %2046 = vmatprep.mubr.bf16.mxu1 %v19555_v8  ;;  %2222 = vmatpush1.bf16.msra.mxu1 %v13008_v7  ;;  %v13093_v7 = vld [vmem:[#allocation8 + $0x1f4] ss:$8 sps:$4 sm:$0xff]  }
 0x36b   : > { %2316 = vmatprep.mubr.bf16.mxu0 %v19555_v8  ;;  %12445 = vmatpush3.bf16.msra.mxu0 %v13011_v6  ;;  %v13090_v6 = vld [vmem:[%s19528_s5 + $0x1f4] ss:$8 sps:$4 sm:$0xff]  }
 0x36c   : > { %11361 = vmatprep.subr.msk.bf16.mxu1 %vm1578_vm2, %v13012_v10  ;;  %12723 = vmatprep.subr.msk.bf16.mxu0 %vm1578_vm2, %v13014_v11  ;;  %v13091_v10 = vld [vmem:[#allocation8 + $0x1f0] ss:$8 sps:$4 sm:$0xff]   ;;  %v13096_v11 = vld [vmem:[%s19528_s5 + $0x204] ss:$8 sps:$4 sm:$0xff]  }
 0x36e   : > { %2224 = vmatpush1.bf16.msra.mxu1 %v2201_v12  ;;  %v13099_v12 = vld [vmem:[#allocation8 + $0x204] ss:$8 sps:$4 sm:$0xff]  }
 0x36f   : > { %12447 = vmatpush3.bf16.msra.mxu0 %v2219_v14  ;;  %2327 = vmatprep.subr.bf16.mxu1 %v13018_v13  ;;  %v13094_v13 = vld [vmem:[%s19528_s5 + $0x200] ss:$8 sps:$4 sm:$0xff]  }
 0x370   : > { %2941 = vmatprep.subr.bf16.mxu0 %v13024_v15  ;;  %v13097_v14 = vld [vmem:[#allocation8 + $0x200] ss:$8 sps:$4 sm:$0xff]   ;;  %v13102_v15 = vld [vmem:[%s19528_s5 + $0x214] ss:$8 sps:$4 sm:$0xff]  }
 0x371   : > { %11344 = vmatmul.mubr.msk.bf16.gmra.mrb[28].mxu1 %vm1571_vm5, %v15330_v26  ;;  %11366 = vmatmul.mubr.msk.bf16.gmra.mrb[20].mxu0 %vm1571_vm5, %v15335_v28  ;;  %v13042_v26 = vld [vmem:[%s19528_s5 + $0x174] ss:$8 sps:$4 sm:$0xff]  }
 0x372   : > { %12448 = vmatprep.mubr.msk.bf16.mxu0 %vm1571_vm5, %v15343_v34  ;;  %2253 = vmatprep.mubr.bf16.mxu1 %v19555_v8 }
 0x379   : > { %11362 = vmatmul.mubr.msk.bf16.vlgmr.msra.gmra.mrb[16].mxu1 %vm1571_vm5, %v15343_v34  ;;  %12449 = vmatmul.mubr.msk.bf16.vlgmr.msra.gmra.mrb[24].mxu0 %vm1571_vm5, %v15335_v28 }
 0x37a   : > { %2263 = vmatprep.mubr.bf16.mxu1 %v19555_v8  ;;  %2328 = vmatpush1.bf16.msra.mxu1 %v13016_v16  ;;  %v13105_v16 = vld [vmem:[#allocation8 + $0x214] ss:$8 sps:$4 sm:$0xff]  }
 0x37b   : > { %11367 = vmatprep.subr.msk.bf16.mxu1 %vm1578_vm2, %v13019_v17  ;;  %2942 = vmatpush1.bf16.msra.mxu0 %v13022_v19  ;;  %v13100_v17 = vld [vmem:[%s19528_s5 + $0x210] ss:$8 sps:$4 sm:$0xff]   ;;  %v13108_v19 = vld [vmem:[%s19528_s5 + $0x224] ss:$8 sps:$4 sm:$0xff]  }
 0x37c   : > { %2943 = vmatprep.subr.bf16.mxu0 %v13030_v20  ;;  %v13111_v20 = vld [vmem:[#allocation8 + $0x224] ss:$8 sps:$4 sm:$0xff]  }
 0x37e   : > { %2330 = vmatpush1.bf16.msra.mxu1 %v2213_v21  ;;  %v2477_v21 = vsub.s32 4, %v15465_v49 }
 0x37f   : > { %3590 = vmatprep.subr.bf16.mxu1 %v13027_v22  ;;  %2944 = vmatpush1.bf16.msra.mxu0 %v13028_v23  ;;  %v13106_v22 = vld [vmem:[%s19528_s5 + $0x220] ss:$8 sps:$4 sm:$0xff]  }
 0x380   : > { %2945 = vmatprep.subr.bf16.mxu0 %v13036_v24  ;;  %v13109_v23 = vld [vmem:[#allocation8 + $0x220] ss:$8 sps:$4 sm:$0xff]   ;;  %v2481_v24 = vsub.s32 5, %v15465_v49 }
 0x381   : > { %11363 = vmatmul.mubr.msk.bf16.gmra.mrb[20].mxu1 %vm1571_vm5, %v15335_v28 }
 0x382   : > { %2359 = vmatprep.mubr.bf16.mxu1 %v19555_v8 }
 0x383   : > { %2946 = vmatpush1.bf16.msra.mxu0 %v13034_v25 }
 0x384   : > { %2947 = vmatprep.subr.bf16.mxu0 %v13042_v26 }
 0x387   : > { %2948 = vmatpush1.bf16.msra.mxu0 %v13040_v27  ;;  %v13114_v27 = vld [vmem:[%s19528_s5 + $0x234] ss:$8 sps:$4 sm:$0xff]  }
 0x388   : > { %2949 = vmatprep.subr.bf16.mxu0 %v13048_v29  ;;  %v13117_v29 = vld [vmem:[#allocation8 + $0x234] ss:$8 sps:$4 sm:$0xff]  }
 0x389   : > { %11368 = vmatmul.mubr.msk.bf16.vlgmr.msra.gmra.mrb[24].mxu1 %vm1571_vm5, %v15343_v34  ;;  %v13045_v34 = vld [vmem:[#allocation8 + $0x174] ss:$8 sps:$4 sm:$0xff]  }
 0x38a   : > { %2369 = vmatprep.mubr.bf16.mxu1 %v19555_v8  ;;  %3591 = vmatpush1.bf16.msra.mxu1 %v13025_v30  ;;  %v13112_v30 = vld [vmem:[%s19528_s5 + $0x230] ss:$8 sps:$4 sm:$0xff]  }
 0x38b   : > { %3592 = vmatprep.subr.bf16.mxu1 %v13033_v31  ;;  %2950 = vmatpush1.bf16.msra.mxu0 %v13046_v32  ;;  %v13115_v31 = vld [vmem:[#allocation8 + $0x230] ss:$8 sps:$4 sm:$0xff]   ;;  %v13120_v32 = vld [vmem:[%s19528_s5 + $0x244] ss:$8 sps:$4 sm:$0xff]  }
 0x38c   : > { %2951 = vmatprep.subr.bf16.mxu0 %v13054_v33  ;;  %v13123_v33 = vld [vmem:[#allocation8 + $0x244] ss:$8 sps:$4 sm:$0xff]  }
 0x38e   : > { %3593 = vmatpush1.bf16.msra.mxu1 %v13031_v35  ;;  %v2469_v35 = vsub.s32 2, %v15465_v49 }
 0x38f   : > { %3594 = vmatprep.subr.bf16.mxu1 %v13039_v36  ;;  %2952 = vmatpush1.bf16.msra.mxu0 %v13052_v37 }
 0x390   : > { %2953 = vmatprep.subr.bf16.mxu0 %v13060_v38 }
 0x391   : > { %11369 = vmatmul.mubr.msk.bf16.gmra.mrb[28].mxu1 %vm1571_vm5, %v15335_v28  ;;  %v15467_v28 = vld [vmem:[#allocation7] sm:$0x7f] }
 0x392   : > { %3595 = vmatpush1.bf16.msra.mxu1 %v13037_v39  ;;  %v15471_v51 = vrot.slane %v15467_v28, %v2473_v50  ;;  %v15499_v5 = vrot.slane %v15467_v28, %v2485_v2  ;;  %v15528_v25 = vrot.slane %v15467_v28, %v2477_v21  ;;  %v15531_v26 = vrot.slane %v15467_v28, %v2481_v24 }
 0x393   : > { %3596 = vmatprep.subr.bf16.mxu1 %v13045_v34  ;;  %2954 = vmatpush1.bf16.msra.mxu0 %v13058_v40  ;;  %v2470_v36 = vrot.slane %v15467_v28, %v2469_v35 }
 0x394   : > { %2955 = vmatprep.subr.bf16.mxu0 %v13066_v52 }
 0x396   : > { %3597 = vmatpush1.bf16.msra.mxu1 %v13043_v41 }
 0x397   : > { %3598 = vmatprep.subr.bf16.mxu1 %v13051_v42  ;;  %2956 = vmatpush1.bf16.msra.mxu0 %v13064_v54 }
 0x398   : > { %2957 = vmatprep.subr.bf16.mxu0 %v13072_v56 }
 0x39a   : > { %3599 = vmatpush1.bf16.msra.mxu1 %v13049_v43 }
 0x39b   : > { %3600 = vmatprep.subr.bf16.mxu1 %v13057_v44  ;;  %2958 = vmatpush1.bf16.msra.mxu0 %v13070_v58  ;;  %v19553_v58 = vsub.s32 1, %v15465_v49 }
 0x39c   : > { %2959 = vmatprep.subr.bf16.mxu0 %v13078_v60 }
 0x39e   : > { %3601 = vmatpush1.bf16.msra.mxu1 %v13055_v45 }
 0x39f   : > { %3602 = vmatprep.subr.bf16.mxu1 %v13063_v46  ;;  %2960 = vmatpush1.bf16.msra.mxu0 %v13076_v62 }
 0x3a0   : > { %2961 = vmatprep.subr.bf16.mxu0 %v13084_v0 }
 0x3a2   : > { %3603 = vmatpush1.bf16.msra.mxu1 %v13061_v47 }
 0x3a3   : > { %3604 = vmatprep.subr.bf16.mxu1 %v13069_v53  ;;  %2962 = vmatpush1.bf16.msra.mxu0 %v13082_v3  ;;  %v2466_v3 = vrot.slane %v15467_v28, %v19553_v58  ;;  %v15843_v58 = vld [vmem:[%s19528_s5 + $0xa4] ss:$8 sps:$4 sm:$0xff]  }
 0x3a4   : > { %2963 = vmatprep.subr.bf16.mxu0 %v13090_v6  ;;  %19806 = vst [vmem:[#allocation43_spill] sm:$0xff] %v15843_v58 }
 0x3a6   : > { %3605 = vmatpush1.bf16.msra.mxu1 %v13067_v55  ;;  %v19554_v55 = vsub.s32 0, %v15465_v49  ;;  %v15872_v49 = vld [vmem:[#allocation8 + $0xb0] ss:$8 sps:$4 sm:$0xff]  }
 0x3a7   : > { %3606 = vmatprep.subr.bf16.mxu1 %v13075_v57  ;;  %2964 = vmatpush1.bf16.msra.mxu0 %v13088_v9  ;;  %19813 = vst [vmem:[#allocation50_spill] sm:$0xff] %v15872_v49 }
 0x3a8   : > { %2965 = vmatprep.subr.bf16.mxu0 %v13096_v11  ;;  %v2462_v0 = vrot.slane %v15467_v28, %v19554_v55  ;;  %v15845_v55 = vld [vmem:[#allocation8 + $0xa4] ss:$8 sps:$4 sm:$0xff]  }
 0x3a9   : > { %19807 = vst [vmem:[#allocation44_spill] sm:$0xff] %v15845_v55 }
 0x3aa   : > { %3607 = vmatpush1.bf16.msra.mxu1 %v13073_v59 }
 0x3ab   : > { %3608 = vmatprep.subr.bf16.mxu1 %v13081_v61  ;;  %2966 = vmatpush1.bf16.msra.mxu0 %v13094_v13 }
 0x3ac   : > { %2967 = vmatprep.subr.bf16.mxu0 %v13102_v15 }
 0x3ae   : > { %3609 = vmatpush1.bf16.msra.mxu1 %v13079_v63 }
 0x3af   : > { %3610 = vmatprep.subr.bf16.mxu1 %v13087_v1  ;;  %2968 = vmatpush1.bf16.msra.mxu0 %v13100_v17 }
 0x3b0   : > { %2969 = vmatprep.subr.bf16.mxu0 %v13108_v19 }
 0x3b2   : > { %3611 = vmatpush1.bf16.msra.mxu1 %v13085_v4 }
 0x3b3   : > { %3612 = vmatprep.subr.bf16.mxu1 %v13093_v7  ;;  %2970 = vmatpush1.bf16.msra.mxu0 %v13106_v22 }
 0x3b4   : > { %2971 = vmatprep.subr.bf16.mxu0 %v13114_v27 }
 0x3b6   : > { %3613 = vmatpush1.bf16.msra.mxu1 %v13091_v10 }
 0x3b7   : > { %3614 = vmatprep.subr.bf16.mxu1 %v13099_v12  ;;  %2972 = vmatpush1.bf16.msra.mxu0 %v13112_v30 }
 0x3b8   : > { %2992 = vmatprep.subr.bf16.mxu0 %v13120_v32 }
 0x3ba   : > { %3615 = vmatpush1.bf16.msra.mxu1 %v13097_v14 }
 0x3bb   : > { %3616 = vmatprep.subr.bf16.mxu1 %v13105_v16 }
 0x3be   : > { %3617 = vmatpush1.bf16.msra.mxu1 %v13103_v18 }
 0x3bf   : > { %3618 = vmatprep.subr.bf16.mxu1 %v13111_v20 }
 0x3c2   : > { %3619 = vmatpush1.bf16.msra.mxu1 %v13109_v23 }
 0x3c3   : > { %3620 = vmatprep.subr.bf16.mxu1 %v13117_v29 }
 0x3c6   : > { %3621 = vmatpush1.bf16.msra.mxu1 %v13115_v31 }
 0x3c7   : > { %3641 = vmatprep.subr.bf16.mxu1 %v13123_v33 }
 0x43c   : > { %v2308_v37 = vpop.f32.mrb[16].mxu0 }
 0x43d   : > { %v2496_v38 = vadd.f32 %v2470_v36, %v2308_v37  ;;  %v2310_v39 = vpop.f32.mrb[17].mxu0 }
 0x43e   : > { %v2497_v34 = vadd.f32 %v15471_v51, %v2310_v39  ;;  %v2312_v40 = vpop.f32.mrb[18].mxu0 }
 0x43f   : > { %v2503_v41 = vadd.f32 %v2470_v36, %v2312_v40  ;;  %v2314_v42 = vpop.f32.mrb[19].mxu0  ;;  %v2524_v44 = vmax.f32 %v2496_v38, 0.0 }
 0x440   : > { %v2504_v43 = vadd.f32 %v15471_v51, %v2314_v42  ;;  %v2525_v46 = vmax.f32 %v2497_v34, 0.0 }
 0x441   : > { %v2531_v45 = vmax.f32 %v2503_v41, 0.0 }
 0x442   : > { %v2532_v47 = vmax.f32 %v2504_v43, 0.0 }
 0x443   : > { %v15546_v48 = vpack.c.bf16 %v2531_v45, %v2524_v44 }
 0x444   : > { %v15548_v50 = vpack.c.bf16 %v2532_v47, %v2525_v46  ;;  %v2318_v52 = vpop.f32.mrb[20].mxu0 }
 0x445   : > { %19796 = vst [vmem:[#allocation33_spill] sm:$0xff] %v15546_v48  ;;  %v2510_v53 = vadd.f32 %v2470_v36, %v2318_v52  ;;  %v2320_v54 = vpop.f32.mrb[21].mxu0 }
 0x446   : > { %v2511_v56 = vadd.f32 %v15471_v51, %v2320_v54  ;;  %v2322_v57 = vpop.f32.mrb[22].mxu0 }
 0x447   : > { %v2517_v59 = vadd.f32 %v2470_v36, %v2322_v57  ;;  %v2324_v60 = vpop.f32.mrb[23].mxu0  ;;  %v2538_v62 = vmax.f32 %v2510_v53, 0.0 }
 0x448   : > { %v2518_v61 = vadd.f32 %v15471_v51, %v2324_v60  ;;  %v2539_v1 = vmax.f32 %v2511_v56, 0.0 }
 0x449   : > { %v2545_v63 = vmax.f32 %v2517_v59, 0.0 }
 0x44a   : > { %v2546_v2 = vmax.f32 %v2518_v61, 0.0 }
 0x44b   : > { %v15560_v4 = vpack.c.bf16 %v2545_v63, %v2538_v62 }
 0x44c   : > { %v15562_v6 = vpack.c.bf16 %v2546_v2, %v2539_v1  ;;  %v2255_v7 = vpop.f32.mrb[16].mxu1  ;;  %v12450_v9 = vpop.f32.mrb[24].mxu0 }
 0x44d   : > { %19797 = vst [vmem:[#allocation34_spill] sm:$0xff] %v15560_v4  ;;  %v2494_v10 = vadd.f32 %v2462_v0, %v2255_v7  ;;  %v2514_v51 = vadd.f32 %v12450_v9, %v15499_v5  ;;  %v2257_v11 = vpop.f32.mrb[17].mxu1  ;;  %v2414_v12 = vpop.f32.mrb[25].mxu0 }
 0x44e   : > { %v2495_v13 = vadd.f32 %v2466_v3, %v2257_v11  ;;  %v2500_v14 = vadd.f32 %v15499_v5, %v2414_v12  ;;  %v2259_v15 = vpop.f32.mrb[18].mxu1  ;;  %v12451_v16 = vpop.f32.mrb[26].mxu0 }
 0x44f   : > { %v2501_v17 = vadd.f32 %v2462_v0, %v2259_v15  ;;  %v2521_v18 = vadd.f32 %v12451_v16, %v15499_v5  ;;  %v2261_v28 = vpop.f32.mrb[19].mxu1  ;;  %v2417_v19 = vpop.f32.mrb[27].mxu0  ;;  %v2522_v22 = vmax.f32 %v2494_v10, 0.0  ;;  %v2542_v23 = vmax.f32 %v2514_v51, 0.0 }
 0x450   : > { %v2502_v20 = vadd.f32 %v2466_v3, %v2261_v28  ;;  %v2507_v21 = vadd.f32 %v15499_v5, %v2417_v19  ;;  %v2523_v29 = vmax.f32 %v2495_v13, 0.0  ;;  %v2528_v30 = vmax.f32 %v2500_v14, 0.0 }
 0x451   : > { %v2529_v24 = vmax.f32 %v2501_v17, 0.0  ;;  %v2549_v27 = vmax.f32 %v2521_v18, 0.0  ;;  %v13118_v17 = vld [vmem:[%s19528_s5 + $0x240] ss:$8 sps:$4 sm:$0xff]  }
 0x452   : > { %v2530_v31 = vmax.f32 %v2502_v20, 0.0  ;;  %v2535_v32 = vmax.f32 %v2507_v21, 0.0  ;;  %v13121_v18 = vld [vmem:[#allocation8 + $0x240] ss:$8 sps:$4 sm:$0xff]  }
 0x453   : > { %v15568_v33 = vpack.c.bf16 %v2529_v24, %v2522_v22  ;;  %v15570_v35 = vpack.c.bf16 %v2549_v27, %v2542_v23  ;;  %v13126_v27 = vld [vmem:[%s19528_s5 + $0x254] ss:$8 sps:$4 sm:$0xff]  }
 0x454   : > { %v15572_v36 = vpack.c.bf16 %v2530_v31, %v2523_v29  ;;  %v15574_v37 = vpack.c.bf16 %v2535_v32, %v2528_v30  ;;  %v2265_v38 = vpop.f32.mrb[20].mxu1  ;;  %v13129_v29 = vld [vmem:[#allocation8 + $0x254] ss:$8 sps:$4 sm:$0xff]  }
 0x455   : > { %19798 = vst [vmem:[#allocation35_spill] sm:$0xff] %v15570_v35  ;;  %v2508_v39 = vadd.f32 %v2462_v0, %v2265_v38  ;;  %v2267_v34 = vpop.f32.mrb[21].mxu1  ;;  %v2688_v47 = vshll.u32 %v15568_v33, 16  ;;  %v2686_v10 = vshrl.u32 %v15568_v33, 16  ;;  %v15854_v35 = vld [vmem:[#allocation8 + $0xa0] ss:$8 sps:$4 sm:$0xff]  }
 0x456   : > { %19799 = vst [vmem:[#allocation36_spill] sm:$0xff] %v15574_v37  ;;  %v2509_v5 = vadd.f32 %v2466_v3, %v2267_v34  ;;  %v2269_v40 = vpop.f32.mrb[22].mxu1  ;;  %v2700_v44 = vshll.u32 %v15572_v36, 16  ;;  %v2698_v2 = vshrl.u32 %v15572_v36, 16  ;;  %v13127_v34 = vld [vmem:[#allocation8 + $0x250] ss:$8 sps:$4 sm:$0xff]  }
 0x457   : > { %v2515_v41 = vadd.f32 %v2462_v0, %v2269_v40  ;;  %v2271_v42 = vpop.f32.mrb[23].mxu1  ;;  %v2536_v45 = vmax.f32 %v2508_v39, 0.0  ;;  %v2690_v62 = vrot.slane %v2688_v47, 1  ;;  %v13124_v39 = vld [vmem:[%s19528_s5 + $0x250] ss:$8 sps:$4 sm:$0xff]   ;;  %19809 = vst [vmem:[#allocation46_spill] sm:$0xff] %v15854_v35 }
 0x458   : > { %v2516_v43 = vadd.f32 %v2466_v3, %v2271_v42  ;;  %v2537_v52 = vmax.f32 %v2509_v5, 0.0  ;;  %v2702_v59 = vrot.slane %v2700_v44, 1  ;;  %v13135_v42 = vld [vmem:[#allocation8 + $0x264] ss:$8 sps:$4 sm:$0xff]  }
 0x459   : > { %v2543_v46 = vmax.f32 %v2515_v41, 0.0  ;;  %v2691_v28 = vor.u32 %v2690_v62, %v2686_v10  ;;  %v13132_v41 = vld [vmem:[%s19528_s5 + $0x264] ss:$8 sps:$4 sm:$0xff]   ;;  %v15861_v37 = vld [vmem:[%s19528_s5 + $0xb4] ss:$8 sps:$4 sm:$0xff]  }
 0x45a   : > { %v2544_v53 = vmax.f32 %v2516_v43, 0.0  ;;  %v2703_v12 = vor.u32 %v2702_v59, %v2698_v2  ;;  %v2712_v59 = vshll.u32 %v15546_v48, 16  ;;  %v15623_v62 = vld [vmem:[#allocation8 + $0x274] ss:$8 sps:$4 sm:$0xff]   ;;  %v15633_v2 = vld [vmem:[%s19528_s5 + $0x270] ss:$8 sps:$4 sm:$0xff]  }
 0x45b   : > { %v15578_v54 = vpack.c.bf16 %v2543_v46, %v2536_v45  ;;  %v13130_v46 = vld [vmem:[%s19528_s5 + $0x260] ss:$8 sps:$4 sm:$0xff]   ;;  %v15644_v10 = vld [vmem:[#allocation8 + $0x4] ss:$8 sps:$4 sm:$0xff]   ;;  %19810 = vst [vmem:[#allocation47_spill] sm:$0xff] %v15861_v37 }
 0x45c   : > { %v15580_v56 = vpack.c.bf16 %v2544_v53, %v2537_v52  ;;  %v2361_v57 = vpop.f32.mrb[24].mxu1 }
 0x45d   : > { %v2498_v60 = vadd.f32 %v15528_v25, %v2361_v57  ;;  %v2363_v61 = vpop.f32.mrb[25].mxu1  ;;  %v2693_v63 = vshll.u32 %v15578_v54, 16  ;;  %v2721_v47 = vshrl.u32 %v15578_v54, 16  ;;  %v13133_v57 = vld [vmem:[#allocation8 + $0x260] ss:$8 sps:$4 sm:$0xff]  }
 0x45e   : > { %v2499_v0 = vadd.f32 %v15531_v26, %v2363_v61  ;;  %v2365_v1 = vpop.f32.mrb[26].mxu1  ;;  %v2705_v3 = vshll.u32 %v15580_v56, 16  ;;  %v2724_v14 = vshrl.u32 %v15580_v56, 16 }
 0x45f   : > { %v2505_v7 = vadd.f32 %v15528_v25, %v2365_v1  ;;  %v2367_v9 = vpop.f32.mrb[27].mxu1  ;;  %v2695_v51 = vrot.slane %v2693_v63, 1  ;;  %v2526_v15 = vmax.f32 %v2498_v60, 0.0 }
 0x460   : > { %v2506_v11 = vadd.f32 %v15531_v26, %v2367_v9  ;;  %v2707_v13 = vrot.slane %v2705_v3, 1  ;;  %v2527_v19 = vmax.f32 %v2499_v0, 0.0  ;;  %v2717_v0 = vshll.u32 %v15560_v4, 16  ;;  %v15635_v3 = vld [vmem:[#allocation8 + $0x270] ss:$8 sps:$4 sm:$0xff]  }
 0x461   : > { %v2533_v16 = vmax.f32 %v2505_v7, 0.0  ;;  %v2696_v24 = vsel %vm1490_vm4, %v2691_v28, %v2695_v51  ;;  %v2723_v61 = vor.u32 %v2721_v47, %v2695_v51  ;;  %v2714_v7 = vrot.slane %v2712_v59, 1  ;;  %v15642_v9 = vld [vmem:[%s19528_s5 + $0x4] ss:$8 sps:$4 sm:$0xff]   ;;  %v15681_v28 = vld [vmem:[#allocation8 + $0x10] ss:$8 sps:$4 sm:$0xff]  }
 0x462   : > { %v2534_v20 = vmax.f32 %v2506_v11, 0.0  ;;  %v2708_v21 = vsel %vm1490_vm4, %v2703_v12, %v2707_v13  ;;  %v2726_v22 = vor.u32 %v2724_v14, %v2707_v13  ;;  %v2710_v51 = vshrl.u32 %v15546_v48, 16  ;;  %v15654_v12 = vld [vmem:[%s19528_s5] ss:$8 sps:$4 sm:$0xff]   ;;  %v15798_v59 = vld [vmem:[%s19528_s5 + $0x70] ss:$8 sps:$4 sm:$0xff]  }
 0x463   : > { %v15595_v23 = vpack.c.bf16 %v2533_v16, %v2526_v15  ;;  %2973 = vmatprep.mubr.bf16.mxu0 %v2708_v21  ;;  %3622 = vmatprep.mubr.bf16.mxu1 %v2708_v21  ;;  %v2719_v11 = vrot.slane %v2717_v0, 1  ;;  %v15656_v13 = vld [vmem:[#allocation8] ss:$8 sps:$4 sm:$0xff]   ;;  %v15663_v15 = vld [vmem:[%s19528_s5 + $0x14] ss:$8 sps:$4 sm:$0xff]   ;;  %v2727_v21 = vshrl.u32 %v15560_v4, 16 }
 0x464   : > { %v15601_v30 = vpack.c.bf16 %v2534_v20, %v2527_v19  ;;  %v2371_v31 = vpop.f32.mrb[28].mxu1  ;;  %2974 = vmatmul.mubr.bf16.vlgmr.msra.gmra.mrb[28].mxu0 %v2696_v24  ;;  %3623 = vmatmul.mubr.bf16.vlgmr.msra.gmra.mrb[32].mxu1 %v2696_v24  ;;  %v2715_v14 = vor.u32 %v2714_v7, %v2710_v51  ;;  %v15665_v16 = vld [vmem:[#allocation8 + $0x14] ss:$8 sps:$4 sm:$0xff]   ;;  %v15690_v20 = vld [vmem:[#allocation8 + $0x24] ss:$8 sps:$4 sm:$0xff]  }
 0x465   : > { %v2512_v32 = vadd.f32 %v15528_v25, %v2371_v31  ;;  %2993 = vmatpush1.bf16.msra.mxu0 %v13118_v17  ;;  %3642 = vmatpush1.bf16.msra.mxu1 %v13121_v18  ;;  %v2373_v38 = vpop.f32.mrb[29].mxu1  ;;  %v15679_v18 = vld [vmem:[%s19528_s5 + $0x10] ss:$8 sps:$4 sm:$0xff]   ;;  %v15688_v19 = vld [vmem:[%s19528_s5 + $0x24] ss:$8 sps:$4 sm:$0xff]  }
 0x466   : > { %19800 = vst [vmem:[#allocation37_spill] sm:$0xff] %v15601_v30  ;;  %v2513_v5 = vadd.f32 %v15531_v26, %v2373_v38  ;;  %2983 = vmatprep.mubr.bf16.mxu0 %v2726_v22  ;;  %3632 = vmatprep.mubr.bf16.mxu1 %v2726_v22  ;;  %v2375_v40 = vpop.f32.mrb[30].mxu1  ;;  %v15668_v17 = vsel %vm1490_vm4, %v2715_v14, %v2719_v11  ;;  %v15700_v22 = vld [vmem:[%s19528_s5 + $0x20] ss:$8 sps:$4 sm:$0xff]   ;;  %v15713_v31 = vld [vmem:[#allocation8 + $0x34] ss:$8 sps:$4 sm:$0xff]  }
 0x467   : > { %v2519_v43 = vadd.f32 %v15528_v25, %v2375_v40  ;;  %v2377_v44 = vpop.f32.mrb[31].mxu1  ;;  %2994 = vmatprep.subr.bf16.mxu0 %v13126_v27  ;;  %3643 = vmatprep.subr.bf16.mxu1 %v13129_v29  ;;  %v2540_v52 = vmax.f32 %v2512_v32, 0.0  ;;  %v15702_v24 = vld [vmem:[#allocation8 + $0x20] ss:$8 sps:$4 sm:$0xff]   ;;  %v15706_v27 = vor.u32 %v2727_v21, %v2719_v11  ;;  %v15711_v29 = vld [vmem:[%s19528_s5 + $0x34] ss:$8 sps:$4 sm:$0xff]  }
 0x468   : > { %v2520_v45 = vadd.f32 %v15531_v26, %v2377_v44  ;;  %v2541_v60 = vmax.f32 %v2513_v5, 0.0  ;;  %v15621_v26 = vld [vmem:[%s19528_s5 + $0x274] ss:$8 sps:$4 sm:$0xff]   ;;  %v15724_v32 = vld [vmem:[%s19528_s5 + $0x30] ss:$8 sps:$4 sm:$0xff]  }
 0x469   : > { %v2547_v53 = vmax.f32 %v2519_v43, 0.0  ;;  %2995 = vmatpush1.bf16.msra.mxu0 %v13124_v39  ;;  %3644 = vmatpush1.bf16.msra.mxu1 %v13127_v34  ;;  %v15726_v38 = vld [vmem:[#allocation8 + $0x30] ss:$8 sps:$4 sm:$0xff]   ;;  %v15733_v39 = vld [vmem:[%s19528_s5 + $0x44] ss:$8 sps:$4 sm:$0xff]  }
 0x46a   : > { %v2548_v25 = vmax.f32 %v2520_v45, 0.0  ;;  %2996 = vmatprep.subr.bf16.mxu0 %v13132_v41  ;;  %3645 = vmatprep.subr.bf16.mxu1 %v13135_v42  ;;  %v15735_v34 = vld [vmem:[#allocation8 + $0x44] ss:$8 sps:$4 sm:$0xff]   ;;  %v15744_v5 = vld [vmem:[%s19528_s5 + $0x40] ss:$8 sps:$4 sm:$0xff]  }
 0x46b   : > { %v15625_v63 = vpack.c.bf16 %v2547_v53, %v2540_v52  ;;  %v15746_v40 = vld [vmem:[#allocation8 + $0x40] ss:$8 sps:$4 sm:$0xff]   ;;  %v15753_v41 = vld [vmem:[%s19528_s5 + $0x54] ss:$8 sps:$4 sm:$0xff]   ;;  %v15764_v44 = vld [vmem:[#allocation8 + $0x50] ss:$8 sps:$4 sm:$0xff]  }
 0x46c   : > { %v15628_v1 = vpack.c.bf16 %v2548_v25, %v2541_v60  ;;  %2984 = vmatmul.mubr.bf16.gmra.mrb[32].mxu0 %v2723_v61  ;;  %3633 = vmatmul.mubr.bf16.gmra.mrb[36].mxu1 %v2723_v61  ;;  %v15755_v42 = vld [vmem:[#allocation8 + $0x54] ss:$8 sps:$4 sm:$0xff]   ;;  %v15762_v43 = vld [vmem:[%s19528_s5 + $0x50] ss:$8 sps:$4 sm:$0xff]   ;;  %v15780_v47 = vld [vmem:[%s19528_s5 + $0x60] ss:$8 sps:$4 sm:$0xff]  }
 0x46d   : > { %2997 = vmatpush1.bf16.msra.mxu0 %v13130_v46  ;;  %3646 = vmatpush1.bf16.msra.mxu1 %v13133_v57  ;;  %v15771_v45 = vld [vmem:[%s19528_s5 + $0x64] ss:$8 sps:$4 sm:$0xff]   ;;  %v15782_v52 = vld [vmem:[#allocation8 + $0x60] ss:$8 sps:$4 sm:$0xff]   ;;  %v15789_v53 = vld [vmem:[%s19528_s5 + $0x74] ss:$8 sps:$4 sm:$0xff]  }
 0x46e   : > { %19801 = vst [vmem:[#allocation38_spill] sm:$0xff] %v15628_v1  ;;  %2998 = vmatprep.subr.bf16.mxu0 %v15621_v26  ;;  %3647 = vmatprep.subr.bf16.mxu1 %v15623_v62  ;;  %v15773_v46 = vld [vmem:[#allocation8 + $0x64] ss:$8 sps:$4 sm:$0xff]   ;;  %v15791_v57 = vld [vmem:[#allocation8 + $0x74] ss:$8 sps:$4 sm:$0xff]  }
 0x46f   : > { %3024 = vmatprep.mubr.bf16.mxu0 %v19555_v8  ;;  %3673 = vmatprep.mubr.bf16.mxu1 %v19555_v8  ;;  %v15800_v60 = vld [vmem:[#allocation8 + $0x70] ss:$8 sps:$4 sm:$0xff]   ;;  %v15807_v25 = vld [vmem:[%s19528_s5 + $0x84] ss:$8 sps:$4 sm:$0xff]   ;;  %v15818_v7 = vld [vmem:[#allocation8 + $0x80] ss:$8 sps:$4 sm:$0xff]  }
 0x470   : > { %v15809_v61 = vld [vmem:[#allocation8 + $0x84] ss:$8 sps:$4 sm:$0xff]   ;;  %v15816_v0 = vld [vmem:[%s19528_s5 + $0x80] ss:$8 sps:$4 sm:$0xff]   ;;  %v15827_v11 = vld [vmem:[#allocation8 + $0x94] ss:$8 sps:$4 sm:$0xff]  }
 0x471   : > { %2999 = vmatpush1.bf16.msra.mxu0 %v15633_v2  ;;  %3648 = vmatpush1.bf16.msra.mxu1 %v15635_v3  ;;  %v15825_v51 = vld [vmem:[%s19528_s5 + $0x94] ss:$8 sps:$4 sm:$0xff]   ;;  %19803 = vst [vmem:[#allocation40_spill] sm:$0xff] %v15827_v11  ;;  %v15834_v14 = vld [vmem:[%s19528_s5 + $0x90] ss:$8 sps:$4 sm:$0xff]  }
 0x472   : > { %3247 = vmatprep.subr.bf16.mxu0 %v15642_v9  ;;  %3892 = vmatprep.subr.bf16.mxu1 %v15644_v10  ;;  %19802 = vst [vmem:[#allocation39_spill] sm:$0xff] %v15825_v51  ;;  %19804 = vst [vmem:[#allocation41_spill] sm:$0xff] %v15834_v14  ;;  %v15836_v21 = vld [vmem:[#allocation8 + $0x90] ss:$8 sps:$4 sm:$0xff]   ;;  %v15863_v1 = vld [vmem:[#allocation8 + $0xb4] ss:$8 sps:$4 sm:$0xff]  }
 0x473   : > { %19805 = vst [vmem:[#allocation42_spill] sm:$0xff] %v15836_v21  ;;  %19811 = vst [vmem:[#allocation48_spill] sm:$0xff] %v15863_v1  ;;  %v15870_v30 = vld [vmem:[%s19528_s5 + $0xb0] ss:$8 sps:$4 sm:$0xff]  }
 0x474   : > { %11452 = vmatmul.mubr.msk.bf16.vlgmr.msra.gmra.mrb[28].mxu0 %vm2934_vm6, %v15668_v17  ;;  %11536 = vmatmul.mubr.msk.bf16.vlgmr.msra.gmra.mrb[32].mxu1 %vm2934_vm6, %v15668_v17  ;;  %19812 = vst [vmem:[#allocation49_spill] sm:$0xff] %v15870_v30 }
 0x475   : > { %3248 = vmatpush1.bf16.msra.mxu0 %v15654_v12  ;;  %3893 = vmatpush1.bf16.msra.mxu1 %v15656_v13 }
 0x476   : > { %3249 = vmatprep.subr.bf16.mxu0 %v15663_v15  ;;  %3894 = vmatprep.subr.bf16.mxu1 %v15665_v16 }
 0x477   : > { %3034 = vmatprep.mubr.bf16.mxu0 %v19555_v8  ;;  %3683 = vmatprep.mubr.bf16.mxu1 %v19555_v8  ;;  %v15852_v8 = vld [vmem:[%s19528_s5 + $0xa0] ss:$8 sps:$4 sm:$0xff]  }
 0x478   : > { %19808 = vst [vmem:[#allocation45_spill] sm:$0xff] %v15852_v8 }
 0x479   : > { %3250 = vmatpush1.bf16.msra.mxu0 %v15679_v18  ;;  %3895 = vmatpush1.bf16.msra.mxu1 %v15681_v28 }
 0x47a   : > { %3251 = vmatprep.subr.bf16.mxu0 %v15688_v19  ;;  %3896 = vmatprep.subr.bf16.mxu1 %v15690_v20 }
 0x47c   : > { %11453 = vmatmul.mubr.msk.bf16.gmra.mrb[36].mxu0 %vm2934_vm6, %v15706_v27  ;;  %11537 = vmatmul.mubr.msk.bf16.gmra.mrb[40].mxu1 %vm2934_vm6, %v15706_v27 }
 0x47d   : > { %3252 = vmatpush1.bf16.msra.mxu0 %v15700_v22  ;;  %3897 = vmatpush1.bf16.msra.mxu1 %v15702_v24 }
 0x47e   : > { %3279 = vmatprep.mubr.bf16.mxu0 %v15572_v36  ;;  %3924 = vmatprep.mubr.bf16.mxu1 %v15572_v36 }
 0x47f   : > { %3253 = vmatprep.subr.bf16.mxu0 %v15711_v29  ;;  %3898 = vmatprep.subr.bf16.mxu1 %v15713_v31 }
 0x481   : > { %3254 = vmatpush1.bf16.msra.mxu0 %v15724_v32  ;;  %3899 = vmatpush1.bf16.msra.mxu1 %v15726_v38 }
 0x482   : > { %3255 = vmatprep.subr.bf16.mxu0 %v15733_v39  ;;  %3900 = vmatprep.subr.bf16.mxu1 %v15735_v34 }
 0x485   : > { %3256 = vmatpush1.bf16.msra.mxu0 %v15744_v5  ;;  %3901 = vmatpush1.bf16.msra.mxu1 %v15746_v40 }
 0x486   : > { %3257 = vmatprep.subr.bf16.mxu0 %v15753_v41  ;;  %3902 = vmatprep.subr.bf16.mxu1 %v15755_v42 }
 0x489   : > { %3258 = vmatpush1.bf16.msra.mxu0 %v15762_v43  ;;  %3903 = vmatpush1.bf16.msra.mxu1 %v15764_v44 }
 0x48a   : > { %3259 = vmatprep.subr.bf16.mxu0 %v15771_v45  ;;  %3904 = vmatprep.subr.bf16.mxu1 %v15773_v46 }
 0x48d   : > { %3260 = vmatpush1.bf16.msra.mxu0 %v15780_v47  ;;  %3905 = vmatpush1.bf16.msra.mxu1 %v15782_v52 }
 0x48e   : > { %3261 = vmatprep.subr.bf16.mxu0 %v15789_v53  ;;  %3906 = vmatprep.subr.bf16.mxu1 %v15791_v57 }
 0x491   : > { %3262 = vmatpush1.bf16.msra.mxu0 %v15798_v59  ;;  %3907 = vmatpush1.bf16.msra.mxu1 %v15800_v60 }
 0x492   : > { %3263 = vmatprep.subr.bf16.mxu0 %v15807_v25  ;;  %3908 = vmatprep.subr.bf16.mxu1 %v15809_v61 }
 0x495   : > { %3264 = vmatpush1.bf16.msra.mxu0 %v15816_v0  ;;  %3909 = vmatpush1.bf16.msra.mxu1 %v15818_v7 }
 0x496   : > { %3265 = vmatprep.subr.bf16.mxu0 %v15825_v51  ;;  %3910 = vmatprep.subr.bf16.mxu1 %v15827_v11 }
 0x499   : > { %3266 = vmatpush1.bf16.msra.mxu0 %v15834_v14  ;;  %3911 = vmatpush1.bf16.msra.mxu1 %v15836_v21  ;;  %v16051_v21 = vld [vmem:[#allocation8 + $0x294] ss:$8 sps:$4 sm:$0xff]  }
 0x49a   : > { %3267 = vmatprep.subr.bf16.mxu0 %v15843_v58  ;;  %3912 = vmatprep.subr.bf16.mxu1 %v15845_v55  ;;  %v15879_v55 = vld [vmem:[%s19528_s5 + $0xc4] ss:$8 sps:$4 sm:$0xff]   ;;  %19852 = vst [vmem:[#allocation88_spill] sm:$0xff] %v16051_v21 }
 0x49b   : > { %19814 = vst [vmem:[#allocation51_spill] sm:$0xff] %v15879_v55  ;;  %v15881_v58 = vld [vmem:[#allocation8 + $0xc4] ss:$8 sps:$4 sm:$0xff]  }
 0x49c   : > { %19815 = vst [vmem:[#allocation52_spill] sm:$0xff] %v15881_v58 }
 0x49d   : > { %3268 = vmatpush1.bf16.msra.mxu0 %v15852_v8  ;;  %3913 = vmatpush1.bf16.msra.mxu1 %v15854_v35  ;;  %v15888_v35 = vld [vmem:[%s19528_s5 + $0xc0] ss:$8 sps:$4 sm:$0xff]  }
 0x49e   : > { %3269 = vmatprep.subr.bf16.mxu0 %v15861_v37  ;;  %3914 = vmatprep.subr.bf16.mxu1 %v15863_v1  ;;  %19816 = vst [vmem:[#allocation53_spill] sm:$0xff] %v15888_v35  ;;  %v15890_v8 = vld [vmem:[#allocation8 + $0xc0] ss:$8 sps:$4 sm:$0xff]   ;;  %v15897_v1 = vld [vmem:[%s19528_s5 + $0xd4] ss:$8 sps:$4 sm:$0xff]  }
 0x49f   : > { %19817 = vst [vmem:[#allocation54_spill] sm:$0xff] %v15890_v8  ;;  %19818 = vst [vmem:[#allocation55_spill] sm:$0xff] %v15897_v1  ;;  %v15899_v37 = vld [vmem:[#allocation8 + $0xd4] ss:$8 sps:$4 sm:$0xff]  }
 0x4a0   : > { %19819 = vst [vmem:[#allocation56_spill] sm:$0xff] %v15899_v37 }
 0x4a1   : > { %3270 = vmatpush1.bf16.msra.mxu0 %v15870_v30  ;;  %3915 = vmatpush1.bf16.msra.mxu1 %v15872_v49  ;;  %v15906_v49 = vld [vmem:[%s19528_s5 + $0xd0] ss:$8 sps:$4 sm:$0xff]  }
 0x4a2   : > { %3271 = vmatprep.subr.bf16.mxu0 %v15879_v55  ;;  %3916 = vmatprep.subr.bf16.mxu1 %v15881_v58  ;;  %19820 = vst [vmem:[#allocation57_spill] sm:$0xff] %v15906_v49  ;;  %v15908_v30 = vld [vmem:[#allocation8 + $0xd0] ss:$8 sps:$4 sm:$0xff]   ;;  %v15915_v58 = vld [vmem:[%s19528_s5 + $0xe4] ss:$8 sps:$4 sm:$0xff]  }
 0x4a3   : > { %19821 = vst [vmem:[#allocation58_spill] sm:$0xff] %v15908_v30  ;;  %19822 = vst [vmem:[#allocation59_spill] sm:$0xff] %v15915_v58  ;;  %v15917_v55 = vld [vmem:[#allocation8 + $0xe4] ss:$8 sps:$4 sm:$0xff]  }
 0x4a4   : > { %19823 = vst [vmem:[#allocation60_spill] sm:$0xff] %v15917_v55 }
 0x4a5   : > { %3272 = vmatpush1.bf16.msra.mxu0 %v15888_v35  ;;  %3917 = vmatpush1.bf16.msra.mxu1 %v15890_v8  ;;  %v15924_v8 = vld [vmem:[%s19528_s5 + $0xe0] ss:$8 sps:$4 sm:$0xff]  }
 0x4a6   : > { %3273 = vmatprep.subr.bf16.mxu0 %v15897_v1  ;;  %3918 = vmatprep.subr.bf16.mxu1 %v15899_v37  ;;  %19824 = vst [vmem:[#allocation61_spill] sm:$0xff] %v15924_v8  ;;  %v15926_v35 = vld [vmem:[#allocation8 + $0xe0] ss:$8 sps:$4 sm:$0xff]   ;;  %v15933_v37 = vld [vmem:[%s19528_s5 + $0xf4] ss:$8 sps:$4 sm:$0xff]  }
 0x4a7   : > { %19825 = vst [vmem:[#allocation62_spill] sm:$0xff] %v15926_v35  ;;  %19826 = vst [vmem:[#allocation63_spill] sm:$0xff] %v15933_v37  ;;  %v15935_v1 = vld [vmem:[#allocation8 + $0xf4] ss:$8 sps:$4 sm:$0xff]  }
 0x4a8   : > { %19827 = vst [vmem:[#allocation64_spill] sm:$0xff] %v15935_v1 }
 0x4a9   : > { %3274 = vmatpush1.bf16.msra.mxu0 %v15906_v49  ;;  %3919 = vmatpush1.bf16.msra.mxu1 %v15908_v30  ;;  %v15942_v30 = vld [vmem:[%s19528_s5 + $0xf0] ss:$8 sps:$4 sm:$0xff]  }
 0x4aa   : > { %3275 = vmatprep.subr.bf16.mxu0 %v15915_v58  ;;  %3920 = vmatprep.subr.bf16.mxu1 %v15917_v55  ;;  %19828 = vst [vmem:[#allocation65_spill] sm:$0xff] %v15942_v30  ;;  %v15944_v49 = vld [vmem:[#allocation8 + $0xf0] ss:$8 sps:$4 sm:$0xff]   ;;  %v15951_v55 = vld [vmem:[%s19528_s5 + $0x104] ss:$8 sps:$4 sm:$0xff]  }
 0x4ab   : > { %19829 = vst [vmem:[#allocation66_spill] sm:$0xff] %v15944_v49  ;;  %19830 = vst [vmem:[#allocation67_spill] sm:$0xff] %v15951_v55  ;;  %v15953_v58 = vld [vmem:[#allocation8 + $0x104] ss:$8 sps:$4 sm:$0xff]  }
 0x4ac   : > { %19831 = vst [vmem:[#allocation68_spill] sm:$0xff] %v15953_v58 }
 0x4ad   : > { %3276 = vmatpush1.bf16.msra.mxu0 %v15924_v8  ;;  %3921 = vmatpush1.bf16.msra.mxu1 %v15926_v35  ;;  %v15960_v35 = vld [vmem:[%s19528_s5 + $0x100] ss:$8 sps:$4 sm:$0xff]   ;;  %v15971_v8 = vld [vmem:[#allocation8 + $0x114] ss:$8 sps:$4 sm:$0xff]  }
 0x4ae   : > { %3277 = vmatprep.subr.bf16.mxu0 %v15933_v37  ;;  %3922 = vmatprep.subr.bf16.mxu1 %v15935_v1  ;;  %19832 = vst [vmem:[#allocation69_spill] sm:$0xff] %v15960_v35  ;;  %v15963_v37 = vld [vmem:[#allocation8 + $0x100] ss:$8 sps:$4 sm:$0xff]   ;;  %v15969_v1 = vld [vmem:[%s19528_s5 + $0x114] ss:$8 sps:$4 sm:$0xff]   ;;  %19835 = vst [vmem:[#allocation72_spill] sm:$0xff] %v15971_v8 }
 0x4af   : > { %19833 = vst [vmem:[#allocation70_spill] sm:$0xff] %v15963_v37  ;;  %19834 = vst [vmem:[#allocation71_spill] sm:$0xff] %v15969_v1 }
 0x4b1   : > { %3278 = vmatpush1.bf16.msra.mxu0 %v15942_v30  ;;  %3923 = vmatpush1.bf16.msra.mxu1 %v15944_v49  ;;  %v15989_v49 = vld [vmem:[%s19528_s5 + $0x124] ss:$8 sps:$4 sm:$0xff]   ;;  %v15999_v30 = vld [vmem:[%s19528_s5 + $0x120] ss:$8 sps:$4 sm:$0xff]  }
 0x4b2   : > { %3298 = vmatprep.subr.bf16.mxu0 %v15951_v55  ;;  %3943 = vmatprep.subr.bf16.mxu1 %v15953_v58  ;;  %v15980_v55 = vld [vmem:[%s19528_s5 + $0x110] ss:$8 sps:$4 sm:$0xff]   ;;  %19838 = vst [vmem:[#allocation75_spill] sm:$0xff] %v15989_v49  ;;  %19840 = vst [vmem:[#allocation77_spill] sm:$0xff] %v15999_v30 }
 0x4b3   : > { %19836 = vst [vmem:[#allocation73_spill] sm:$0xff] %v15980_v55  ;;  %v15984_v58 = vld [vmem:[#allocation8 + $0x110] ss:$8 sps:$4 sm:$0xff]  }
 0x4b4   : > { %3280 = vmatmul.mubr.bf16.vlgmr.msra.gmra.mrb[28].mxu0 %v15568_v33  ;;  %3925 = vmatmul.mubr.bf16.vlgmr.msra.gmra.mrb[32].mxu1 %v15568_v33  ;;  %19837 = vst [vmem:[#allocation74_spill] sm:$0xff] %v15984_v58 }
 0x4b5   : > { %3289 = vmatprep.mubr.bf16.mxu0 %v15580_v56  ;;  %3299 = vmatpush1.bf16.msra.mxu0 %v15960_v35  ;;  %v15993_v35 = vld [vmem:[#allocation8 + $0x124] ss:$8 sps:$4 sm:$0xff]  }
 0x4b6   : > { %3934 = vmatprep.mubr.bf16.mxu1 %v15580_v56  ;;  %3944 = vmatpush1.bf16.msra.mxu1 %v15963_v37  ;;  %19839 = vst [vmem:[#allocation76_spill] sm:$0xff] %v15993_v35  ;;  %v16003_v37 = vld [vmem:[#allocation8 + $0x120] ss:$8 sps:$4 sm:$0xff]  }
 0x4b7   : > { %3300 = vmatprep.subr.bf16.mxu0 %v15969_v1  ;;  %3945 = vmatprep.subr.bf16.mxu1 %v15971_v8  ;;  %19841 = vst [vmem:[#allocation78_spill] sm:$0xff] %v16003_v37  ;;  %v16008_v1 = vld [vmem:[%s19528_s5 + $0x134] ss:$8 sps:$4 sm:$0xff]  }
 0x4b8   : > { %19842 = vst [vmem:[#allocation79_spill] sm:$0xff] %v16008_v1  ;;  %v16011_v8 = vld [vmem:[#allocation8 + $0x134] ss:$8 sps:$4 sm:$0xff]  }
 0x4b9   : > { %3301 = vmatpush1.bf16.msra.mxu0 %v15980_v55  ;;  %19843 = vst [vmem:[#allocation80_spill] sm:$0xff] %v16011_v8  ;;  %v16029_v55 = vld [vmem:[%s19528_s5 + $0x284] ss:$8 sps:$4 sm:$0xff]  }
 0x4ba   : > { %3946 = vmatpush1.bf16.msra.mxu1 %v15984_v58  ;;  %3302 = vmatprep.subr.bf16.mxu0 %v15989_v49  ;;  %v16019_v49 = vld [vmem:[%s19528_s5 + $0x130] ss:$8 sps:$4 sm:$0xff]   ;;  %v19845_v58 = vmov 0   ;;  %19847 = vst [vmem:[#allocation83_spill] sm:$0xff] %v16029_v55 }
 0x4bb   : > { %3947 = vmatprep.subr.bf16.mxu1 %v15993_v35  ;;  %19844 = vst [vmem:[#allocation81_spill] sm:$0xff] %v16019_v49  ;;  %v16024_v35 = vld [vmem:[#allocation8 + $0x130] ss:$8 sps:$4 sm:$0xff]  }
 0x4bc   : > { %3290 = vmatmul.mubr.bf16.gmra.mrb[40].mxu0 %v15578_v54  ;;  %3935 = vmatmul.mubr.bf16.gmra.mrb[44].mxu1 %v15578_v54  ;;  %19846 = vst [vmem:[#allocation82_spill] sm:$0xff] %v16024_v35 }
 0x4bd   : > { %3303 = vmatpush1.bf16.msra.mxu0 %v15999_v30  ;;  %3330 = vmatprep.mubr.bf16.mxu0 %v19845_v58  ;;  %v16033_v30 = vld [vmem:[#allocation8 + $0x284] ss:$8 sps:$4 sm:$0xff]  }
 0x4be   : > { %3948 = vmatpush1.bf16.msra.mxu1 %v16003_v37  ;;  %3304 = vmatprep.subr.bf16.mxu0 %v16008_v1  ;;  %19848 = vst [vmem:[#allocation84_spill] sm:$0xff] %v16033_v30  ;;  %v16039_v37 = vld [vmem:[%s19528_s5 + $0x280] ss:$8 sps:$4 sm:$0xff]  }
 0x4bf   : > { %3949 = vmatprep.subr.bf16.mxu1 %v16011_v8  ;;  %3975 = vmatprep.mubr.bf16.mxu1 %v19845_v58  ;;  %19849 = vst [vmem:[#allocation85_spill] sm:$0xff] %v16039_v37  ;;  %v16043_v1 = vld [vmem:[#allocation8 + $0x280] ss:$8 sps:$4 sm:$0xff]   ;;  %v16048_v8 = vld [vmem:[%s19528_s5 + $0x294] ss:$8 sps:$4 sm:$0xff]  }
 0x4c0   : > { %19850 = vst [vmem:[#allocation86_spill] sm:$0xff] %v16043_v1  ;;  %19851 = vst [vmem:[#allocation87_spill] sm:$0xff] %v16048_v8 }
 0x4c1   : > { %3305 = vmatpush1.bf16.msra.mxu0 %v16019_v49  ;;  %v4044_v49 = vrot.slane %v15572_v36, 1  ;;  %v16109_v36 = vld [vmem:[%s19528_s5 + $0x2b0] ss:$8 sps:$4 sm:$0xff]  }
 0x4c2   : > { %3950 = vmatpush1.bf16.msra.mxu1 %v16024_v35  ;;  %4260 = vmatprep.subr.bf16.mxu0 %v16029_v55  ;;  %v16061_v55 = vld [vmem:[%s19528_s5 + $0x290] ss:$8 sps:$4 sm:$0xff]   ;;  %v16070_v35 = vld [vmem:[%s19528_s5 + $0x2a4] ss:$8 sps:$4 sm:$0xff]   ;;  %19861 = vst [vmem:[#allocation97_spill] sm:$0xff] %v16109_v36 }
 0x4c3   : > { %4609 = vmatprep.subr.bf16.mxu1 %v16033_v30  ;;  %19853 = vst [vmem:[#allocation89_spill] sm:$0xff] %v16061_v55  ;;  %v16065_v30 = vld [vmem:[#allocation8 + $0x290] ss:$8 sps:$4 sm:$0xff]   ;;  %19855 = vst [vmem:[#allocation91_spill] sm:$0xff] %v16070_v35 }
 0x4c4   : > { %11494 = vmatmul.mubr.msk.bf16.vlgmr.msra.gmra.mrb[28].mxu0 %vm2934_vm6, %v15546_v48  ;;  %19854 = vst [vmem:[#allocation90_spill] sm:$0xff] %v16065_v30 }
 0x4c5   : > { %11578 = vmatmul.mubr.msk.bf16.vlgmr.msra.gmra.mrb[32].mxu1 %vm2934_vm6, %v15546_v48  ;;  %4261 = vmatpush1.bf16.msra.mxu0 %v16039_v37  ;;  %v16074_v37 = vld [vmem:[#allocation8 + $0x2a4] ss:$8 sps:$4 sm:$0xff]  }
 0x4c6   : > { %4610 = vmatpush1.bf16.msra.mxu1 %v16043_v1  ;;  %4262 = vmatprep.subr.bf16.mxu0 %v16048_v8  ;;  %19856 = vst [vmem:[#allocation92_spill] sm:$0xff] %v16074_v37  ;;  %v16081_v8 = vld [vmem:[%s19528_s5 + $0x2a0] ss:$8 sps:$4 sm:$0xff]   ;;  %v16084_v1 = vrot.slane %v15580_v56, 1  ;;  %v16099_v56 = vld [vmem:[#allocation8 + $0x2b4] ss:$8 sps:$4 sm:$0xff]  }
 0x4c7   : > { %4611 = vmatprep.subr.bf16.mxu1 %v16051_v21  ;;  %3340 = vmatprep.mubr.bf16.mxu0 %v19845_v58  ;;  %19857 = vst [vmem:[#allocation93_spill] sm:$0xff] %v16081_v8  ;;  %v16088_v21 = vld [vmem:[#allocation8 + $0x2a0] ss:$8 sps:$4 sm:$0xff]   ;;  %19860 = vst [vmem:[#allocation96_spill] sm:$0xff] %v16099_v56 }
 0x4c8   : > { %3985 = vmatprep.mubr.bf16.mxu1 %v19845_v58  ;;  %19858 = vst [vmem:[#allocation94_spill] sm:$0xff] %v16088_v21 }
 0x4c9   : > { %4263 = vmatpush1.bf16.msra.mxu0 %v16061_v55  ;;  %v16095_v55 = vld [vmem:[%s19528_s5 + $0x2b4] ss:$8 sps:$4 sm:$0xff]  }
 0x4ca   : > { %4612 = vmatpush1.bf16.msra.mxu1 %v16065_v30  ;;  %4264 = vmatprep.subr.bf16.mxu0 %v16070_v35  ;;  %19859 = vst [vmem:[#allocation95_spill] sm:$0xff] %v16095_v55  ;;  %v16112_v35 = vld [vmem:[#allocation8 + $0x2b0] ss:$8 sps:$4 sm:$0xff]   ;;  %v16117_v30 = vld [vmem:[%s19528_s5 + $0x2c4] ss:$8 sps:$4 sm:$0xff]  }
 0x4cb   : > { %4613 = vmatprep.subr.bf16.mxu1 %v16074_v37  ;;  %v4046_v37 = vsel %vm2125_vm3, %v4044_v49, %v16084_v1  ;;  %19862 = vst [vmem:[#allocation98_spill] sm:$0xff] %v16112_v35  ;;  %19863 = vst [vmem:[#allocation99_spill] sm:$0xff] %v16117_v30  ;;  %v16127_v49 = vld [vmem:[%s19528_s5 + $0x2c0] ss:$8 sps:$4 sm:$0xff]  }
 0x4cc   : > { %11495 = vmatmul.mubr.msk.bf16.gmra.mrb[44].mxu0 %vm2934_vm6, %v15560_v4  ;;  %19865 = vst [vmem:[#allocation101_spill] sm:$0xff] %v16127_v49 }
 0x4cd   : > { %11579 = vmatmul.mubr.msk.bf16.gmra.mrb[48].mxu1 %vm2934_vm6, %v15560_v4  ;;  %4265 = vmatpush1.bf16.msra.mxu0 %v16081_v8  ;;  %v16120_v8 = vld [vmem:[#allocation8 + $0x2c4] ss:$8 sps:$4 sm:$0xff]  }
 0x4ce   : > { %4292 = vmatprep.mubr.bf16.mxu0 %v4046_v37  ;;  %4614 = vmatpush1.bf16.msra.mxu1 %v16088_v21  ;;  %19864 = vst [vmem:[#allocation100_spill] sm:$0xff] %v16120_v8  ;;  %v16131_v21 = vld [vmem:[#allocation8 + $0x2c0] ss:$8 sps:$4 sm:$0xff]  }
 0x4cf   : > { %4641 = vmatprep.mubr.bf16.mxu1 %v4046_v37  ;;  %4266 = vmatprep.subr.bf16.mxu0 %v16095_v55  ;;  %19866 = vst [vmem:[#allocation102_spill] sm:$0xff] %v16131_v21  ;;  %v16136_v37 = vld [vmem:[%s19528_s5 + $0x2d4] ss:$8 sps:$4 sm:$0xff]   ;;  %v4041_v55 = vrot.slane %v15568_v33, 1 }
 0x4d0   : > { %4615 = vmatprep.subr.bf16.mxu1 %v16099_v56  ;;  %19867 = vst [vmem:[#allocation103_spill] sm:$0xff] %v16136_v37  ;;  %v16139_v56 = vld [vmem:[#allocation8 + $0x2d4] ss:$8 sps:$4 sm:$0xff]  }
 0x4d1   : > { %4267 = vmatpush1.bf16.msra.mxu0 %v16109_v36  ;;  %19868 = vst [vmem:[#allocation104_spill] sm:$0xff] %v16139_v56  ;;  %v16145_v36 = vld [vmem:[%s19528_s5 + $0x2d0] ss:$8 sps:$4 sm:$0xff]   ;;  %v16358_v33 = vld [vmem:[#allocation8 + $0x394] ss:$8 sps:$4 sm:$0xff]  }
 0x4d2   : > { %4616 = vmatpush1.bf16.msra.mxu1 %v16112_v35  ;;  %4268 = vmatprep.subr.bf16.mxu0 %v16117_v30  ;;  %19869 = vst [vmem:[#allocation105_spill] sm:$0xff] %v16145_v36  ;;  %v16149_v30 = vld [vmem:[#allocation8 + $0x2d0] ss:$8 sps:$4 sm:$0xff]   ;;  %v16154_v35 = vld [vmem:[%s19528_s5 + $0x2e4] ss:$8 sps:$4 sm:$0xff]   ;;  %19916 = vst [vmem:[#allocation152_spill] sm:$0xff] %v16358_v33 }
 0x4d3   : > { %4617 = vmatprep.subr.bf16.mxu1 %v16120_v8  ;;  %19870 = vst [vmem:[#allocation106_spill] sm:$0xff] %v16149_v30  ;;  %19871 = vst [vmem:[#allocation107_spill] sm:$0xff] %v16154_v35  ;;  %v16157_v8 = vld [vmem:[#allocation8 + $0x2e4] ss:$8 sps:$4 sm:$0xff]  }
 0x4d4   : > { %19872 = vst [vmem:[#allocation108_spill] sm:$0xff] %v16157_v8 }
 0x4d5   : > { %4269 = vmatpush1.bf16.msra.mxu0 %v16127_v49  ;;  %v16163_v49 = vld [vmem:[%s19528_s5 + $0x2e0] ss:$8 sps:$4 sm:$0xff]  }
 0x4d6   : > { %4618 = vmatpush1.bf16.msra.mxu1 %v16131_v21  ;;  %4270 = vmatprep.subr.bf16.mxu0 %v16136_v37  ;;  %19873 = vst [vmem:[#allocation109_spill] sm:$0xff] %v16163_v49  ;;  %v16167_v37 = vld [vmem:[#allocation8 + $0x2e0] ss:$8 sps:$4 sm:$0xff]   ;;  %v16172_v21 = vld [vmem:[%s19528_s5 + $0x2f4] ss:$8 sps:$4 sm:$0xff]  }
 0x4d7   : > { %4619 = vmatprep.subr.bf16.mxu1 %v16139_v56  ;;  %19874 = vst [vmem:[#allocation110_spill] sm:$0xff] %v16167_v37  ;;  %19875 = vst [vmem:[#allocation111_spill] sm:$0xff] %v16172_v21  ;;  %v16175_v56 = vld [vmem:[#allocation8 + $0x2f4] ss:$8 sps:$4 sm:$0xff]  }
 0x4d8   : > { %19876 = vst [vmem:[#allocation112_spill] sm:$0xff] %v16175_v56 }
 0x4d9   : > { %4271 = vmatpush1.bf16.msra.mxu0 %v16145_v36  ;;  %v16181_v36 = vld [vmem:[%s19528_s5 + $0x2f0] ss:$8 sps:$4 sm:$0xff]  }
 0x4da   : > { %4620 = vmatpush1.bf16.msra.mxu1 %v16149_v30  ;;  %4272 = vmatprep.subr.bf16.mxu0 %v16154_v35  ;;  %19877 = vst [vmem:[#allocation113_spill] sm:$0xff] %v16181_v36  ;;  %v16185_v35 = vld [vmem:[#allocation8 + $0x2f0] ss:$8 sps:$4 sm:$0xff]   ;;  %v16190_v30 = vld [vmem:[%s19528_s5 + $0x304] ss:$8 sps:$4 sm:$0xff]  }
 0x4db   : > { %4621 = vmatprep.subr.bf16.mxu1 %v16157_v8  ;;  %19878 = vst [vmem:[#allocation114_spill] sm:$0xff] %v16185_v35  ;;  %19879 = vst [vmem:[#allocation115_spill] sm:$0xff] %v16190_v30  ;;  %v16193_v8 = vld [vmem:[#allocation8 + $0x304] ss:$8 sps:$4 sm:$0xff]  }
 0x4dc   : > { %19880 = vst [vmem:[#allocation116_spill] sm:$0xff] %v16193_v8 }
 0x4dd   : > { %4273 = vmatpush1.bf16.msra.mxu0 %v16163_v49  ;;  %v16199_v49 = vld [vmem:[%s19528_s5 + $0x300] ss:$8 sps:$4 sm:$0xff]  }
 0x4de   : > { %4622 = vmatpush1.bf16.msra.mxu1 %v16167_v37  ;;  %4274 = vmatprep.subr.bf16.mxu0 %v16172_v21  ;;  %19881 = vst [vmem:[#allocation117_spill] sm:$0xff] %v16199_v49  ;;  %v16203_v21 = vld [vmem:[#allocation8 + $0x300] ss:$8 sps:$4 sm:$0xff]   ;;  %v16208_v37 = vld [vmem:[%s19528_s5 + $0x314] ss:$8 sps:$4 sm:$0xff]  }
 0x4df   : > { %4623 = vmatprep.subr.bf16.mxu1 %v16175_v56  ;;  %19882 = vst [vmem:[#allocation118_spill] sm:$0xff] %v16203_v21  ;;  %19883 = vst [vmem:[#allocation119_spill] sm:$0xff] %v16208_v37  ;;  %v16211_v56 = vld [vmem:[#allocation8 + $0x314] ss:$8 sps:$4 sm:$0xff]  }
 0x4e0   : > { %19884 = vst [vmem:[#allocation120_spill] sm:$0xff] %v16211_v56 }
 0x4e1   : > { %4275 = vmatpush1.bf16.msra.mxu0 %v16181_v36  ;;  %v16217_v36 = vld [vmem:[%s19528_s5 + $0x310] ss:$8 sps:$4 sm:$0xff]  }
 0x4e2   : > { %4624 = vmatpush1.bf16.msra.mxu1 %v16185_v35  ;;  %4276 = vmatprep.subr.bf16.mxu0 %v16190_v30  ;;  %19885 = vst [vmem:[#allocation121_spill] sm:$0xff] %v16217_v36  ;;  %v16221_v30 = vld [vmem:[#allocation8 + $0x310] ss:$8 sps:$4 sm:$0xff]   ;;  %v16226_v35 = vld [vmem:[%s19528_s5 + $0x324] ss:$8 sps:$4 sm:$0xff]  }
 0x4e3   : > { %4625 = vmatprep.subr.bf16.mxu1 %v16193_v8  ;;  %19886 = vst [vmem:[#allocation122_spill] sm:$0xff] %v16221_v30  ;;  %19887 = vst [vmem:[#allocation123_spill] sm:$0xff] %v16226_v35  ;;  %v16229_v8 = vld [vmem:[#allocation8 + $0x324] ss:$8 sps:$4 sm:$0xff]  }
 0x4e4   : > { %19888 = vst [vmem:[#allocation124_spill] sm:$0xff] %v16229_v8 }
 0x4e5   : > { %4277 = vmatpush1.bf16.msra.mxu0 %v16199_v49  ;;  %v16235_v49 = vld [vmem:[%s19528_s5 + $0x320] ss:$8 sps:$4 sm:$0xff]  }
 0x4e6   : > { %4626 = vmatpush1.bf16.msra.mxu1 %v16203_v21  ;;  %4278 = vmatprep.subr.bf16.mxu0 %v16208_v37  ;;  %19889 = vst [vmem:[#allocation125_spill] sm:$0xff] %v16235_v49  ;;  %v16239_v37 = vld [vmem:[#allocation8 + $0x320] ss:$8 sps:$4 sm:$0xff]   ;;  %v16244_v21 = vld [vmem:[%s19528_s5 + $0x334] ss:$8 sps:$4 sm:$0xff]  }
 0x4e7   : > { %4627 = vmatprep.subr.bf16.mxu1 %v16211_v56  ;;  %19890 = vst [vmem:[#allocation126_spill] sm:$0xff] %v16239_v37  ;;  %19891 = vst [vmem:[#allocation127_spill] sm:$0xff] %v16244_v21  ;;  %v16247_v56 = vld [vmem:[#allocation8 + $0x334] ss:$8 sps:$4 sm:$0xff]  }
 0x4e8   : > { %19892 = vst [vmem:[#allocation128_spill] sm:$0xff] %v16247_v56 }
 0x4e9   : > { %4279 = vmatpush1.bf16.msra.mxu0 %v16217_v36  ;;  %v16253_v36 = vld [vmem:[%s19528_s5 + $0x330] ss:$8 sps:$4 sm:$0xff]  }
 0x4ea   : > { %4628 = vmatpush1.bf16.msra.mxu1 %v16221_v30  ;;  %4280 = vmatprep.subr.bf16.mxu0 %v16226_v35  ;;  %19893 = vst [vmem:[#allocation129_spill] sm:$0xff] %v16253_v36  ;;  %v16257_v35 = vld [vmem:[#allocation8 + $0x330] ss:$8 sps:$4 sm:$0xff]   ;;  %v16262_v30 = vld [vmem:[%s19528_s5 + $0x344] ss:$8 sps:$4 sm:$0xff]  }
 0x4eb   : > { %4629 = vmatprep.subr.bf16.mxu1 %v16229_v8  ;;  %19894 = vst [vmem:[#allocation130_spill] sm:$0xff] %v16257_v35  ;;  %19895 = vst [vmem:[#allocation131_spill] sm:$0xff] %v16262_v30  ;;  %v16265_v8 = vld [vmem:[#allocation8 + $0x344] ss:$8 sps:$4 sm:$0xff]  }
 0x4ec   : > { %19896 = vst [vmem:[#allocation132_spill] sm:$0xff] %v16265_v8 }
 0x4ed   : > { %4281 = vmatpush1.bf16.msra.mxu0 %v16235_v49  ;;  %v16271_v49 = vld [vmem:[%s19528_s5 + $0x340] ss:$8 sps:$4 sm:$0xff]  }
 0x4ee   : > { %4630 = vmatpush1.bf16.msra.mxu1 %v16239_v37  ;;  %4282 = vmatprep.subr.bf16.mxu0 %v16244_v21  ;;  %19897 = vst [vmem:[#allocation133_spill] sm:$0xff] %v16271_v49  ;;  %v16275_v21 = vld [vmem:[#allocation8 + $0x340] ss:$8 sps:$4 sm:$0xff]   ;;  %v16280_v37 = vld [vmem:[%s19528_s5 + $0x354] ss:$8 sps:$4 sm:$0xff]  }
 0x4ef   : > { %4631 = vmatprep.subr.bf16.mxu1 %v16247_v56  ;;  %19898 = vst [vmem:[#allocation134_spill] sm:$0xff] %v16275_v21  ;;  %19899 = vst [vmem:[#allocation135_spill] sm:$0xff] %v16280_v37  ;;  %v16283_v56 = vld [vmem:[#allocation8 + $0x354] ss:$8 sps:$4 sm:$0xff]  }
 0x4f0   : > { %19900 = vst [vmem:[#allocation136_spill] sm:$0xff] %v16283_v56 }
 0x4f1   : > { %4283 = vmatpush1.bf16.msra.mxu0 %v16253_v36  ;;  %v16289_v36 = vld [vmem:[%s19528_s5 + $0x350] ss:$8 sps:$4 sm:$0xff]  }
 0x4f2   : > { %4632 = vmatpush1.bf16.msra.mxu1 %v16257_v35  ;;  %4284 = vmatprep.subr.bf16.mxu0 %v16262_v30  ;;  %19901 = vst [vmem:[#allocation137_spill] sm:$0xff] %v16289_v36  ;;  %v16293_v30 = vld [vmem:[#allocation8 + $0x350] ss:$8 sps:$4 sm:$0xff]   ;;  %v16298_v35 = vld [vmem:[%s19528_s5 + $0x364] ss:$8 sps:$4 sm:$0xff]  }
 0x4f3   : > { %4633 = vmatprep.subr.bf16.mxu1 %v16265_v8  ;;  %19902 = vst [vmem:[#allocation138_spill] sm:$0xff] %v16293_v30  ;;  %19903 = vst [vmem:[#allocation139_spill] sm:$0xff] %v16298_v35  ;;  %v16301_v8 = vld [vmem:[#allocation8 + $0x364] ss:$8 sps:$4 sm:$0xff]  }
 0x4f4   : > { %19904 = vst [vmem:[#allocation140_spill] sm:$0xff] %v16301_v8 }
 0x4f5   : > { %4285 = vmatpush1.bf16.msra.mxu0 %v16271_v49  ;;  %v16307_v49 = vld [vmem:[%s19528_s5 + $0x360] ss:$8 sps:$4 sm:$0xff]  }
 0x4f6   : > { %4634 = vmatpush1.bf16.msra.mxu1 %v16275_v21  ;;  %4286 = vmatprep.subr.bf16.mxu0 %v16280_v37  ;;  %19905 = vst [vmem:[#allocation141_spill] sm:$0xff] %v16307_v49  ;;  %v16311_v37 = vld [vmem:[#allocation8 + $0x360] ss:$8 sps:$4 sm:$0xff]   ;;  %v16316_v21 = vld [vmem:[%s19528_s5 + $0x374] ss:$8 sps:$4 sm:$0xff]  }
 0x4f7   : > { %4635 = vmatprep.subr.bf16.mxu1 %v16283_v56  ;;  %19906 = vst [vmem:[#allocation142_spill] sm:$0xff] %v16311_v37  ;;  %19907 = vst [vmem:[#allocation143_spill] sm:$0xff] %v16316_v21  ;;  %v16319_v56 = vld [vmem:[#allocation8 + $0x374] ss:$8 sps:$4 sm:$0xff]  }
 0x4f8   : > { %19908 = vst [vmem:[#allocation144_spill] sm:$0xff] %v16319_v56 }
 0x4f9   : > { %4287 = vmatpush1.bf16.msra.mxu0 %v16289_v36  ;;  %v16325_v36 = vld [vmem:[%s19528_s5 + $0x370] ss:$8 sps:$4 sm:$0xff]  }
 0x4fa   : > { %4636 = vmatpush1.bf16.msra.mxu1 %v16293_v30  ;;  %4288 = vmatprep.subr.bf16.mxu0 %v16298_v35  ;;  %19909 = vst [vmem:[#allocation145_spill] sm:$0xff] %v16325_v36  ;;  %v16329_v35 = vld [vmem:[#allocation8 + $0x370] ss:$8 sps:$4 sm:$0xff]   ;;  %v16334_v30 = vld [vmem:[%s19528_s5 + $0x384] ss:$8 sps:$4 sm:$0xff]  }
 0x4fb   : > { %4637 = vmatprep.subr.bf16.mxu1 %v16301_v8  ;;  %19910 = vst [vmem:[#allocation146_spill] sm:$0xff] %v16329_v35  ;;  %19911 = vst [vmem:[#allocation147_spill] sm:$0xff] %v16334_v30  ;;  %v16338_v8 = vld [vmem:[#allocation8 + $0x384] ss:$8 sps:$4 sm:$0xff]  }
 0x4fc   : > { %19912 = vst [vmem:[#allocation148_spill] sm:$0xff] %v16338_v8 }
 0x4fd   : > { %4289 = vmatpush1.bf16.msra.mxu0 %v16307_v49  ;;  %v4042_v49 = vrot.slane %v15578_v54, 1  ;;  %v16356_v54 = vld [vmem:[%s19528_s5 + $0x394] ss:$8 sps:$4 sm:$0xff]  }
 0x4fe   : > { %4638 = vmatpush1.bf16.msra.mxu1 %v16311_v37  ;;  %4290 = vmatprep.subr.bf16.mxu0 %v16316_v21  ;;  %v16346_v21 = vld [vmem:[%s19528_s5 + $0x380] ss:$8 sps:$4 sm:$0xff]   ;;  %19915 = vst [vmem:[#allocation151_spill] sm:$0xff] %v16356_v54 }
 0x4ff   : > { %4639 = vmatprep.subr.bf16.mxu1 %v16319_v56  ;;  %19913 = vst [vmem:[#allocation149_spill] sm:$0xff] %v16346_v21  ;;  %v4043_v37 = vsel %vm2125_vm3, %v4041_v55, %v4042_v49  ;;  %v16350_v56 = vld [vmem:[#allocation8 + $0x380] ss:$8 sps:$4 sm:$0xff]  }
 0x500   : > { %19914 = vst [vmem:[#allocation150_spill] sm:$0xff] %v16350_v56  ;;  %v16366_v55 = vld [vmem:[%s19528_s5 + $0x390] ss:$8 sps:$4 sm:$0xff]  }
 0x501   : > { %4291 = vmatpush1.bf16.msra.mxu0 %v16325_v36  ;;  %19917 = vst [vmem:[#allocation153_spill] sm:$0xff] %v16366_v55 }
 0x502   : > { %4640 = vmatpush1.bf16.msra.mxu1 %v16329_v35  ;;  %4311 = vmatprep.subr.bf16.mxu0 %v16334_v30 }
 0x503   : > { %4660 = vmatprep.subr.bf16.mxu1 %v16338_v8  ;;  %v16370_v8 = vld [vmem:[#allocation8 + $0x390] ss:$8 sps:$4 sm:$0xff]  }
 0x504   : > { %4293 = vmatmul.mubr.bf16.vlgmr.msra.gmra.mrb[28].mxu0 %v4043_v37  ;;  %19918 = vst [vmem:[#allocation154_spill] sm:$0xff] %v16370_v8 }
 0x505   : > { %4642 = vmatmul.mubr.bf16.vlgmr.msra.gmra.mrb[32].mxu1 %v4043_v37  ;;  %4302 = vmatprep.mubr.bf16.mxu0 %v16084_v1  ;;  %v16375_v37 = vld [vmem:[%s19528_s5 + $0x3a4] ss:$8 sps:$4 sm:$0xff]  }
 0x506   : > { %4312 = vmatpush1.bf16.msra.mxu0 %v16346_v21  ;;  %4651 = vmatprep.mubr.bf16.mxu1 %v16084_v1  ;;  %19919 = vst [vmem:[#allocation155_spill] sm:$0xff] %v16375_v37  ;;  %v16378_v21 = vld [vmem:[#allocation8 + $0x3a4] ss:$8 sps:$4 sm:$0xff]   ;;  %v16384_v1 = vld [vmem:[%s19528_s5 + $0x3a0] ss:$8 sps:$4 sm:$0xff]  }
 0x507   : > { %4661 = vmatpush1.bf16.msra.mxu1 %v16350_v56  ;;  %4313 = vmatprep.subr.bf16.mxu0 %v16356_v54  ;;  %19920 = vst [vmem:[#allocation156_spill] sm:$0xff] %v16378_v21  ;;  %19921 = vst [vmem:[#allocation157_spill] sm:$0xff] %v16384_v1  ;;  %v16388_v54 = vld [vmem:[#allocation8 + $0x3a0] ss:$8 sps:$4 sm:$0xff]   ;;  %v16393_v56 = vld [vmem:[%s19528_s5 + $0x3b4] ss:$8 sps:$4 sm:$0xff]  }
 0x508   : > { %4662 = vmatprep.subr.bf16.mxu1 %v16358_v33  ;;  %19922 = vst [vmem:[#allocation158_spill] sm:$0xff] %v16388_v54  ;;  %19923 = vst [vmem:[#allocation159_spill] sm:$0xff] %v16393_v56  ;;  %v4760_v33 = vshrl.u32 %v15548_v50, 16 }
 0x50a   : > { %4314 = vmatpush1.bf16.msra.mxu0 %v16366_v55  ;;  %v16396_v55 = vld [vmem:[#allocation8 + $0x3b4] ss:$8 sps:$4 sm:$0xff]  }
 0x50b   : > { %4663 = vmatpush1.bf16.msra.mxu1 %v16370_v8  ;;  %4315 = vmatprep.subr.bf16.mxu0 %v16375_v37  ;;  %19924 = vst [vmem:[#allocation160_spill] sm:$0xff] %v16396_v55  ;;  %v16403_v37 = vld [vmem:[%s19528_s5 + $0x3b0] ss:$8 sps:$4 sm:$0xff]  }
 0x50c   : > { %4303 = vmatmul.mubr.bf16.gmra.mrb[48].mxu0 %v4042_v49  ;;  %4664 = vmatprep.subr.bf16.mxu1 %v16378_v21  ;;  %19925 = vst [vmem:[#allocation161_spill] sm:$0xff] %v16403_v37  ;;  %v16408_v8 = vld [vmem:[#allocation8 + $0x3b0] ss:$8 sps:$4 sm:$0xff]   ;;  %v16420_v21 = vld [vmem:[%s19528_s5 + $0x144] ss:$8 sps:$4 sm:$0xff]  }
 0x50d   : > { %4652 = vmatmul.mubr.bf16.gmra.mrb[52].mxu1 %v4042_v49  ;;  %4343 = vmatprep.mubr.bf16.mxu0 %v19845_v58  ;;  %19926 = vst [vmem:[#allocation162_spill] sm:$0xff] %v16408_v8  ;;  %v16412_v49 = vrot.slane %v15560_v4, 1  ;;  %19928 = vst [vmem:[#allocation164_spill] sm:$0xff] %v16420_v21  ;;  %v16651_v4 = vld [vmem:[#allocation8 + $0x1f0] ss:$8 sps:$4 sm:$0xff]  }
 0x50e   : > { %4316 = vmatpush1.bf16.msra.mxu0 %v16384_v1  ;;  %4692 = vmatprep.mubr.bf16.mxu1 %v19845_v58  ;;  %v4047_v1 = vrot.slane %v15546_v48, 1  ;;  %19976 = vst [vmem:[#allocation212_spill] sm:$0xff] %v16651_v4 }
 0x50f   : > { %4665 = vmatpush1.bf16.msra.mxu1 %v16388_v54  ;;  %4317 = vmatprep.subr.bf16.mxu0 %v16393_v56  ;;  %19927 = vst [vmem:[#allocation163_spill] sm:$0xff] %v16412_v49  ;;  %v16451_v54 = vld [vmem:[#allocation8 + $0x154] ss:$8 sps:$4 sm:$0xff]  }
 0x510   : > { %4666 = vmatprep.subr.bf16.mxu1 %v16396_v55  ;;  %v16425_v56 = vsel %vm2125_vm3, %v4047_v1, %v16412_v49  ;;  %v16427_v55 = vld [vmem:[#allocation8 + $0x144] ss:$8 sps:$4 sm:$0xff]   ;;  %v4767_v1 = vshll.u32 %v15562_v6, 16  ;;  %19934 = vst [vmem:[#allocation170_spill] sm:$0xff] %v16451_v54 }
 0x511   : > { %19929 = vst [vmem:[#allocation165_spill] sm:$0xff] %v16425_v56  ;;  %19930 = vst [vmem:[#allocation166_spill] sm:$0xff] %v16427_v55 }
 0x512   : > { %4318 = vmatpush1.bf16.msra.mxu0 %v16403_v37  ;;  %v4762_v37 = vshll.u32 %v15548_v50, 16 }
 0x513   : > { %4667 = vmatpush1.bf16.msra.mxu1 %v16408_v8  ;;  %4799 = vmatprep.subr.bf16.mxu0 %v16420_v21  ;;  %v16438_v21 = vld [vmem:[%s19528_s5 + $0x140] ss:$8 sps:$4 sm:$0xff]  }
 0x514   : > { %5007 = vmatprep.subr.bf16.mxu1 %v16427_v55  ;;  %19931 = vst [vmem:[#allocation167_spill] sm:$0xff] %v16438_v21  ;;  %v16442_v8 = vld [vmem:[#allocation8 + $0x140] ss:$8 sps:$4 sm:$0xff]   ;;  %v16448_v55 = vld [vmem:[%s19528_s5 + $0x154] ss:$8 sps:$4 sm:$0xff]  }
 0x515   : > { %11660 = vmatmul.mubr.msk.bf16.vlgmr.msra.gmra.mrb[28].mxu0 %vm2934_vm6, %v16425_v56  ;;  %19932 = vst [vmem:[#allocation168_spill] sm:$0xff] %v16442_v8  ;;  %19933 = vst [vmem:[#allocation169_spill] sm:$0xff] %v16448_v55 }
 0x516   : > { %11702 = vmatmul.mubr.msk.bf16.vlgmr.msra.gmra.mrb[32].mxu1 %vm2934_vm6, %v16425_v56  ;;  %4800 = vmatpush1.bf16.msra.mxu0 %v16438_v21  ;;  %v4764_v21 = vrot.slane %v4762_v37, 1  ;;  %v16463_v56 = vrot.slane %v4767_v1, 1  ;;  %v16471_v37 = vld [vmem:[%s19528_s5 + $0x164] ss:$8 sps:$4 sm:$0xff]   ;;  %v16484_v1 = vld [vmem:[%s19528_s5 + $0x160] ss:$8 sps:$4 sm:$0xff]  }
 0x517   : > { %5008 = vmatpush1.bf16.msra.mxu1 %v16442_v8  ;;  %4801 = vmatprep.subr.bf16.mxu0 %v16448_v55  ;;  %v16459_v8 = vld [vmem:[%s19528_s5 + $0x150] ss:$8 sps:$4 sm:$0xff]   ;;  %19937 = vst [vmem:[#allocation173_spill] sm:$0xff] %v16471_v37  ;;  %19939 = vst [vmem:[#allocation175_spill] sm:$0xff] %v16484_v1 }
 0x518   : > { %5009 = vmatprep.subr.bf16.mxu1 %v16451_v54  ;;  %4353 = vmatprep.mubr.bf16.mxu0 %v19845_v58  ;;  %19935 = vst [vmem:[#allocation171_spill] sm:$0xff] %v16459_v8  ;;  %v16465_v55 = vld [vmem:[#allocation8 + $0x150] ss:$8 sps:$4 sm:$0xff]   ;;  %v16474_v54 = vld [vmem:[#allocation8 + $0x164] ss:$8 sps:$4 sm:$0xff]  }
 0x519   : > { %4702 = vmatprep.mubr.bf16.mxu1 %v19845_v58  ;;  %19936 = vst [vmem:[#allocation172_spill] sm:$0xff] %v16465_v55  ;;  %19938 = vst [vmem:[#allocation174_spill] sm:$0xff] %v16474_v54 }
 0x51a   : > { %4802 = vmatpush1.bf16.msra.mxu0 %v16459_v8  ;;  %v4765_v8 = vor.u32 %v4764_v21, %v4760_v33  ;;  %v16495_v21 = vld [vmem:[%s19528_s5 + $0x174] ss:$8 sps:$4 sm:$0xff]  }
 0x51b   : > { %5010 = vmatpush1.bf16.msra.mxu1 %v16465_v55  ;;  %4803 = vmatprep.subr.bf16.mxu0 %v16471_v37  ;;  %v16489_v55 = vld [vmem:[#allocation8 + $0x160] ss:$8 sps:$4 sm:$0xff]   ;;  %19941 = vst [vmem:[#allocation177_spill] sm:$0xff] %v16495_v21  ;;  %v16498_v33 = vld [vmem:[#allocation8 + $0x174] ss:$8 sps:$4 sm:$0xff]  }
 0x51c   : > { %5011 = vmatprep.subr.bf16.mxu1 %v16474_v54  ;;  %v4770_v37 = vsel %vm1490_vm4, %v4765_v8, %v16463_v56  ;;  %19940 = vst [vmem:[#allocation176_spill] sm:$0xff] %v16489_v55  ;;  %19942 = vst [vmem:[#allocation178_spill] sm:$0xff] %v16498_v33  ;;  %v16504_v8 = vld [vmem:[%s19528_s5 + $0x170] ss:$8 sps:$4 sm:$0xff]  }
 0x51d   : > { %11661 = vmatmul.mubr.msk.bf16.gmra.mrb[52].mxu0 %vm2934_vm6, %v16412_v49  ;;  %19943 = vst [vmem:[#allocation179_spill] sm:$0xff] %v16504_v8 }
 0x51e   : > { %11703 = vmatmul.mubr.msk.bf16.gmra.mrb[56].mxu1 %vm2934_vm6, %v16412_v49  ;;  %4804 = vmatpush1.bf16.msra.mxu0 %v16484_v1 }
 0x51f   : > { %4831 = vmatprep.mubr.bf16.mxu0 %v4770_v37  ;;  %5012 = vmatpush1.bf16.msra.mxu1 %v16489_v55  ;;  %v16507_v55 = vld [vmem:[#allocation8 + $0x170] ss:$8 sps:$4 sm:$0xff]  }
 0x520   : > { %5039 = vmatprep.mubr.bf16.mxu1 %v4770_v37  ;;  %4805 = vmatprep.subr.bf16.mxu0 %v16495_v21  ;;  %19944 = vst [vmem:[#allocation180_spill] sm:$0xff] %v16507_v55  ;;  %v16513_v37 = vld [vmem:[%s19528_s5 + $0x184] ss:$8 sps:$4 sm:$0xff]  }
 0x521   : > { %5013 = vmatprep.subr.bf16.mxu1 %v16498_v33  ;;  %19945 = vst [vmem:[#allocation181_spill] sm:$0xff] %v16513_v37  ;;  %v16516_v21 = vld [vmem:[#allocation8 + $0x184] ss:$8 sps:$4 sm:$0xff]   ;;  %v16522_v33 = vld [vmem:[%s19528_s5 + $0x180] ss:$8 sps:$4 sm:$0xff]  }
 0x522   : > { %4806 = vmatpush1.bf16.msra.mxu0 %v16504_v8  ;;  %19946 = vst [vmem:[#allocation182_spill] sm:$0xff] %v16516_v21  ;;  %19947 = vst [vmem:[#allocation183_spill] sm:$0xff] %v16522_v33  ;;  %v16525_v8 = vld [vmem:[#allocation8 + $0x180] ss:$8 sps:$4 sm:$0xff]  }
 0x523   : > { %5014 = vmatpush1.bf16.msra.mxu1 %v16507_v55  ;;  %4807 = vmatprep.subr.bf16.mxu0 %v16513_v37  ;;  %19948 = vst [vmem:[#allocation184_spill] sm:$0xff] %v16525_v8  ;;  %v16531_v55 = vld [vmem:[%s19528_s5 + $0x194] ss:$8 sps:$4 sm:$0xff]  }
 0x524   : > { %5015 = vmatprep.subr.bf16.mxu1 %v16516_v21  ;;  %19949 = vst [vmem:[#allocation185_spill] sm:$0xff] %v16531_v55  ;;  %v16534_v37 = vld [vmem:[#allocation8 + $0x194] ss:$8 sps:$4 sm:$0xff]   ;;  %v16540_v21 = vld [vmem:[%s19528_s5 + $0x190] ss:$8 sps:$4 sm:$0xff]  }
 0x525   : > { %19950 = vst [vmem:[#allocation186_spill] sm:$0xff] %v16534_v37  ;;  %19951 = vst [vmem:[#allocation187_spill] sm:$0xff] %v16540_v21 }
 0x526   : > { %4808 = vmatpush1.bf16.msra.mxu0 %v16522_v33  ;;  %v16543_v33 = vld [vmem:[#allocation8 + $0x190] ss:$8 sps:$4 sm:$0xff]  }
 0x527   : > { %5016 = vmatpush1.bf16.msra.mxu1 %v16525_v8  ;;  %4809 = vmatprep.subr.bf16.mxu0 %v16531_v55  ;;  %19952 = vst [vmem:[#allocation188_spill] sm:$0xff] %v16543_v33  ;;  %v16549_v8 = vld [vmem:[%s19528_s5 + $0x1a4] ss:$8 sps:$4 sm:$0xff]  }
 0x528   : > { %5017 = vmatprep.subr.bf16.mxu1 %v16534_v37  ;;  %19953 = vst [vmem:[#allocation189_spill] sm:$0xff] %v16549_v8  ;;  %v16552_v55 = vld [vmem:[#allocation8 + $0x1a4] ss:$8 sps:$4 sm:$0xff]   ;;  %v16558_v37 = vld [vmem:[%s19528_s5 + $0x1a0] ss:$8 sps:$4 sm:$0xff]  }
 0x529   : > { %19954 = vst [vmem:[#allocation190_spill] sm:$0xff] %v16552_v55  ;;  %19955 = vst [vmem:[#allocation191_spill] sm:$0xff] %v16558_v37 }
 0x52a   : > { %4810 = vmatpush1.bf16.msra.mxu0 %v16540_v21  ;;  %v16561_v21 = vld [vmem:[#allocation8 + $0x1a0] ss:$8 sps:$4 sm:$0xff]  }
 0x52b   : > { %5018 = vmatpush1.bf16.msra.mxu1 %v16543_v33  ;;  %4811 = vmatprep.subr.bf16.mxu0 %v16549_v8  ;;  %19956 = vst [vmem:[#allocation192_spill] sm:$0xff] %v16561_v21  ;;  %v16567_v33 = vld [vmem:[%s19528_s5 + $0x1b4] ss:$8 sps:$4 sm:$0xff]  }
 0x52c   : > { %5019 = vmatprep.subr.bf16.mxu1 %v16552_v55  ;;  %19957 = vst [vmem:[#allocation193_spill] sm:$0xff] %v16567_v33  ;;  %v16570_v8 = vld [vmem:[#allocation8 + $0x1b4] ss:$8 sps:$4 sm:$0xff]   ;;  %v16576_v55 = vld [vmem:[%s19528_s5 + $0x1b0] ss:$8 sps:$4 sm:$0xff]  }
 0x52d   : > { %19958 = vst [vmem:[#allocation194_spill] sm:$0xff] %v16570_v8  ;;  %19959 = vst [vmem:[#allocation195_spill] sm:$0xff] %v16576_v55 }
 0x52e   : > { %4812 = vmatpush1.bf16.msra.mxu0 %v16558_v37  ;;  %v16579_v37 = vld [vmem:[#allocation8 + $0x1b0] ss:$8 sps:$4 sm:$0xff]  }
 0x52f   : > { %5020 = vmatpush1.bf16.msra.mxu1 %v16561_v21  ;;  %4813 = vmatprep.subr.bf16.mxu0 %v16567_v33  ;;  %19960 = vst [vmem:[#allocation196_spill] sm:$0xff] %v16579_v37  ;;  %v16585_v21 = vld [vmem:[%s19528_s5 + $0x1c4] ss:$8 sps:$4 sm:$0xff]  }
 0x530   : > { %5021 = vmatprep.subr.bf16.mxu1 %v16570_v8  ;;  %19961 = vst [vmem:[#allocation197_spill] sm:$0xff] %v16585_v21  ;;  %v16588_v33 = vld [vmem:[#allocation8 + $0x1c4] ss:$8 sps:$4 sm:$0xff]   ;;  %v16594_v8 = vld [vmem:[%s19528_s5 + $0x1c0] ss:$8 sps:$4 sm:$0xff]  }
 0x531   : > { %19962 = vst [vmem:[#allocation198_spill] sm:$0xff] %v16588_v33  ;;  %19963 = vst [vmem:[#allocation199_spill] sm:$0xff] %v16594_v8 }
 0x532   : > { %4814 = vmatpush1.bf16.msra.mxu0 %v16576_v55  ;;  %v16597_v55 = vld [vmem:[#allocation8 + $0x1c0] ss:$8 sps:$4 sm:$0xff]  }
 0x533   : > { %5022 = vmatpush1.bf16.msra.mxu1 %v16579_v37  ;;  %4815 = vmatprep.subr.bf16.mxu0 %v16585_v21  ;;  %19964 = vst [vmem:[#allocation200_spill] sm:$0xff] %v16597_v55  ;;  %v16603_v37 = vld [vmem:[%s19528_s5 + $0x1d4] ss:$8 sps:$4 sm:$0xff]  }
 0x534   : > { %5023 = vmatprep.subr.bf16.mxu1 %v16588_v33  ;;  %19965 = vst [vmem:[#allocation201_spill] sm:$0xff] %v16603_v37  ;;  %v16606_v21 = vld [vmem:[#allocation8 + $0x1d4] ss:$8 sps:$4 sm:$0xff]   ;;  %v16612_v33 = vld [vmem:[%s19528_s5 + $0x1d0] ss:$8 sps:$4 sm:$0xff]  }
 0x535   : > { %19966 = vst [vmem:[#allocation202_spill] sm:$0xff] %v16606_v21  ;;  %19967 = vst [vmem:[#allocation203_spill] sm:$0xff] %v16612_v33 }
 0x536   : > { %4816 = vmatpush1.bf16.msra.mxu0 %v16594_v8  ;;  %v16615_v8 = vld [vmem:[#allocation8 + $0x1d0] ss:$8 sps:$4 sm:$0xff]  }
 0x537   : > { %5024 = vmatpush1.bf16.msra.mxu1 %v16597_v55  ;;  %4817 = vmatprep.subr.bf16.mxu0 %v16603_v37  ;;  %19968 = vst [vmem:[#allocation204_spill] sm:$0xff] %v16615_v8  ;;  %v16621_v55 = vld [vmem:[%s19528_s5 + $0x1e4] ss:$8 sps:$4 sm:$0xff]  }
 0x538   : > { %5025 = vmatprep.subr.bf16.mxu1 %v16606_v21  ;;  %19969 = vst [vmem:[#allocation205_spill] sm:$0xff] %v16621_v55  ;;  %v16624_v37 = vld [vmem:[#allocation8 + $0x1e4] ss:$8 sps:$4 sm:$0xff]   ;;  %v16630_v21 = vld [vmem:[%s19528_s5 + $0x1e0] ss:$8 sps:$4 sm:$0xff]  }
 0x539   : > { %19970 = vst [vmem:[#allocation206_spill] sm:$0xff] %v16624_v37  ;;  %19971 = vst [vmem:[#allocation207_spill] sm:$0xff] %v16630_v21 }
 0x53a   : > { %4818 = vmatpush1.bf16.msra.mxu0 %v16612_v33  ;;  %v16633_v33 = vld [vmem:[#allocation8 + $0x1e0] ss:$8 sps:$4 sm:$0xff]  }
 0x53b   : > { %5026 = vmatpush1.bf16.msra.mxu1 %v16615_v8  ;;  %4819 = vmatprep.subr.bf16.mxu0 %v16621_v55  ;;  %19972 = vst [vmem:[#allocation208_spill] sm:$0xff] %v16633_v33  ;;  %v16639_v55 = vld [vmem:[%s19528_s5 + $0x1f4] ss:$8 sps:$4 sm:$0xff]  }
 0x53c   : > { %5027 = vmatprep.subr.bf16.mxu1 %v16624_v37  ;;  %19973 = vst [vmem:[#allocation209_spill] sm:$0xff] %v16639_v55  ;;  %v16642_v37 = vld [vmem:[#allocation8 + $0x1f4] ss:$8 sps:$4 sm:$0xff]  }
 0x53d   : > { %19974 = vst [vmem:[#allocation210_spill] sm:$0xff] %v16642_v37 }
 0x53e   : > { %4820 = vmatpush1.bf16.msra.mxu0 %v16630_v21 }
 0x53f   : > { %5028 = vmatpush1.bf16.msra.mxu1 %v16633_v33  ;;  %v2985_v8 = vpop.f32.mrb[32].mxu0  ;;  %v3634_v1 = vpop.f32.mrb[36].mxu1  ;;  %4821 = vmatprep.subr.bf16.mxu0 %v16639_v55  ;;  %v16648_v33 = vld [vmem:[%s19528_s5 + $0x1f0] ss:$8 sps:$4 sm:$0xff]   ;;  %v16718_v55 = vld [vmem:[#allocation8 + $0x234] ss:$8 sps:$4 sm:$0xff]  }
 0x540   : > { %5029 = vmatprep.subr.bf16.mxu1 %v16642_v37  ;;  %v2987_v54 = vpop.f32.mrb[33].mxu0  ;;  %v3636_v49 = vpop.f32.mrb[37].mxu1  ;;  %19975 = vst [vmem:[#allocation211_spill] sm:$0xff] %v16648_v33  ;;  %v16657_v37 = vld [vmem:[%s19528_s5 + $0x204] ss:$8 sps:$4 sm:$0xff]  }
 0x541   : > { %v2989_v21 = vpop.f32.mrb[34].mxu0  ;;  %v3638_v30 = vpop.f32.mrb[38].mxu1  ;;  %19977 = vst [vmem:[#allocation213_spill] sm:$0xff] %v16657_v37 }
 0x542   : > { %4822 = vmatpush1.bf16.msra.mxu0 %v16648_v33  ;;  %v2990_v35 = vpop.f32.mrb[35].mxu0  ;;  %v3639_v36 = vpop.f32.mrb[39].mxu1  ;;  %v16660_v30 = vld [vmem:[#allocation8 + $0x204] ss:$8 sps:$4 sm:$0xff]  }
 0x543   : > { %5030 = vmatpush1.bf16.msra.mxu1 %v16651_v4  ;;  %4823 = vmatprep.subr.bf16.mxu0 %v16657_v37  ;;  %19978 = vst [vmem:[#allocation214_spill] sm:$0xff] %v16660_v30  ;;  %v16666_v35 = vld [vmem:[%s19528_s5 + $0x200] ss:$8 sps:$4 sm:$0xff]   ;;  %v16675_v21 = vld [vmem:[%s19528_s5 + $0x214] ss:$8 sps:$4 sm:$0xff]  }
 0x544   : > { %5031 = vmatprep.subr.bf16.mxu1 %v16660_v30  ;;  %19979 = vst [vmem:[#allocation215_spill] sm:$0xff] %v16666_v35  ;;  %v16669_v36 = vld [vmem:[#allocation8 + $0x200] ss:$8 sps:$4 sm:$0xff]   ;;  %19981 = vst [vmem:[#allocation217_spill] sm:$0xff] %v16675_v21  ;;  %v16678_v37 = vld [vmem:[#allocation8 + $0x214] ss:$8 sps:$4 sm:$0xff]  }
 0x545   : > { %19980 = vst [vmem:[#allocation216_spill] sm:$0xff] %v16669_v36  ;;  %19982 = vst [vmem:[#allocation218_spill] sm:$0xff] %v16678_v37  ;;  %v16684_v30 = vld [vmem:[%s19528_s5 + $0x210] ss:$8 sps:$4 sm:$0xff]  }
 0x546   : > { %4824 = vmatpush1.bf16.msra.mxu0 %v16666_v35  ;;  %19983 = vst [vmem:[#allocation219_spill] sm:$0xff] %v16684_v30  ;;  %v16687_v35 = vld [vmem:[#allocation8 + $0x210] ss:$8 sps:$4 sm:$0xff]  }
 0x547   : > { %5032 = vmatpush1.bf16.msra.mxu1 %v16669_v36  ;;  %4825 = vmatprep.subr.bf16.mxu0 %v16675_v21  ;;  %19984 = vst [vmem:[#allocation220_spill] sm:$0xff] %v16687_v35  ;;  %v16693_v36 = vld [vmem:[%s19528_s5 + $0x224] ss:$8 sps:$4 sm:$0xff]  }
 0x548   : > { %5033 = vmatprep.subr.bf16.mxu1 %v16678_v37  ;;  %19985 = vst [vmem:[#allocation221_spill] sm:$0xff] %v16693_v36  ;;  %v16696_v21 = vld [vmem:[#allocation8 + $0x224] ss:$8 sps:$4 sm:$0xff]   ;;  %v16702_v37 = vld [vmem:[%s19528_s5 + $0x220] ss:$8 sps:$4 sm:$0xff]  }
 0x549   : > { %19986 = vst [vmem:[#allocation222_spill] sm:$0xff] %v16696_v21  ;;  %19987 = vst [vmem:[#allocation223_spill] sm:$0xff] %v16702_v37 }
 0x54a   : > { %4826 = vmatpush1.bf16.msra.mxu0 %v16684_v30  ;;  %v16705_v30 = vld [vmem:[#allocation8 + $0x220] ss:$8 sps:$4 sm:$0xff]  }
 0x54b   : > { %5034 = vmatpush1.bf16.msra.mxu1 %v16687_v35  ;;  %4827 = vmatprep.subr.bf16.mxu0 %v16693_v36  ;;  %19988 = vst [vmem:[#allocation224_spill] sm:$0xff] %v16705_v30  ;;  %v16711_v36 = vld [vmem:[%s19528_s5 + $0x234] ss:$8 sps:$4 sm:$0xff]  }
 0x54c   : > { %5035 = vmatprep.subr.bf16.mxu1 %v16696_v21  ;;  %19989 = vst [vmem:[#allocation225_spill] sm:$0xff] %v16711_v36 }
 0x54e   : > { %4828 = vmatpush1.bf16.msra.mxu0 %v16702_v37 }
 0x54f   : > { %5036 = vmatpush1.bf16.msra.mxu1 %v16705_v30  ;;  %v3036_v35 = vpop.f32.mrb[36].mxu0  ;;  %v3685_v4 = vpop.f32.mrb[40].mxu1  ;;  %4829 = vmatprep.subr.bf16.mxu0 %v16711_v36  ;;  %v16728_v36 = vld [vmem:[%s19528_s5 + $0x230] ss:$8 sps:$4 sm:$0xff]  }
 0x550   : > { %v16714_v21 = vadd.f32 %v3036_v35, %v2985_v8  ;;  %v16716_v33 = vadd.f32 %v3685_v4, %v3634_v1  ;;  %5037 = vmatprep.subr.bf16.mxu1 %v16718_v55  ;;  %v3038_v37 = vpop.f32.mrb[37].mxu0  ;;  %v3687_v48 = vpop.f32.mrb[41].mxu1  ;;  %v4783_v8 = vshrl.u32 %v15562_v6, 16  ;;  %v16732_v35 = vld [vmem:[#allocation8 + $0x230] ss:$8 sps:$4 sm:$0xff]  }
 0x551   : > { %v16721_v30 = vadd.f32 %v3038_v37, %v2987_v54  ;;  %v16723_v14 = vadd.f32 %v3687_v48, %v3636_v49  ;;  %v3040_v11 = vpop.f32.mrb[38].mxu0  ;;  %v3689_v51 = vpop.f32.mrb[42].mxu1  ;;  %v16738_v48 = vld [vmem:[%s19528_s5 + $0x244] ss:$8 sps:$4 sm:$0xff]   ;;  %v16750_v54 = vld [vmem:[%s19528_s5 + $0x240] ss:$8 sps:$4 sm:$0xff]  }
 0x552   : > { %4830 = vmatpush1.bf16.msra.mxu0 %v16728_v36  ;;  %v3041_v4 = vpop.f32.mrb[39].mxu0  ;;  %v3690_v1 = vpop.f32.mrb[43].mxu1  ;;  %v16741_v51 = vld [vmem:[#allocation8 + $0x244] ss:$8 sps:$4 sm:$0xff]   ;;  %v4785_v11 = vor.u32 %v4783_v8, %v16463_v56  ;;  %v16753_v49 = vld [vmem:[#allocation8 + $0x240] ss:$8 sps:$4 sm:$0xff]  }
 0x553   : > { %5038 = vmatpush1.bf16.msra.mxu1 %v16732_v35  ;;  %4850 = vmatprep.subr.bf16.mxu0 %v16738_v48  ;;  %v16759_v56 = vld [vmem:[%s19528_s5 + $0x254] ss:$8 sps:$4 sm:$0xff]   ;;  %v16768_v37 = vld [vmem:[%s19528_s5 + $0x250] ss:$8 sps:$4 sm:$0xff]   ;;  %v4774_v4 = vshll.u32 %v15595_v23, 16 }
 0x554   : > { %5058 = vmatprep.subr.bf16.mxu1 %v16741_v51  ;;  %19990 = vst [vmem:[#allocation226_spill] sm:$0xff] %v16759_v56  ;;  %19992 = vst [vmem:[#allocation228_spill] sm:$0xff] %v16768_v37  ;;  %v16772_v1 = vld [vmem:[#allocation8 + $0x250] ss:$8 sps:$4 sm:$0xff]   ;;  %v16778_v8 = vld [vmem:[%s19528_s5 + $0x264] ss:$8 sps:$4 sm:$0xff]  }
 0x555   : > { %4832 = vmatmul.mubr.bf16.vlgmr.msra.gmra.mrb[56].mxu0 %v15668_v17  ;;  %19993 = vst [vmem:[#allocation229_spill] sm:$0xff] %v16772_v1  ;;  %19994 = vst [vmem:[#allocation230_spill] sm:$0xff] %v16778_v8 }
 0x556   : > { %5040 = vmatmul.mubr.bf16.vlgmr.msra.gmra.mrb[60].mxu1 %v15668_v17  ;;  %4841 = vmatprep.mubr.bf16.mxu0 %v4785_v11  ;;  %v16762_v17 = vld [vmem:[#allocation8 + $0x254] ss:$8 sps:$4 sm:$0xff]  }
 0x557   : > { %4851 = vmatpush1.bf16.msra.mxu0 %v16750_v54  ;;  %5049 = vmatprep.mubr.bf16.mxu1 %v4785_v11  ;;  %19991 = vst [vmem:[#allocation227_spill] sm:$0xff] %v16762_v17  ;;  %v16782_v11 = vld [vmem:[#allocation8 + $0x264] ss:$8 sps:$4 sm:$0xff]  }
 0x558   : > { %5059 = vmatpush1.bf16.msra.mxu1 %v16753_v49  ;;  %4852 = vmatprep.subr.bf16.mxu0 %v16759_v56  ;;  %19995 = vst [vmem:[#allocation231_spill] sm:$0xff] %v16782_v11 }
 0x559   : > { %5060 = vmatprep.subr.bf16.mxu1 %v16762_v17  ;;  %v16795_v17 = vld [vmem:[#allocation8 + $0x260] ss:$8 sps:$4 sm:$0xff]  }
 0x55b   : > { %4853 = vmatpush1.bf16.msra.mxu0 %v16768_v37  ;;  %v4779_v37 = vshll.u32 %v15625_v63, 16 }
 0x55c   : > { %5061 = vmatpush1.bf16.msra.mxu1 %v16772_v1  ;;  %4854 = vmatprep.subr.bf16.mxu0 %v16778_v8  ;;  %v16791_v1 = vld [vmem:[%s19528_s5 + $0x260] ss:$8 sps:$4 sm:$0xff]   ;;  %v4776_v8 = vrot.slane %v4774_v4, 1 }
 0x55d   : > { %4842 = vmatmul.mubr.bf16.gmra.mrb[60].mxu0 %v15706_v27  ;;  %5062 = vmatprep.subr.bf16.mxu1 %v16782_v11  ;;  %v4781_v11 = vrot.slane %v4779_v37, 1 }
 0x55e   : > { %5050 = vmatmul.mubr.bf16.gmra.mrb[64].mxu1 %v15706_v27  ;;  %4882 = vmatprep.mubr.bf16.mxu0 %v19845_v58  ;;  %v4772_v27 = vshrl.u32 %v15595_v23, 16 }
 0x55f   : > { %4855 = vmatpush1.bf16.msra.mxu0 %v16791_v1  ;;  %5090 = vmatprep.mubr.bf16.mxu1 %v19845_v58 }
 0x560   : > { %5063 = vmatpush1.bf16.msra.mxu1 %v16795_v17  ;;  %4856 = vmatprep.subr.bf16.mxu0 %v15621_v26  ;;  %v4777_v56 = vor.u32 %v4776_v8, %v4772_v27  ;;  %v4786_v26 = vshrl.u32 %v15625_v63, 16  ;;  %v20021_v8 = vld [vmem:[#allocation64_spill] sm:$0xff] }
 0x561   : > { %5064 = vmatprep.subr.bf16.mxu1 %v15623_v62 }
 0x562   : > { %v16805_v4 = vsel %vm1490_vm4, %v4777_v56, %v4781_v11  ;;  %v16821_v62 = vor.u32 %v4786_v26, %v4781_v11 }
 0x563   : > { %4857 = vmatpush1.bf16.msra.mxu0 %v15633_v2  ;;  %v19996_v2 = vld [vmem:[#allocation39_spill] sm:$0xff] }
 0x564   : > { %5065 = vmatpush1.bf16.msra.mxu1 %v15635_v3  ;;  %4905 = vmatprep.subr.bf16.mxu0 %v15642_v9  ;;  %v19997_v3 = vld [vmem:[#allocation40_spill] sm:$0xff]  ;;  %v19998_v9 = vld [vmem:[#allocation41_spill] sm:$0xff] }
 0x565   : > { %5109 = vmatprep.subr.bf16.mxu1 %v15644_v10  ;;  %v19999_v10 = vld [vmem:[#allocation42_spill] sm:$0xff] }
 0x566   : > { %11704 = vmatmul.mubr.msk.bf16.vlgmr.msra.gmra.mrb[56].mxu0 %vm2934_vm6, %v16805_v4 }
 0x567   : > { %11708 = vmatmul.mubr.msk.bf16.vlgmr.msra.gmra.mrb[60].mxu1 %vm2934_vm6, %v16805_v4  ;;  %4906 = vmatpush1.bf16.msra.mxu0 %v15654_v12  ;;  %v20000_v12 = vld [vmem:[#allocation43_spill] sm:$0xff] }
 0x568   : > { %5110 = vmatpush1.bf16.msra.mxu1 %v15656_v13  ;;  %4907 = vmatprep.subr.bf16.mxu0 %v15663_v15  ;;  %v20001_v13 = vld [vmem:[#allocation44_spill] sm:$0xff]  ;;  %v20002_v15 = vld [vmem:[#allocation45_spill] sm:$0xff] }
 0x569   : > { %5111 = vmatprep.subr.bf16.mxu1 %v15665_v16  ;;  %4892 = vmatprep.mubr.bf16.mxu0 %v19845_v58 }
 0x56a   : > { %5100 = vmatprep.mubr.bf16.mxu1 %v19845_v58 }
 0x56b   : > { %4908 = vmatpush1.bf16.msra.mxu0 %v15679_v18 }
 0x56c   : > { %5112 = vmatpush1.bf16.msra.mxu1 %v15681_v28  ;;  %4909 = vmatprep.subr.bf16.mxu0 %v15688_v19  ;;  %v20003_v28 = vld [vmem:[#allocation46_spill] sm:$0xff] }
 0x56d   : > { %5113 = vmatprep.subr.bf16.mxu1 %v15690_v20 }
 0x56e   : > { %11705 = vmatmul.mubr.msk.bf16.gmra.mrb[64].mxu0 %vm2934_vm6, %v16821_v62 }
 0x56f   : > { %11709 = vmatmul.mubr.msk.bf16.gmra.mrb[68].mxu1 %vm2934_vm6, %v16821_v62  ;;  %4910 = vmatpush1.bf16.msra.mxu0 %v15700_v22 }
 0x570   : > { %4937 = vmatprep.mubr.bf16.mxu0 %v15548_v50  ;;  %5114 = vmatpush1.bf16.msra.mxu1 %v15702_v24 }
 0x571   : > { %5141 = vmatprep.mubr.bf16.mxu1 %v15548_v50  ;;  %4911 = vmatprep.subr.bf16.mxu0 %v15711_v29  ;;  %v20004_v29 = vld [vmem:[#allocation47_spill] sm:$0xff] }
 0x572   : > { %5115 = vmatprep.subr.bf16.mxu1 %v15713_v31 }
 0x573   : > { %4912 = vmatpush1.bf16.msra.mxu0 %v15724_v32 }
 0x574   : > { %5116 = vmatpush1.bf16.msra.mxu1 %v15726_v38  ;;  %4913 = vmatprep.subr.bf16.mxu0 %v15733_v39  ;;  %v20005_v38 = vld [vmem:[#allocation48_spill] sm:$0xff] }
 0x575   : > { %5117 = vmatprep.subr.bf16.mxu1 %v15735_v34 }
 0x577   : > { %4914 = vmatpush1.bf16.msra.mxu0 %v15744_v5 }
 0x578   : > { %5118 = vmatpush1.bf16.msra.mxu1 %v15746_v40  ;;  %4915 = vmatprep.subr.bf16.mxu0 %v15753_v41  ;;  %v20006_v41 = vld [vmem:[#allocation49_spill] sm:$0xff] }
 0x579   : > { %5119 = vmatprep.subr.bf16.mxu1 %v15755_v42  ;;  %v20007_v42 = vld [vmem:[#allocation50_spill] sm:$0xff] }
 0x57b   : > { %4916 = vmatpush1.bf16.msra.mxu0 %v15762_v43  ;;  %v20008_v43 = vld [vmem:[#allocation51_spill] sm:$0xff] }
 0x57c   : > { %5120 = vmatpush1.bf16.msra.mxu1 %v15764_v44  ;;  %4917 = vmatprep.subr.bf16.mxu0 %v15771_v45  ;;  %v20009_v44 = vld [vmem:[#allocation52_spill] sm:$0xff]  ;;  %v20010_v45 = vld [vmem:[#allocation53_spill] sm:$0xff] }
 0x57d   : > { %5121 = vmatprep.subr.bf16.mxu1 %v15773_v46  ;;  %v20011_v46 = vld [vmem:[#allocation54_spill] sm:$0xff] }
 0x57f   : > { %4918 = vmatpush1.bf16.msra.mxu0 %v15780_v47  ;;  %v20012_v47 = vld [vmem:[#allocation55_spill] sm:$0xff] }
 0x580   : > { %5122 = vmatpush1.bf16.msra.mxu1 %v15782_v52  ;;  %4919 = vmatprep.subr.bf16.mxu0 %v15789_v53  ;;  %v20013_v52 = vld [vmem:[#allocation56_spill] sm:$0xff]  ;;  %v20014_v53 = vld [vmem:[#allocation57_spill] sm:$0xff] }
 0x581   : > { %5123 = vmatprep.subr.bf16.mxu1 %v15791_v57  ;;  %v20015_v57 = vld [vmem:[#allocation58_spill] sm:$0xff] }
 0x583   : > { %4920 = vmatpush1.bf16.msra.mxu0 %v15798_v59  ;;  %v20016_v59 = vld [vmem:[#allocation59_spill] sm:$0xff] }
 0x584   : > { %5124 = vmatpush1.bf16.msra.mxu1 %v15800_v60  ;;  %4921 = vmatprep.subr.bf16.mxu0 %v15807_v25  ;;  %v20017_v60 = vld [vmem:[#allocation60_spill] sm:$0xff]  ;;  %v20018_v25 = vld [vmem:[#allocation61_spill] sm:$0xff] }
 0x585   : > { %5125 = vmatprep.subr.bf16.mxu1 %v15809_v61 }
 0x587   : > { %4922 = vmatpush1.bf16.msra.mxu0 %v15816_v0  ;;  %v20019_v0 = vld [vmem:[#allocation62_spill] sm:$0xff] }
 0x588   : > { %5126 = vmatpush1.bf16.msra.mxu1 %v15818_v7  ;;  %4923 = vmatprep.subr.bf16.mxu0 %v19996_v2 }
 0x589   : > { %5127 = vmatprep.subr.bf16.mxu1 %v19997_v3  ;;  %v20022_v3 = vld [vmem:[#allocation65_spill] sm:$0xff] }
 0x58b   : > { %4924 = vmatpush1.bf16.msra.mxu0 %v19998_v9 }
 0x58c   : > { %5128 = vmatpush1.bf16.msra.mxu1 %v19999_v10  ;;  %4925 = vmatprep.subr.bf16.mxu0 %v20000_v12  ;;  %v20023_v10 = vld [vmem:[#allocation66_spill] sm:$0xff]  ;;  %v20024_v12 = vld [vmem:[#allocation67_spill] sm:$0xff] }
 0x58d   : > { %5129 = vmatprep.subr.bf16.mxu1 %v20001_v13  ;;  %v20025_v13 = vld [vmem:[#allocation68_spill] sm:$0xff] }
 0x58f   : > { %4926 = vmatpush1.bf16.msra.mxu0 %v20002_v15  ;;  %v3291_v16 = vpop.f32.mrb[40].mxu0  ;;  %v3936_v18 = vpop.f32.mrb[44].mxu1  ;;  %v20026_v15 = vld [vmem:[#allocation33_spill] sm:$0xff] }
 0x590   : > { %5130 = vmatpush1.bf16.msra.mxu1 %v20003_v28  ;;  %v3292_v19 = vadd.f32 %v3291_v16, %v16714_v21  ;;  %v3937_v20 = vadd.f32 %v3936_v18, %v16716_v33  ;;  %v3293_v22 = vpop.f32.mrb[41].mxu0  ;;  %v3938_v24 = vpop.f32.mrb[45].mxu1  ;;  %4927 = vmatprep.subr.bf16.mxu0 %v20004_v29  ;;  %v20027_v16 = vld [vmem:[#allocation69_spill] sm:$0xff]  ;;  %v20028_v18 = vld [vmem:[#allocation70_spill] sm:$0xff]  ;;  %v20029_v28 = vld [vmem:[#allocation71_spill] sm:$0xff] }
 0x591   : > { %v3294_v31 = vadd.f32 %v3293_v22, %v16721_v30  ;;  %v3939_v32 = vadd.f32 %v3938_v24, %v16723_v14  ;;  %5131 = vmatprep.subr.bf16.mxu1 %v20005_v38  ;;  %v3295_v39 = vpop.f32.mrb[42].mxu0  ;;  %v3940_v34 = vpop.f32.mrb[46].mxu1  ;;  %v20020_v30 = vld [vmem:[#allocation63_spill] sm:$0xff]  ;;  %v20032_v22 = vld [vmem:[#allocation74_spill] sm:$0xff] }
 0x592   : > { %v3296_v5 = vpop.f32.mrb[43].mxu0  ;;  %v3941_v40 = vpop.f32.mrb[47].mxu1  ;;  %v20033_v24 = vld [vmem:[#allocation75_spill] sm:$0xff]  ;;  %v20034_v29 = vld [vmem:[#allocation34_spill] sm:$0xff]  ;;  %v20039_v34 = vld [vmem:[#allocation80_spill] sm:$0xff] }
 0x593   : > { %4928 = vmatpush1.bf16.msra.mxu0 %v20006_v41  ;;  %v20037_v38 = vld [vmem:[#allocation78_spill] sm:$0xff]  ;;  %v20038_v39 = vld [vmem:[#allocation79_spill] sm:$0xff]  ;;  %v20040_v5 = vld [vmem:[#allocation81_spill] sm:$0xff] }
 0x594   : > { %5132 = vmatpush1.bf16.msra.mxu1 %v20007_v42  ;;  %4929 = vmatprep.subr.bf16.mxu0 %v20008_v43  ;;  %v20041_v40 = vld [vmem:[#allocation82_spill] sm:$0xff]  ;;  %v20042_v41 = vld [vmem:[#allocation83_spill] sm:$0xff]  ;;  %v20043_v42 = vld [vmem:[#allocation84_spill] sm:$0xff] }
 0x595   : > { %5133 = vmatprep.subr.bf16.mxu1 %v20009_v44  ;;  %v20044_v43 = vld [vmem:[#allocation85_spill] sm:$0xff]  ;;  %v20045_v44 = vld [vmem:[#allocation86_spill] sm:$0xff] }
 0x597   : > { %4930 = vmatpush1.bf16.msra.mxu0 %v20010_v45  ;;  %v20046_v45 = vld [vmem:[#allocation87_spill] sm:$0xff] }
 0x598   : > { %5134 = vmatpush1.bf16.msra.mxu1 %v20011_v46  ;;  %4931 = vmatprep.subr.bf16.mxu0 %v20012_v47  ;;  %v20047_v46 = vld [vmem:[#allocation88_spill] sm:$0xff]  ;;  %v20048_v47 = vld [vmem:[#allocation89_spill] sm:$0xff] }
 0x599   : > { %5135 = vmatprep.subr.bf16.mxu1 %v20013_v52  ;;  %v16935_v52 = vrot.slane %v15562_v6, 1 }
 0x59b   : > { %4932 = vmatpush1.bf16.msra.mxu0 %v20014_v53  ;;  %v20049_v53 = vld [vmem:[#allocation90_spill] sm:$0xff] }
 0x59c   : > { %5136 = vmatpush1.bf16.msra.mxu1 %v20015_v57  ;;  %4933 = vmatprep.subr.bf16.mxu0 %v20016_v59  ;;  %v20050_v57 = vld [vmem:[#allocation91_spill] sm:$0xff]  ;;  %v20051_v59 = vld [vmem:[#allocation92_spill] sm:$0xff] }
 0x59d   : > { %5137 = vmatprep.subr.bf16.mxu1 %v20017_v60  ;;  %v5215_v60 = vrot.slane %v15548_v50, 1  ;;  %v20056_v50 = vld [vmem:[#allocation97_spill] sm:$0xff] }
 0x59f   : > { %4934 = vmatpush1.bf16.msra.mxu0 %v20018_v25  ;;  %v3342_v61 = vpop.f32.mrb[44].mxu0  ;;  %v20052_v25 = vld [vmem:[#allocation93_spill] sm:$0xff] }
 0x5a0   : > { %5138 = vmatpush1.bf16.msra.mxu1 %v20019_v0  ;;  %v16885_v7 = vadd.f32 %v3342_v61, %v3292_v19  ;;  %v3987_v14 = vpop.f32.mrb[48].mxu1  ;;  %v3344_v33 = vpop.f32.mrb[45].mxu0  ;;  %4935 = vmatprep.subr.bf16.mxu0 %v20020_v30  ;;  %v20030_v19 = vld [vmem:[#allocation72_spill] sm:$0xff]  ;;  %v20053_v61 = vld [vmem:[#allocation94_spill] sm:$0xff]  ;;  %v20054_v0 = vld [vmem:[#allocation95_spill] sm:$0xff] }
 0x5a1   : > { %v16888_v21 = vadd.f32 %v3987_v14, %v3937_v20  ;;  %v16890_v56 = vadd.f32 %v3344_v33, %v3294_v31  ;;  %v3989_v37 = vpop.f32.mrb[49].mxu1  ;;  %5139 = vmatprep.subr.bf16.mxu1 %v20021_v8  ;;  %v3346_v11 = vpop.f32.mrb[46].mxu0  ;;  %v20031_v20 = vld [vmem:[#allocation73_spill] sm:$0xff]  ;;  %v20035_v31 = vld [vmem:[#allocation76_spill] sm:$0xff]  ;;  %v20057_v33 = vld [vmem:[#allocation98_spill] sm:$0xff] }
 0x5a2   : > { %v16893_v27 = vadd.f32 %v3989_v37, %v3939_v32  ;;  %v3991_v26 = vpop.f32.mrb[50].mxu1  ;;  %v3347_v2 = vpop.f32.mrb[47].mxu0  ;;  %v20036_v32 = vld [vmem:[#allocation77_spill] sm:$0xff]  ;;  %v20055_v14 = vld [vmem:[#allocation96_spill] sm:$0xff]  ;;  %v20058_v30 = vld [vmem:[#allocation99_spill] sm:$0xff] }
 0x5a3   : > { %4936 = vmatpush1.bf16.msra.mxu0 %v20022_v3  ;;  %v3992_v9 = vpop.f32.mrb[51].mxu1  ;;  %v20059_v37 = vld [vmem:[#allocation100_spill] sm:$0xff]  ;;  %v20060_v8 = vld [vmem:[#allocation101_spill] sm:$0xff]  ;;  %v20061_v11 = vld [vmem:[#allocation102_spill] sm:$0xff] }
 0x5a4   : > { %5140 = vmatpush1.bf16.msra.mxu1 %v20023_v10  ;;  %4956 = vmatprep.subr.bf16.mxu0 %v20024_v12  ;;  %v20062_v26 = vld [vmem:[#allocation103_spill] sm:$0xff]  ;;  %v20063_v2 = vld [vmem:[#allocation104_spill] sm:$0xff]  ;;  %v20064_v3 = vld [vmem:[#allocation105_spill] sm:$0xff] }
 0x5a5   : > { %5160 = vmatprep.subr.bf16.mxu1 %v20025_v13  ;;  %v20065_v9 = vld [vmem:[#allocation106_spill] sm:$0xff]  ;;  %v20066_v10 = vld [vmem:[#allocation107_spill] sm:$0xff]  ;;  %v20067_v12 = vld [vmem:[#allocation108_spill] sm:$0xff] }
 0x5a6   : > { %4938 = vmatmul.mubr.bf16.vlgmr.msra.gmra.mrb[56].mxu0 %v20026_v15  ;;  %v20068_v13 = vld [vmem:[#allocation109_spill] sm:$0xff] }
 0x5a7   : > { %5142 = vmatmul.mubr.bf16.vlgmr.msra.gmra.mrb[60].mxu1 %v20026_v15  ;;  %4947 = vmatprep.mubr.bf16.mxu0 %v15562_v6  ;;  %v20069_v15 = vld [vmem:[#allocation110_spill] sm:$0xff] }
 0x5a8   : > { %4957 = vmatpush1.bf16.msra.mxu0 %v20027_v16  ;;  %5151 = vmatprep.mubr.bf16.mxu1 %v15562_v6  ;;  %v5217_v6 = vsel %vm2125_vm3, %v5215_v60, %v16935_v52  ;;  %v20070_v16 = vld [vmem:[#allocation111_spill] sm:$0xff] }
 0x5a9   : > { %5161 = vmatpush1.bf16.msra.mxu1 %v20028_v18  ;;  %4958 = vmatprep.subr.bf16.mxu0 %v20029_v28  ;;  %v20071_v18 = vld [vmem:[#allocation112_spill] sm:$0xff]  ;;  %v20072_v28 = vld [vmem:[#allocation113_spill] sm:$0xff] }
 0x5aa   : > { %5162 = vmatprep.subr.bf16.mxu1 %v20030_v19  ;;  %v20073_v19 = vld [vmem:[#allocation114_spill] sm:$0xff] }
 0x5ac   : > { %4959 = vmatpush1.bf16.msra.mxu0 %v20031_v20  ;;  %v20074_v20 = vld [vmem:[#allocation115_spill] sm:$0xff] }
 0x5ad   : > { %5163 = vmatpush1.bf16.msra.mxu1 %v20032_v22  ;;  %4960 = vmatprep.subr.bf16.mxu0 %v20033_v24  ;;  %v20075_v22 = vld [vmem:[#allocation116_spill] sm:$0xff]  ;;  %v20076_v24 = vld [vmem:[#allocation117_spill] sm:$0xff] }
 0x5ae   : > { %4948 = vmatmul.mubr.bf16.gmra.mrb[68].mxu0 %v20034_v29  ;;  %5164 = vmatprep.subr.bf16.mxu1 %v20035_v31  ;;  %v20078_v31 = vld [vmem:[#allocation119_spill] sm:$0xff] }
 0x5af   : > { %5152 = vmatmul.mubr.bf16.gmra.mrb[72].mxu1 %v20034_v29  ;;  %4988 = vmatprep.mubr.bf16.mxu0 %v19845_v58  ;;  %v20077_v29 = vld [vmem:[#allocation118_spill] sm:$0xff] }
 0x5b0   : > { %4961 = vmatpush1.bf16.msra.mxu0 %v20036_v32  ;;  %5192 = vmatprep.mubr.bf16.mxu1 %v19845_v58  ;;  %v20079_v32 = vld [vmem:[#allocation120_spill] sm:$0xff] }
 0x5b1   : > { %5165 = vmatpush1.bf16.msra.mxu1 %v20037_v38  ;;  %4962 = vmatprep.subr.bf16.mxu0 %v20038_v39  ;;  %v20080_v38 = vld [vmem:[#allocation121_spill] sm:$0xff]  ;;  %v20081_v39 = vld [vmem:[#allocation122_spill] sm:$0xff] }
 0x5b2   : > { %5166 = vmatprep.subr.bf16.mxu1 %v20039_v34  ;;  %v20082_v34 = vld [vmem:[#allocation123_spill] sm:$0xff] }
 0x5b4   : > { %4963 = vmatpush1.bf16.msra.mxu0 %v20040_v5  ;;  %v20083_v5 = vld [vmem:[#allocation124_spill] sm:$0xff] }
 0x5b5   : > { %5167 = vmatpush1.bf16.msra.mxu1 %v20041_v40  ;;  %5231 = vmatprep.subr.bf16.mxu0 %v20042_v41  ;;  %v20084_v41 = vld [vmem:[#allocation125_spill] sm:$0xff] }
 0x5b6   : > { %5339 = vmatprep.subr.bf16.mxu1 %v20043_v42 }
 0x5b7   : > { %11706 = vmatmul.mubr.msk.bf16.vlgmr.msra.gmra.mrb[56].mxu0 %vm2934_vm6, %v15595_v23 }
 0x5b8   : > { %11710 = vmatmul.mubr.msk.bf16.vlgmr.msra.gmra.mrb[60].mxu1 %vm2934_vm6, %v15595_v23  ;;  %5232 = vmatpush1.bf16.msra.mxu0 %v20044_v43 }
 0x5b9   : > { %5340 = vmatpush1.bf16.msra.mxu1 %v20045_v44  ;;  %5233 = vmatprep.subr.bf16.mxu0 %v20046_v45  ;;  %v20085_v44 = vld [vmem:[#allocation126_spill] sm:$0xff] }
 0x5ba   : > { %5341 = vmatprep.subr.bf16.mxu1 %v20047_v46  ;;  %4998 = vmatprep.mubr.bf16.mxu0 %v19845_v58  ;;  %v20086_v46 = vld [vmem:[#allocation127_spill] sm:$0xff] }
 0x5bb   : > { %5202 = vmatprep.mubr.bf16.mxu1 %v19845_v58 }
 0x5bc   : > { %5234 = vmatpush1.bf16.msra.mxu0 %v20048_v47 }
 0x5bd   : > { %5342 = vmatpush1.bf16.msra.mxu1 %v20049_v53  ;;  %5235 = vmatprep.subr.bf16.mxu0 %v20050_v57  ;;  %v4717_v53 = vld [vmem:[#allocation10] sm:$0x3]  ;;  %v20087_v57 = vld [vmem:[#allocation128_spill] sm:$0xff] }
 0x5be   : > { %5343 = vmatprep.subr.bf16.mxu1 %v20051_v59 }
 0x5bf   : > { %11707 = vmatmul.mubr.msk.bf16.gmra.mrb[72].mxu0 %vm2934_vm6, %v15625_v63 }
 0x5c0   : > { %11711 = vmatmul.mubr.msk.bf16.gmra.mrb[76].mxu1 %vm2934_vm6, %v15625_v63  ;;  %5236 = vmatpush1.bf16.msra.mxu0 %v20052_v25 }
 0x5c1   : > { %5263 = vmatprep.mubr.bf16.mxu0 %v5217_v6  ;;  %5344 = vmatpush1.bf16.msra.mxu1 %v20053_v61  ;;  %v20089_v61 = vld [vmem:[#allocation32_spill] sm:$0xff] }
 0x5c2   : > { %5371 = vmatprep.mubr.bf16.mxu1 %v5217_v6  ;;  %5237 = vmatprep.subr.bf16.mxu0 %v20054_v0  ;;  %v20088_v6 = vld [vmem:[#allocation129_spill] sm:$0xff]  ;;  %v20090_v0 = vsub.s32 0, %v20089_v61 }
 0x5c3   : > { %5345 = vmatprep.subr.bf16.mxu1 %v20055_v14 }
 0x5c4   : > { %5238 = vmatpush1.bf16.msra.mxu0 %v20056_v50  ;;  %v16988_v14 = vrot.slane %v4717_v53, %v20090_v0  ;;  %v20091_v50 = vld [vmem:[#allocation130_spill] sm:$0xff] }
 0x5c5   : > { %5346 = vmatpush1.bf16.msra.mxu1 %v20057_v33  ;;  %5239 = vmatprep.subr.bf16.mxu0 %v20058_v30  ;;  %v20092_v33 = vld [vmem:[#allocation131_spill] sm:$0xff]  ;;  %v20093_v30 = vsub.s32 1, %v20089_v61 }
 0x5c6   : > { %5347 = vmatprep.subr.bf16.mxu1 %v20059_v37 }
 0x5c7   : > { %v16994_v37 = vrot.slane %v4717_v53, %v20093_v30  ;;  %v20101_v53 = vld [vmem:[#allocation139_spill] sm:$0xff] }
 0x5c8   : > { %5240 = vmatpush1.bf16.msra.mxu0 %v20060_v8  ;;  %v20094_v8 = vld [vmem:[#allocation132_spill] sm:$0xff] }
 0x5c9   : > { %5348 = vmatpush1.bf16.msra.mxu1 %v20061_v11  ;;  %5241 = vmatprep.subr.bf16.mxu0 %v20062_v26  ;;  %v20095_v11 = vld [vmem:[#allocation133_spill] sm:$0xff] }
 0x5ca   : > { %5349 = vmatprep.subr.bf16.mxu1 %v20063_v2  ;;  %v20096_v2 = vld [vmem:[#allocation134_spill] sm:$0xff] }
 0x5cc   : > { %5242 = vmatpush1.bf16.msra.mxu0 %v20064_v3 }
 0x5cd   : > { %5350 = vmatpush1.bf16.msra.mxu1 %v20065_v9  ;;  %5243 = vmatprep.subr.bf16.mxu0 %v20066_v10 }
 0x5ce   : > { %5351 = vmatprep.subr.bf16.mxu1 %v20067_v12  ;;  %v20097_v12 = vld [vmem:[#allocation135_spill] sm:$0xff] }
 0x5d0   : > { %5244 = vmatpush1.bf16.msra.mxu0 %v20068_v13 }
 0x5d1   : > { %5352 = vmatpush1.bf16.msra.mxu1 %v20069_v15  ;;  %5245 = vmatprep.subr.bf16.mxu0 %v20070_v16 }
 0x5d2   : > { %5353 = vmatprep.subr.bf16.mxu1 %v20071_v18  ;;  %v20098_v18 = vld [vmem:[#allocation136_spill] sm:$0xff] }
 0x5d4   : > { %5246 = vmatpush1.bf16.msra.mxu0 %v20072_v28 }
 0x5d5   : > { %5354 = vmatpush1.bf16.msra.mxu1 %v20073_v19  ;;  %5247 = vmatprep.subr.bf16.mxu0 %v20074_v20 }
 0x5d6   : > { %5355 = vmatprep.subr.bf16.mxu1 %v20075_v22 }
 0x5d8   : > { %5248 = vmatpush1.bf16.msra.mxu0 %v20076_v24 }
 0x5d9   : > { %5356 = vmatpush1.bf16.msra.mxu1 %v20077_v29  ;;  %5249 = vmatprep.subr.bf16.mxu0 %v20078_v31 }
 0x5da   : > { %5357 = vmatprep.subr.bf16.mxu1 %v20079_v32 }
 0x5dc   : > { %5250 = vmatpush1.bf16.msra.mxu0 %v20080_v38 }
 0x5dd   : > { %5358 = vmatpush1.bf16.msra.mxu1 %v20081_v39  ;;  %5251 = vmatprep.subr.bf16.mxu0 %v20082_v34  ;;  %v20099_v39 = vld [vmem:[#allocation137_spill] sm:$0xff] }
 0x5de   : > { %5359 = vmatprep.subr.bf16.mxu1 %v20083_v5 }
 0x5df   : > { %v4304_v40 = vpop.f32.mrb[48].mxu0 }
 0x5e0   : > { %5252 = vmatpush1.bf16.msra.mxu0 %v20084_v41  ;;  %v4653_v42 = vpop.f32.mrb[52].mxu1  ;;  %v4306_v43 = vpop.f32.mrb[49].mxu0 }
 0x5e1   : > { %5360 = vmatpush1.bf16.msra.mxu1 %v20085_v44  ;;  %v16981_v45 = vpop.f32.mrb[53].mxu1  ;;  %5253 = vmatprep.subr.bf16.mxu0 %v20086_v46  ;;  %v4308_v47 = vpop.f32.mrb[50].mxu0  ;;  %v20100_v46 = vld [vmem:[#allocation138_spill] sm:$0xff] }
 0x5e2   : > { %5361 = vmatprep.subr.bf16.mxu1 %v20087_v57  ;;  %v4657_v59 = vpop.f32.mrb[54].mxu1  ;;  %v4309_v60 = vpop.f32.mrb[51].mxu0 }
 0x5e3   : > { %v4658_v25 = vpop.f32.mrb[55].mxu1 }
 0x5e4   : > { %5254 = vmatpush1.bf16.msra.mxu0 %v20088_v6  ;;  %v20102_v25 = vld [vmem:[#allocation140_spill] sm:$0xff] }
 0x5e5   : > { %5362 = vmatpush1.bf16.msra.mxu1 %v20091_v50  ;;  %5255 = vmatprep.subr.bf16.mxu0 %v20092_v33  ;;  %v20103_v50 = vld [vmem:[#allocation141_spill] sm:$0xff] }
 0x5e6   : > { %5363 = vmatprep.subr.bf16.mxu1 %v20094_v8  ;;  %v20104_v8 = vld [vmem:[#allocation142_spill] sm:$0xff] }
 0x5e8   : > { %5256 = vmatpush1.bf16.msra.mxu0 %v20095_v11  ;;  %v4345_v26 = vpop.f32.mrb[28].mxu0 }
 0x5e9   : > { %5364 = vmatpush1.bf16.msra.mxu1 %v20096_v2  ;;  %v4729_v3 = vadd.f32 %v16988_v14, %v4345_v26  ;;  %v4694_v9 = vpop.f32.mrb[32].mxu1  ;;  %v4347_v10 = vpop.f32.mrb[29].mxu0  ;;  %5257 = vmatprep.subr.bf16.mxu0 %v20097_v12 }
 0x5ea   : > { %v4741_v13 = vadd.f32 %v16988_v14, %v4694_v9  ;;  %v4730_v15 = vadd.f32 %v16994_v37, %v4347_v10  ;;  %v4696_v16 = vpop.f32.mrb[33].mxu1  ;;  %5365 = vmatprep.subr.bf16.mxu1 %v20098_v18  ;;  %v4349_v28 = vpop.f32.mrb[30].mxu0 }
 0x5eb   : > { %v4735_v19 = vmax.f32 %v4729_v3, 0.0  ;;  %v4742_v20 = vadd.f32 %v16994_v37, %v4696_v16  ;;  %v4731_v22 = vadd.f32 %v16988_v14, %v4349_v28  ;;  %v4698_v24 = vpop.f32.mrb[34].mxu1  ;;  %v4351_v29 = vpop.f32.mrb[31].mxu0  ;;  %v20105_v3 = vld [vmem:[#allocation143_spill] sm:$0xff] }
 0x5ec   : > { %v4747_v31 = vmax.f32 %v4741_v13, 0.0  ;;  %v4736_v32 = vmax.f32 %v4730_v15, 0.0  ;;  %v4743_v38 = vadd.f32 %v16988_v14, %v4698_v24  ;;  %5258 = vmatpush1.bf16.msra.mxu0 %v20099_v39  ;;  %v4732_v34 = vadd.f32 %v16994_v37, %v4351_v29  ;;  %v4700_v5 = vpop.f32.mrb[35].mxu1  ;;  %v20106_v15 = vld [vmem:[#allocation144_spill] sm:$0xff]  ;;  %v20107_v29 = vld [vmem:[#allocation145_spill] sm:$0xff] }
 0x5ed   : > { %v4748_v41 = vmax.f32 %v4742_v20, 0.0  ;;  %v4737_v44 = vmax.f32 %v4731_v22, 0.0  ;;  %5366 = vmatpush1.bf16.msra.mxu1 %v20100_v46  ;;  %v4744_v47 = vadd.f32 %v16994_v37, %v4700_v5  ;;  %5259 = vmatprep.subr.bf16.mxu0 %v20101_v53  ;;  %v20110_v39 = vld [vmem:[#allocation148_spill] sm:$0xff]  ;;  %v20114_v53 = vld [vmem:[#allocation151_spill] sm:$0xff] }
 0x5ee   : > { %v4753_v57 = vmax.f32 %v4735_v19, %v4747_v31  ;;  %v4749_v59 = vmax.f32 %v4743_v38, 0.0  ;;  %v4738_v60 = vmax.f32 %v4732_v34, 0.0  ;;  %5367 = vmatprep.subr.bf16.mxu1 %v20102_v25  ;;  %v20111_v34 = vld [vmem:[#allocation165_spill] sm:$0xff]  ;;  %v20117_v25 = vld [vmem:[#allocation154_spill] sm:$0xff] }
 0x5ef   : > { %v4754_v6 = vmax.f32 %v4736_v32, %v4748_v41  ;;  %v4750_v61 = vmax.f32 %v4744_v47, 0.0  ;;  %v20108_v32 = vld [vmem:[#allocation146_spill] sm:$0xff] }
 0x5f0   : > { %v4755_v0 = vmax.f32 %v4737_v44, %v4749_v59  ;;  %5260 = vmatpush1.bf16.msra.mxu0 %v20103_v50  ;;  %v4355_v33 = vpop.f32.mrb[52].mxu0  ;;  %v20112_v44 = vld [vmem:[#allocation149_spill] sm:$0xff]  ;;  %v20113_v47 = vld [vmem:[#allocation150_spill] sm:$0xff] }
 0x5f1   : > { %v4756_v30 = vmax.f32 %v4738_v60, %v4750_v61  ;;  %5368 = vmatpush1.bf16.msra.mxu1 %v20104_v8  ;;  %v4356_v11 = vadd.f32 %v4355_v33, %v4304_v40  ;;  %v4704_v26 = vpop.f32.mrb[56].mxu1  ;;  %v4357_v2 = vpop.f32.mrb[53].mxu0  ;;  %5261 = vmatprep.subr.bf16.mxu0 %v20105_v3  ;;  %v20116_v60 = vld [vmem:[#allocation153_spill] sm:$0xff]  ;;  %v20119_v61 = vld [vmem:[#allocation163_spill] sm:$0xff]  ;;  %v20122_v50 = vld [vmem:[#allocation158_spill] sm:$0xff]  ;;  %v17059_v8 = vrot.slane %v15625_v63, 1 }
 0x5f2   : > { %v17016_v9 = vpack.c.bf16 %v4755_v0, %v4753_v57  ;;  %v4705_v10 = vadd.f32 %v4704_v26, %v4653_v42  ;;  %v4358_v12 = vadd.f32 %v4357_v2, %v4306_v43  ;;  %v4706_v13 = vpop.f32.mrb[57].mxu1  ;;  %5369 = vmatprep.subr.bf16.mxu1 %v20106_v15  ;;  %v4359_v16 = vpop.f32.mrb[54].mxu0  ;;  %v20115_v57 = vld [vmem:[#allocation152_spill] sm:$0xff]  ;;  %v20123_v33 = vld [vmem:[#allocation159_spill] sm:$0xff]  ;;  %v5218_v26 = vrot.slane %v15595_v23, 1  ;;  %v20126_v2 = vld [vmem:[#allocation162_spill] sm:$0xff] }
 0x5f3   : > { %v4366_v18 = vadd.f32 %v4356_v11, %v16885_v7  ;;  %v4707_v28 = vadd.f32 %v4706_v13, %v16981_v45  ;;  %v4708_v19 = vpop.f32.mrb[58].mxu1  ;;  %v4360_v20 = vpop.f32.mrb[55].mxu0  ;;  %v17021_v22 = vpack.c.bf16 %v4756_v30, %v4754_v6  ;;  %v20109_v7 = vld [vmem:[#allocation147_spill] sm:$0xff]  ;;  %v20120_v0 = vld [vmem:[#allocation156_spill] sm:$0xff]  ;;  %v20125_v11 = vld [vmem:[#allocation161_spill] sm:$0xff] }
 0x5f4   : > { %v4715_v40 = vadd.f32 %v4705_v10, %v16888_v21  ;;  %v4367_v24 = vadd.f32 %v4358_v12, %v16890_v56  ;;  %5262 = vmatpush1.bf16.msra.mxu0 %v20107_v29  ;;  %v4709_v42 = vpop.f32.mrb[59].mxu1  ;;  %v20118_v6 = vld [vmem:[#allocation155_spill] sm:$0xff]  ;;  %v20124_v30 = vld [vmem:[#allocation160_spill] sm:$0xff]  ;;  %v17067_v10 = vsel %vm2125_vm3, %v5218_v26, %v17059_v8  ;;  %v20128_v12 = vld [vmem:[#allocation166_spill] sm:$0xff] }
 0x5f5   : > { %v4733_v43 = vadd.f32 %v16988_v14, %v4366_v18  ;;  %v4716_v31 = vadd.f32 %v4707_v28, %v16893_v27  ;;  %5370 = vmatpush1.bf16.msra.mxu1 %v20108_v32  ;;  %5282 = vmatprep.subr.bf16.mxu0 %v20109_v7  ;;  %v20127_v3 = vld [vmem:[#allocation164_spill] sm:$0xff]  ;;  %v20129_v13 = vld [vmem:[#allocation37_spill] sm:$0xff]  ;;  %v20130_v16 = vld [vmem:[#allocation167_spill] sm:$0xff] }
 0x5f6   : > { %v4745_v45 = vadd.f32 %v16988_v14, %v4715_v40  ;;  %v4734_v38 = vadd.f32 %v16994_v37, %v4367_v24  ;;  %5390 = vmatprep.subr.bf16.mxu1 %v20110_v39  ;;  %v5480_v15 = vshll.u32 %v20129_v13, 16  ;;  %v20131_v18 = vld [vmem:[#allocation38_spill] sm:$0xff]  ;;  %v20132_v19 = vld [vmem:[#allocation168_spill] sm:$0xff]  ;;  %v20133_v20 = vld [vmem:[#allocation169_spill] sm:$0xff]  ;;  %v5478_v42 = vshrl.u32 %v20129_v13, 16 }
 0x5f7   : > { %v4739_v21 = vmax.f32 %v4733_v43, 0.0  ;;  %v4746_v56 = vadd.f32 %v16994_v37, %v4716_v31  ;;  %5264 = vmatmul.mubr.bf16.vlgmr.msra.gmra.mrb[56].mxu0 %v20111_v34  ;;  %v5485_v28 = vshll.u32 %v20131_v18, 16  ;;  %v20134_v40 = vld [vmem:[#allocation170_spill] sm:$0xff]  ;;  %v20135_v29 = vld [vmem:[#allocation171_spill] sm:$0xff]  ;;  %v20136_v31 = vld [vmem:[#allocation172_spill] sm:$0xff] }
 0x5f8   : > { %v4751_v5 = vmax.f32 %v4745_v45, 0.0  ;;  %v4740_v41 = vmax.f32 %v4734_v38, 0.0  ;;  %5372 = vmatmul.mubr.bf16.vlgmr.msra.gmra.mrb[60].mxu1 %v20111_v34  ;;  %5273 = vmatprep.mubr.bf16.mxu0 %v16935_v52  ;;  %v5482_v24 = vrot.slane %v5480_v15, 1  ;;  %v20137_v32 = vld [vmem:[#allocation173_spill] sm:$0xff]  ;;  %v20138_v7 = vld [vmem:[#allocation174_spill] sm:$0xff]  ;;  %v20139_v38 = vld [vmem:[#allocation175_spill] sm:$0xff] }
 0x5f9   : > { %v4752_v27 = vmax.f32 %v4746_v56, 0.0  ;;  %5283 = vmatpush1.bf16.msra.mxu0 %v20112_v44  ;;  %5381 = vmatprep.mubr.bf16.mxu1 %v16935_v52  ;;  %v20121_v52 = vld [vmem:[#allocation157_spill] sm:$0xff]  ;;  %v17084_v43 = vrot.slane %v5485_v28, 1  ;;  %v20142_v34 = vld [vmem:[#allocation178_spill] sm:$0xff]  ;;  %v20160_v26 = vld [vmem:[#allocation196_spill] sm:$0xff] }
 0x5fa   : > { %v17039_v46 = vmax.f32 %v4739_v21, %v4751_v5  ;;  %5391 = vmatpush1.bf16.msra.mxu1 %v20113_v47  ;;  %5284 = vmatprep.subr.bf16.mxu0 %v20114_v53  ;;  %v5483_v45 = vor.u32 %v5482_v24, %v5478_v42  ;;  %v20140_v21 = vld [vmem:[#allocation176_spill] sm:$0xff]  ;;  %v20141_v56 = vld [vmem:[#allocation177_spill] sm:$0xff]  ;;  %v20143_v5 = vld [vmem:[#allocation179_spill] sm:$0xff] }
 0x5fb   : > { %5392 = vmatprep.subr.bf16.mxu1 %v20115_v57  ;;  %v17044_v59 = vmax.f32 %v4740_v41, %v4752_v27  ;;  %v20144_v41 = vld [vmem:[#allocation180_spill] sm:$0xff]  ;;  %v20145_v27 = vld [vmem:[#allocation181_spill] sm:$0xff]  ;;  %v20146_v44 = vld [vmem:[#allocation182_spill] sm:$0xff] }
 0x5fc   : > { %v5488_v39 = vsel %vm1490_vm4, %v5483_v45, %v17084_v43  ;;  %v20147_v47 = vld [vmem:[#allocation183_spill] sm:$0xff]  ;;  %v20148_v53 = vld [vmem:[#allocation184_spill] sm:$0xff]  ;;  %v20149_v57 = vld [vmem:[#allocation185_spill] sm:$0xff] }
 0x5fd   : > { %5285 = vmatpush1.bf16.msra.mxu0 %v20116_v60  ;;  %v20150_v60 = vld [vmem:[#allocation186_spill] sm:$0xff]  ;;  %v20164_v15 = vld [vmem:[#allocation200_spill] sm:$0xff]  ;;  %v20171_v42 = vld [vmem:[#allocation207_spill] sm:$0xff] }
 0x5fe   : > { %5393 = vmatpush1.bf16.msra.mxu1 %v20117_v25  ;;  %5286 = vmatprep.subr.bf16.mxu0 %v20118_v6  ;;  %v20151_v25 = vld [vmem:[#allocation187_spill] sm:$0xff]  ;;  %v20152_v6 = vld [vmem:[#allocation188_spill] sm:$0xff]  ;;  %v20166_v28 = vld [vmem:[#allocation202_spill] sm:$0xff] }
 0x5ff   : > { %5274 = vmatmul.mubr.bf16.gmra.mrb[76].mxu0 %v20119_v61  ;;  %5394 = vmatprep.subr.bf16.mxu1 %v20120_v0  ;;  %v20154_v0 = vld [vmem:[#allocation190_spill] sm:$0xff] }
 0x600   : > { %5382 = vmatmul.mubr.bf16.gmra.mrb[80].mxu1 %v20119_v61  ;;  %5314 = vmatprep.mubr.bf16.mxu0 %v19845_v58  ;;  %v20153_v61 = vld [vmem:[#allocation189_spill] sm:$0xff]  ;;  %v20170_v24 = vld [vmem:[#allocation206_spill] sm:$0xff] }
 0x601   : > { %5287 = vmatpush1.bf16.msra.mxu0 %v20121_v52  ;;  %5422 = vmatprep.mubr.bf16.mxu1 %v19845_v58  ;;  %v20155_v52 = vld [vmem:[#allocation191_spill] sm:$0xff] }
 0x602   : > { %5395 = vmatpush1.bf16.msra.mxu1 %v20122_v50  ;;  %5288 = vmatprep.subr.bf16.mxu0 %v20123_v33  ;;  %v20156_v50 = vld [vmem:[#allocation192_spill] sm:$0xff]  ;;  %v20157_v33 = vld [vmem:[#allocation193_spill] sm:$0xff] }
 0x603   : > { %5396 = vmatprep.subr.bf16.mxu1 %v20124_v30  ;;  %v20158_v30 = vld [vmem:[#allocation194_spill] sm:$0xff] }
 0x605   : > { %5289 = vmatpush1.bf16.msra.mxu0 %v20125_v11  ;;  %v20159_v11 = vld [vmem:[#allocation195_spill] sm:$0xff] }
 0x606   : > { %5397 = vmatpush1.bf16.msra.mxu1 %v20126_v2  ;;  %5517 = vmatprep.subr.bf16.mxu0 %v20127_v3  ;;  %v20161_v2 = vld [vmem:[#allocation197_spill] sm:$0xff]  ;;  %v20162_v3 = vld [vmem:[#allocation198_spill] sm:$0xff] }
 0x607   : > { %5725 = vmatprep.subr.bf16.mxu1 %v20128_v12  ;;  %v20163_v12 = vld [vmem:[#allocation199_spill] sm:$0xff] }
 0x608   : > { %11712 = vmatmul.mubr.msk.bf16.vlgmr.msra.gmra.mrb[56].mxu0 %vm2934_vm6, %v17067_v10 }
 0x609   : > { %11714 = vmatmul.mubr.msk.bf16.vlgmr.msra.gmra.mrb[60].mxu1 %vm2934_vm6, %v17067_v10  ;;  %5518 = vmatpush1.bf16.msra.mxu0 %v20130_v16  ;;  %v20165_v16 = vld [vmem:[#allocation201_spill] sm:$0xff] }
 0x60a   : > { %5726 = vmatpush1.bf16.msra.mxu1 %v20132_v19  ;;  %5519 = vmatprep.subr.bf16.mxu0 %v20133_v20  ;;  %v20167_v19 = vld [vmem:[#allocation203_spill] sm:$0xff]  ;;  %v20168_v20 = vld [vmem:[#allocation204_spill] sm:$0xff] }
 0x60b   : > { %5727 = vmatprep.subr.bf16.mxu1 %v20134_v40  ;;  %5324 = vmatprep.mubr.bf16.mxu0 %v19845_v58  ;;  %v20169_v40 = vld [vmem:[#allocation205_spill] sm:$0xff] }
 0x60c   : > { %5432 = vmatprep.mubr.bf16.mxu1 %v19845_v58 }
 0x60d   : > { %5520 = vmatpush1.bf16.msra.mxu0 %v20135_v29 }
 0x60e   : > { %5728 = vmatpush1.bf16.msra.mxu1 %v20136_v31  ;;  %5521 = vmatprep.subr.bf16.mxu0 %v20137_v32 }
 0x60f   : > { %5729 = vmatprep.subr.bf16.mxu1 %v20138_v7  ;;  %v20172_v7 = vld [vmem:[#allocation208_spill] sm:$0xff] }
 0x610   : > { %11713 = vmatmul.mubr.msk.bf16.gmra.mrb[80].mxu0 %vm2934_vm6, %v17059_v8 }
 0x611   : > { %11715 = vmatmul.mubr.msk.bf16.gmra.mrb[84].mxu1 %vm2934_vm6, %v17059_v8  ;;  %5522 = vmatpush1.bf16.msra.mxu0 %v20139_v38  ;;  %v20173_v38 = vld [vmem:[#allocation209_spill] sm:$0xff] }
 0x612   : > { %5549 = vmatprep.mubr.bf16.mxu0 %v5488_v39  ;;  %5730 = vmatpush1.bf16.msra.mxu1 %v20140_v21  ;;  %v20174_v21 = vld [vmem:[#allocation210_spill] sm:$0xff] }
 0x613   : > { %5757 = vmatprep.mubr.bf16.mxu1 %v5488_v39  ;;  %5523 = vmatprep.subr.bf16.mxu0 %v20141_v56 }
 0x614   : > { %5731 = vmatprep.subr.bf16.mxu1 %v20142_v34 }
 0x615   : > { %5524 = vmatpush1.bf16.msra.mxu0 %v20143_v5 }
 0x616   : > { %5732 = vmatpush1.bf16.msra.mxu1 %v20144_v41  ;;  %5525 = vmatprep.subr.bf16.mxu0 %v20145_v27  ;;  %v20175_v41 = vld [vmem:[#allocation211_spill] sm:$0xff]  ;;  %v20176_v27 = vld [vmem:[#allocation212_spill] sm:$0xff] }
 0x617   : > { %5733 = vmatprep.subr.bf16.mxu1 %v20146_v44  ;;  %v20177_v44 = vld [vmem:[#allocation213_spill] sm:$0xff] }
 0x619   : > { %5526 = vmatpush1.bf16.msra.mxu0 %v20147_v47  ;;  %v20178_v47 = vld [vmem:[#allocation214_spill] sm:$0xff] }
 0x61a   : > { %5734 = vmatpush1.bf16.msra.mxu1 %v20148_v53  ;;  %5527 = vmatprep.subr.bf16.mxu0 %v20149_v57  ;;  %v20179_v53 = vld [vmem:[#allocation215_spill] sm:$0xff]  ;;  %v20180_v57 = vld [vmem:[#allocation216_spill] sm:$0xff] }
 0x61b   : > { %5735 = vmatprep.subr.bf16.mxu1 %v20150_v60  ;;  %v20181_v60 = vld [vmem:[#allocation217_spill] sm:$0xff] }
 0x61d   : > { %5528 = vmatpush1.bf16.msra.mxu0 %v20151_v25  ;;  %v20182_v25 = vld [vmem:[#allocation218_spill] sm:$0xff] }
 0x61e   : > { %5736 = vmatpush1.bf16.msra.mxu1 %v20152_v6  ;;  %5529 = vmatprep.subr.bf16.mxu0 %v20153_v61  ;;  %v20183_v6 = vld [vmem:[#allocation219_spill] sm:$0xff]  ;;  %v20184_v61 = vld [vmem:[#allocation220_spill] sm:$0xff] }
 0x61f   : > { %5737 = vmatprep.subr.bf16.mxu1 %v20154_v0  ;;  %v20185_v0 = vld [vmem:[#allocation221_spill] sm:$0xff] }
 0x621   : > { %5530 = vmatpush1.bf16.msra.mxu0 %v20155_v52  ;;  %v20186_v52 = vld [vmem:[#allocation222_spill] sm:$0xff] }
 0x622   : > { %5738 = vmatpush1.bf16.msra.mxu1 %v20156_v50  ;;  %5531 = vmatprep.subr.bf16.mxu0 %v20157_v33  ;;  %v20187_v50 = vld [vmem:[#allocation223_spill] sm:$0xff] }
 0x623   : > { %5739 = vmatprep.subr.bf16.mxu1 %v20158_v30  ;;  %v20188_v30 = vld [vmem:[#allocation224_spill] sm:$0xff] }
 0x625   : > { %5532 = vmatpush1.bf16.msra.mxu0 %v20159_v11 }
 0x626   : > { %5740 = vmatpush1.bf16.msra.mxu1 %v20160_v26  ;;  %5533 = vmatprep.subr.bf16.mxu0 %v20161_v2 }
 0x627   : > { %5741 = vmatprep.subr.bf16.mxu1 %v20162_v3  ;;  %v20189_v3 = vld [vmem:[#allocation225_spill] sm:$0xff] }
 0x629   : > { %5534 = vmatpush1.bf16.msra.mxu0 %v20163_v12 }
 0x62a   : > { %5742 = vmatpush1.bf16.msra.mxu1 %v20164_v15  ;;  %5535 = vmatprep.subr.bf16.mxu0 %v20165_v16 }
 0x62b   : > { %5743 = vmatprep.subr.bf16.mxu1 %v20166_v28 }
 0x62d   : > { %5536 = vmatpush1.bf16.msra.mxu0 %v20167_v19 }
 0x62e   : > { %5744 = vmatpush1.bf16.msra.mxu1 %v20168_v20  ;;  %5537 = vmatprep.subr.bf16.mxu0 %v20169_v40 }
 0x62f   : > { %5745 = vmatprep.subr.bf16.mxu1 %v20170_v24 }
 0x630   : > { %v4843_v29 = vpop.f32.mrb[60].mxu0 }
 0x631   : > { %5538 = vmatpush1.bf16.msra.mxu0 %v20171_v42  ;;  %v5051_v31 = vpop.f32.mrb[64].mxu1  ;;  %v4845_v32 = vpop.f32.mrb[61].mxu0 }
 0x632   : > { %5746 = vmatpush1.bf16.msra.mxu1 %v20172_v7  ;;  %v5053_v45 = vpop.f32.mrb[65].mxu1  ;;  %5539 = vmatprep.subr.bf16.mxu0 %v20173_v38  ;;  %v4847_v39 = vpop.f32.mrb[62].mxu0  ;;  %v14327_v38 = vld [vmem:[#allocation8 + $0x274] ss:$8 sps:$4 sm:$0xff]  }
 0x633   : > { %5747 = vmatprep.subr.bf16.mxu1 %v20174_v21  ;;  %v5055_v56 = vpop.f32.mrb[66].mxu1  ;;  %v4848_v34 = vpop.f32.mrb[63].mxu0  ;;  %v14329_v21 = vld [vmem:[#allocation8 + $0x270] ss:$8 sps:$4 sm:$0xff]  }
 0x634   : > { %v5056_v5 = vpop.f32.mrb[67].mxu1  ;;  %v14331_v34 = vld [vmem:[#allocation8 + $0x4] ss:$8 sps:$4 sm:$0xff]  }
 0x635   : > { %5540 = vmatpush1.bf16.msra.mxu0 %v20175_v41  ;;  %v14332_v5 = vld [vmem:[%s19528_s5] ss:$8 sps:$4 sm:$0xff]  }
 0x636   : > { %5748 = vmatpush1.bf16.msra.mxu1 %v20176_v27  ;;  %5541 = vmatprep.subr.bf16.mxu0 %v20177_v44  ;;  %v14333_v41 = vld [vmem:[#allocation8] ss:$8 sps:$4 sm:$0xff]   ;;  %v14334_v27 = vld [vmem:[%s19528_s5 + $0x14] ss:$8 sps:$4 sm:$0xff]  }
 0x637   : > { %5749 = vmatprep.subr.bf16.mxu1 %v20178_v47  ;;  %v14335_v44 = vld [vmem:[#allocation8 + $0x14] ss:$8 sps:$4 sm:$0xff]  }
 0x639   : > { %5542 = vmatpush1.bf16.msra.mxu0 %v20179_v53  ;;  %v14336_v53 = vld [vmem:[%s19528_s5 + $0x10] ss:$8 sps:$4 sm:$0xff]  }
 0x63a   : > { %5750 = vmatpush1.bf16.msra.mxu1 %v20180_v57  ;;  %5543 = vmatprep.subr.bf16.mxu0 %v20181_v60  ;;  %v14337_v57 = vld [vmem:[#allocation8 + $0x10] ss:$8 sps:$4 sm:$0xff]  }
 0x63b   : > { %5751 = vmatprep.subr.bf16.mxu1 %v20182_v25  ;;  %v14338_v25 = vld [vmem:[%s19528_s5 + $0x24] ss:$8 sps:$4 sm:$0xff]  }
 0x63d   : > { %5544 = vmatpush1.bf16.msra.mxu0 %v20183_v6  ;;  %v14339_v6 = vld [vmem:[#allocation8 + $0x24] ss:$8 sps:$4 sm:$0xff]  }
 0x63e   : > { %5752 = vmatpush1.bf16.msra.mxu1 %v20184_v61  ;;  %5545 = vmatprep.subr.bf16.mxu0 %v20185_v0  ;;  %v14340_v61 = vld [vmem:[%s19528_s5 + $0x20] ss:$8 sps:$4 sm:$0xff]  }
 0x63f   : > { %5753 = vmatprep.subr.bf16.mxu1 %v20186_v52  ;;  %v14341_v0 = vld [vmem:[#allocation8 + $0x20] ss:$8 sps:$4 sm:$0xff]   ;;  %v14342_v52 = vld [vmem:[%s19528_s5 + $0x34] ss:$8 sps:$4 sm:$0xff]  }
 0x641   : > { %5546 = vmatpush1.bf16.msra.mxu0 %v20187_v50  ;;  %v4894_v33 = vpop.f32.mrb[64].mxu0  ;;  %v14343_v50 = vld [vmem:[#allocation8 + $0x34] ss:$8 sps:$4 sm:$0xff]  }
 0x642   : > { %5754 = vmatpush1.bf16.msra.mxu1 %v20188_v30  ;;  %v17145_v11 = vadd.f32 %v4894_v33, %v4843_v29  ;;  %v5102_v26 = vpop.f32.mrb[68].mxu1  ;;  %v4896_v2 = vpop.f32.mrb[65].mxu0  ;;  %5547 = vmatprep.subr.bf16.mxu0 %v20189_v3  ;;  %v5501_v29 = vshrl.u32 %v20131_v18, 16  ;;  %v14344_v33 = vld [vmem:[%s19528_s5 + $0x30] ss:$8 sps:$4 sm:$0xff]  }
 0x643   : > { %v17148_v12 = vadd.f32 %v5102_v26, %v5051_v31  ;;  %v17150_v15 = vadd.f32 %v4896_v2, %v4845_v32  ;;  %v5104_v16 = vpop.f32.mrb[69].mxu1  ;;  %5755 = vmatprep.subr.bf16.mxu1 %v16718_v55  ;;  %v4898_v28 = vpop.f32.mrb[66].mxu0  ;;  %v20190_v55 = vld [vmem:[#allocation226_spill] sm:$0xff]  ;;  %v20193_v31 = vld [vmem:[#allocation228_spill] sm:$0xff]  ;;  %v20197_v32 = vld [vmem:[#allocation35_spill] sm:$0xff] }
 0x644   : > { %v17153_v19 = vadd.f32 %v5104_v16, %v5053_v45  ;;  %v5106_v20 = vpop.f32.mrb[70].mxu1  ;;  %v4899_v40 = vpop.f32.mrb[67].mxu0  ;;  %v5503_v42 = vor.u32 %v5501_v29, %v17084_v43  ;;  %v20195_v43 = vld [vmem:[#allocation230_spill] sm:$0xff]  ;;  %v5497_v7 = vshll.u32 %v20197_v32, 16  ;;  %v14326_v45 = vld [vmem:[%s19528_s5 + $0x274] ss:$8 sps:$4 sm:$0xff]  }
 0x645   : > { %5548 = vmatpush1.bf16.msra.mxu0 %v16728_v36  ;;  %v5107_v24 = vpop.f32.mrb[71].mxu1  ;;  %v20191_v36 = vld [vmem:[#allocation227_spill] sm:$0xff]  ;;  %v5504_v47 = vshrl.u32 %v20197_v32, 16  ;;  %v14345_v30 = vld [vmem:[#allocation8 + $0x30] ss:$8 sps:$4 sm:$0xff]  }
 0x646   : > { %5756 = vmatpush1.bf16.msra.mxu1 %v16732_v35  ;;  %5568 = vmatprep.subr.bf16.mxu0 %v16738_v48  ;;  %v20192_v35 = vld [vmem:[#allocation36_spill] sm:$0xff]  ;;  %v5499_v39 = vrot.slane %v5497_v7, 1  ;;  %v14346_v26 = vld [vmem:[%s19528_s5 + $0x44] ss:$8 sps:$4 sm:$0xff]   ;;  %v14348_v3 = vld [vmem:[%s19528_s5 + $0x40] ss:$8 sps:$4 sm:$0xff]  }
 0x647   : > { %5776 = vmatprep.subr.bf16.mxu1 %v16741_v51  ;;  %v5492_v48 = vshll.u32 %v20192_v35, 16  ;;  %v20194_v51 = vld [vmem:[#allocation229_spill] sm:$0xff]  ;;  %v14347_v2 = vld [vmem:[#allocation8 + $0x44] ss:$8 sps:$4 sm:$0xff]   ;;  %v14349_v16 = vld [vmem:[#allocation8 + $0x40] ss:$8 sps:$4 sm:$0xff]  }
 0x648   : > { %5550 = vmatmul.mubr.bf16.vlgmr.msra.gmra.mrb[84].mxu0 %v16805_v4  ;;  %v5506_v60 = vor.u32 %v5504_v47, %v5499_v39  ;;  %v14350_v28 = vld [vmem:[%s19528_s5 + $0x54] ss:$8 sps:$4 sm:$0xff]   ;;  %v14352_v40 = vld [vmem:[%s19528_s5 + $0x50] ss:$8 sps:$4 sm:$0xff]   ;;  %v14354_v29 = vld [vmem:[%s19528_s5 + $0x64] ss:$8 sps:$4 sm:$0xff]  }
 0x649   : > { %5758 = vmatmul.mubr.bf16.vlgmr.msra.gmra.mrb[88].mxu1 %v16805_v4  ;;  %5559 = vmatprep.mubr.bf16.mxu0 %v5503_v42  ;;  %v20196_v4 = vld [vmem:[#allocation231_spill] sm:$0xff]  ;;  %v14351_v20 = vld [vmem:[#allocation8 + $0x54] ss:$8 sps:$4 sm:$0xff]   ;;  %v14353_v24 = vld [vmem:[#allocation8 + $0x50] ss:$8 sps:$4 sm:$0xff]  }
 0x64a   : > { %5569 = vmatpush1.bf16.msra.mxu0 %v16750_v54  ;;  %5767 = vmatprep.mubr.bf16.mxu1 %v5503_v42  ;;  %v5494_v54 = vrot.slane %v5492_v48, 1  ;;  %v14355_v42 = vld [vmem:[#allocation8 + $0x64] ss:$8 sps:$4 sm:$0xff]   ;;  %v14365_v7 = vld [vmem:[#allocation8 + $0x80] ss:$8 sps:$4 sm:$0xff]  }
 0x64b   : > { %5777 = vmatpush1.bf16.msra.mxu1 %v16753_v49  ;;  %5570 = vmatprep.subr.bf16.mxu0 %v20190_v55  ;;  %v5490_v49 = vshrl.u32 %v20192_v35, 16  ;;  %v14356_v55 = vld [vmem:[%s19528_s5 + $0x60] ss:$8 sps:$4 sm:$0xff]   ;;  %v14358_v48 = vld [vmem:[%s19528_s5 + $0x74] ss:$8 sps:$4 sm:$0xff]  }
 0x64c   : > { %5778 = vmatprep.subr.bf16.mxu1 %v20191_v36  ;;  %v14357_v36 = vld [vmem:[#allocation8 + $0x60] ss:$8 sps:$4 sm:$0xff]  }
 0x64e   : > { %5571 = vmatpush1.bf16.msra.mxu0 %v20193_v31  ;;  %v14359_v31 = vld [vmem:[#allocation8 + $0x74] ss:$8 sps:$4 sm:$0xff]  }
 0x64f   : > { %5779 = vmatpush1.bf16.msra.mxu1 %v20194_v51  ;;  %5572 = vmatprep.subr.bf16.mxu0 %v20195_v43  ;;  %v14360_v51 = vld [vmem:[%s19528_s5 + $0x70] ss:$8 sps:$4 sm:$0xff]  }
 0x650   : > { %5560 = vmatmul.mubr.bf16.gmra.mrb[88].mxu0 %v16821_v62  ;;  %5780 = vmatprep.subr.bf16.mxu1 %v20196_v4  ;;  %v14361_v43 = vld [vmem:[#allocation8 + $0x70] ss:$8 sps:$4 sm:$0xff]   ;;  %v14362_v4 = vld [vmem:[%s19528_s5 + $0x84] ss:$8 sps:$4 sm:$0xff]  }
 0x651   : > { %5768 = vmatmul.mubr.bf16.gmra.mrb[92].mxu1 %v16821_v62  ;;  %5600 = vmatprep.mubr.bf16.mxu0 %v19845_v58  ;;  %v5495_v62 = vor.u32 %v5494_v54, %v5490_v49  ;;  %v14363_v54 = vld [vmem:[#allocation8 + $0x84] ss:$8 sps:$4 sm:$0xff]   ;;  %v14364_v49 = vld [vmem:[%s19528_s5 + $0x80] ss:$8 sps:$4 sm:$0xff]  }
 0x652   : > { %5573 = vmatpush1.bf16.msra.mxu0 %v16791_v1  ;;  %5808 = vmatprep.mubr.bf16.mxu1 %v19845_v58  ;;  %v14328_v1 = vld [vmem:[%s19528_s5 + $0x270] ss:$8 sps:$4 sm:$0xff]  }
 0x653   : > { %5781 = vmatpush1.bf16.msra.mxu1 %v16795_v17  ;;  %5574 = vmatprep.subr.bf16.mxu0 %v14326_v45  ;;  %v14330_v17 = vld [vmem:[%s19528_s5 + $0x4] ss:$8 sps:$4 sm:$0xff]   ;;  %v5500_v56 = vsel %vm1490_vm4, %v5495_v62, %v5499_v39  ;;  %v14366_v45 = vld [vmem:[%s19528_s5 + $0x94] ss:$8 sps:$4 sm:$0xff]   ;;  %v14368_v62 = vld [vmem:[%s19528_s5 + $0x90] ss:$8 sps:$4 sm:$0xff]  }
 0x654   : > { %5782 = vmatprep.subr.bf16.mxu1 %v14327_v38  ;;  %v14367_v38 = vld [vmem:[#allocation8 + $0x94] ss:$8 sps:$4 sm:$0xff]  }
 0x655   : > { %v14370_v39 = vld [vmem:[%s19528_s5 + $0xa4] ss:$8 sps:$4 sm:$0xff]  }
 0x656   : > { %5575 = vmatpush1.bf16.msra.mxu0 %v14328_v1  ;;  %v14369_v1 = vld [vmem:[#allocation8 + $0x90] ss:$8 sps:$4 sm:$0xff]  }
 0x657   : > { %5783 = vmatpush1.bf16.msra.mxu1 %v14329_v21  ;;  %5623 = vmatprep.subr.bf16.mxu0 %v14330_v17  ;;  %v14371_v21 = vld [vmem:[#allocation8 + $0xa4] ss:$8 sps:$4 sm:$0xff]  }
 0x658   : > { %5827 = vmatprep.subr.bf16.mxu1 %v14331_v34 }
 0x659   : > { %11716 = vmatmul.mubr.msk.bf16.vlgmr.msra.gmra.mrb[84].mxu0 %vm2934_vm6, %v5500_v56 }
 0x65a   : > { %11720 = vmatmul.mubr.msk.bf16.vlgmr.msra.gmra.mrb[88].mxu1 %vm2934_vm6, %v5500_v56  ;;  %5624 = vmatpush1.bf16.msra.mxu0 %v14332_v5  ;;  %v14372_v56 = vld [vmem:[%s19528_s5 + $0xa0] ss:$8 sps:$4 sm:$0xff]  }
 0x65b   : > { %5828 = vmatpush1.bf16.msra.mxu1 %v14333_v41  ;;  %5625 = vmatprep.subr.bf16.mxu0 %v14334_v27  ;;  %v14373_v27 = vld [vmem:[#allocation8 + $0xa0] ss:$8 sps:$4 sm:$0xff]  }
 0x65c   : > { %5829 = vmatprep.subr.bf16.mxu1 %v14335_v44  ;;  %5610 = vmatprep.mubr.bf16.mxu0 %v19845_v58 }
 0x65d   : > { %5818 = vmatprep.mubr.bf16.mxu1 %v19845_v58 }
 0x65e   : > { %5626 = vmatpush1.bf16.msra.mxu0 %v14336_v53 }
 0x65f   : > { %5830 = vmatpush1.bf16.msra.mxu1 %v14337_v57  ;;  %5627 = vmatprep.subr.bf16.mxu0 %v14338_v25  ;;  %v14374_v57 = vld [vmem:[%s19528_s5 + $0xb4] ss:$8 sps:$4 sm:$0xff]  }
 0x660   : > { %5831 = vmatprep.subr.bf16.mxu1 %v14339_v6  ;;  %v14375_v6 = vld [vmem:[#allocation8 + $0xb4] ss:$8 sps:$4 sm:$0xff]  }
 0x661   : > { %11717 = vmatmul.mubr.msk.bf16.gmra.mrb[92].mxu0 %vm2934_vm6, %v5506_v60 }
 0x662   : > { %11721 = vmatmul.mubr.msk.bf16.gmra.mrb[96].mxu1 %vm2934_vm6, %v5506_v60  ;;  %5628 = vmatpush1.bf16.msra.mxu0 %v14340_v61 }
 0x663   : > { %5655 = vmatprep.mubr.bf16.mxu0 %v20129_v13  ;;  %5832 = vmatpush1.bf16.msra.mxu1 %v14341_v0 }
 0x664   : > { %5859 = vmatprep.mubr.bf16.mxu1 %v20129_v13  ;;  %5629 = vmatprep.subr.bf16.mxu0 %v14342_v52  ;;  %v14378_v52 = vld [vmem:[%s19528_s5 + $0xc4] ss:$8 sps:$4 sm:$0xff]  }
 0x665   : > { %5833 = vmatprep.subr.bf16.mxu1 %v14343_v50  ;;  %v14379_v50 = vld [vmem:[#allocation8 + $0xc4] ss:$8 sps:$4 sm:$0xff]  }
 0x666   : > { %5630 = vmatpush1.bf16.msra.mxu0 %v14344_v33  ;;  %v14381_v33 = vld [vmem:[#allocation8 + $0xc0] ss:$8 sps:$4 sm:$0xff]  }
 0x667   : > { %5834 = vmatpush1.bf16.msra.mxu1 %v14345_v30  ;;  %5631 = vmatprep.subr.bf16.mxu0 %v14346_v26  ;;  %v14382_v30 = vld [vmem:[%s19528_s5 + $0xd4] ss:$8 sps:$4 sm:$0xff]  }
 0x668   : > { %5835 = vmatprep.subr.bf16.mxu1 %v14347_v2  ;;  %v14383_v26 = vld [vmem:[#allocation8 + $0xd4] ss:$8 sps:$4 sm:$0xff]   ;;  %v14384_v2 = vld [vmem:[%s19528_s5 + $0xd0] ss:$8 sps:$4 sm:$0xff]  }
 0x66a   : > { %5632 = vmatpush1.bf16.msra.mxu0 %v14348_v3  ;;  %v14385_v3 = vld [vmem:[#allocation8 + $0xd0] ss:$8 sps:$4 sm:$0xff]  }
 0x66b   : > { %5836 = vmatpush1.bf16.msra.mxu1 %v14349_v16  ;;  %5633 = vmatprep.subr.bf16.mxu0 %v14350_v28  ;;  %v14386_v16 = vld [vmem:[%s19528_s5 + $0xe4] ss:$8 sps:$4 sm:$0xff]  }
 0x66c   : > { %5837 = vmatprep.subr.bf16.mxu1 %v14351_v20  ;;  %v14387_v28 = vld [vmem:[#allocation8 + $0xe4] ss:$8 sps:$4 sm:$0xff]   ;;  %v14388_v20 = vld [vmem:[%s19528_s5 + $0xe0] ss:$8 sps:$4 sm:$0xff]  }
 0x66e   : > { %5634 = vmatpush1.bf16.msra.mxu0 %v14352_v40 }
 0x66f   : > { %5838 = vmatpush1.bf16.msra.mxu1 %v14353_v24  ;;  %5635 = vmatprep.subr.bf16.mxu0 %v14354_v29  ;;  %v14389_v24 = vld [vmem:[#allocation8 + $0xe0] ss:$8 sps:$4 sm:$0xff]  }
 0x670   : > { %5839 = vmatprep.subr.bf16.mxu1 %v14355_v42 }
 0x672   : > { %5636 = vmatpush1.bf16.msra.mxu0 %v14356_v55 }
 0x673   : > { %5840 = vmatpush1.bf16.msra.mxu1 %v14357_v36  ;;  %5637 = vmatprep.subr.bf16.mxu0 %v14358_v48  ;;  %v14390_v36 = vld [vmem:[%s19528_s5 + $0xf4] ss:$8 sps:$4 sm:$0xff]  }
 0x674   : > { %5841 = vmatprep.subr.bf16.mxu1 %v14359_v31 }
 0x676   : > { %5638 = vmatpush1.bf16.msra.mxu0 %v14360_v51 }
 0x677   : > { %5842 = vmatpush1.bf16.msra.mxu1 %v14361_v43  ;;  %5639 = vmatprep.subr.bf16.mxu0 %v14362_v4  ;;  %v14391_v43 = vld [vmem:[#allocation8 + $0xf4] ss:$8 sps:$4 sm:$0xff]  }
 0x678   : > { %5843 = vmatprep.subr.bf16.mxu1 %v14363_v54 }
 0x67a   : > { %5640 = vmatpush1.bf16.msra.mxu0 %v14364_v49 }
 0x67b   : > { %5844 = vmatpush1.bf16.msra.mxu1 %v14365_v7  ;;  %5641 = vmatprep.subr.bf16.mxu0 %v14366_v45  ;;  %v14392_v45 = vld [vmem:[%s19528_s5 + $0xf0] ss:$8 sps:$4 sm:$0xff]  }
 0x67c   : > { %5845 = vmatprep.subr.bf16.mxu1 %v14367_v38 }
 0x67e   : > { %5642 = vmatpush1.bf16.msra.mxu0 %v14368_v62  ;;  %v14393_v62 = vld [vmem:[#allocation8 + $0xf0] ss:$8 sps:$4 sm:$0xff]  }
 0x67f   : > { %5846 = vmatpush1.bf16.msra.mxu1 %v14369_v1  ;;  %5643 = vmatprep.subr.bf16.mxu0 %v14370_v39  ;;  %v14394_v1 = vld [vmem:[%s19528_s5 + $0x104] ss:$8 sps:$4 sm:$0xff]  }
 0x680   : > { %5847 = vmatprep.subr.bf16.mxu1 %v14371_v21  ;;  %v14395_v39 = vld [vmem:[#allocation8 + $0x104] ss:$8 sps:$4 sm:$0xff]   ;;  %v14396_v21 = vld [vmem:[%s19528_s5 + $0x100] ss:$8 sps:$4 sm:$0xff]  }
 0x681   : > { %v4949_v17 = vpop.f32.mrb[68].mxu0 }
 0x682   : > { %5644 = vmatpush1.bf16.msra.mxu0 %v14372_v56  ;;  %v4950_v34 = vadd.f32 %v4949_v17, %v17145_v11  ;;  %v5153_v5 = vpop.f32.mrb[72].mxu1  ;;  %v4951_v41 = vpop.f32.mrb[69].mxu0  ;;  %v14397_v17 = vld [vmem:[#allocation8 + $0x100] ss:$8 sps:$4 sm:$0xff]   ;;  %v14398_v56 = vld [vmem:[%s19528_s5 + $0x114] ss:$8 sps:$4 sm:$0xff]  }
 0x683   : > { %5848 = vmatpush1.bf16.msra.mxu1 %v14373_v27  ;;  %v5154_v44 = vadd.f32 %v5153_v5, %v17148_v12  ;;  %v4952_v47 = vadd.f32 %v4951_v41, %v17150_v15  ;;  %v5155_v53 = vpop.f32.mrb[73].mxu1  ;;  %5645 = vmatprep.subr.bf16.mxu0 %v14374_v57  ;;  %v4953_v60 = vpop.f32.mrb[70].mxu0  ;;  %v14376_v12 = vld [vmem:[%s19528_s5 + $0xb0] ss:$8 sps:$4 sm:$0xff]   ;;  %v14402_v41 = vld [vmem:[%s19528_s5 + $0x124] ss:$8 sps:$4 sm:$0xff]  }
 0x684   : > { %v5156_v25 = vadd.f32 %v5155_v53, %v17153_v19  ;;  %5849 = vmatprep.subr.bf16.mxu1 %v14375_v6  ;;  %v5157_v11 = vpop.f32.mrb[74].mxu1  ;;  %v4954_v61 = vpop.f32.mrb[71].mxu0  ;;  %v14377_v15 = vld [vmem:[#allocation8 + $0xb0] ss:$8 sps:$4 sm:$0xff]   ;;  %v14403_v27 = vld [vmem:[#allocation8 + $0x124] ss:$8 sps:$4 sm:$0xff]  }
 0x685   : > { %v5158_v0 = vpop.f32.mrb[75].mxu1  ;;  %v14380_v19 = vld [vmem:[%s19528_s5 + $0xc0] ss:$8 sps:$4 sm:$0xff]   ;;  %v14406_v53 = vld [vmem:[%s19528_s5 + $0x134] ss:$8 sps:$4 sm:$0xff]  }
 0x686   : > { %5646 = vmatpush1.bf16.msra.mxu0 %v14376_v12  ;;  %v14401_v5 = vld [vmem:[#allocation8 + $0x110] ss:$8 sps:$4 sm:$0xff]   ;;  %v14407_v57 = vld [vmem:[#allocation8 + $0x134] ss:$8 sps:$4 sm:$0xff]   ;;  %v14411_v6 = vld [vmem:[#allocation8 + $0x284] ss:$8 sps:$4 sm:$0xff]  }
 0x687   : > { %5850 = vmatpush1.bf16.msra.mxu1 %v14377_v15  ;;  %5647 = vmatprep.subr.bf16.mxu0 %v14378_v52  ;;  %v14409_v60 = vld [vmem:[#allocation8 + $0x130] ss:$8 sps:$4 sm:$0xff]   ;;  %v14413_v61 = vld [vmem:[#allocation8 + $0x280] ss:$8 sps:$4 sm:$0xff]   ;;  %v14414_v0 = vld [vmem:[%s19528_s5 + $0x294] ss:$8 sps:$4 sm:$0xff]  }
 0x688   : > { %5851 = vmatprep.subr.bf16.mxu1 %v14379_v50  ;;  %v14412_v11 = vld [vmem:[%s19528_s5 + $0x280] ss:$8 sps:$4 sm:$0xff]   ;;  %v14415_v12 = vld [vmem:[#allocation8 + $0x294] ss:$8 sps:$4 sm:$0xff]   ;;  %v14416_v15 = vld [vmem:[%s19528_s5 + $0x290] ss:$8 sps:$4 sm:$0xff]  }
 0x689   : > { %v17355_v52 = vrot.slane %v20131_v18, 1  ;;  %v14417_v50 = vld [vmem:[#allocation8 + $0x290] ss:$8 sps:$4 sm:$0xff]  }
 0x68a   : > { %5648 = vmatpush1.bf16.msra.mxu0 %v14380_v19  ;;  %v14418_v19 = vld [vmem:[%s19528_s5 + $0x2a4] ss:$8 sps:$4 sm:$0xff]  }
 0x68b   : > { %5852 = vmatpush1.bf16.msra.mxu1 %v14381_v33  ;;  %5649 = vmatprep.subr.bf16.mxu0 %v14382_v30  ;;  %v14419_v33 = vld [vmem:[#allocation8 + $0x2a4] ss:$8 sps:$4 sm:$0xff]   ;;  %v5933_v30 = vrot.slane %v20129_v13, 1 }
 0x68c   : > { %5853 = vmatprep.subr.bf16.mxu1 %v14383_v26  ;;  %v14422_v13 = vld [vmem:[%s19528_s5 + $0x2b4] ss:$8 sps:$4 sm:$0xff]  }
 0x68d   : > { %v5935_v26 = vsel %vm2125_vm3, %v5933_v30, %v17355_v52  ;;  %v14458_v30 = vld [vmem:[%s19528_s5 + $0x344] ss:$8 sps:$4 sm:$0xff]  }
 0x68e   : > { %5650 = vmatpush1.bf16.msra.mxu0 %v14384_v2  ;;  %v14421_v2 = vld [vmem:[#allocation8 + $0x2a0] ss:$8 sps:$4 sm:$0xff]  }
 0x68f   : > { %5854 = vmatpush1.bf16.msra.mxu1 %v14385_v3  ;;  %5651 = vmatprep.subr.bf16.mxu0 %v14386_v16  ;;  %v14423_v3 = vld [vmem:[#allocation8 + $0x2b4] ss:$8 sps:$4 sm:$0xff]   ;;  %v14424_v16 = vld [vmem:[%s19528_s5 + $0x2b0] ss:$8 sps:$4 sm:$0xff]  }
 0x690   : > { %5855 = vmatprep.subr.bf16.mxu1 %v14387_v28  ;;  %v14425_v28 = vld [vmem:[#allocation8 + $0x2b0] ss:$8 sps:$4 sm:$0xff]  }
 0x692   : > { %5652 = vmatpush1.bf16.msra.mxu0 %v14388_v20  ;;  %v5000_v40 = vpop.f32.mrb[72].mxu0  ;;  %v14426_v20 = vld [vmem:[%s19528_s5 + $0x2c4] ss:$8 sps:$4 sm:$0xff]  }
 0x693   : > { %5856 = vmatpush1.bf16.msra.mxu1 %v14389_v24  ;;  %v17290_v29 = vadd.f32 %v5000_v40, %v4950_v34  ;;  %v5204_v42 = vpop.f32.mrb[76].mxu1  ;;  %v5002_v55 = vpop.f32.mrb[73].mxu0  ;;  %5653 = vmatprep.subr.bf16.mxu0 %v14390_v36  ;;  %v14399_v34 = vld [vmem:[#allocation8 + $0x114] ss:$8 sps:$4 sm:$0xff]   ;;  %v14427_v40 = vld [vmem:[#allocation8 + $0x2c4] ss:$8 sps:$4 sm:$0xff]  }
 0x694   : > { %v17295_v48 = vadd.f32 %v5204_v42, %v5154_v44  ;;  %v17297_v31 = vadd.f32 %v5002_v55, %v4952_v47  ;;  %v5206_v51 = vpop.f32.mrb[77].mxu1  ;;  %5857 = vmatprep.subr.bf16.mxu1 %v14391_v43  ;;  %v5004_v4 = vpop.f32.mrb[74].mxu0  ;;  %v14404_v44 = vld [vmem:[%s19528_s5 + $0x120] ss:$8 sps:$4 sm:$0xff]   ;;  %v14430_v55 = vld [vmem:[%s19528_s5 + $0x2d4] ss:$8 sps:$4 sm:$0xff]  }
 0x695   : > { %v17299_v54 = vadd.f32 %v5206_v51, %v5156_v25  ;;  %v5208_v49 = vpop.f32.mrb[78].mxu1  ;;  %v5005_v7 = vpop.f32.mrb[75].mxu0  ;;  %v14405_v47 = vld [vmem:[#allocation8 + $0x120] ss:$8 sps:$4 sm:$0xff]   ;;  %v14410_v25 = vld [vmem:[%s19528_s5 + $0x284] ss:$8 sps:$4 sm:$0xff]  }
 0x696   : > { %5654 = vmatpush1.bf16.msra.mxu0 %v14392_v45  ;;  %v5209_v38 = vpop.f32.mrb[79].mxu1  ;;  %v14428_v24 = vld [vmem:[%s19528_s5 + $0x2c0] ss:$8 sps:$4 sm:$0xff]   ;;  %v14431_v36 = vld [vmem:[#allocation8 + $0x2d4] ss:$8 sps:$4 sm:$0xff]  }
 0x697   : > { %5858 = vmatpush1.bf16.msra.mxu1 %v14393_v62  ;;  %5674 = vmatprep.subr.bf16.mxu0 %v14394_v1  ;;  %v14429_v42 = vld [vmem:[#allocation8 + $0x2c0] ss:$8 sps:$4 sm:$0xff]   ;;  %v14433_v43 = vld [vmem:[#allocation8 + $0x2d0] ss:$8 sps:$4 sm:$0xff]   ;;  %v14434_v4 = vld [vmem:[%s19528_s5 + $0x2e4] ss:$8 sps:$4 sm:$0xff]  }
 0x698   : > { %5878 = vmatprep.subr.bf16.mxu1 %v14395_v39  ;;  %v14432_v51 = vld [vmem:[%s19528_s5 + $0x2d0] ss:$8 sps:$4 sm:$0xff]   ;;  %v14435_v49 = vld [vmem:[#allocation8 + $0x2e4] ss:$8 sps:$4 sm:$0xff]   ;;  %v14436_v7 = vld [vmem:[%s19528_s5 + $0x2e0] ss:$8 sps:$4 sm:$0xff]  }
 0x699   : > { %5656 = vmatmul.mubr.bf16.vlgmr.msra.gmra.mrb[84].mxu0 %v15595_v23  ;;  %v14437_v45 = vld [vmem:[#allocation8 + $0x2e0] ss:$8 sps:$4 sm:$0xff]   ;;  %v14438_v38 = vld [vmem:[%s19528_s5 + $0x2f4] ss:$8 sps:$4 sm:$0xff]   ;;  %v14441_v39 = vld [vmem:[#allocation8 + $0x2f0] ss:$8 sps:$4 sm:$0xff]  }
 0x69a   : > { %5860 = vmatmul.mubr.bf16.vlgmr.msra.gmra.mrb[88].mxu1 %v15595_v23  ;;  %5665 = vmatprep.mubr.bf16.mxu0 %v20131_v18  ;;  %v14400_v23 = vld [vmem:[%s19528_s5 + $0x110] ss:$8 sps:$4 sm:$0xff]   ;;  %v14439_v62 = vld [vmem:[#allocation8 + $0x2f4] ss:$8 sps:$4 sm:$0xff]  }
 0x69b   : > { %5675 = vmatpush1.bf16.msra.mxu0 %v14396_v21  ;;  %5869 = vmatprep.mubr.bf16.mxu1 %v20131_v18  ;;  %v14420_v18 = vld [vmem:[%s19528_s5 + $0x2a0] ss:$8 sps:$4 sm:$0xff]   ;;  %v14440_v1 = vld [vmem:[%s19528_s5 + $0x2f0] ss:$8 sps:$4 sm:$0xff]   ;;  %v14442_v21 = vld [vmem:[%s19528_s5 + $0x304] ss:$8 sps:$4 sm:$0xff]  }
 0x69c   : > { %5879 = vmatpush1.bf16.msra.mxu1 %v14397_v17  ;;  %5676 = vmatprep.subr.bf16.mxu0 %v14398_v56  ;;  %v14443_v17 = vld [vmem:[#allocation8 + $0x304] ss:$8 sps:$4 sm:$0xff]   ;;  %v14444_v56 = vld [vmem:[%s19528_s5 + $0x300] ss:$8 sps:$4 sm:$0xff]  }
 0x69d   : > { %5880 = vmatprep.subr.bf16.mxu1 %v14399_v34  ;;  %v14445_v34 = vld [vmem:[#allocation8 + $0x300] ss:$8 sps:$4 sm:$0xff]  }
 0x69f   : > { %5677 = vmatpush1.bf16.msra.mxu0 %v14400_v23  ;;  %v14446_v23 = vld [vmem:[%s19528_s5 + $0x314] ss:$8 sps:$4 sm:$0xff]  }
 0x6a0   : > { %5881 = vmatpush1.bf16.msra.mxu1 %v14401_v5  ;;  %5678 = vmatprep.subr.bf16.mxu0 %v14402_v41  ;;  %v14447_v5 = vld [vmem:[#allocation8 + $0x314] ss:$8 sps:$4 sm:$0xff]   ;;  %v14448_v41 = vld [vmem:[%s19528_s5 + $0x310] ss:$8 sps:$4 sm:$0xff]  }
 0x6a1   : > { %5666 = vmatmul.mubr.bf16.gmra.mrb[96].mxu0 %v15625_v63  ;;  %5882 = vmatprep.subr.bf16.mxu1 %v14403_v27  ;;  %v14449_v27 = vld [vmem:[#allocation8 + $0x310] ss:$8 sps:$4 sm:$0xff]  }
 0x6a2   : > { %5870 = vmatmul.mubr.bf16.gmra.mrb[100].mxu1 %v15625_v63  ;;  %5706 = vmatprep.mubr.bf16.mxu0 %v19845_v58  ;;  %v14408_v63 = vld [vmem:[%s19528_s5 + $0x130] ss:$8 sps:$4 sm:$0xff]  }
 0x6a3   : > { %5679 = vmatpush1.bf16.msra.mxu0 %v14404_v44  ;;  %5910 = vmatprep.mubr.bf16.mxu1 %v19845_v58  ;;  %v14450_v44 = vld [vmem:[%s19528_s5 + $0x324] ss:$8 sps:$4 sm:$0xff]  }
 0x6a4   : > { %5883 = vmatpush1.bf16.msra.mxu1 %v14405_v47  ;;  %5680 = vmatprep.subr.bf16.mxu0 %v14406_v53  ;;  %v14451_v47 = vld [vmem:[#allocation8 + $0x324] ss:$8 sps:$4 sm:$0xff]  }
 0x6a5   : > { %5884 = vmatprep.subr.bf16.mxu1 %v14407_v57  ;;  %v14452_v57 = vld [vmem:[%s19528_s5 + $0x320] ss:$8 sps:$4 sm:$0xff]  }
 0x6a7   : > { %5681 = vmatpush1.bf16.msra.mxu0 %v14408_v63 }
 0x6a8   : > { %5885 = vmatpush1.bf16.msra.mxu1 %v14409_v60  ;;  %5949 = vmatprep.subr.bf16.mxu0 %v14410_v25  ;;  %v14453_v25 = vld [vmem:[#allocation8 + $0x320] ss:$8 sps:$4 sm:$0xff]  }
 0x6a9   : > { %6057 = vmatprep.subr.bf16.mxu1 %v14411_v6 }
 0x6aa   : > { %11718 = vmatmul.mubr.msk.bf16.vlgmr.msra.gmra.mrb[84].mxu0 %vm2934_vm6, %v20192_v35 }
 0x6ab   : > { %11722 = vmatmul.mubr.msk.bf16.vlgmr.msra.gmra.mrb[88].mxu1 %vm2934_vm6, %v20192_v35  ;;  %5950 = vmatpush1.bf16.msra.mxu0 %v14412_v11  ;;  %v14454_v11 = vld [vmem:[%s19528_s5 + $0x334] ss:$8 sps:$4 sm:$0xff]  }
 0x6ac   : > { %6058 = vmatpush1.bf16.msra.mxu1 %v14413_v61  ;;  %5951 = vmatprep.subr.bf16.mxu0 %v14414_v0  ;;  %v14455_v0 = vld [vmem:[#allocation8 + $0x334] ss:$8 sps:$4 sm:$0xff]  }
 0x6ad   : > { %6059 = vmatprep.subr.bf16.mxu1 %v14415_v12  ;;  %5716 = vmatprep.mubr.bf16.mxu0 %v19845_v58 }
 0x6ae   : > { %5920 = vmatprep.mubr.bf16.mxu1 %v19845_v58 }
 0x6af   : > { %5952 = vmatpush1.bf16.msra.mxu0 %v14416_v15 }
 0x6b0   : > { %6060 = vmatpush1.bf16.msra.mxu1 %v14417_v50  ;;  %5953 = vmatprep.subr.bf16.mxu0 %v14418_v19  ;;  %v14456_v19 = vld [vmem:[%s19528_s5 + $0x330] ss:$8 sps:$4 sm:$0xff]  }
 0x6b1   : > { %6061 = vmatprep.subr.bf16.mxu1 %v14419_v33  ;;  %v14457_v33 = vld [vmem:[#allocation8 + $0x330] ss:$8 sps:$4 sm:$0xff]  }
 0x6b2   : > { %11719 = vmatmul.mubr.msk.bf16.gmra.mrb[100].mxu0 %vm2934_vm6, %v20197_v32 }
 0x6b3   : > { %11723 = vmatmul.mubr.msk.bf16.gmra.mrb[104].mxu1 %vm2934_vm6, %v20197_v32  ;;  %5954 = vmatpush1.bf16.msra.mxu0 %v14420_v18  ;;  %v14459_v18 = vld [vmem:[#allocation8 + $0x344] ss:$8 sps:$4 sm:$0xff]  }
 0x6b4   : > { %5981 = vmatprep.mubr.bf16.mxu0 %v5935_v26  ;;  %6062 = vmatpush1.bf16.msra.mxu1 %v14421_v2 }
 0x6b5   : > { %6089 = vmatprep.mubr.bf16.mxu1 %v5935_v26  ;;  %5955 = vmatprep.subr.bf16.mxu0 %v14422_v13  ;;  %v14460_v26 = vld [vmem:[%s19528_s5 + $0x340] ss:$8 sps:$4 sm:$0xff]  }
 0x6b6   : > { %6063 = vmatprep.subr.bf16.mxu1 %v14423_v3  ;;  %v14461_v13 = vld [vmem:[#allocation8 + $0x340] ss:$8 sps:$4 sm:$0xff]  }
 0x6b7   : > { %5956 = vmatpush1.bf16.msra.mxu0 %v14424_v16 }
 0x6b8   : > { %6064 = vmatpush1.bf16.msra.mxu1 %v14425_v28  ;;  %5957 = vmatprep.subr.bf16.mxu0 %v14426_v20  ;;  %v14462_v20 = vld [vmem:[%s19528_s5 + $0x354] ss:$8 sps:$4 sm:$0xff]  }
 0x6b9   : > { %6065 = vmatprep.subr.bf16.mxu1 %v14427_v40 }
 0x6bb   : > { %5958 = vmatpush1.bf16.msra.mxu0 %v14428_v24 }
 0x6bc   : > { %6066 = vmatpush1.bf16.msra.mxu1 %v14429_v42  ;;  %5959 = vmatprep.subr.bf16.mxu0 %v14430_v55  ;;  %v14463_v55 = vld [vmem:[#allocation8 + $0x354] ss:$8 sps:$4 sm:$0xff]  }
 0x6bd   : > { %6067 = vmatprep.subr.bf16.mxu1 %v14431_v36 }
 0x6bf   : > { %5960 = vmatpush1.bf16.msra.mxu0 %v14432_v51 }
 0x6c0   : > { %6068 = vmatpush1.bf16.msra.mxu1 %v14433_v43  ;;  %5961 = vmatprep.subr.bf16.mxu0 %v14434_v4 }
 0x6c1   : > { %6069 = vmatprep.subr.bf16.mxu1 %v14435_v49 }
 0x6c3   : > { %5962 = vmatpush1.bf16.msra.mxu0 %v14436_v7 }
 0x6c4   : > { %6070 = vmatpush1.bf16.msra.mxu1 %v14437_v45  ;;  %5963 = vmatprep.subr.bf16.mxu0 %v14438_v38 }
 0x6c5   : > { %6071 = vmatprep.subr.bf16.mxu1 %v14439_v62 }
 0x6c7   : > { %5964 = vmatpush1.bf16.msra.mxu0 %v14440_v1  ;;  %v14464_v1 = vld [vmem:[%s19528_s5 + $0x350] ss:$8 sps:$4 sm:$0xff]  }
 0x6c8   : > { %6072 = vmatpush1.bf16.msra.mxu1 %v14441_v39  ;;  %5965 = vmatprep.subr.bf16.mxu0 %v14442_v21 }
 0x6c9   : > { %6073 = vmatprep.subr.bf16.mxu1 %v14443_v17 }
 0x6cb   : > { %5966 = vmatpush1.bf16.msra.mxu0 %v14444_v56 }
 0x6cc   : > { %6074 = vmatpush1.bf16.msra.mxu1 %v14445_v34  ;;  %5967 = vmatprep.subr.bf16.mxu0 %v14446_v23  ;;  %v14465_v34 = vld [vmem:[#allocation8 + $0x350] ss:$8 sps:$4 sm:$0xff]  }
 0x6cd   : > { %6075 = vmatprep.subr.bf16.mxu1 %v14447_v5  ;;  %v14466_v5 = vld [vmem:[%s19528_s5 + $0x364] ss:$8 sps:$4 sm:$0xff]  }
 0x6cf   : > { %5968 = vmatpush1.bf16.msra.mxu0 %v14448_v41 }
 0x6d0   : > { %6076 = vmatpush1.bf16.msra.mxu1 %v14449_v27  ;;  %5969 = vmatprep.subr.bf16.mxu0 %v14450_v44 }
 0x6d1   : > { %6077 = vmatprep.subr.bf16.mxu1 %v14451_v47  ;;  %v14467_v47 = vld [vmem:[#allocation8 + $0x364] ss:$8 sps:$4 sm:$0xff]  }
 0x6d2   : > { %v17415_v53 = vpop.f32.mrb[76].mxu0 }
 0x6d3   : > { %5970 = vmatpush1.bf16.msra.mxu0 %v14452_v57  ;;  %v17420_v63 = vpop.f32.mrb[80].mxu1  ;;  %v17422_v60 = vpop.f32.mrb[77].mxu0 }
 0x6d4   : > { %6078 = vmatpush1.bf16.msra.mxu1 %v14453_v25  ;;  %v17424_v6 = vpop.f32.mrb[81].mxu1  ;;  %5971 = vmatprep.subr.bf16.mxu0 %v14454_v11  ;;  %v5279_v61 = vpop.f32.mrb[78].mxu0 }
 0x6d5   : > { %6079 = vmatprep.subr.bf16.mxu1 %v14455_v0  ;;  %v5387_v12 = vpop.f32.mrb[82].mxu1  ;;  %v5280_v15 = vpop.f32.mrb[79].mxu0  ;;  %v14468_v61 = vld [vmem:[%s19528_s5 + $0x360] ss:$8 sps:$4 sm:$0xff]  }
 0x6d6   : > { %v5388_v50 = vpop.f32.mrb[83].mxu1  ;;  %v14469_v15 = vld [vmem:[#allocation8 + $0x360] ss:$8 sps:$4 sm:$0xff]  }
 0x6d7   : > { %5972 = vmatpush1.bf16.msra.mxu0 %v14456_v19 }
 0x6d8   : > { %6080 = vmatpush1.bf16.msra.mxu1 %v14457_v33  ;;  %5973 = vmatprep.subr.bf16.mxu0 %v14458_v30  ;;  %v14470_v30 = vld [vmem:[%s19528_s5 + $0x374] ss:$8 sps:$4 sm:$0xff]  }
 0x6d9   : > { %6081 = vmatprep.subr.bf16.mxu1 %v14459_v18 }
 0x6db   : > { %5974 = vmatpush1.bf16.msra.mxu0 %v14460_v26  ;;  %v5316_v2 = vpop.f32.mrb[56].mxu0 }
 0x6dc   : > { %6082 = vmatpush1.bf16.msra.mxu1 %v14461_v13  ;;  %v5447_v3 = vadd.f32 %v5316_v2, %v16988_v14  ;;  %v5424_v16 = vpop.f32.mrb[60].mxu1  ;;  %v5318_v28 = vpop.f32.mrb[57].mxu0  ;;  %5975 = vmatprep.subr.bf16.mxu0 %v14462_v20 }
 0x6dd   : > { %v5459_v40 = vadd.f32 %v5424_v16, %v16988_v14  ;;  %v5448_v24 = vadd.f32 %v5318_v28, %v16994_v37  ;;  %v5426_v42 = vpop.f32.mrb[61].mxu1  ;;  %6083 = vmatprep.subr.bf16.mxu1 %v14463_v55  ;;  %v5320_v36 = vpop.f32.mrb[58].mxu0 }
 0x6de   : > { %v5453_v51 = vmax.f32 %v5447_v3, 0.0  ;;  %v5460_v43 = vadd.f32 %v5426_v42, %v16994_v37  ;;  %v5449_v4 = vadd.f32 %v5320_v36, %v16988_v14  ;;  %v5428_v49 = vpop.f32.mrb[62].mxu1  ;;  %v5322_v7 = vpop.f32.mrb[59].mxu0  ;;  %v14471_v3 = vld [vmem:[#allocation8 + $0x374] ss:$8 sps:$4 sm:$0xff]  }
 0x6df   : > { %v5465_v45 = vmax.f32 %v5459_v40, 0.0  ;;  %v5454_v38 = vmax.f32 %v5448_v24, 0.0  ;;  %v5461_v62 = vadd.f32 %v5428_v49, %v16988_v14  ;;  %5976 = vmatpush1.bf16.msra.mxu0 %v14464_v1  ;;  %v5450_v39 = vadd.f32 %v5322_v7, %v16994_v37  ;;  %v5430_v21 = vpop.f32.mrb[63].mxu1  ;;  %v14477_v1 = vld [vmem:[#allocation8 + $0x380] ss:$8 sps:$4 sm:$0xff]  }
 0x6e0   : > { %v5466_v17 = vmax.f32 %v5460_v43, 0.0  ;;  %v5455_v56 = vmax.f32 %v5449_v4, 0.0  ;;  %6084 = vmatpush1.bf16.msra.mxu1 %v14465_v34  ;;  %v5462_v23 = vadd.f32 %v5430_v21, %v16994_v37  ;;  %5977 = vmatprep.subr.bf16.mxu0 %v14466_v5  ;;  %v14475_v43 = vld [vmem:[#allocation8 + $0x384] ss:$8 sps:$4 sm:$0xff]   ;;  %v14485_v5 = vld [vmem:[#allocation8 + $0x3a0] ss:$8 sps:$4 sm:$0xff]  }
 0x6e1   : > { %v5471_v41 = vmax.f32 %v5453_v51, %v5465_v45  ;;  %v5467_v27 = vmax.f32 %v5461_v62, 0.0  ;;  %v5456_v44 = vmax.f32 %v5450_v39, 0.0  ;;  %6085 = vmatprep.subr.bf16.mxu1 %v14467_v47  ;;  %v14473_v51 = vld [vmem:[#allocation8 + $0x370] ss:$8 sps:$4 sm:$0xff]   ;;  %v14478_v39 = vld [vmem:[%s19528_s5 + $0x394] ss:$8 sps:$4 sm:$0xff]  }
 0x6e2   : > { %v5472_v57 = vmax.f32 %v5454_v38, %v5466_v17  ;;  %v5468_v25 = vmax.f32 %v5462_v23, 0.0  ;;  %v14476_v38 = vld [vmem:[%s19528_s5 + $0x380] ss:$8 sps:$4 sm:$0xff]   ;;  %v14480_v17 = vld [vmem:[%s19528_s5 + $0x390] ss:$8 sps:$4 sm:$0xff]  }
 0x6e3   : > { %v5473_v11 = vmax.f32 %v5455_v56, %v5467_v27  ;;  %5978 = vmatpush1.bf16.msra.mxu0 %v14468_v61  ;;  %v5326_v0 = vpop.f32.mrb[80].mxu0  ;;  %v14481_v56 = vld [vmem:[#allocation8 + $0x390] ss:$8 sps:$4 sm:$0xff]   ;;  %v14483_v34 = vld [vmem:[#allocation8 + $0x3a4] ss:$8 sps:$4 sm:$0xff]  }
 0x6e4   : > { %v5474_v12 = vmax.f32 %v5456_v44, %v5468_v25  ;;  %6086 = vmatpush1.bf16.msra.mxu1 %v14469_v15  ;;  %v5327_v50 = vadd.f32 %v5326_v0, %v17415_v53  ;;  %v5434_v19 = vpop.f32.mrb[84].mxu1  ;;  %v5328_v33 = vpop.f32.mrb[81].mxu0  ;;  %5979 = vmatprep.subr.bf16.mxu0 %v14470_v30  ;;  %v14484_v23 = vld [vmem:[%s19528_s5 + $0x3a0] ss:$8 sps:$4 sm:$0xff]   ;;  %v14487_v27 = vld [vmem:[#allocation8 + $0x3b4] ss:$8 sps:$4 sm:$0xff]  }
 0x6e5   : > { %v17462_v18 = vpack.c.bf16 %v5473_v11, %v5471_v41  ;;  %v5435_v26 = vadd.f32 %v5434_v19, %v17420_v63  ;;  %v5329_v2 = vadd.f32 %v5328_v33, %v17422_v60  ;;  %v5436_v13 = vpop.f32.mrb[85].mxu1  ;;  %6087 = vmatprep.subr.bf16.mxu1 %v14471_v3  ;;  %v5330_v16 = vpop.f32.mrb[82].mxu0  ;;  %v14472_v63 = vld [vmem:[%s19528_s5 + $0x370] ss:$8 sps:$4 sm:$0xff]   ;;  %v14486_v41 = vld [vmem:[%s19528_s5 + $0x3b4] ss:$8 sps:$4 sm:$0xff]  }
 0x6e6   : > { %v5337_v28 = vadd.f32 %v5327_v50, %v17290_v29  ;;  %v5437_v53 = vadd.f32 %v5436_v13, %v17424_v6  ;;  %v5438_v20 = vpop.f32.mrb[86].mxu1  ;;  %v5331_v40 = vpop.f32.mrb[83].mxu0  ;;  %v17468_v24 = vpack.c.bf16 %v5474_v12, %v5472_v57  ;;  %v14474_v6 = vld [vmem:[%s19528_s5 + $0x384] ss:$8 sps:$4 sm:$0xff]   ;;  %v5937_v44 = vrot.slane %v20197_v32, 1  ;;  %v17555_v11 = vld [vmem:[#allocation13] sm:$0xff] }
 0x6e7   : > { %v5445_v42 = vadd.f32 %v5435_v26, %v17295_v48  ;;  %v5338_v55 = vadd.f32 %v5329_v2, %v17297_v31  ;;  %5980 = vmatpush1.bf16.msra.mxu0 %v14472_v63  ;;  %v5439_v60 = vpop.f32.mrb[87].mxu1  ;;  %v14488_v47 = vld [vmem:[%s19528_s5 + $0x3b0] ss:$8 sps:$4 sm:$0xff]  }
 0x6e8   : > { %v5451_v36 = vadd.f32 %v5337_v28, %v16988_v14  ;;  %v5446_v29 = vadd.f32 %v5437_v53, %v17299_v54  ;;  %6088 = vmatpush1.bf16.msra.mxu1 %v14473_v51  ;;  %6000 = vmatprep.subr.bf16.mxu0 %v14474_v6  ;;  %v14489_v57 = vld [vmem:[#allocation8 + $0x3b0] ss:$8 sps:$4 sm:$0xff]   ;;  %v17532_v32 = vld [vmem:[#allocation11] sm:$0xff] }
 0x6e9   : > { %v5463_v48 = vadd.f32 %v5445_v42, %v16988_v14  ;;  %v5452_v31 = vadd.f32 %v5338_v55, %v16994_v37  ;;  %6108 = vmatprep.subr.bf16.mxu1 %v14475_v43 }
 0x6ea   : > { %v5457_v4 = vmax.f32 %v5451_v36, 0.0  ;;  %v5464_v49 = vadd.f32 %v5446_v29, %v16994_v37  ;;  %5982 = vmatmul.mubr.bf16.vlgmr.msra.gmra.mrb[84].mxu0 %v17067_v10 }
 0x6eb   : > { %v5469_v7 = vmax.f32 %v5463_v48, 0.0  ;;  %v5458_v54 = vmax.f32 %v5452_v31, 0.0  ;;  %6090 = vmatmul.mubr.bf16.vlgmr.msra.gmra.mrb[88].mxu1 %v17067_v10  ;;  %5991 = vmatprep.mubr.bf16.mxu0 %v17355_v52  ;;  %v14479_v10 = vld [vmem:[#allocation8 + $0x394] ss:$8 sps:$4 sm:$0xff]  }
 0x6ec   : > { %v5470_v45 = vmax.f32 %v5464_v49, 0.0  ;;  %6001 = vmatpush1.bf16.msra.mxu0 %v14476_v38  ;;  %6099 = vmatprep.mubr.bf16.mxu1 %v17355_v52  ;;  %v14482_v52 = vld [vmem:[%s19528_s5 + $0x3a4] ss:$8 sps:$4 sm:$0xff]  }
 0x6ed   : > { %v17490_v62 = vmax.f32 %v5457_v4, %v5469_v7  ;;  %6109 = vmatpush1.bf16.msra.mxu1 %v14477_v1  ;;  %6002 = vmatprep.subr.bf16.mxu0 %v14478_v39 }
 0x6ee   : > { %6110 = vmatprep.subr.bf16.mxu1 %v14479_v10  ;;  %v17495_v21 = vmax.f32 %v5458_v54, %v5470_v45 }
 0x6f0   : > { %6003 = vmatpush1.bf16.msra.mxu0 %v14480_v17 }
 0x6f1   : > { %6111 = vmatpush1.bf16.msra.mxu1 %v14481_v56  ;;  %6004 = vmatprep.subr.bf16.mxu0 %v14482_v52 }
 0x6f2   : > { %5992 = vmatmul.mubr.bf16.gmra.mrb[104].mxu0 %v17059_v8  ;;  %6112 = vmatprep.subr.bf16.mxu1 %v14483_v34 }
 0x6f3   : > { %6100 = vmatmul.mubr.bf16.gmra.mrb[108].mxu1 %v17059_v8  ;;  %6032 = vmatprep.mubr.bf16.mxu0 %v19845_v58  ;;  %v5936_v8 = vrot.slane %v20192_v35, 1  ;;  %v14842_v35 = vmov 0.0  }
 0x6f4   : > { %6005 = vmatpush1.bf16.msra.mxu0 %v14484_v23  ;;  %6140 = vmatprep.mubr.bf16.mxu1 %v19845_v58 }
 0x6f5   : > { %6113 = vmatpush1.bf16.msra.mxu1 %v14485_v5  ;;  %6006 = vmatprep.subr.bf16.mxu0 %v14486_v41  ;;  %v5938_v25 = vsel %vm2125_vm3, %v5936_v8, %v5937_v44 }
 0x6f6   : > { %6114 = vmatprep.subr.bf16.mxu1 %v14487_v27 }
 0x6f8   : > { %6007 = vmatpush1.bf16.msra.mxu0 %v14488_v47 }
 0x6f9   : > { %6115 = vmatpush1.bf16.msra.mxu1 %v14489_v57  ;;  %12488 = vmatprep.subr.bf16.mxu0 %v17021_v22 }
 0x6fb   : > { %11724 = vmatmul.mubr.msk.bf16.vlgmr.msra.gmra.mrb[84].mxu0 %vm2934_vm6, %v5938_v25 }
 0x6fc   : > { %11726 = vmatmul.mubr.msk.bf16.vlgmr.msra.gmra.mrb[88].mxu1 %vm2934_vm6, %v5938_v25  ;;  %12490 = vmatpush1.bf16.msra.mxu0 %v17016_v9 }
 0x6fd   : > { %6207 = vmatprep.subr.mxu0 %v17044_v59  ;;  %6042 = vmatprep.mubr.bf16.mxu0 %v19845_v58 }
 0x6fe   : > { %6150 = vmatprep.mubr.bf16.mxu1 %v19845_v58  ;;  %v17538_v58 = vld [vmem:[#allocation11 + $0x8] sm:$0xf] }
 0x700   : > { %6208 = vmatpush1.msra.mxu0 %v17039_v46 }
 0x701   : > { %12492 = vmatprep.subr.bf16.mxu0 %v17468_v24 }
 0x703   : > { %11725 = vmatmul.mubr.msk.bf16.gmra.mrb[108].mxu0 %vm2934_vm6, %v5937_v44 }
 0x704   : > { %11727 = vmatmul.mubr.msk.bf16.gmra.mrb[112].mxu1 %vm2934_vm6, %v5937_v44  ;;  %6267 = vmatprep.mubr.f32.mxu0 %v14842_v35 }
 0x705   : > { %6421 = vmatprep.mubr.f32.mxu1 %v14842_v35 }
 0x70b   : > { %11728 = vmatmul.mubr.msk.f32.vlgmr.msra.gmra.mrb[112].mxu0 %vm977_vm1, %v17532_v32 }
 0x70c   : > { %12494 = vmatpush1.bf16.msra.mxu0 %v17462_v18  ;;  %6273 = vmatprep.mubr.f32.mxu0 %v14842_v35 }
 0x70d   : > { %6284 = vmatprep.subr.mxu0 %v17495_v21 }
 0x70f   : > { %11729 = vmatmul.mubr.msk.f32.gmra.mrb[114].mxu0 %vm977_vm1, %v17538_v58 }
 0x710   : > { %6285 = vmatpush1.msra.mxu0 %v17490_v62  ;;  %6344 = vmatprep.mubr.f32.mxu0 %v14842_v35 }
 0x711   : > { %12500 = vmatprep.subr.bf16.mxu0 %v17021_v22  ;;  %v17560_v22 = vld [vmem:[#allocation13 + $0x8] sm:$0xf] }
 0x713   : > { %11730 = vmatmul.mubr.msk.f32.vlgmr.msra.gmra.mrb[116].mxu0 %vm977_vm1, %v17532_v32 }
 0x714   : > { %12502 = vmatpush1.bf16.msra.mxu0 %v17016_v9  ;;  %6350 = vmatprep.mubr.f32.mxu0 %v14842_v35 }
 0x715   : > { %6446 = vmatprep.subr.mxu0 %v17044_v59 }
 0x717   : > { %11731 = vmatmul.mubr.msk.f32.gmra.mrb[118].mxu0 %vm977_vm1, %v17538_v58 }
 0x718   : > { %6447 = vmatpush1.msra.mxu0 %v17039_v46  ;;  %6506 = vmatprep.mubr.f32.mxu0 %v14842_v35 }
 0x71b   : > { %11734 = vmatmul.mubr.msk.f32.vlgmr.msra.gmra.mrb[120].mxu0 %vm977_vm1, %v17555_v11 }
 0x71c   : > { %6512 = vmatprep.mubr.f32.mxu0 %v14842_v35 }
 0x71f   : > { %11735 = vmatmul.mubr.msk.f32.gmra.mrb[122].mxu0 %vm977_vm1, %v17560_v22 }
 0x720   : > { %6660 = vmatprep.mubr.f32.mxu0 %v14842_v35 }
 0x723   : > { %v5561_v9 = vpop.f32.mrb[88].mxu0 }
 0x724   : > { %v5769_v59 = vpop.f32.mrb[92].mxu1  ;;  %v5563_v61 = vpop.f32.mrb[89].mxu0 }
 0x725   : > { %v5771_v46 = vpop.f32.mrb[93].mxu1  ;;  %v5565_v0 = vpop.f32.mrb[90].mxu0 }
 0x726   : > { %v5773_v12 = vpop.f32.mrb[94].mxu1  ;;  %v5566_v15 = vpop.f32.mrb[91].mxu0 }
 0x727   : > { %v5774_v50 = vpop.f32.mrb[95].mxu1 }
 0x734   : > { %v5612_v19 = vpop.f32.mrb[92].mxu0 }
 0x735   : > { %v5613_v33 = vadd.f32 %v5612_v19, %v5561_v9  ;;  %v5820_v30 = vpop.f32.mrb[96].mxu1  ;;  %v5614_v26 = vpop.f32.mrb[93].mxu0 }
 0x736   : > { %v5821_v2 = vadd.f32 %v5820_v30, %v5769_v59  ;;  %v5615_v13 = vadd.f32 %v5614_v26, %v5563_v61  ;;  %v5822_v3 = vpop.f32.mrb[97].mxu1  ;;  %v5616_v16 = vpop.f32.mrb[94].mxu0 }
 0x737   : > { %v5823_v28 = vadd.f32 %v5822_v3, %v5771_v46  ;;  %v5824_v53 = vpop.f32.mrb[98].mxu1  ;;  %v5617_v20 = vpop.f32.mrb[95].mxu0 }
 0x738   : > { %v5825_v40 = vpop.f32.mrb[99].mxu1 }
 0x774   : > { %v5667_v42 = vpop.f32.mrb[96].mxu0 }
 0x775   : > { %v5668_v55 = vadd.f32 %v5667_v42, %v5613_v33  ;;  %v5871_v63 = vpop.f32.mrb[100].mxu1  ;;  %v5669_v60 = vpop.f32.mrb[97].mxu0 }
 0x776   : > { %v5872_v36 = vadd.f32 %v5871_v63, %v5821_v2  ;;  %v5670_v29 = vadd.f32 %v5669_v60, %v5615_v13  ;;  %v5873_v51 = vpop.f32.mrb[101].mxu1  ;;  %v5671_v6 = vpop.f32.mrb[98].mxu0 }
 0x777   : > { %v5874_v48 = vadd.f32 %v5873_v51, %v5823_v28  ;;  %v5875_v31 = vpop.f32.mrb[102].mxu1  ;;  %v5672_v43 = vpop.f32.mrb[99].mxu0 }
 0x778   : > { %v5876_v4 = vpop.f32.mrb[103].mxu1 }
 0x785   : > { %v5718_v49 = vpop.f32.mrb[100].mxu0 }
 0x786   : > { %v5719_v7 = vadd.f32 %v5718_v49, %v5668_v55  ;;  %v5922_v54 = vpop.f32.mrb[104].mxu1  ;;  %v5720_v45 = vpop.f32.mrb[101].mxu0 }
 0x787   : > { %v5923_v38 = vadd.f32 %v5922_v54, %v5872_v36  ;;  %v5721_v1 = vadd.f32 %v5720_v45, %v5670_v29  ;;  %v5924_v39 = vpop.f32.mrb[105].mxu1  ;;  %v5722_v10 = vpop.f32.mrb[102].mxu0 }
 0x788   : > { %v5925_v17 = vadd.f32 %v5924_v39, %v5874_v48  ;;  %v5926_v56 = vpop.f32.mrb[106].mxu1  ;;  %v5723_v52 = vpop.f32.mrb[103].mxu0 }
 0x789   : > { %v5927_v34 = vpop.f32.mrb[107].mxu1 }
 0x7c5   : > { %v5993_v23 = vpop.f32.mrb[104].mxu0 }
 0x7c6   : > { %v6101_v5 = vpop.f32.mrb[108].mxu1  ;;  %v5995_v41 = vpop.f32.mrb[105].mxu0 }
 0x7c7   : > { %v6103_v27 = vpop.f32.mrb[109].mxu1  ;;  %v5997_v8 = vpop.f32.mrb[106].mxu0 }
 0x7c8   : > { %v6105_v44 = vpop.f32.mrb[110].mxu1  ;;  %v5998_v47 = vpop.f32.mrb[107].mxu0 }
 0x7c9   : > { %v6106_v57 = vpop.f32.mrb[111].mxu1 }
 0x7ce   : > { %v6034_v25 = vpop.f32.mrb[84].mxu0 }
 0x7cf   : > { %v6165_v9 = vadd.f32 %v6034_v25, %v16988_v14  ;;  %v6142_v59 = vpop.f32.mrb[88].mxu1  ;;  %v6036_v61 = vpop.f32.mrb[85].mxu0 }
 0x7d0   : > { %v6177_v46 = vadd.f32 %v6142_v59, %v16988_v14  ;;  %v6166_v0 = vadd.f32 %v6036_v61, %v16994_v37  ;;  %v6144_v12 = vpop.f32.mrb[89].mxu1  ;;  %v6038_v15 = vpop.f32.mrb[86].mxu0 }
 0x7d1   : > { %v6171_v50 = vmax.f32 %v6165_v9, 0.0  ;;  %v6178_v19 = vadd.f32 %v6144_v12, %v16994_v37  ;;  %v6167_v33 = vadd.f32 %v6038_v15, %v16988_v14  ;;  %v6146_v30 = vpop.f32.mrb[90].mxu1  ;;  %v6040_v26 = vpop.f32.mrb[87].mxu0  ;;  %v13436_v12 = vld [vmem:[%s19533_s10 + $0x600] ss:$48 sps:$4 sm:$0xff]  }
 0x7d2   : > { %v6183_v2 = vmax.f32 %v6177_v46, 0.0  ;;  %v6172_v13 = vmax.f32 %v6166_v0, 0.0  ;;  %v6179_v3 = vadd.f32 %v6146_v30, %v16988_v14  ;;  %v6168_v16 = vadd.f32 %v6040_v26, %v16994_v37  ;;  %v6148_v28 = vpop.f32.mrb[91].mxu1  ;;  %v13450_v30 = vld [vmem:[%s19533_s10 + $0x6c4] ss:$48 sps:$4 sm:$0xff]  }
 0x7d3   : > { %v6184_v53 = vmax.f32 %v6178_v19, 0.0  ;;  %v6173_v20 = vmax.f32 %v6167_v33, 0.0  ;;  %v6180_v40 = vadd.f32 %v6148_v28, %v16994_v37  ;;  %v13385_v26 = vld [vmem:[%s19533_s10 + $0x60] ss:$48 sps:$4 sm:$0xff]  }
 0x7d4   : > { %v6189_v42 = vmax.f32 %v6171_v50, %v6183_v2  ;;  %v6185_v55 = vmax.f32 %v6179_v3, 0.0  ;;  %v6174_v63 = vmax.f32 %v6168_v16, 0.0  ;;  %v13444_v50 = vld [vmem:[%s19533_s10 + $0x664] ss:$48 sps:$4 sm:$0xff]  }
 0x7d5   : > { %v6190_v60 = vmax.f32 %v6172_v13, %v6184_v53  ;;  %v6186_v36 = vmax.f32 %v6180_v40, 0.0  ;;  %v13456_v13 = vld [vmem:[%s19533_s10 + $0x724] ss:$48 sps:$4 sm:$0xff]   ;;  %v13454_v53 = vld [vmem:[%s19533_s10 + $0x720] ss:$48 sps:$4 sm:$0xff]  }
 0x7d6   : > { %v6191_v29 = vmax.f32 %v6173_v20, %v6185_v55  ;;  %v6044_v51 = vpop.f32.mrb[108].mxu0  ;;  %v13388_v20 = vld [vmem:[%s19533_s10 + $0xc0] ss:$48 sps:$4 sm:$0xff]  }
 0x7d7   : > { %v6192_v6 = vmax.f32 %v6174_v63, %v6186_v36  ;;  %v6045_v48 = vadd.f32 %v6044_v51, %v5993_v23  ;;  %v6152_v31 = vpop.f32.mrb[112].mxu1  ;;  %v6046_v43 = vpop.f32.mrb[109].mxu0  ;;  %v13391_v51 = vld [vmem:[%s19533_s10 + $0x120] ss:$48 sps:$4 sm:$0xff]  }
 0x7d8   : > { %v12497_v4 = vpack.c.bf16 %v6191_v29, %v6189_v42  ;;  %v6153_v49 = vadd.f32 %v6152_v31, %v6101_v5  ;;  %v6047_v54 = vadd.f32 %v6046_v43, %v5995_v41  ;;  %v6154_v45 = vpop.f32.mrb[113].mxu1  ;;  %v6048_v39 = vpop.f32.mrb[110].mxu0  ;;  %v13462_v42 = vld [vmem:[%s19533_s10 + $0x784] ss:$48 sps:$4 sm:$0xff]   ;;  %v13460_v29 = vld [vmem:[%s19533_s10 + $0x780] ss:$48 sps:$4 sm:$0xff]  }
 0x7d9   : > { %v6055_v10 = vadd.f32 %v6045_v48, %v5719_v7  ;;  %v6155_v56 = vadd.f32 %v6154_v45, %v6103_v27  ;;  %v6156_v52 = vpop.f32.mrb[114].mxu1  ;;  %v6049_v34 = vpop.f32.mrb[111].mxu0  ;;  %v12495_v8 = vpack.c.bf16 %v6192_v6, %v6190_v60  ;;  %v13468_v48 = vld [vmem:[%s19533_s10 + $0x7e4] ss:$48 sps:$4 sm:$0xff]   ;;  %v13466_v43 = vld [vmem:[%s19533_s10 + $0x7e0] ss:$48 sps:$4 sm:$0xff]  }
 0x7da   : > { %v6163_v44 = vadd.f32 %v6153_v49, %v5923_v38  ;;  %v6056_v47 = vadd.f32 %v6047_v54, %v5721_v1  ;;  %v6157_v57 = vpop.f32.mrb[115].mxu1  ;;  %v13396_v31 = vld [vmem:[%s19533_s10 + $0x184] ss:$48 sps:$4 sm:$0xff]   ;;  %v13472_v45 = vld [vmem:[%s19533_s10 + $0x840] ss:$48 sps:$4 sm:$0xff]  }
 0x7db   : > { %v6169_v25 = vadd.f32 %v6055_v10, %v16988_v14  ;;  %v6164_v9 = vadd.f32 %v6155_v56, %v5925_v17  ;;  %12496 = vmatprep.subr.bf16.mxu1 %v12495_v8  ;;  %12508 = vmatprep.subr.bf16.mxu0 %v12495_v8  ;;  %v13474_v49 = vld [vmem:[%s19533_s10 + $0x844] ss:$48 sps:$4 sm:$0xff]   ;;  %v13397_v39 = vld [vmem:[%s19533_s10 + $0x1e0] ss:$48 sps:$4 sm:$0xff]  }
 0x7dc   : > { %v6181_v23 = vadd.f32 %v6163_v44, %v16988_v14  ;;  %v6170_v5 = vadd.f32 %v6056_v47, %v16994_v37  ;;  %12498 = vmatpush1.bf16.msra.mxu1 %v12497_v4  ;;  %12510 = vmatpush1.bf16.msra.mxu0 %v12497_v4  ;;  %v13394_v4 = vld [vmem:[%s19533_s10 + $0x180] ss:$48 sps:$4 sm:$0xff]   ;;  %v13399_v54 = vld [vmem:[%s19533_s10 + $0x1e4] ss:$48 sps:$4 sm:$0xff]  }
 0x7dd   : > { %v6175_v41 = vmax.f32 %v6169_v25, 0.0  ;;  %v6182_v7 = vadd.f32 %v6164_v9, %v16994_v37  ;;  %v13438_v37 = vld [vmem:[%s19533_s10 + $0x604] ss:$48 sps:$4 sm:$0xff]   ;;  %v13478_v52 = vld [vmem:[%s19533_s10 + $0x8a0] ss:$48 sps:$4 sm:$0xff]  }
 0x7de   : > { %v6187_v27 = vmax.f32 %v6181_v23, 0.0  ;;  %v6176_v59 = vmax.f32 %v6170_v5, 0.0  ;;  %v17577_v61 = vpop.f32.mrb[112].mxu0  ;;  %v13480_v10 = vld [vmem:[%s19533_s10 + $0x8a4] ss:$48 sps:$4 sm:$0xff]  }
 0x7df   : > { %v6188_v38 = vmax.f32 %v6182_v7, 0.0  ;;  %v17579_v1 = vpop.f32.mrb[113].mxu0  ;;  %v13402_v56 = vld [vmem:[%s19533_s10 + $0x244] ss:$48 sps:$4 sm:$0xff]   ;;  %v13400_v34 = vld [vmem:[%s19533_s10 + $0x240] ss:$48 sps:$4 sm:$0xff]  }
 0x7e0   : > { %v6193_v46 = vmax.f32 %v6175_v41, %v6187_v27  ;;  %v13486_v8 = vld [vmem:[%s19533_s10 + $0x904] ss:$48 sps:$4 sm:$0xff]   ;;  %v13484_v47 = vld [vmem:[%s19533_s10 + $0x900] ss:$48 sps:$4 sm:$0xff]  }
 0x7e1   : > { %v6194_v17 = vmax.f32 %v6176_v59, %v6188_v38  ;;  %v13405_v44 = vld [vmem:[%s19533_s10 + $0x2a4] ss:$48 sps:$4 sm:$0xff]   ;;  %v13403_v57 = vld [vmem:[%s19533_s10 + $0x2a0] ss:$48 sps:$4 sm:$0xff]  }
 0x7e2   : > { %v6275_v0 = vpop.f32.mrb[114].mxu0  ;;  %v13492_v25 = vld [vmem:[%s19533_s10 + $0x964] ss:$48 sps:$4 sm:$0xff]   ;;  %v13490_v23 = vld [vmem:[%s19533_s10 + $0x960] ss:$48 sps:$4 sm:$0xff]  }
 0x7e3   : > { %6361 = vmatprep.subr.mxu1 %v6194_v17  ;;  %6600 = vmatprep.subr.mxu0 %v6194_v17  ;;  %v17581_v14 = vpop.f32.mrb[115].mxu0  ;;  %v13408_v9 = vld [vmem:[%s19533_s10 + $0x304] ss:$48 sps:$4 sm:$0xff]   ;;  %v13406_v5 = vld [vmem:[%s19533_s10 + $0x300] ss:$48 sps:$4 sm:$0xff]  }
 0x7e4   : > { %6362 = vmatpush1.msra.mxu1 %v6193_v46  ;;  %6601 = vmatpush1.msra.mxu0 %v6193_v46  ;;  %v13498_v41 = vld [vmem:[%s19533_s10 + $0x9c4] ss:$48 sps:$4 sm:$0xff]   ;;  %v13496_v27 = vld [vmem:[%s19533_s10 + $0x9c0] ss:$48 sps:$4 sm:$0xff]  }
 0x7e5   : > { %11732 = vmatmul.mubr.msk.f32.vlgmr.msra.gmra.mrb[116].mxu1 %vm977_vm1, %v17532_v32  ;;  %12504 = vmatprep.subr.bf16.mxu1 %v17468_v24  ;;  %v13384_v32 = vld [vmem:[%s19533_s10 + $0x4] ss:$48 sps:$4 sm:$0xff]   ;;  %v13409_v59 = vld [vmem:[%s19533_s10 + $0x360] ss:$48 sps:$4 sm:$0xff]  }
 0x7e6   : > { %11738 = vmatmul.mubr.msk.f32.vlgmr.msra.gmra.mrb[124].mxu0 %vm977_vm1, %v17555_v11  ;;  %12506 = vmatpush1.bf16.msra.mxu1 %v17462_v18  ;;  %v17595_v15 = vpop.f32.mrb[116].mxu0  ;;  %v13442_v18 = vld [vmem:[%s19533_s10 + $0x660] ss:$48 sps:$4 sm:$0xff]   ;;  %v13411_v7 = vld [vmem:[%s19533_s10 + $0x364] ss:$48 sps:$4 sm:$0xff]  }
 0x7e7   : > { %6523 = vmatprep.subr.mxu1 %v17495_v21  ;;  %6427 = vmatprep.mubr.f32.mxu1 %v14842_v35  ;;  %v17602_v24 = vpop.f32.mrb[117].mxu0  ;;  %v13382_v21 = vld [vmem:[%s19533_s10] ss:$48 sps:$4 sm:$0xff]   ;;  %v13414_v38 = vld [vmem:[%s19533_s10 + $0x3c4] ss:$48 sps:$4 sm:$0xff]  }
 0x7e8   : > { %6666 = vmatprep.mubr.f32.mxu0 %v14842_v35  ;;  %10188 = vmatprep.subr.bf16.mxu0 %v13438_v37  ;;  %v13412_v46 = vld [vmem:[%s19533_s10 + $0x3c0] ss:$48 sps:$4 sm:$0xff]   ;;  %v13417_v17 = vld [vmem:[%s19533_s10 + $0x424] ss:$48 sps:$4 sm:$0xff]  }
 0x7e9   : > { %11733 = vmatmul.mubr.msk.f32.gmra.mrb[118].mxu1 %vm977_vm1, %v17538_v58  ;;  %10189 = vmatpush1.bf16.msra.mxu0 %v13436_v12  ;;  %v13387_v58 = vld [vmem:[%s19533_s10 + $0x64] ss:$48 sps:$4 sm:$0xff]   ;;  %v13418_v37 = vld [vmem:[%s19533_s10 + $0x480] ss:$48 sps:$4 sm:$0xff]  }
 0x7ea   : > { %11739 = vmatmul.mubr.msk.f32.gmra.mrb[126].mxu0 %vm977_vm1, %v17560_v22  ;;  %6524 = vmatpush1.msra.mxu1 %v17490_v62  ;;  %v17619_v19 = vpop.f32.mrb[118].mxu0  ;;  %v13448_v62 = vld [vmem:[%s19533_s10 + $0x6c0] ss:$48 sps:$4 sm:$0xff]   ;;  %v13423_v12 = vld [vmem:[%s19533_s10 + $0x4e4] ss:$48 sps:$4 sm:$0xff]  }
 0x7eb   : > { %6583 = vmatprep.mubr.f32.mxu1 %v14842_v35  ;;  %10147 = vmatprep.subr.bf16.mxu1 %v13384_v32  ;;  %v17625_v33 = vpop.f32.mrb[119].mxu0  ;;  %v13421_v32 = vld [vmem:[%s19533_s10 + $0x4e0] ss:$48 sps:$4 sm:$0xff]  }
 0x7ec   : > { %10190 = vmatprep.subr.bf16.mxu0 %v13444_v50  ;;  %v13426_v50 = vld [vmem:[%s19533_s10 + $0x544] ss:$48 sps:$4 sm:$0xff]  }
 0x7ed   : > { %11736 = vmatmul.mubr.msk.f32.vlgmr.msra.gmra.mrb[120].mxu1 %vm977_vm1, %v17555_v11  ;;  %10191 = vmatpush1.bf16.msra.mxu0 %v13442_v18  ;;  %v13390_v11 = vld [vmem:[%s19533_s10 + $0xc4] ss:$48 sps:$4 sm:$0xff]   ;;  %v13424_v18 = vld [vmem:[%s19533_s10 + $0x540] ss:$48 sps:$4 sm:$0xff]  }
 0x7ee   : > { %6589 = vmatprep.mubr.f32.mxu1 %v14842_v35  ;;  %10148 = vmatpush1.bf16.msra.mxu1 %v13382_v21  ;;  %v6508_v2 = vpop.f32.mrb[120].mxu0  ;;  %v13429_v21 = vld [vmem:[%s19533_s10 + $0x5a4] ss:$48 sps:$4 sm:$0xff]  }
 0x7ef   : > { %10149 = vmatprep.subr.bf16.mxu1 %v13387_v58  ;;  %v6673_v3 = vmax.f32 %v17577_v61, %v6508_v2  ;;  %v6510_v16 = vpop.f32.mrb[121].mxu0  ;;  %10192 = vmatprep.subr.bf16.mxu0 %v13450_v30  ;;  %v13504_v61 = vld [vmem:[%s19533_s10 + $0xa24] ss:$48 sps:$4 sm:$0xff]   ;;  %v13427_v58 = vld [vmem:[%s19533_s10 + $0x5a0] ss:$48 sps:$4 sm:$0xff]  }
 0x7f0   : > { %v6674_v28 = vmax.f32 %v17579_v1, %v6510_v16  ;;  %v13502_v1 = vld [vmem:[%s19533_s10 + $0xa20] ss:$48 sps:$4 sm:$0xff]   ;;  %v13432_v30 = vld [vmem:[%s19533_s10 + $0xc04] ss:$48 sps:$4 sm:$0xff]  }
 0x7f1   : > { %11737 = vmatmul.mubr.msk.f32.gmra.mrb[122].mxu1 %vm977_vm1, %v17560_v22  ;;  %10193 = vmatpush1.bf16.msra.mxu0 %v13448_v62  ;;  %v13393_v22 = vld [vmem:[%s19533_s10 + $0x124] ss:$48 sps:$4 sm:$0xff]   ;;  %v13430_v62 = vld [vmem:[%s19533_s10 + $0xc00] ss:$48 sps:$4 sm:$0xff]  }
 0x7f2   : > { %10150 = vmatpush1.bf16.msra.mxu1 %v13385_v26  ;;  %v6514_v40 = vpop.f32.mrb[122].mxu0  ;;  %10194 = vmatprep.subr.bf16.mxu0 %v13456_v13  ;;  %v13435_v26 = vld [vmem:[%s19533_s10 + $0xc64] ss:$48 sps:$4 sm:$0xff]   ;;  %v13433_v2 = vld [vmem:[%s19533_s10 + $0xc60] ss:$48 sps:$4 sm:$0xff]  }
 0x7f3   : > { %10151 = vmatprep.subr.bf16.mxu1 %v13390_v11  ;;  %v6679_v55 = vmax.f32 %v6275_v0, %v6514_v40  ;;  %v6516_v63 = vpop.f32.mrb[123].mxu0  ;;  %v13415_v0 = vld [vmem:[%s19533_s10 + $0x420] ss:$48 sps:$4 sm:$0xff]   ;;  %v13441_v13 = vld [vmem:[%s19533_s10 + $0xcc4] ss:$48 sps:$4 sm:$0xff]  }
 0x7f4   : > { %v6680_v60 = vmax.f32 %v17581_v14, %v6516_v63  ;;  %v13420_v14 = vld [vmem:[%s19533_s10 + $0x484] ss:$48 sps:$4 sm:$0xff]   ;;  %v13439_v11 = vld [vmem:[%s19533_s10 + $0xcc0] ss:$48 sps:$4 sm:$0xff]  }
 0x7f5   : > { %v17662_v36 = vpack.c.bf16 %v6679_v55, %v6673_v3  ;;  %10195 = vmatpush1.bf16.msra.mxu0 %v13454_v53  ;;  %v13447_v3 = vld [vmem:[%s19533_s10 + $0xd24] ss:$48 sps:$4 sm:$0xff]   ;;  %v13445_v16 = vld [vmem:[%s19533_s10 + $0xd20] ss:$48 sps:$4 sm:$0xff]  }
 0x7f6   : > { %10152 = vmatpush1.bf16.msra.mxu1 %v13388_v20  ;;  %v17670_v6 = vpack.c.bf16 %v6680_v60, %v6674_v28  ;;  %10196 = vmatprep.subr.bf16.mxu0 %v13462_v42  ;;  %v13453_v28 = vld [vmem:[%s19533_s10 + $0xd84] ss:$48 sps:$4 sm:$0xff]   ;;  %v13451_v53 = vld [vmem:[%s19533_s10 + $0xd80] ss:$48 sps:$4 sm:$0xff]  }
 0x7f7   : > { %10153 = vmatprep.subr.bf16.mxu1 %v13393_v22  ;;  %v13508_v20 = vld [vmem:[%s19533_s10 + $0xa80] ss:$48 sps:$4 sm:$0xff]   ;;  %v13510_v40 = vld [vmem:[%s19533_s10 + $0xa84] ss:$48 sps:$4 sm:$0xff]  }
 0x7f8   : > { %10179 = vmatprep.mubr.bf16.mxu1 %v17670_v6  ;;  %v13459_v42 = vld [vmem:[%s19533_s10 + $0xde4] ss:$48 sps:$4 sm:$0xff]   ;;  %v13457_v22 = vld [vmem:[%s19533_s10 + $0xde0] ss:$48 sps:$4 sm:$0xff]  }
 0x7f9   : > { %10197 = vmatpush1.bf16.msra.mxu0 %v13460_v29  ;;  %v13516_v55 = vld [vmem:[%s19533_s10 + $0xae4] ss:$48 sps:$4 sm:$0xff]   ;;  %v13514_v60 = vld [vmem:[%s19533_s10 + $0xae0] ss:$48 sps:$4 sm:$0xff]  }
 0x7fa   : > { %10154 = vmatpush1.bf16.msra.mxu1 %v13391_v51  ;;  %10198 = vmatprep.subr.bf16.mxu0 %v13468_v48  ;;  %v13465_v63 = vld [vmem:[%s19533_s10 + $0xe44] ss:$48 sps:$4 sm:$0xff]   ;;  %v13463_v29 = vld [vmem:[%s19533_s10 + $0xe40] ss:$48 sps:$4 sm:$0xff]  }
 0x7fb   : > { %10155 = vmatprep.subr.bf16.mxu1 %v13396_v31  ;;  %v13520_v51 = vld [vmem:[%s19533_s10 + $0xb40] ss:$48 sps:$4 sm:$0xff]   ;;  %v13522_v48 = vld [vmem:[%s19533_s10 + $0xb44] ss:$48 sps:$4 sm:$0xff]  }
 0x7fc   : > { %v13471_v31 = vld [vmem:[%s19533_s10 + $0xea4] ss:$48 sps:$4 sm:$0xff]  }
 0x7fd   : > { %10199 = vmatpush1.bf16.msra.mxu0 %v13466_v43  ;;  %v13469_v43 = vld [vmem:[%s19533_s10 + $0xea0] ss:$48 sps:$4 sm:$0xff]  }
 0x7fe   : > { %10156 = vmatpush1.bf16.msra.mxu1 %v13394_v4  ;;  %10200 = vmatprep.subr.bf16.mxu0 %v13474_v49  ;;  %v13528_v4 = vld [vmem:[%s19533_s10 + $0xba4] ss:$48 sps:$4 sm:$0xff]  }
 0x7ff   : > { %10157 = vmatprep.subr.bf16.mxu1 %v13399_v54  ;;  %v13477_v49 = vld [vmem:[%s19533_s10 + $0xf04] ss:$48 sps:$4 sm:$0xff]   ;;  %v13526_v54 = vld [vmem:[%s19533_s10 + $0xba0] ss:$48 sps:$4 sm:$0xff]  }
 0x801   : > { %10201 = vmatpush1.bf16.msra.mxu0 %v13472_v45  ;;  %v13475_v45 = vld [vmem:[%s19533_s10 + $0xf00] ss:$48 sps:$4 sm:$0xff]  }
 0x802   : > { %10158 = vmatpush1.bf16.msra.mxu1 %v13397_v39  ;;  %10202 = vmatprep.subr.bf16.mxu0 %v13480_v10  ;;  %v13534_v39 = vld [vmem:[%s19533_s10 + $0xc] ss:$48 sps:$4 sm:$0xff]   ;;  %v13483_v10 = vld [vmem:[%s19533_s10 + $0xf64] ss:$48 sps:$4 sm:$0xff]  }
 0x803   : > { %10159 = vmatprep.subr.bf16.mxu1 %v13402_v56  ;;  %v13481_v56 = vld [vmem:[%s19533_s10 + $0xf60] ss:$48 sps:$4 sm:$0xff]  }
 0x805   : > { %10203 = vmatpush1.bf16.msra.mxu0 %v13478_v52  ;;  %v13489_v52 = vld [vmem:[%s19533_s10 + $0xfc4] ss:$48 sps:$4 sm:$0xff]  }
 0x806   : > { %10160 = vmatpush1.bf16.msra.mxu1 %v13400_v34  ;;  %10204 = vmatprep.subr.bf16.mxu0 %v13486_v8  ;;  %v13487_v34 = vld [vmem:[%s19533_s10 + $0xfc0] ss:$48 sps:$4 sm:$0xff]   ;;  %v13495_v8 = vld [vmem:[%s19533_s10 + $0x1024] ss:$48 sps:$4 sm:$0xff]  }
 0x807   : > { %10161 = vmatprep.subr.bf16.mxu1 %v13405_v44  ;;  %v13493_v44 = vld [vmem:[%s19533_s10 + $0x1020] ss:$48 sps:$4 sm:$0xff]  }
 0x809   : > { %10205 = vmatpush1.bf16.msra.mxu0 %v13484_v47  ;;  %v13501_v47 = vld [vmem:[%s19533_s10 + $0x1084] ss:$48 sps:$4 sm:$0xff]  }
 0x80a   : > { %10162 = vmatpush1.bf16.msra.mxu1 %v13403_v57  ;;  %10206 = vmatprep.subr.bf16.mxu0 %v13492_v25  ;;  %v13499_v57 = vld [vmem:[%s19533_s10 + $0x1080] ss:$48 sps:$4 sm:$0xff]   ;;  %v13507_v25 = vld [vmem:[%s19533_s10 + $0x10e4] ss:$48 sps:$4 sm:$0xff]  }
 0x80b   : > { %10163 = vmatprep.subr.bf16.mxu1 %v13408_v9  ;;  %v13505_v9 = vld [vmem:[%s19533_s10 + $0x10e0] ss:$48 sps:$4 sm:$0xff]  }
 0x80d   : > { %10207 = vmatpush1.bf16.msra.mxu0 %v13490_v23  ;;  %v13513_v23 = vld [vmem:[%s19533_s10 + $0x1144] ss:$48 sps:$4 sm:$0xff]  }
 0x80e   : > { %10164 = vmatpush1.bf16.msra.mxu1 %v13406_v5  ;;  %10208 = vmatprep.subr.bf16.mxu0 %v13498_v41  ;;  %v13511_v5 = vld [vmem:[%s19533_s10 + $0x1140] ss:$48 sps:$4 sm:$0xff]   ;;  %v13519_v41 = vld [vmem:[%s19533_s10 + $0x11a4] ss:$48 sps:$4 sm:$0xff]  }
 0x80f   : > { %10165 = vmatprep.subr.bf16.mxu1 %v13411_v7  ;;  %v13517_v7 = vld [vmem:[%s19533_s10 + $0x11a0] ss:$48 sps:$4 sm:$0xff]  }
 0x811   : > { %10209 = vmatpush1.bf16.msra.mxu0 %v13496_v27  ;;  %v13525_v27 = vld [vmem:[%s19533_s10 + $0x60c] ss:$48 sps:$4 sm:$0xff]  }
 0x812   : > { %10166 = vmatpush1.bf16.msra.mxu1 %v13409_v59  ;;  %10210 = vmatprep.subr.bf16.mxu0 %v13504_v61 }
 0x813   : > { %10167 = vmatprep.subr.bf16.mxu1 %v13414_v38 }
 0x815   : > { %10211 = vmatpush1.bf16.msra.mxu0 %v13502_v1 }
 0x816   : > { %10168 = vmatpush1.bf16.msra.mxu1 %v13412_v46  ;;  %10212 = vmatprep.subr.bf16.mxu0 %v13510_v40  ;;  %v13535_v40 = vld [vmem:[%s19533_s10 + $0x6c8] ss:$48 sps:$4 sm:$0xff]  }
 0x817   : > { %10169 = vmatprep.subr.bf16.mxu1 %v13417_v17 }
 0x819   : > { %10213 = vmatpush1.bf16.msra.mxu0 %v13508_v20 }
 0x81a   : > { %10170 = vmatpush1.bf16.msra.mxu1 %v13415_v0  ;;  %10214 = vmatprep.subr.bf16.mxu0 %v13516_v55  ;;  %v13541_v55 = vld [vmem:[%s19533_s10 + $0x728] ss:$48 sps:$4 sm:$0xff]  }
 0x81b   : > { %10171 = vmatprep.subr.bf16.mxu1 %v13420_v14 }
 0x81d   : > { %10215 = vmatpush1.bf16.msra.mxu0 %v13514_v60  ;;  %v13549_v60 = vld [vmem:[%s19533_s10 + $0x78c] ss:$48 sps:$4 sm:$0xff]  }
 0x81e   : > { %10172 = vmatpush1.bf16.msra.mxu1 %v13418_v37  ;;  %10216 = vmatprep.subr.bf16.mxu0 %v13522_v48  ;;  %v13552_v48 = vld [vmem:[%s19533_s10 + $0x12c] ss:$48 sps:$4 sm:$0xff]  }
 0x81f   : > { %10173 = vmatprep.subr.bf16.mxu1 %v13423_v12 }
 0x821   : > { %10217 = vmatpush1.bf16.msra.mxu0 %v13520_v51  ;;  %v13547_v51 = vld [vmem:[%s19533_s10 + $0x788] ss:$48 sps:$4 sm:$0xff]  }
 0x822   : > { %10174 = vmatpush1.bf16.msra.mxu1 %v13421_v32  ;;  %10218 = vmatprep.subr.bf16.mxu0 %v13528_v4  ;;  %v13553_v4 = vld [vmem:[%s19533_s10 + $0x7e8] ss:$48 sps:$4 sm:$0xff]  }
 0x823   : > { %10175 = vmatprep.subr.bf16.mxu1 %v13426_v50 }
 0x825   : > { %10219 = vmatpush1.bf16.msra.mxu0 %v13526_v54  ;;  %v13561_v54 = vld [vmem:[%s19533_s10 + $0x84c] ss:$48 sps:$4 sm:$0xff]  }
 0x826   : > { %10176 = vmatpush1.bf16.msra.mxu1 %v13424_v18  ;;  %10270 = vmatprep.subr.bf16.mxu0 %v13534_v39  ;;  %v13559_v39 = vld [vmem:[%s19533_s10 + $0x848] ss:$48 sps:$4 sm:$0xff]  }
 0x827   : > { %10177 = vmatprep.subr.bf16.mxu1 %v13429_v21 }
 0x82a   : > { %10178 = vmatpush1.bf16.msra.mxu1 %v13427_v58 }
 0x82b   : > { %10229 = vmatprep.subr.bf16.mxu1 %v13432_v30 }
 0x82d   : > { %10180 = vmatmul.mubr.bf16.vlgmr.msra.gmra.mrb[124].mxu1 %v17662_v36 }
 0x82e   : > { %10230 = vmatpush1.bf16.msra.mxu1 %v13430_v62 }
 0x82f   : > { %10231 = vmatprep.subr.bf16.mxu1 %v13435_v26  ;;  %v13523_v26 = vld [vmem:[%s19533_s10 + $0x608] ss:$48 sps:$4 sm:$0xff]  }
 0x832   : > { %10232 = vmatpush1.bf16.msra.mxu1 %v13433_v2 }
 0x833   : > { %10233 = vmatprep.subr.bf16.mxu1 %v13441_v13  ;;  %v13531_v13 = vld [vmem:[%s19533_s10 + $0x66c] ss:$48 sps:$4 sm:$0xff]  }
 0x836   : > { %10234 = vmatpush1.bf16.msra.mxu1 %v13439_v11 }
 0x837   : > { %10235 = vmatprep.subr.bf16.mxu1 %v13447_v3 }
 0x83a   : > { %10236 = vmatpush1.bf16.msra.mxu1 %v13445_v16  ;;  %v13529_v16 = vld [vmem:[%s19533_s10 + $0x668] ss:$48 sps:$4 sm:$0xff]  }
 0x83b   : > { %10237 = vmatprep.subr.bf16.mxu1 %v13453_v28 }
 0x83e   : > { %10238 = vmatpush1.bf16.msra.mxu1 %v13451_v53 }
 0x83f   : > { %10239 = vmatprep.subr.bf16.mxu1 %v13459_v42  ;;  %v13543_v42 = vld [vmem:[%s19533_s10 + $0x72c] ss:$48 sps:$4 sm:$0xff]  }
 0x842   : > { %10240 = vmatpush1.bf16.msra.mxu1 %v13457_v22  ;;  %v13538_v22 = vld [vmem:[%s19533_s10 + $0x68] ss:$48 sps:$4 sm:$0xff]  }
 0x843   : > { %10241 = vmatprep.subr.bf16.mxu1 %v13465_v63  ;;  %v13546_v63 = vld [vmem:[%s19533_s10 + $0xcc] ss:$48 sps:$4 sm:$0xff]  }
 0x846   : > { %10242 = vmatpush1.bf16.msra.mxu1 %v13463_v29  ;;  %v13544_v29 = vld [vmem:[%s19533_s10 + $0xc8] ss:$48 sps:$4 sm:$0xff]  }
 0x847   : > { %10243 = vmatprep.subr.bf16.mxu1 %v13471_v31  ;;  %v13555_v31 = vld [vmem:[%s19533_s10 + $0x7ec] ss:$48 sps:$4 sm:$0xff]  }
 0x84a   : > { %10244 = vmatpush1.bf16.msra.mxu1 %v13469_v43  ;;  %v13550_v43 = vld [vmem:[%s19533_s10 + $0x128] ss:$48 sps:$4 sm:$0xff]  }
 0x84b   : > { %10245 = vmatprep.subr.bf16.mxu1 %v13477_v49  ;;  %v13558_v49 = vld [vmem:[%s19533_s10 + $0x18c] ss:$48 sps:$4 sm:$0xff]  }
 0x84e   : > { %10246 = vmatpush1.bf16.msra.mxu1 %v13475_v45  ;;  %v13556_v45 = vld [vmem:[%s19533_s10 + $0x188] ss:$48 sps:$4 sm:$0xff]  }
 0x84f   : > { %10247 = vmatprep.subr.bf16.mxu1 %v13483_v10  ;;  %v13564_v10 = vld [vmem:[%s19533_s10 + $0x1ec] ss:$48 sps:$4 sm:$0xff]  }
 0x852   : > { %10248 = vmatpush1.bf16.msra.mxu1 %v13481_v56  ;;  %v13567_v56 = vld [vmem:[%s19533_s10 + $0x8ac] ss:$48 sps:$4 sm:$0xff]  }
 0x853   : > { %10249 = vmatprep.subr.bf16.mxu1 %v13489_v52  ;;  %v13562_v52 = vld [vmem:[%s19533_s10 + $0x1e8] ss:$48 sps:$4 sm:$0xff]  }
 0x856   : > { %10250 = vmatpush1.bf16.msra.mxu1 %v13487_v34  ;;  %v13565_v34 = vld [vmem:[%s19533_s10 + $0x8a8] ss:$48 sps:$4 sm:$0xff]  }
 0x857   : > { %10251 = vmatprep.subr.bf16.mxu1 %v13495_v8  ;;  %v13570_v8 = vld [vmem:[%s19533_s10 + $0x24c] ss:$48 sps:$4 sm:$0xff]  }
 0x85a   : > { %10252 = vmatpush1.bf16.msra.mxu1 %v13493_v44  ;;  %v13573_v44 = vld [vmem:[%s19533_s10 + $0x90c] ss:$48 sps:$4 sm:$0xff]  }
 0x85b   : > { %10253 = vmatprep.subr.bf16.mxu1 %v13501_v47  ;;  %v13568_v47 = vld [vmem:[%s19533_s10 + $0x248] ss:$48 sps:$4 sm:$0xff]  }
 0x85e   : > { %10254 = vmatpush1.bf16.msra.mxu1 %v13499_v57  ;;  %v13571_v57 = vld [vmem:[%s19533_s10 + $0x908] ss:$48 sps:$4 sm:$0xff]  }
 0x85f   : > { %10255 = vmatprep.subr.bf16.mxu1 %v13507_v25  ;;  %v13576_v25 = vld [vmem:[%s19533_s10 + $0x2ac] ss:$48 sps:$4 sm:$0xff]  }
 0x862   : > { %10256 = vmatpush1.bf16.msra.mxu1 %v13505_v9  ;;  %v13579_v9 = vld [vmem:[%s19533_s10 + $0x96c] ss:$48 sps:$4 sm:$0xff]  }
 0x863   : > { %10257 = vmatprep.subr.bf16.mxu1 %v13513_v23  ;;  %v13574_v23 = vld [vmem:[%s19533_s10 + $0x2a8] ss:$48 sps:$4 sm:$0xff]  }
 0x866   : > { %10258 = vmatpush1.bf16.msra.mxu1 %v13511_v5  ;;  %v13577_v5 = vld [vmem:[%s19533_s10 + $0x968] ss:$48 sps:$4 sm:$0xff]  }
 0x867   : > { %10259 = vmatprep.subr.bf16.mxu1 %v13519_v41  ;;  %v13582_v41 = vld [vmem:[%s19533_s10 + $0x30c] ss:$48 sps:$4 sm:$0xff]  }
 0x86a   : > { %10260 = vmatpush1.bf16.msra.mxu1 %v13517_v7  ;;  %v13585_v7 = vld [vmem:[%s19533_s10 + $0x9cc] ss:$48 sps:$4 sm:$0xff]  }
 0x86b   : > { %10311 = vmatprep.subr.bf16.mxu1 %v13525_v27  ;;  %v13580_v27 = vld [vmem:[%s19533_s10 + $0x308] ss:$48 sps:$4 sm:$0xff]  }
 0x8b8   : > { %v6423_v59 = vpop.f32.mrb[116].mxu1 }
 0x8b9   : > { %v6662_v61 = vpop.f32.mrb[124].mxu0  ;;  %v6425_v38 = vpop.f32.mrb[117].mxu1 }
 0x8ba   : > { %v6677_v1 = vmax.f32 %v6423_v59, %v6662_v61  ;;  %v6664_v46 = vpop.f32.mrb[125].mxu0  ;;  %v13583_v59 = vld [vmem:[%s19533_s10 + $0x9c8] ss:$48 sps:$4 sm:$0xff]   ;;  %v13588_v61 = vld [vmem:[%s19533_s10 + $0x36c] ss:$48 sps:$4 sm:$0xff]  }
 0x8bb   : > { %v6678_v17 = vmax.f32 %v6425_v38, %v6664_v46  ;;  %v13591_v38 = vld [vmem:[%s19533_s10 + $0xa2c] ss:$48 sps:$4 sm:$0xff]   ;;  %v13589_v46 = vld [vmem:[%s19533_s10 + $0xa28] ss:$48 sps:$4 sm:$0xff]  }
 0x8bc   : > { %v6429_v0 = vpop.f32.mrb[118].mxu1 }
 0x8bd   : > { %v6668_v14 = vpop.f32.mrb[126].mxu0  ;;  %v6431_v37 = vpop.f32.mrb[119].mxu1 }
 0x8be   : > { %v6683_v12 = vmax.f32 %v6429_v0, %v6668_v14  ;;  %v6670_v32 = vpop.f32.mrb[127].mxu0  ;;  %v13597_v0 = vld [vmem:[%s19533_s10 + $0xa8c] ss:$48 sps:$4 sm:$0xff]   ;;  %v13592_v14 = vld [vmem:[%s19533_s10 + $0x3c8] ss:$48 sps:$4 sm:$0xff]  }
 0x8bf   : > { %v6684_v50 = vmax.f32 %v6431_v37, %v6670_v32  ;;  %v13595_v37 = vld [vmem:[%s19533_s10 + $0xa88] ss:$48 sps:$4 sm:$0xff]   ;;  %v13603_v32 = vld [vmem:[%s19533_s10 + $0xaec] ss:$48 sps:$4 sm:$0xff]  }
 0x8c0   : > { %v17914_v18 = vpack.c.bf16 %v6683_v12, %v6677_v1  ;;  %v6585_v21 = vpop.f32.mrb[120].mxu1  ;;  %v13586_v1 = vld [vmem:[%s19533_s10 + $0x368] ss:$48 sps:$4 sm:$0xff]   ;;  %v13600_v12 = vld [vmem:[%s19533_s10 + $0x42c] ss:$48 sps:$4 sm:$0xff]  }
 0x8c1   : > { %v17916_v58 = vpack.c.bf16 %v6684_v50, %v6678_v17  ;;  %v6675_v30 = vmax.f32 %v17595_v15, %v6585_v21  ;;  %v6587_v62 = vpop.f32.mrb[121].mxu1  ;;  %v13594_v17 = vld [vmem:[%s19533_s10 + $0x3cc] ss:$48 sps:$4 sm:$0xff]   ;;  %v13598_v50 = vld [vmem:[%s19533_s10 + $0x428] ss:$48 sps:$4 sm:$0xff]  }
 0x8c2   : > { %v6676_v2 = vmax.f32 %v17602_v24, %v6587_v62  ;;  %v13537_v24 = vld [vmem:[%s19533_s10 + $0x6cc] ss:$48 sps:$4 sm:$0xff]   ;;  %v13601_v21 = vld [vmem:[%s19533_s10 + $0xae8] ss:$48 sps:$4 sm:$0xff]  }
 0x8c3   : > { %10261 = vmatprep.mubr.bf16.mxu1 %v17916_v58  ;;  %v13609_v62 = vld [vmem:[%s19533_s10 + $0xb4c] ss:$48 sps:$4 sm:$0xff]  }
 0x8c4   : > { %10262 = vmatmul.mubr.bf16.vlgmr.msra.gmra.mrb[128].mxu1 %v17914_v18  ;;  %v6591_v11 = vpop.f32.mrb[122].mxu1 }
 0x8c5   : > { %10312 = vmatpush1.bf16.msra.mxu1 %v13523_v26  ;;  %v6681_v3 = vmax.f32 %v17619_v19, %v6591_v11  ;;  %v6593_v15 = vpop.f32.mrb[123].mxu1  ;;  %v13532_v19 = vld [vmem:[%s19533_s10 + $0x8] ss:$48 sps:$4 sm:$0xff]   ;;  %v13615_v11 = vld [vmem:[%s19533_s10 + $0xbac] ss:$48 sps:$4 sm:$0xff]  }
 0x8c6   : > { %v6682_v28 = vmax.f32 %v17625_v33, %v6593_v15  ;;  %10313 = vmatprep.subr.bf16.mxu1 %v13531_v13  ;;  %v13540_v33 = vld [vmem:[%s19533_s10 + $0x6c] ss:$48 sps:$4 sm:$0xff]   ;;  %v13604_v26 = vld [vmem:[%s19533_s10 + $0x488] ss:$48 sps:$4 sm:$0xff]  }
 0x8c7   : > { %v17936_v53 = vpack.c.bf16 %v6681_v3, %v6675_v30  ;;  %v13606_v30 = vld [vmem:[%s19533_s10 + $0x48c] ss:$48 sps:$4 sm:$0xff]   ;;  %v13610_v3 = vld [vmem:[%s19533_s10 + $0x4e8] ss:$48 sps:$4 sm:$0xff]  }
 0x8c8   : > { %v17938_v20 = vpack.c.bf16 %v6682_v28, %v6676_v2  ;;  %v13607_v2 = vld [vmem:[%s19533_s10 + $0xb48] ss:$48 sps:$4 sm:$0xff]   ;;  %v13612_v13 = vld [vmem:[%s19533_s10 + $0x4ec] ss:$48 sps:$4 sm:$0xff]   ;;  %v13621_v28 = vld [vmem:[%s19533_s10 + $0x14] ss:$48 sps:$4 sm:$0xff]  }
 0x8c9   : > { %10314 = vmatpush1.bf16.msra.mxu1 %v13529_v16  ;;  %v13613_v15 = vld [vmem:[%s19533_s10 + $0xba8] ss:$48 sps:$4 sm:$0xff]   ;;  %v13618_v16 = vld [vmem:[%s19533_s10 + $0x54c] ss:$48 sps:$4 sm:$0xff]  }
 0x8ca   : > { %10220 = vmatprep.mubr.bf16.mxu0 %v17938_v20  ;;  %10315 = vmatprep.subr.bf16.mxu1 %v13537_v24  ;;  %v13616_v24 = vld [vmem:[%s19533_s10 + $0x548] ss:$48 sps:$4 sm:$0xff]  }
 0x8cb   : > { %10343 = vmatprep.mubr.bf16.mxu1 %v17938_v20  ;;  %10221 = vmatmul.mubr.bf16.vlgmr.msra.gmra.mrb[128].mxu0 %v17936_v53 }
 0x8cc   : > { %10271 = vmatpush1.bf16.msra.mxu0 %v13532_v19  ;;  %10302 = vmatprep.mubr.bf16.mxu0 %v17670_v6  ;;  %v13619_v19 = vld [vmem:[%s19533_s10 + $0x10] ss:$48 sps:$4 sm:$0xff]  }
 0x8cd   : > { %10316 = vmatpush1.bf16.msra.mxu1 %v13535_v40  ;;  %10272 = vmatprep.subr.bf16.mxu0 %v13540_v33  ;;  %v13624_v40 = vld [vmem:[%s19533_s10 + $0x5ac] ss:$48 sps:$4 sm:$0xff]   ;;  %v13627_v33 = vld [vmem:[%s19533_s10 + $0x74] ss:$48 sps:$4 sm:$0xff]  }
 0x8ce   : > { %10317 = vmatprep.subr.bf16.mxu1 %v13543_v42  ;;  %v13622_v42 = vld [vmem:[%s19533_s10 + $0x5a8] ss:$48 sps:$4 sm:$0xff]  }
 0x8d0   : > { %10273 = vmatpush1.bf16.msra.mxu0 %v13538_v22  ;;  %v13625_v22 = vld [vmem:[%s19533_s10 + $0x70] ss:$48 sps:$4 sm:$0xff]  }
 0x8d1   : > { %10318 = vmatpush1.bf16.msra.mxu1 %v13541_v55  ;;  %10274 = vmatprep.subr.bf16.mxu0 %v13546_v63  ;;  %v13630_v55 = vld [vmem:[%s19533_s10 + $0xc0c] ss:$48 sps:$4 sm:$0xff]  }
 0x8d2   : > { %10319 = vmatprep.subr.bf16.mxu1 %v13549_v60  ;;  %v13633_v60 = vld [vmem:[%s19533_s10 + $0xd4] ss:$48 sps:$4 sm:$0xff]  }
 0x8d4   : > { %10275 = vmatpush1.bf16.msra.mxu0 %v13544_v29 }
 0x8d5   : > { %10320 = vmatpush1.bf16.msra.mxu1 %v13547_v51  ;;  %10276 = vmatprep.subr.bf16.mxu0 %v13552_v48  ;;  %v13628_v48 = vld [vmem:[%s19533_s10 + $0xc08] ss:$48 sps:$4 sm:$0xff]  }
 0x8d6   : > { %10321 = vmatprep.subr.bf16.mxu1 %v13555_v31 }
 0x8d8   : > { %10277 = vmatpush1.bf16.msra.mxu0 %v13550_v43  ;;  %v13631_v43 = vld [vmem:[%s19533_s10 + $0xd0] ss:$48 sps:$4 sm:$0xff]  }
 0x8d9   : > { %10322 = vmatpush1.bf16.msra.mxu1 %v13553_v4  ;;  %10278 = vmatprep.subr.bf16.mxu0 %v13558_v49  ;;  %v13636_v4 = vld [vmem:[%s19533_s10 + $0xc6c] ss:$48 sps:$4 sm:$0xff]   ;;  %v13639_v49 = vld [vmem:[%s19533_s10 + $0x134] ss:$48 sps:$4 sm:$0xff]  }
 0x8da   : > { %10323 = vmatprep.subr.bf16.mxu1 %v13561_v54  ;;  %v13634_v54 = vld [vmem:[%s19533_s10 + $0xc68] ss:$48 sps:$4 sm:$0xff]  }
 0x8dc   : > { %10279 = vmatpush1.bf16.msra.mxu0 %v13556_v45  ;;  %v13637_v45 = vld [vmem:[%s19533_s10 + $0x130] ss:$48 sps:$4 sm:$0xff]  }
 0x8dd   : > { %10324 = vmatpush1.bf16.msra.mxu1 %v13559_v39  ;;  %10280 = vmatprep.subr.bf16.mxu0 %v13564_v10  ;;  %v13642_v39 = vld [vmem:[%s19533_s10 + $0xccc] ss:$48 sps:$4 sm:$0xff]   ;;  %v13645_v10 = vld [vmem:[%s19533_s10 + $0x194] ss:$48 sps:$4 sm:$0xff]  }
 0x8de   : > { %10325 = vmatprep.subr.bf16.mxu1 %v13567_v56  ;;  %v13640_v56 = vld [vmem:[%s19533_s10 + $0xcc8] ss:$48 sps:$4 sm:$0xff]  }
 0x8e0   : > { %10281 = vmatpush1.bf16.msra.mxu0 %v13562_v52  ;;  %v13643_v52 = vld [vmem:[%s19533_s10 + $0x190] ss:$48 sps:$4 sm:$0xff]  }
 0x8e1   : > { %10326 = vmatpush1.bf16.msra.mxu1 %v13565_v34  ;;  %10282 = vmatprep.subr.bf16.mxu0 %v13570_v8  ;;  %v13648_v34 = vld [vmem:[%s19533_s10 + $0xd2c] ss:$48 sps:$4 sm:$0xff]   ;;  %v13651_v8 = vld [vmem:[%s19533_s10 + $0x1f4] ss:$48 sps:$4 sm:$0xff]  }
 0x8e2   : > { %10327 = vmatprep.subr.bf16.mxu1 %v13573_v44  ;;  %v13646_v44 = vld [vmem:[%s19533_s10 + $0xd28] ss:$48 sps:$4 sm:$0xff]  }
 0x8e4   : > { %10283 = vmatpush1.bf16.msra.mxu0 %v13568_v47  ;;  %v13649_v47 = vld [vmem:[%s19533_s10 + $0x1f0] ss:$48 sps:$4 sm:$0xff]  }
 0x8e5   : > { %10328 = vmatpush1.bf16.msra.mxu1 %v13571_v57  ;;  %10284 = vmatprep.subr.bf16.mxu0 %v13576_v25  ;;  %v13654_v57 = vld [vmem:[%s19533_s10 + $0xd8c] ss:$48 sps:$4 sm:$0xff]   ;;  %v13657_v25 = vld [vmem:[%s19533_s10 + $0x254] ss:$48 sps:$4 sm:$0xff]  }
 0x8e6   : > { %10329 = vmatprep.subr.bf16.mxu1 %v13579_v9  ;;  %v13652_v9 = vld [vmem:[%s19533_s10 + $0xd88] ss:$48 sps:$4 sm:$0xff]  }
 0x8e8   : > { %10285 = vmatpush1.bf16.msra.mxu0 %v13574_v23  ;;  %v13655_v23 = vld [vmem:[%s19533_s10 + $0x250] ss:$48 sps:$4 sm:$0xff]  }
 0x8e9   : > { %10330 = vmatpush1.bf16.msra.mxu1 %v13577_v5  ;;  %10286 = vmatprep.subr.bf16.mxu0 %v13582_v41  ;;  %v13660_v5 = vld [vmem:[%s19533_s10 + $0xdec] ss:$48 sps:$4 sm:$0xff]   ;;  %v13663_v41 = vld [vmem:[%s19533_s10 + $0x2b4] ss:$48 sps:$4 sm:$0xff]  }
 0x8ea   : > { %10331 = vmatprep.subr.bf16.mxu1 %v13585_v7  ;;  %v13658_v7 = vld [vmem:[%s19533_s10 + $0xde8] ss:$48 sps:$4 sm:$0xff]  }
 0x8ec   : > { %10287 = vmatpush1.bf16.msra.mxu0 %v13580_v27  ;;  %v13661_v27 = vld [vmem:[%s19533_s10 + $0x2b0] ss:$48 sps:$4 sm:$0xff]  }
 0x8ed   : > { %10332 = vmatpush1.bf16.msra.mxu1 %v13583_v59  ;;  %10288 = vmatprep.subr.bf16.mxu0 %v13588_v61  ;;  %v13666_v59 = vld [vmem:[%s19533_s10 + $0xe4c] ss:$48 sps:$4 sm:$0xff]   ;;  %v13669_v61 = vld [vmem:[%s19533_s10 + $0x314] ss:$48 sps:$4 sm:$0xff]  }
 0x8ee   : > { %10333 = vmatprep.subr.bf16.mxu1 %v13591_v38  ;;  %v13664_v38 = vld [vmem:[%s19533_s10 + $0xe48] ss:$48 sps:$4 sm:$0xff]  }
 0x8f0   : > { %10289 = vmatpush1.bf16.msra.mxu0 %v13586_v1  ;;  %v13667_v1 = vld [vmem:[%s19533_s10 + $0x310] ss:$48 sps:$4 sm:$0xff]  }
 0x8f1   : > { %10334 = vmatpush1.bf16.msra.mxu1 %v13589_v46  ;;  %10290 = vmatprep.subr.bf16.mxu0 %v13594_v17  ;;  %v13672_v46 = vld [vmem:[%s19533_s10 + $0xeac] ss:$48 sps:$4 sm:$0xff]   ;;  %v13675_v17 = vld [vmem:[%s19533_s10 + $0x374] ss:$48 sps:$4 sm:$0xff]  }
 0x8f2   : > { %10335 = vmatprep.subr.bf16.mxu1 %v13597_v0  ;;  %v13670_v0 = vld [vmem:[%s19533_s10 + $0xea8] ss:$48 sps:$4 sm:$0xff]  }
 0x8f4   : > { %10291 = vmatpush1.bf16.msra.mxu0 %v13592_v14  ;;  %v13673_v14 = vld [vmem:[%s19533_s10 + $0x370] ss:$48 sps:$4 sm:$0xff]  }
 0x8f5   : > { %10336 = vmatpush1.bf16.msra.mxu1 %v13595_v37  ;;  %10292 = vmatprep.subr.bf16.mxu0 %v13600_v12  ;;  %v13678_v37 = vld [vmem:[%s19533_s10 + $0xf0c] ss:$48 sps:$4 sm:$0xff]   ;;  %v13681_v12 = vld [vmem:[%s19533_s10 + $0x3d4] ss:$48 sps:$4 sm:$0xff]  }
 0x8f6   : > { %10337 = vmatprep.subr.bf16.mxu1 %v13603_v32  ;;  %v13676_v32 = vld [vmem:[%s19533_s10 + $0xf08] ss:$48 sps:$4 sm:$0xff]  }
 0x8f8   : > { %10293 = vmatpush1.bf16.msra.mxu0 %v13598_v50  ;;  %v13679_v50 = vld [vmem:[%s19533_s10 + $0x3d0] ss:$48 sps:$4 sm:$0xff]  }
 0x8f9   : > { %10338 = vmatpush1.bf16.msra.mxu1 %v13601_v21  ;;  %10294 = vmatprep.subr.bf16.mxu0 %v13606_v30  ;;  %v13684_v21 = vld [vmem:[%s19533_s10 + $0xf6c] ss:$48 sps:$4 sm:$0xff]   ;;  %v13687_v30 = vld [vmem:[%s19533_s10 + $0x434] ss:$48 sps:$4 sm:$0xff]  }
 0x8fa   : > { %10339 = vmatprep.subr.bf16.mxu1 %v13609_v62  ;;  %v13682_v62 = vld [vmem:[%s19533_s10 + $0xf68] ss:$48 sps:$4 sm:$0xff]  }
 0x8fc   : > { %10295 = vmatpush1.bf16.msra.mxu0 %v13604_v26  ;;  %v13685_v26 = vld [vmem:[%s19533_s10 + $0x430] ss:$48 sps:$4 sm:$0xff]  }
 0x8fd   : > { %10340 = vmatpush1.bf16.msra.mxu1 %v13607_v2  ;;  %10296 = vmatprep.subr.bf16.mxu0 %v13612_v13  ;;  %v13690_v2 = vld [vmem:[%s19533_s10 + $0xfcc] ss:$48 sps:$4 sm:$0xff]   ;;  %v13693_v13 = vld [vmem:[%s19533_s10 + $0x494] ss:$48 sps:$4 sm:$0xff]  }
 0x8fe   : > { %10341 = vmatprep.subr.bf16.mxu1 %v13615_v11  ;;  %v13688_v11 = vld [vmem:[%s19533_s10 + $0xfc8] ss:$48 sps:$4 sm:$0xff]  }
 0x900   : > { %10297 = vmatpush1.bf16.msra.mxu0 %v13610_v3  ;;  %v18135_v63 = vpop.f32.mrb[124].mxu1  ;;  %v13691_v3 = vld [vmem:[%s19533_s10 + $0x490] ss:$48 sps:$4 sm:$0xff]  }
 0x901   : > { %10342 = vmatpush1.bf16.msra.mxu1 %v13613_v15  ;;  %10298 = vmatprep.subr.bf16.mxu0 %v13618_v16  ;;  %v18140_v29 = vpop.f32.mrb[125].mxu1  ;;  %v13696_v15 = vld [vmem:[%s19533_s10 + $0x102c] ss:$48 sps:$4 sm:$0xff]   ;;  %v13699_v16 = vld [vmem:[%s19533_s10 + $0x4f4] ss:$48 sps:$4 sm:$0xff]  }
 0x902   : > { %10393 = vmatprep.subr.bf16.mxu1 %v13621_v28  ;;  %v10185_v51 = vpop.f32.mrb[126].mxu1  ;;  %v13694_v28 = vld [vmem:[%s19533_s10 + $0x1028] ss:$48 sps:$4 sm:$0xff]  }
 0x903   : > { %v10186_v31 = vpop.f32.mrb[127].mxu1  ;;  %v13709_v51 = vld [vmem:[%s19533_s10 + $0x5b0] ss:$48 sps:$4 sm:$0xff]  }
 0x904   : > { %10344 = vmatmul.mubr.bf16.vlgmr.msra.gmra.mrb[132].mxu1 %v17936_v53  ;;  %10299 = vmatpush1.bf16.msra.mxu0 %v13616_v24  ;;  %v13697_v24 = vld [vmem:[%s19533_s10 + $0x4f0] ss:$48 sps:$4 sm:$0xff]   ;;  %v13717_v31 = vld [vmem:[%s19533_s10 + $0xc14] ss:$48 sps:$4 sm:$0xff]  }
 0x905   : > { %10394 = vmatpush1.bf16.msra.mxu1 %v13619_v19  ;;  %10425 = vmatprep.mubr.bf16.mxu1 %v17670_v6  ;;  %v13702_v19 = vld [vmem:[%s19533_s10 + $0x108c] ss:$48 sps:$4 sm:$0xff]  }
 0x906   : > { %10300 = vmatprep.subr.bf16.mxu0 %v13624_v40  ;;  %10395 = vmatprep.subr.bf16.mxu1 %v13627_v33  ;;  %v13705_v40 = vld [vmem:[%s19533_s10 + $0x554] ss:$48 sps:$4 sm:$0xff]   ;;  %v13700_v33 = vld [vmem:[%s19533_s10 + $0x1088] ss:$48 sps:$4 sm:$0xff]  }
 0x908   : > { %10301 = vmatpush1.bf16.msra.mxu0 %v13622_v42  ;;  %v13703_v42 = vld [vmem:[%s19533_s10 + $0x550] ss:$48 sps:$4 sm:$0xff]  }
 0x909   : > { %10396 = vmatpush1.bf16.msra.mxu1 %v13625_v22  ;;  %10352 = vmatprep.subr.bf16.mxu0 %v13630_v55  ;;  %v13708_v22 = vld [vmem:[%s19533_s10 + $0x10ec] ss:$48 sps:$4 sm:$0xff]   ;;  %v13711_v55 = vld [vmem:[%s19533_s10 + $0x5b4] ss:$48 sps:$4 sm:$0xff]  }
 0x90a   : > { %10397 = vmatprep.subr.bf16.mxu1 %v13633_v60  ;;  %v13706_v60 = vld [vmem:[%s19533_s10 + $0x10e8] ss:$48 sps:$4 sm:$0xff]  }
 0x90b   : > { %10303 = vmatmul.mubr.bf16.vlgmr.msra.gmra.mrb[132].mxu0 %v17662_v36 }
 0x90c   : > { %10353 = vmatpush1.bf16.msra.mxu0 %v13628_v48  ;;  %10384 = vmatprep.mubr.bf16.mxu0 %v17916_v58  ;;  %v13714_v48 = vld [vmem:[%s19533_s10 + $0x114c] ss:$48 sps:$4 sm:$0xff]  }
 0x90d   : > { %10398 = vmatpush1.bf16.msra.mxu1 %v13631_v43  ;;  %10354 = vmatprep.subr.bf16.mxu0 %v13636_v4  ;;  %v13712_v43 = vld [vmem:[%s19533_s10 + $0x1148] ss:$48 sps:$4 sm:$0xff]   ;;  %v13715_v4 = vld [vmem:[%s19533_s10 + $0xc10] ss:$48 sps:$4 sm:$0xff]  }
 0x90e   : > { %10399 = vmatprep.subr.bf16.mxu1 %v13639_v49  ;;  %v13720_v49 = vld [vmem:[%s19533_s10 + $0x11ac] ss:$48 sps:$4 sm:$0xff]  }
 0x910   : > { %10355 = vmatpush1.bf16.msra.mxu0 %v13634_v54  ;;  %v13723_v54 = vld [vmem:[%s19533_s10 + $0xc74] ss:$48 sps:$4 sm:$0xff]  }
 0x911   : > { %10400 = vmatpush1.bf16.msra.mxu1 %v13637_v45  ;;  %10356 = vmatprep.subr.bf16.mxu0 %v13642_v39  ;;  %v13718_v45 = vld [vmem:[%s19533_s10 + $0x11a8] ss:$48 sps:$4 sm:$0xff]   ;;  %v13721_v39 = vld [vmem:[%s19533_s10 + $0xc70] ss:$48 sps:$4 sm:$0xff]  }
 0x912   : > { %10401 = vmatprep.subr.bf16.mxu1 %v13645_v10  ;;  %v13726_v10 = vld [vmem:[%s19533_s10 + $0x614] ss:$48 sps:$4 sm:$0xff]  }
 0x914   : > { %10357 = vmatpush1.bf16.msra.mxu0 %v13640_v56  ;;  %v13729_v56 = vld [vmem:[%s19533_s10 + $0xcd4] ss:$48 sps:$4 sm:$0xff]  }
 0x915   : > { %10402 = vmatpush1.bf16.msra.mxu1 %v13643_v52  ;;  %10358 = vmatprep.subr.bf16.mxu0 %v13648_v34  ;;  %v13724_v52 = vld [vmem:[%s19533_s10 + $0x610] ss:$48 sps:$4 sm:$0xff]  }
 0x916   : > { %10403 = vmatprep.subr.bf16.mxu1 %v13651_v8  ;;  %v13727_v34 = vld [vmem:[%s19533_s10 + $0xcd0] ss:$48 sps:$4 sm:$0xff]   ;;  %v13732_v8 = vld [vmem:[%s19533_s10 + $0x674] ss:$48 sps:$4 sm:$0xff]  }
 0x918   : > { %10359 = vmatpush1.bf16.msra.mxu0 %v13646_v44  ;;  %v13735_v44 = vld [vmem:[%s19533_s10 + $0xd34] ss:$48 sps:$4 sm:$0xff]  }
 0x919   : > { %10404 = vmatpush1.bf16.msra.mxu1 %v13649_v47  ;;  %10360 = vmatprep.subr.bf16.mxu0 %v13654_v57  ;;  %v13730_v47 = vld [vmem:[%s19533_s10 + $0x670] ss:$48 sps:$4 sm:$0xff]  }
 0x91a   : > { %10405 = vmatprep.subr.bf16.mxu1 %v13657_v25  ;;  %v13733_v57 = vld [vmem:[%s19533_s10 + $0xd30] ss:$48 sps:$4 sm:$0xff]   ;;  %v13738_v25 = vld [vmem:[%s19533_s10 + $0x6d4] ss:$48 sps:$4 sm:$0xff]  }
 0x91c   : > { %10361 = vmatpush1.bf16.msra.mxu0 %v13652_v9  ;;  %v13741_v9 = vld [vmem:[%s19533_s10 + $0xd94] ss:$48 sps:$4 sm:$0xff]  }
 0x91d   : > { %10406 = vmatpush1.bf16.msra.mxu1 %v13655_v23  ;;  %10362 = vmatprep.subr.bf16.mxu0 %v13660_v5  ;;  %v13736_v23 = vld [vmem:[%s19533_s10 + $0x6d0] ss:$48 sps:$4 sm:$0xff]  }
 0x91e   : > { %10407 = vmatprep.subr.bf16.mxu1 %v13663_v41  ;;  %v13739_v5 = vld [vmem:[%s19533_s10 + $0xd90] ss:$48 sps:$4 sm:$0xff]   ;;  %v13744_v41 = vld [vmem:[%s19533_s10 + $0x734] ss:$48 sps:$4 sm:$0xff]  }
 0x920   : > { %10363 = vmatpush1.bf16.msra.mxu0 %v13658_v7  ;;  %v13747_v7 = vld [vmem:[%s19533_s10 + $0xdf4] ss:$48 sps:$4 sm:$0xff]  }
 0x921   : > { %10408 = vmatpush1.bf16.msra.mxu1 %v13661_v27  ;;  %10364 = vmatprep.subr.bf16.mxu0 %v13666_v59  ;;  %v13742_v27 = vld [vmem:[%s19533_s10 + $0x730] ss:$48 sps:$4 sm:$0xff]  }
 0x922   : > { %10409 = vmatprep.subr.bf16.mxu1 %v13669_v61  ;;  %v13745_v59 = vld [vmem:[%s19533_s10 + $0xdf0] ss:$48 sps:$4 sm:$0xff]   ;;  %v13750_v61 = vld [vmem:[%s19533_s10 + $0x794] ss:$48 sps:$4 sm:$0xff]  }
 0x924   : > { %10365 = vmatpush1.bf16.msra.mxu0 %v13664_v38  ;;  %v13753_v38 = vld [vmem:[%s19533_s10 + $0xe54] ss:$48 sps:$4 sm:$0xff]  }
 0x925   : > { %10410 = vmatpush1.bf16.msra.mxu1 %v13667_v1  ;;  %10366 = vmatprep.subr.bf16.mxu0 %v13672_v46  ;;  %v13748_v1 = vld [vmem:[%s19533_s10 + $0x790] ss:$48 sps:$4 sm:$0xff]  }
 0x926   : > { %10411 = vmatprep.subr.bf16.mxu1 %v13675_v17  ;;  %v13751_v46 = vld [vmem:[%s19533_s10 + $0xe50] ss:$48 sps:$4 sm:$0xff]   ;;  %v13756_v17 = vld [vmem:[%s19533_s10 + $0x7f4] ss:$48 sps:$4 sm:$0xff]  }
 0x928   : > { %10367 = vmatpush1.bf16.msra.mxu0 %v13670_v0  ;;  %v13759_v0 = vld [vmem:[%s19533_s10 + $0xeb4] ss:$48 sps:$4 sm:$0xff]  }
 0x929   : > { %10412 = vmatpush1.bf16.msra.mxu1 %v13673_v14  ;;  %10368 = vmatprep.subr.bf16.mxu0 %v13678_v37  ;;  %v13754_v14 = vld [vmem:[%s19533_s10 + $0x7f0] ss:$48 sps:$4 sm:$0xff]  }
 0x92a   : > { %10413 = vmatprep.subr.bf16.mxu1 %v13681_v12  ;;  %v13757_v37 = vld [vmem:[%s19533_s10 + $0xeb0] ss:$48 sps:$4 sm:$0xff]   ;;  %v13762_v12 = vld [vmem:[%s19533_s10 + $0x854] ss:$48 sps:$4 sm:$0xff]  }
 0x92c   : > { %10369 = vmatpush1.bf16.msra.mxu0 %v13676_v32  ;;  %v13765_v32 = vld [vmem:[%s19533_s10 + $0xf14] ss:$48 sps:$4 sm:$0xff]  }
 0x92d   : > { %10414 = vmatpush1.bf16.msra.mxu1 %v13679_v50  ;;  %10370 = vmatprep.subr.bf16.mxu0 %v13684_v21  ;;  %v13760_v50 = vld [vmem:[%s19533_s10 + $0x850] ss:$48 sps:$4 sm:$0xff]  }
 0x92e   : > { %10415 = vmatprep.subr.bf16.mxu1 %v13687_v30  ;;  %v13763_v21 = vld [vmem:[%s19533_s10 + $0xf10] ss:$48 sps:$4 sm:$0xff]   ;;  %v13768_v30 = vld [vmem:[%s19533_s10 + $0x8b4] ss:$48 sps:$4 sm:$0xff]  }
 0x930   : > { %10371 = vmatpush1.bf16.msra.mxu0 %v13682_v62  ;;  %v13771_v62 = vld [vmem:[%s19533_s10 + $0xf74] ss:$48 sps:$4 sm:$0xff]  }
 0x931   : > { %10416 = vmatpush1.bf16.msra.mxu1 %v13685_v26  ;;  %10372 = vmatprep.subr.bf16.mxu0 %v13690_v2  ;;  %v13766_v26 = vld [vmem:[%s19533_s10 + $0x8b0] ss:$48 sps:$4 sm:$0xff]  }
 0x932   : > { %10417 = vmatprep.subr.bf16.mxu1 %v13693_v13  ;;  %v13769_v2 = vld [vmem:[%s19533_s10 + $0xf70] ss:$48 sps:$4 sm:$0xff]   ;;  %v13774_v13 = vld [vmem:[%s19533_s10 + $0x914] ss:$48 sps:$4 sm:$0xff]  }
 0x934   : > { %10373 = vmatpush1.bf16.msra.mxu0 %v13688_v11  ;;  %v13777_v11 = vld [vmem:[%s19533_s10 + $0xfd4] ss:$48 sps:$4 sm:$0xff]  }
 0x935   : > { %10418 = vmatpush1.bf16.msra.mxu1 %v13691_v3  ;;  %10374 = vmatprep.subr.bf16.mxu0 %v13696_v15  ;;  %v13772_v3 = vld [vmem:[%s19533_s10 + $0x910] ss:$48 sps:$4 sm:$0xff]  }
 0x936   : > { %10419 = vmatprep.subr.bf16.mxu1 %v13699_v16  ;;  %v13775_v15 = vld [vmem:[%s19533_s10 + $0xfd0] ss:$48 sps:$4 sm:$0xff]   ;;  %v13780_v16 = vld [vmem:[%s19533_s10 + $0x974] ss:$48 sps:$4 sm:$0xff]  }
 0x938   : > { %10375 = vmatpush1.bf16.msra.mxu0 %v13694_v28  ;;  %v13783_v28 = vld [vmem:[%s19533_s10 + $0x1034] ss:$48 sps:$4 sm:$0xff]  }
 0x939   : > { %10420 = vmatpush1.bf16.msra.mxu1 %v13697_v24  ;;  %10376 = vmatprep.subr.bf16.mxu0 %v13702_v19  ;;  %v13778_v24 = vld [vmem:[%s19533_s10 + $0x970] ss:$48 sps:$4 sm:$0xff]  }
 0x93a   : > { %10421 = vmatprep.subr.bf16.mxu1 %v13705_v40  ;;  %v13781_v19 = vld [vmem:[%s19533_s10 + $0x1030] ss:$48 sps:$4 sm:$0xff]   ;;  %v13786_v40 = vld [vmem:[%s19533_s10 + $0x9d4] ss:$48 sps:$4 sm:$0xff]  }
 0x93c   : > { %10377 = vmatpush1.bf16.msra.mxu0 %v13700_v33  ;;  %v13789_v33 = vld [vmem:[%s19533_s10 + $0x1094] ss:$48 sps:$4 sm:$0xff]  }
 0x93d   : > { %10422 = vmatpush1.bf16.msra.mxu1 %v13703_v42  ;;  %10378 = vmatprep.subr.bf16.mxu0 %v13708_v22  ;;  %v13784_v42 = vld [vmem:[%s19533_s10 + $0x9d0] ss:$48 sps:$4 sm:$0xff]  }
 0x93e   : > { %10423 = vmatprep.subr.bf16.mxu1 %v13711_v55  ;;  %v13787_v22 = vld [vmem:[%s19533_s10 + $0x1090] ss:$48 sps:$4 sm:$0xff]   ;;  %v13792_v55 = vld [vmem:[%s19533_s10 + $0xa34] ss:$48 sps:$4 sm:$0xff]  }
 0x940   : > { %10379 = vmatpush1.bf16.msra.mxu0 %v13706_v60  ;;  %v13795_v60 = vld [vmem:[%s19533_s10 + $0x10f4] ss:$48 sps:$4 sm:$0xff]  }
 0x941   : > { %10424 = vmatpush1.bf16.msra.mxu1 %v13709_v51  ;;  %10380 = vmatprep.subr.bf16.mxu0 %v13714_v48  ;;  %v13790_v51 = vld [vmem:[%s19533_s10 + $0xa30] ss:$48 sps:$4 sm:$0xff]  }
 0x942   : > { %10475 = vmatprep.subr.bf16.mxu1 %v13717_v31  ;;  %v13793_v48 = vld [vmem:[%s19533_s10 + $0x10f0] ss:$48 sps:$4 sm:$0xff]   ;;  %v13798_v31 = vld [vmem:[%s19533_s10 + $0xa94] ss:$48 sps:$4 sm:$0xff]  }
 0x944   : > { %10426 = vmatmul.mubr.bf16.vlgmr.msra.gmra.mrb[136].mxu1 %v17662_v36  ;;  %10381 = vmatpush1.bf16.msra.mxu0 %v13712_v43  ;;  %v13801_v43 = vld [vmem:[%s19533_s10 + $0x1154] ss:$48 sps:$4 sm:$0xff]  }
 0x945   : > { %10476 = vmatpush1.bf16.msra.mxu1 %v13715_v4  ;;  %10507 = vmatprep.mubr.bf16.mxu1 %v17916_v58  ;;  %v13796_v4 = vld [vmem:[%s19533_s10 + $0xa90] ss:$48 sps:$4 sm:$0xff]  }
 0x946   : > { %10382 = vmatprep.subr.bf16.mxu0 %v13720_v49  ;;  %10477 = vmatprep.subr.bf16.mxu1 %v13723_v54  ;;  %v13799_v49 = vld [vmem:[%s19533_s10 + $0x1150] ss:$48 sps:$4 sm:$0xff]   ;;  %v13804_v54 = vld [vmem:[%s19533_s10 + $0xaf4] ss:$48 sps:$4 sm:$0xff]  }
 0x948   : > { %10383 = vmatpush1.bf16.msra.mxu0 %v13718_v45  ;;  %v13807_v45 = vld [vmem:[%s19533_s10 + $0x11b4] ss:$48 sps:$4 sm:$0xff]  }
 0x949   : > { %10478 = vmatpush1.bf16.msra.mxu1 %v13721_v39  ;;  %10434 = vmatprep.subr.bf16.mxu0 %v13726_v10  ;;  %v13802_v39 = vld [vmem:[%s19533_s10 + $0xaf0] ss:$48 sps:$4 sm:$0xff]  }
 0x94a   : > { %10479 = vmatprep.subr.bf16.mxu1 %v13729_v56  ;;  %v13805_v10 = vld [vmem:[%s19533_s10 + $0x11b0] ss:$48 sps:$4 sm:$0xff]   ;;  %v13810_v56 = vld [vmem:[%s19533_s10 + $0xb54] ss:$48 sps:$4 sm:$0xff]  }
 0x94b   : > { %10385 = vmatmul.mubr.bf16.vlgmr.msra.gmra.mrb[136].mxu0 %v17914_v18 }
 0x94c   : > { %10435 = vmatpush1.bf16.msra.mxu0 %v13724_v52  ;;  %10466 = vmatprep.mubr.bf16.mxu0 %v17938_v20  ;;  %v13813_v52 = vld [vmem:[%s19533_s10 + $0x61c] ss:$48 sps:$4 sm:$0xff]  }
 0x94d   : > { %10480 = vmatpush1.bf16.msra.mxu1 %v13727_v34  ;;  %10436 = vmatprep.subr.bf16.mxu0 %v13732_v8  ;;  %v13808_v34 = vld [vmem:[%s19533_s10 + $0xb50] ss:$48 sps:$4 sm:$0xff]   ;;  %v13811_v8 = vld [vmem:[%s19533_s10 + $0x618] ss:$48 sps:$4 sm:$0xff]  }
 0x94e   : > { %10481 = vmatprep.subr.bf16.mxu1 %v13735_v44  ;;  %v13816_v44 = vld [vmem:[%s19533_s10 + $0xbb4] ss:$48 sps:$4 sm:$0xff]  }
 0x950   : > { %10437 = vmatpush1.bf16.msra.mxu0 %v13730_v47  ;;  %v13819_v47 = vld [vmem:[%s19533_s10 + $0x67c] ss:$48 sps:$4 sm:$0xff]  }
 0x951   : > { %10482 = vmatpush1.bf16.msra.mxu1 %v13733_v57  ;;  %10438 = vmatprep.subr.bf16.mxu0 %v13738_v25  ;;  %v13814_v57 = vld [vmem:[%s19533_s10 + $0xbb0] ss:$48 sps:$4 sm:$0xff]   ;;  %v13817_v25 = vld [vmem:[%s19533_s10 + $0x678] ss:$48 sps:$4 sm:$0xff]  }
 0x952   : > { %10483 = vmatprep.subr.bf16.mxu1 %v13741_v9  ;;  %v13822_v9 = vld [vmem:[%s19533_s10 + $0x1c] ss:$48 sps:$4 sm:$0xff]  }
 0x954   : > { %10439 = vmatpush1.bf16.msra.mxu0 %v13736_v23  ;;  %v13825_v23 = vld [vmem:[%s19533_s10 + $0x6dc] ss:$48 sps:$4 sm:$0xff]  }
 0x955   : > { %10484 = vmatpush1.bf16.msra.mxu1 %v13739_v5  ;;  %10440 = vmatprep.subr.bf16.mxu0 %v13744_v41  ;;  %v13820_v5 = vld [vmem:[%s19533_s10 + $0x18] ss:$48 sps:$4 sm:$0xff]  }
 0x956   : > { %10485 = vmatprep.subr.bf16.mxu1 %v13747_v7  ;;  %v13823_v41 = vld [vmem:[%s19533_s10 + $0x6d8] ss:$48 sps:$4 sm:$0xff]   ;;  %v13828_v7 = vld [vmem:[%s19533_s10 + $0x7c] ss:$48 sps:$4 sm:$0xff]  }
 0x958   : > { %10441 = vmatpush1.bf16.msra.mxu0 %v13742_v27  ;;  %v13831_v27 = vld [vmem:[%s19533_s10 + $0x73c] ss:$48 sps:$4 sm:$0xff]  }
 0x959   : > { %10486 = vmatpush1.bf16.msra.mxu1 %v13745_v59  ;;  %10442 = vmatprep.subr.bf16.mxu0 %v13750_v61  ;;  %v13826_v59 = vld [vmem:[%s19533_s10 + $0x78] ss:$48 sps:$4 sm:$0xff]  }
 0x95a   : > { %10487 = vmatprep.subr.bf16.mxu1 %v13753_v38  ;;  %v13829_v61 = vld [vmem:[%s19533_s10 + $0x738] ss:$48 sps:$4 sm:$0xff]   ;;  %v13834_v38 = vld [vmem:[%s19533_s10 + $0xdc] ss:$48 sps:$4 sm:$0xff]  }
 0x95c   : > { %10443 = vmatpush1.bf16.msra.mxu0 %v13748_v1  ;;  %v13837_v1 = vld [vmem:[%s19533_s10 + $0x79c] ss:$48 sps:$4 sm:$0xff]  }
 0x95d   : > { %10488 = vmatpush1.bf16.msra.mxu1 %v13751_v46  ;;  %10444 = vmatprep.subr.bf16.mxu0 %v13756_v17  ;;  %v13832_v46 = vld [vmem:[%s19533_s10 + $0xd8] ss:$48 sps:$4 sm:$0xff]  }
 0x95e   : > { %10489 = vmatprep.subr.bf16.mxu1 %v13759_v0  ;;  %v13835_v17 = vld [vmem:[%s19533_s10 + $0x798] ss:$48 sps:$4 sm:$0xff]   ;;  %v13840_v0 = vld [vmem:[%s19533_s10 + $0x13c] ss:$48 sps:$4 sm:$0xff]  }
 0x960   : > { %10445 = vmatpush1.bf16.msra.mxu0 %v13754_v14  ;;  %v13843_v14 = vld [vmem:[%s19533_s10 + $0x7fc] ss:$48 sps:$4 sm:$0xff]  }
 0x961   : > { %10490 = vmatpush1.bf16.msra.mxu1 %v13757_v37  ;;  %10446 = vmatprep.subr.bf16.mxu0 %v13762_v12  ;;  %v13838_v37 = vld [vmem:[%s19533_s10 + $0x138] ss:$48 sps:$4 sm:$0xff]  }
 0x962   : > { %10491 = vmatprep.subr.bf16.mxu1 %v13765_v32  ;;  %v13841_v12 = vld [vmem:[%s19533_s10 + $0x7f8] ss:$48 sps:$4 sm:$0xff]   ;;  %v13846_v32 = vld [vmem:[%s19533_s10 + $0x19c] ss:$48 sps:$4 sm:$0xff]  }
 0x964   : > { %10447 = vmatpush1.bf16.msra.mxu0 %v13760_v50  ;;  %v13849_v50 = vld [vmem:[%s19533_s10 + $0x85c] ss:$48 sps:$4 sm:$0xff]  }
 0x965   : > { %10492 = vmatpush1.bf16.msra.mxu1 %v13763_v21  ;;  %10448 = vmatprep.subr.bf16.mxu0 %v13768_v30 }
 0x966   : > { %10493 = vmatprep.subr.bf16.mxu1 %v13771_v62  ;;  %v13844_v62 = vld [vmem:[%s19533_s10 + $0x198] ss:$48 sps:$4 sm:$0xff]  }
 0x968   : > { %10449 = vmatpush1.bf16.msra.mxu0 %v13766_v26 }
 0x969   : > { %10494 = vmatpush1.bf16.msra.mxu1 %v13769_v2  ;;  %10450 = vmatprep.subr.bf16.mxu0 %v13774_v13  ;;  %v13847_v2 = vld [vmem:[%s19533_s10 + $0x858] ss:$48 sps:$4 sm:$0xff]   ;;  %v13852_v13 = vld [vmem:[%s19533_s10 + $0x1fc] ss:$48 sps:$4 sm:$0xff]  }
 0x96a   : > { %10495 = vmatprep.subr.bf16.mxu1 %v13777_v11 }
 0x96c   : > { %10451 = vmatpush1.bf16.msra.mxu0 %v13772_v3  ;;  %v13855_v3 = vld [vmem:[%s19533_s10 + $0x8bc] ss:$48 sps:$4 sm:$0xff]  }
 0x96d   : > { %10496 = vmatpush1.bf16.msra.mxu1 %v13775_v15  ;;  %10452 = vmatprep.subr.bf16.mxu0 %v13780_v16  ;;  %v13850_v15 = vld [vmem:[%s19533_s10 + $0x1f8] ss:$48 sps:$4 sm:$0xff]  }
 0x96e   : > { %10497 = vmatprep.subr.bf16.mxu1 %v13783_v28  ;;  %v13853_v16 = vld [vmem:[%s19533_s10 + $0x8b8] ss:$48 sps:$4 sm:$0xff]   ;;  %v13858_v28 = vld [vmem:[%s19533_s10 + $0x25c] ss:$48 sps:$4 sm:$0xff]  }
 0x970   : > { %10453 = vmatpush1.bf16.msra.mxu0 %v13778_v24 }
 0x971   : > { %10498 = vmatpush1.bf16.msra.mxu1 %v13781_v19  ;;  %10454 = vmatprep.subr.bf16.mxu0 %v13786_v40  ;;  %v13861_v19 = vld [vmem:[%s19533_s10 + $0x91c] ss:$48 sps:$4 sm:$0xff]  }
 0x972   : > { %10499 = vmatprep.subr.bf16.mxu1 %v13789_v33 }
 0x974   : > { %10455 = vmatpush1.bf16.msra.mxu0 %v13784_v42 }
 0x975   : > { %10500 = vmatpush1.bf16.msra.mxu1 %v13787_v22  ;;  %10456 = vmatprep.subr.bf16.mxu0 %v13792_v55  ;;  %v13856_v55 = vld [vmem:[%s19533_s10 + $0x258] ss:$48 sps:$4 sm:$0xff]  }
 0x976   : > { %10501 = vmatprep.subr.bf16.mxu1 %v13795_v60 }
 0x978   : > { %10457 = vmatpush1.bf16.msra.mxu0 %v13790_v51 }
 0x979   : > { %10502 = vmatpush1.bf16.msra.mxu1 %v13793_v48  ;;  %10458 = vmatprep.subr.bf16.mxu0 %v13798_v31  ;;  %v13859_v48 = vld [vmem:[%s19533_s10 + $0x918] ss:$48 sps:$4 sm:$0xff]  }
 0x97a   : > { %10503 = vmatprep.subr.bf16.mxu1 %v13801_v43 }
 0x97c   : > { %10459 = vmatpush1.bf16.msra.mxu0 %v13796_v4  ;;  %v13862_v4 = vld [vmem:[%s19533_s10 + $0x2b8] ss:$48 sps:$4 sm:$0xff]  }
 0x97d   : > { %10504 = vmatpush1.bf16.msra.mxu1 %v13799_v49  ;;  %10460 = vmatprep.subr.bf16.mxu0 %v13804_v54  ;;  %v13865_v49 = vld [vmem:[%s19533_s10 + $0x978] ss:$48 sps:$4 sm:$0xff]   ;;  %v13870_v54 = vld [vmem:[%s19533_s10 + $0x31c] ss:$48 sps:$4 sm:$0xff]  }
 0x97e   : > { %10505 = vmatprep.subr.bf16.mxu1 %v13807_v45 }
 0x980   : > { %10461 = vmatpush1.bf16.msra.mxu0 %v13802_v39  ;;  %v13873_v39 = vld [vmem:[%s19533_s10 + $0x9dc] ss:$48 sps:$4 sm:$0xff]  }
 0x981   : > { %10506 = vmatpush1.bf16.msra.mxu1 %v13805_v10  ;;  %10462 = vmatprep.subr.bf16.mxu0 %v13810_v56  ;;  %v13868_v10 = vld [vmem:[%s19533_s10 + $0x318] ss:$48 sps:$4 sm:$0xff]  }
 0x982   : > { %10557 = vmatprep.subr.bf16.mxu1 %v13813_v52  ;;  %v13871_v56 = vld [vmem:[%s19533_s10 + $0x9d8] ss:$48 sps:$4 sm:$0xff]   ;;  %v13876_v52 = vld [vmem:[%s19533_s10 + $0x37c] ss:$48 sps:$4 sm:$0xff]  }
 0x984   : > { %10508 = vmatmul.mubr.bf16.vlgmr.msra.gmra.mrb[140].mxu1 %v17914_v18  ;;  %10463 = vmatpush1.bf16.msra.mxu0 %v13808_v34  ;;  %v13879_v34 = vld [vmem:[%s19533_s10 + $0xa3c] ss:$48 sps:$4 sm:$0xff]  }
 0x985   : > { %10558 = vmatpush1.bf16.msra.mxu1 %v13811_v8  ;;  %10589 = vmatprep.mubr.bf16.mxu1 %v17938_v20  ;;  %v13874_v8 = vld [vmem:[%s19533_s10 + $0x378] ss:$48 sps:$4 sm:$0xff]  }
 0x986   : > { %10464 = vmatprep.subr.bf16.mxu0 %v13816_v44  ;;  %10559 = vmatprep.subr.bf16.mxu1 %v13819_v47  ;;  %v13877_v44 = vld [vmem:[%s19533_s10 + $0xa38] ss:$48 sps:$4 sm:$0xff]   ;;  %v13882_v47 = vld [vmem:[%s19533_s10 + $0x3dc] ss:$48 sps:$4 sm:$0xff]  }
 0x988   : > { %10465 = vmatpush1.bf16.msra.mxu0 %v13814_v57  ;;  %v13885_v57 = vld [vmem:[%s19533_s10 + $0xa9c] ss:$48 sps:$4 sm:$0xff]  }
 0x989   : > { %10560 = vmatpush1.bf16.msra.mxu1 %v13817_v25  ;;  %10516 = vmatprep.subr.bf16.mxu0 %v13822_v9  ;;  %v13880_v25 = vld [vmem:[%s19533_s10 + $0x3d8] ss:$48 sps:$4 sm:$0xff]  }
 0x98a   : > { %10561 = vmatprep.subr.bf16.mxu1 %v13825_v23  ;;  %v13883_v9 = vld [vmem:[%s19533_s10 + $0xa98] ss:$48 sps:$4 sm:$0xff]   ;;  %v13888_v23 = vld [vmem:[%s19533_s10 + $0x43c] ss:$48 sps:$4 sm:$0xff]  }
 0x98b   : > { %10467 = vmatmul.mubr.bf16.vlgmr.msra.gmra.mrb[140].mxu0 %v17936_v53 }
 0x98c   : > { %10517 = vmatpush1.bf16.msra.mxu0 %v13820_v5  ;;  %10548 = vmatprep.mubr.bf16.mxu0 %v17670_v6  ;;  %v13891_v5 = vld [vmem:[%s19533_s10 + $0xafc] ss:$48 sps:$4 sm:$0xff]  }
 0x98d   : > { %10562 = vmatpush1.bf16.msra.mxu1 %v13823_v41  ;;  %10518 = vmatprep.subr.bf16.mxu0 %v13828_v7  ;;  %v13886_v41 = vld [vmem:[%s19533_s10 + $0x438] ss:$48 sps:$4 sm:$0xff]  }
 0x98e   : > { %10563 = vmatprep.subr.bf16.mxu1 %v13831_v27  ;;  %v13889_v7 = vld [vmem:[%s19533_s10 + $0xaf8] ss:$48 sps:$4 sm:$0xff]   ;;  %v13894_v27 = vld [vmem:[%s19533_s10 + $0x49c] ss:$48 sps:$4 sm:$0xff]  }
 0x990   : > { %10519 = vmatpush1.bf16.msra.mxu0 %v13826_v59  ;;  %v13897_v59 = vld [vmem:[%s19533_s10 + $0xb5c] ss:$48 sps:$4 sm:$0xff]  }
 0x991   : > { %10564 = vmatpush1.bf16.msra.mxu1 %v13829_v61  ;;  %10520 = vmatprep.subr.bf16.mxu0 %v13834_v38  ;;  %v13892_v61 = vld [vmem:[%s19533_s10 + $0x498] ss:$48 sps:$4 sm:$0xff]  }
 0x992   : > { %10565 = vmatprep.subr.bf16.mxu1 %v13837_v1  ;;  %v13895_v38 = vld [vmem:[%s19533_s10 + $0xb58] ss:$48 sps:$4 sm:$0xff]   ;;  %v13900_v1 = vld [vmem:[%s19533_s10 + $0x4fc] ss:$48 sps:$4 sm:$0xff]  }
 0x994   : > { %10521 = vmatpush1.bf16.msra.mxu0 %v13832_v46  ;;  %v13903_v46 = vld [vmem:[%s19533_s10 + $0xbbc] ss:$48 sps:$4 sm:$0xff]  }
 0x995   : > { %10566 = vmatpush1.bf16.msra.mxu1 %v13835_v17  ;;  %10522 = vmatprep.subr.bf16.mxu0 %v13840_v0  ;;  %v13898_v17 = vld [vmem:[%s19533_s10 + $0x4f8] ss:$48 sps:$4 sm:$0xff]  }
 0x996   : > { %10567 = vmatprep.subr.bf16.mxu1 %v13843_v14  ;;  %v13901_v0 = vld [vmem:[%s19533_s10 + $0xbb8] ss:$48 sps:$4 sm:$0xff]   ;;  %v13906_v14 = vld [vmem:[%s19533_s10 + $0x55c] ss:$48 sps:$4 sm:$0xff]  }
 0x997   : > { %v10263_v21 = vpop.f32.mrb[128].mxu1 }
 0x998   : > { %v10265_v30 = vpop.f32.mrb[129].mxu1  ;;  %10523 = vmatpush1.bf16.msra.mxu0 %v13838_v37  ;;  %v13909_v37 = vld [vmem:[%s19533_s10 + $0x24] ss:$48 sps:$4 sm:$0xff]  }
 0x999   : > { %10568 = vmatpush1.bf16.msra.mxu1 %v13841_v12  ;;  %v10267_v26 = vpop.f32.mrb[130].mxu1  ;;  %10524 = vmatprep.subr.bf16.mxu0 %v13846_v32  ;;  %v13904_v12 = vld [vmem:[%s19533_s10 + $0x558] ss:$48 sps:$4 sm:$0xff]   ;;  %v13907_v32 = vld [vmem:[%s19533_s10 + $0x20] ss:$48 sps:$4 sm:$0xff]  }
 0x99a   : > { %v10268_v11 = vpop.f32.mrb[131].mxu1  ;;  %10569 = vmatprep.subr.bf16.mxu1 %v13849_v50  ;;  %v13912_v50 = vld [vmem:[%s19533_s10 + $0x5bc] ss:$48 sps:$4 sm:$0xff]  }
 0x99b   : > { %v13918_v26 = vld [vmem:[%s19533_s10 + $0xc1c] ss:$48 sps:$4 sm:$0xff]   ;;  %v13919_v11 = vld [vmem:[%s19533_s10 + $0xe0] ss:$48 sps:$4 sm:$0xff]  }
 0x99c   : > { %10525 = vmatpush1.bf16.msra.mxu0 %v13844_v62  ;;  %v13913_v62 = vld [vmem:[%s19533_s10 + $0x80] ss:$48 sps:$4 sm:$0xff]  }
 0x99d   : > { %10570 = vmatpush1.bf16.msra.mxu1 %v13847_v2  ;;  %10526 = vmatprep.subr.bf16.mxu0 %v13852_v13  ;;  %v13921_v2 = vld [vmem:[%s19533_s10 + $0xe4] ss:$48 sps:$4 sm:$0xff]   ;;  %v13916_v13 = vld [vmem:[%s19533_s10 + $0xc18] ss:$48 sps:$4 sm:$0xff]  }
 0x99e   : > { %v10222_v24 = vpop.f32.mrb[128].mxu0  ;;  %10571 = vmatprep.subr.bf16.mxu1 %v13855_v3  ;;  %v13924_v3 = vld [vmem:[%s19533_s10 + $0xc7c] ss:$48 sps:$4 sm:$0xff]  }
 0x99f   : > { %v10223_v40 = vadd.f32 %v10222_v24, %v18135_v63  ;;  %v10224_v33 = vpop.f32.mrb[129].mxu0  ;;  %v13864_v63 = vld [vmem:[%s19533_s10 + $0x2bc] ss:$48 sps:$4 sm:$0xff]  }
 0x9a0   : > { %v10225_v42 = vadd.f32 %v10224_v33, %v18140_v29  ;;  %10527 = vmatpush1.bf16.msra.mxu0 %v13850_v15  ;;  %v10226_v22 = vpop.f32.mrb[130].mxu0  ;;  %v13867_v29 = vld [vmem:[%s19533_s10 + $0x97c] ss:$48 sps:$4 sm:$0xff]   ;;  %v13927_v15 = vld [vmem:[%s19533_s10 + $0x144] ss:$48 sps:$4 sm:$0xff]  }
 0x9a1   : > { %v10264_v60 = vadd.f32 %v10263_v21, %v10223_v40  ;;  %10572 = vmatpush1.bf16.msra.mxu1 %v13853_v16  ;;  %v10227_v51 = vpop.f32.mrb[131].mxu0  ;;  %10528 = vmatprep.subr.bf16.mxu0 %v13858_v28  ;;  %v13915_v21 = vld [vmem:[%s19533_s10 + $0x84] ss:$48 sps:$4 sm:$0xff]   ;;  %v13922_v16 = vld [vmem:[%s19533_s10 + $0xc78] ss:$48 sps:$4 sm:$0xff]  }
 0x9a2   : > { %v10266_v31 = vadd.f32 %v10265_v30, %v10225_v42  ;;  %10573 = vmatprep.subr.bf16.mxu1 %v13861_v19  ;;  %v13910_v30 = vld [vmem:[%s19533_s10 + $0x5b8] ss:$48 sps:$4 sm:$0xff]   ;;  %v13925_v28 = vld [vmem:[%s19533_s10 + $0x140] ss:$48 sps:$4 sm:$0xff]   ;;  %v13930_v24 = vld [vmem:[%s19533_s10 + $0xcdc] ss:$48 sps:$4 sm:$0xff]  }
 0x9a3   : > { %v13933_v19 = vld [vmem:[%s19533_s10 + $0x1a4] ss:$48 sps:$4 sm:$0xff]   ;;  %v13928_v40 = vld [vmem:[%s19533_s10 + $0xcd8] ss:$48 sps:$4 sm:$0xff]   ;;  %v13931_v33 = vld [vmem:[%s19533_s10 + $0x1a0] ss:$48 sps:$4 sm:$0xff]  }
 0x9a4   : > { %v10886_v43 = vrot.slane %v10266_v31, 1  ;;  %10529 = vmatpush1.bf16.msra.mxu0 %v13856_v55  ;;  %v13936_v42 = vld [vmem:[%s19533_s10 + $0xd3c] ss:$48 sps:$4 sm:$0xff]   ;;  %v13939_v22 = vld [vmem:[%s19533_s10 + $0x204] ss:$48 sps:$4 sm:$0xff]  }
 0x9a5   : > { %10574 = vmatpush1.bf16.msra.mxu1 %v13859_v48  ;;  %10530 = vmatprep.subr.bf16.mxu0 %v13864_v63  ;;  %v13934_v55 = vld [vmem:[%s19533_s10 + $0xd38] ss:$48 sps:$4 sm:$0xff]   ;;  %v13942_v51 = vld [vmem:[%s19533_s10 + $0xd9c] ss:$48 sps:$4 sm:$0xff]   ;;  %v13945_v48 = vld [vmem:[%s19533_s10 + $0x264] ss:$48 sps:$4 sm:$0xff]  }
 0x9a6   : > { %v18631_v45 = vadd.f32 %v10886_v43, %v10264_v60  ;;  %10575 = vmatprep.subr.bf16.mxu1 %v13867_v29  ;;  %v13937_v60 = vld [vmem:[%s19533_s10 + $0x200] ss:$48 sps:$4 sm:$0xff]   ;;  %v13940_v29 = vld [vmem:[%s19533_s10 + $0xd98] ss:$48 sps:$4 sm:$0xff]  }
 0x9a8   : > { %10531 = vmatpush1.bf16.msra.mxu0 %v13862_v4  ;;  %v13943_v4 = vld [vmem:[%s19533_s10 + $0x260] ss:$48 sps:$4 sm:$0xff]  }
 0x9a9   : > { %10576 = vmatpush1.bf16.msra.mxu1 %v13865_v49  ;;  %10532 = vmatprep.subr.bf16.mxu0 %v13870_v54  ;;  %v13948_v49 = vld [vmem:[%s19533_s10 + $0xdfc] ss:$48 sps:$4 sm:$0xff]  }
 0x9aa   : > { %10577 = vmatprep.subr.bf16.mxu1 %v13873_v39  ;;  %v13951_v39 = vld [vmem:[%s19533_s10 + $0x2c4] ss:$48 sps:$4 sm:$0xff]  }
 0x9ac   : > { %10533 = vmatpush1.bf16.msra.mxu0 %v13868_v10  ;;  %v13946_v10 = vld [vmem:[%s19533_s10 + $0xdf8] ss:$48 sps:$4 sm:$0xff]  }
 0x9ad   : > { %10578 = vmatpush1.bf16.msra.mxu1 %v13871_v56  ;;  %10534 = vmatprep.subr.bf16.mxu0 %v13876_v52  ;;  %v13949_v56 = vld [vmem:[%s19533_s10 + $0x2c0] ss:$48 sps:$4 sm:$0xff]   ;;  %v13954_v52 = vld [vmem:[%s19533_s10 + $0xe5c] ss:$48 sps:$4 sm:$0xff]  }
 0x9ae   : > { %10579 = vmatprep.subr.bf16.mxu1 %v13879_v34 }
 0x9b0   : > { %10535 = vmatpush1.bf16.msra.mxu0 %v13874_v8  ;;  %v13957_v8 = vld [vmem:[%s19533_s10 + $0x324] ss:$48 sps:$4 sm:$0xff]  }
 0x9b1   : > { %10580 = vmatpush1.bf16.msra.mxu1 %v13877_v44  ;;  %10536 = vmatprep.subr.bf16.mxu0 %v13882_v47 }
 0x9b2   : > { %10581 = vmatprep.subr.bf16.mxu1 %v13885_v57 }
 0x9b4   : > { %10537 = vmatpush1.bf16.msra.mxu0 %v13880_v25 }
 0x9b5   : > { %10582 = vmatpush1.bf16.msra.mxu1 %v13883_v9  ;;  %10538 = vmatprep.subr.bf16.mxu0 %v13888_v23  ;;  %v13952_v9 = vld [vmem:[%s19533_s10 + $0xe58] ss:$48 sps:$4 sm:$0xff]  }
 0x9b6   : > { %10583 = vmatprep.subr.bf16.mxu1 %v13891_v5  ;;  %v13955_v5 = vld [vmem:[%s19533_s10 + $0x320] ss:$48 sps:$4 sm:$0xff]  }
 0x9b8   : > { %10539 = vmatpush1.bf16.msra.mxu0 %v13886_v41  ;;  %v13960_v41 = vld [vmem:[%s19533_s10 + $0xebc] ss:$48 sps:$4 sm:$0xff]  }
 0x9b9   : > { %10584 = vmatpush1.bf16.msra.mxu1 %v13889_v7  ;;  %10540 = vmatprep.subr.bf16.mxu0 %v13894_v27  ;;  %v13963_v7 = vld [vmem:[%s19533_s10 + $0x384] ss:$48 sps:$4 sm:$0xff]   ;;  %v13958_v27 = vld [vmem:[%s19533_s10 + $0xeb8] ss:$48 sps:$4 sm:$0xff]  }
 0x9ba   : > { %10585 = vmatprep.subr.bf16.mxu1 %v13897_v59  ;;  %v13961_v59 = vld [vmem:[%s19533_s10 + $0x380] ss:$48 sps:$4 sm:$0xff]  }
 0x9bc   : > { %10541 = vmatpush1.bf16.msra.mxu0 %v13892_v61  ;;  %v13966_v61 = vld [vmem:[%s19533_s10 + $0xf1c] ss:$48 sps:$4 sm:$0xff]  }
 0x9bd   : > { %10586 = vmatpush1.bf16.msra.mxu1 %v13895_v38  ;;  %10542 = vmatprep.subr.bf16.mxu0 %v13900_v1  ;;  %v13969_v38 = vld [vmem:[%s19533_s10 + $0x3e4] ss:$48 sps:$4 sm:$0xff]   ;;  %v13964_v1 = vld [vmem:[%s19533_s10 + $0xf18] ss:$48 sps:$4 sm:$0xff]  }
 0x9be   : > { %10587 = vmatprep.subr.bf16.mxu1 %v13903_v46  ;;  %v13967_v46 = vld [vmem:[%s19533_s10 + $0x3e0] ss:$48 sps:$4 sm:$0xff]  }
 0x9c0   : > { %10543 = vmatpush1.bf16.msra.mxu0 %v13898_v17  ;;  %v13972_v17 = vld [vmem:[%s19533_s10 + $0xf7c] ss:$48 sps:$4 sm:$0xff]  }
 0x9c1   : > { %10588 = vmatpush1.bf16.msra.mxu1 %v13901_v0  ;;  %10544 = vmatprep.subr.bf16.mxu0 %v13906_v14  ;;  %v13975_v0 = vld [vmem:[%s19533_s10 + $0x444] ss:$48 sps:$4 sm:$0xff]   ;;  %v13970_v14 = vld [vmem:[%s19533_s10 + $0xf78] ss:$48 sps:$4 sm:$0xff]  }
 0x9c2   : > { %10639 = vmatprep.subr.bf16.mxu1 %v13909_v37  ;;  %v13973_v37 = vld [vmem:[%s19533_s10 + $0x440] ss:$48 sps:$4 sm:$0xff]  }
 0x9c4   : > { %10590 = vmatmul.mubr.bf16.vlgmr.msra.gmra.mrb[144].mxu1 %v17936_v53  ;;  %10545 = vmatpush1.bf16.msra.mxu0 %v13904_v12  ;;  %v13978_v12 = vld [vmem:[%s19533_s10 + $0xfdc] ss:$48 sps:$4 sm:$0xff]  }
 0x9c5   : > { %10640 = vmatpush1.bf16.msra.mxu1 %v13907_v32  ;;  %10671 = vmatprep.mubr.bf16.mxu1 %v17670_v6  ;;  %v13981_v32 = vld [vmem:[%s19533_s10 + $0x4a4] ss:$48 sps:$4 sm:$0xff]  }
 0x9c6   : > { %10546 = vmatprep.subr.bf16.mxu0 %v13912_v50  ;;  %10641 = vmatprep.subr.bf16.mxu1 %v13915_v21  ;;  %v13976_v50 = vld [vmem:[%s19533_s10 + $0xfd8] ss:$48 sps:$4 sm:$0xff]   ;;  %v13979_v21 = vld [vmem:[%s19533_s10 + $0x4a0] ss:$48 sps:$4 sm:$0xff]  }
 0x9c8   : > { %10547 = vmatpush1.bf16.msra.mxu0 %v13910_v30  ;;  %v13984_v30 = vld [vmem:[%s19533_s10 + $0x103c] ss:$48 sps:$4 sm:$0xff]  }
 0x9c9   : > { %10642 = vmatpush1.bf16.msra.mxu1 %v13913_v62  ;;  %10598 = vmatprep.subr.bf16.mxu0 %v13918_v26  ;;  %v13987_v62 = vld [vmem:[%s19533_s10 + $0x504] ss:$48 sps:$4 sm:$0xff]   ;;  %v13982_v26 = vld [vmem:[%s19533_s10 + $0x1038] ss:$48 sps:$4 sm:$0xff]  }
 0x9ca   : > { %10643 = vmatprep.subr.bf16.mxu1 %v13921_v2  ;;  %v13985_v2 = vld [vmem:[%s19533_s10 + $0x500] ss:$48 sps:$4 sm:$0xff]  }
 0x9cb   : > { %10549 = vmatmul.mubr.bf16.vlgmr.msra.gmra.mrb[144].mxu0 %v17662_v36 }
 0x9cc   : > { %10599 = vmatpush1.bf16.msra.mxu0 %v13916_v13  ;;  %10630 = vmatprep.mubr.bf16.mxu0 %v17916_v58  ;;  %v13990_v13 = vld [vmem:[%s19533_s10 + $0x109c] ss:$48 sps:$4 sm:$0xff]  }
 0x9cd   : > { %10644 = vmatpush1.bf16.msra.mxu1 %v13919_v11  ;;  %10600 = vmatprep.subr.bf16.mxu0 %v13924_v3  ;;  %v13993_v11 = vld [vmem:[%s19533_s10 + $0x564] ss:$48 sps:$4 sm:$0xff]   ;;  %v13988_v3 = vld [vmem:[%s19533_s10 + $0x1098] ss:$48 sps:$4 sm:$0xff]  }
 0x9ce   : > { %10645 = vmatprep.subr.bf16.mxu1 %v13927_v15  ;;  %v13991_v15 = vld [vmem:[%s19533_s10 + $0x560] ss:$48 sps:$4 sm:$0xff]  }
 0x9d0   : > { %10601 = vmatpush1.bf16.msra.mxu0 %v13922_v16  ;;  %v13996_v16 = vld [vmem:[%s19533_s10 + $0x10fc] ss:$48 sps:$4 sm:$0xff]  }
 0x9d1   : > { %10646 = vmatpush1.bf16.msra.mxu1 %v13925_v28  ;;  %10602 = vmatprep.subr.bf16.mxu0 %v13930_v24  ;;  %v13999_v28 = vld [vmem:[%s19533_s10 + $0x5c4] ss:$48 sps:$4 sm:$0xff]   ;;  %v13994_v24 = vld [vmem:[%s19533_s10 + $0x10f8] ss:$48 sps:$4 sm:$0xff]  }
 0x9d2   : > { %10647 = vmatprep.subr.bf16.mxu1 %v13933_v19  ;;  %v13997_v19 = vld [vmem:[%s19533_s10 + $0x5c0] ss:$48 sps:$4 sm:$0xff]  }
 0x9d4   : > { %10603 = vmatpush1.bf16.msra.mxu0 %v13928_v40  ;;  %v14002_v40 = vld [vmem:[%s19533_s10 + $0x115c] ss:$48 sps:$4 sm:$0xff]  }
 0x9d5   : > { %10648 = vmatpush1.bf16.msra.mxu1 %v13931_v33  ;;  %10604 = vmatprep.subr.bf16.mxu0 %v13936_v42  ;;  %v14005_v33 = vld [vmem:[%s19533_s10 + $0xc24] ss:$48 sps:$4 sm:$0xff]   ;;  %v14000_v42 = vld [vmem:[%s19533_s10 + $0x1158] ss:$48 sps:$4 sm:$0xff]  }
 0x9d6   : > { %10649 = vmatprep.subr.bf16.mxu1 %v13939_v22  ;;  %v14003_v22 = vld [vmem:[%s19533_s10 + $0xc20] ss:$48 sps:$4 sm:$0xff]  }
 0x9d7   : > { %v10345_v63 = vpop.f32.mrb[132].mxu1 }
 0x9d8   : > { %v10347_v31 = vpop.f32.mrb[133].mxu1  ;;  %10605 = vmatpush1.bf16.msra.mxu0 %v13934_v55  ;;  %v14008_v55 = vld [vmem:[%s19533_s10 + $0x11bc] ss:$48 sps:$4 sm:$0xff]  }
 0x9d9   : > { %v10349_v43 = vpop.f32.mrb[134].mxu1  ;;  %10650 = vmatpush1.bf16.msra.mxu1 %v13937_v60  ;;  %10606 = vmatprep.subr.bf16.mxu0 %v13942_v51  ;;  %v14011_v60 = vld [vmem:[%s19533_s10 + $0xc84] ss:$48 sps:$4 sm:$0xff]   ;;  %v14006_v51 = vld [vmem:[%s19533_s10 + $0x11b8] ss:$48 sps:$4 sm:$0xff]  }
 0x9da   : > { %v10350_v54 = vpop.f32.mrb[135].mxu1  ;;  %10651 = vmatprep.subr.bf16.mxu1 %v13945_v48  ;;  %v14009_v48 = vld [vmem:[%s19533_s10 + $0xc80] ss:$48 sps:$4 sm:$0xff]  }
 0x9db   : > { %v14015_v43 = vld [vmem:[%s19533_s10 + $0xce0] ss:$48 sps:$4 sm:$0xff]  }
 0x9dc   : > { %10607 = vmatpush1.bf16.msra.mxu0 %v13940_v29  ;;  %v14012_v29 = vld [vmem:[%s19533_s10 + $0x620] ss:$48 sps:$4 sm:$0xff]  }
 0x9dd   : > { %10652 = vmatpush1.bf16.msra.mxu1 %v13943_v4  ;;  %10608 = vmatprep.subr.bf16.mxu0 %v13948_v49  ;;  %v14020_v4 = vld [vmem:[%s19533_s10 + $0x684] ss:$48 sps:$4 sm:$0xff]   ;;  %v14018_v54 = vld [vmem:[%s19533_s10 + $0x680] ss:$48 sps:$4 sm:$0xff]  }
 0x9de   : > { %v10304_v34 = vpop.f32.mrb[132].mxu0  ;;  %10653 = vmatprep.subr.bf16.mxu1 %v13951_v39  ;;  %v14023_v49 = vld [vmem:[%s19533_s10 + $0xd44] ss:$48 sps:$4 sm:$0xff]   ;;  %v14021_v39 = vld [vmem:[%s19533_s10 + $0xd40] ss:$48 sps:$4 sm:$0xff]  }
 0x9df   : > { %v18808_v44 = vadd.f32 %v10345_v63, %v10304_v34  ;;  %v10306_v47 = vpop.f32.mrb[133].mxu0  ;;  %v14014_v63 = vld [vmem:[%s19533_s10 + $0x624] ss:$48 sps:$4 sm:$0xff]   ;;  %v14027_v34 = vld [vmem:[%s19533_s10 + $0xda0] ss:$48 sps:$4 sm:$0xff]  }
 0x9e0   : > { %v18810_v57 = vadd.f32 %v10347_v31, %v10306_v47  ;;  %v10308_v25 = vpop.f32.mrb[134].mxu0  ;;  %10609 = vmatpush1.bf16.msra.mxu0 %v13946_v10  ;;  %v14017_v31 = vld [vmem:[%s19533_s10 + $0xce4] ss:$48 sps:$4 sm:$0xff]  }
 0x9e1   : > { %10654 = vmatpush1.bf16.msra.mxu1 %v13949_v56  ;;  %v10309_v23 = vpop.f32.mrb[135].mxu0  ;;  %10610 = vmatprep.subr.bf16.mxu0 %v13954_v52  ;;  %v14026_v10 = vld [vmem:[%s19533_s10 + $0x6e4] ss:$48 sps:$4 sm:$0xff]   ;;  %v14024_v52 = vld [vmem:[%s19533_s10 + $0x6e0] ss:$48 sps:$4 sm:$0xff]  }
 0x9e2   : > { %10655 = vmatprep.subr.bf16.mxu1 %v13957_v8  ;;  %v14029_v56 = vld [vmem:[%s19533_s10 + $0xda4] ss:$48 sps:$4 sm:$0xff]   ;;  %v14030_v25 = vld [vmem:[%s19533_s10 + $0x740] ss:$48 sps:$4 sm:$0xff]  }
 0x9e3   : > { %v14032_v8 = vld [vmem:[%s19533_s10 + $0x744] ss:$48 sps:$4 sm:$0xff]  }
 0x9e4   : > { %10611 = vmatpush1.bf16.msra.mxu0 %v13952_v9  ;;  %v14035_v47 = vld [vmem:[%s19533_s10 + $0xe04] ss:$48 sps:$4 sm:$0xff]   ;;  %v14033_v9 = vld [vmem:[%s19533_s10 + $0xe00] ss:$48 sps:$4 sm:$0xff]  }
 0x9e5   : > { %10656 = vmatpush1.bf16.msra.mxu1 %v13955_v5  ;;  %10612 = vmatprep.subr.bf16.mxu0 %v13960_v41  ;;  %v14038_v23 = vld [vmem:[%s19533_s10 + $0x7a4] ss:$48 sps:$4 sm:$0xff]  }
 0x9e6   : > { %10657 = vmatprep.subr.bf16.mxu1 %v13963_v7  ;;  %v14041_v5 = vld [vmem:[%s19533_s10 + $0xe64] ss:$48 sps:$4 sm:$0xff]  }
 0x9e8   : > { %10613 = vmatpush1.bf16.msra.mxu0 %v13958_v27  ;;  %v14036_v27 = vld [vmem:[%s19533_s10 + $0x7a0] ss:$48 sps:$4 sm:$0xff]  }
 0x9e9   : > { %10658 = vmatpush1.bf16.msra.mxu1 %v13961_v59  ;;  %10614 = vmatprep.subr.bf16.mxu0 %v13966_v61  ;;  %v14039_v61 = vld [vmem:[%s19533_s10 + $0xe60] ss:$48 sps:$4 sm:$0xff]  }
 0x9ea   : > { %10659 = vmatprep.subr.bf16.mxu1 %v13969_v38  ;;  %v14044_v38 = vld [vmem:[%s19533_s10 + $0x804] ss:$48 sps:$4 sm:$0xff]  }
 0x9ec   : > { %10615 = vmatpush1.bf16.msra.mxu0 %v13964_v1 }
 0x9ed   : > { %10660 = vmatpush1.bf16.msra.mxu1 %v13967_v46  ;;  %10616 = vmatprep.subr.bf16.mxu0 %v13972_v17  ;;  %v14047_v46 = vld [vmem:[%s19533_s10 + $0xec4] ss:$48 sps:$4 sm:$0xff]   ;;  %v14042_v17 = vld [vmem:[%s19533_s10 + $0x800] ss:$48 sps:$4 sm:$0xff]  }
 0x9ee   : > { %10661 = vmatprep.subr.bf16.mxu1 %v13975_v0  ;;  %v14045_v0 = vld [vmem:[%s19533_s10 + $0xec0] ss:$48 sps:$4 sm:$0xff]  }
 0x9f0   : > { %10617 = vmatpush1.bf16.msra.mxu0 %v13970_v14  ;;  %v14050_v14 = vld [vmem:[%s19533_s10 + $0x864] ss:$48 sps:$4 sm:$0xff]  }
 0x9f1   : > { %10662 = vmatpush1.bf16.msra.mxu1 %v13973_v37  ;;  %10618 = vmatprep.subr.bf16.mxu0 %v13978_v12  ;;  %v14053_v12 = vld [vmem:[%s19533_s10 + $0xf24] ss:$48 sps:$4 sm:$0xff]  }
 0x9f2   : > { %10663 = vmatprep.subr.bf16.mxu1 %v13981_v32 }
 0x9f4   : > { %10619 = vmatpush1.bf16.msra.mxu0 %v13976_v50 }
 0x9f5   : > { %10664 = vmatpush1.bf16.msra.mxu1 %v13979_v21  ;;  %10620 = vmatprep.subr.bf16.mxu0 %v13984_v30 }
 0x9f6   : > { %10665 = vmatprep.subr.bf16.mxu1 %v13987_v62  ;;  %v14048_v62 = vld [vmem:[%s19533_s10 + $0x860] ss:$48 sps:$4 sm:$0xff]  }
 0x9f8   : > { %10621 = vmatpush1.bf16.msra.mxu0 %v13982_v26 }
 0x9f9   : > { %10666 = vmatpush1.bf16.msra.mxu1 %v13985_v2  ;;  %10622 = vmatprep.subr.bf16.mxu0 %v13990_v13  ;;  %v14051_v2 = vld [vmem:[%s19533_s10 + $0xf20] ss:$48 sps:$4 sm:$0xff]  }
 0x9fa   : > { %10667 = vmatprep.subr.bf16.mxu1 %v13993_v11 }
 0x9fc   : > { %10623 = vmatpush1.bf16.msra.mxu0 %v13988_v3  ;;  %v14054_v3 = vld [vmem:[%s19533_s10 + $0x8c0] ss:$48 sps:$4 sm:$0xff]  }
 0x9fd   : > { %10668 = vmatpush1.bf16.msra.mxu1 %v13991_v15  ;;  %10624 = vmatprep.subr.bf16.mxu0 %v13996_v16  ;;  %v14057_v15 = vld [vmem:[%s19533_s10 + $0xf80] ss:$48 sps:$4 sm:$0xff]   ;;  %v14062_v16 = vld [vmem:[%s19533_s10 + $0x924] ss:$48 sps:$4 sm:$0xff]  }
 0x9fe   : > { %10669 = vmatprep.subr.bf16.mxu1 %v13999_v28 }
 0xa00   : > { %10625 = vmatpush1.bf16.msra.mxu0 %v13994_v24  ;;  %v14065_v24 = vld [vmem:[%s19533_s10 + $0xfe4] ss:$48 sps:$4 sm:$0xff]  }
 0xa01   : > { %10670 = vmatpush1.bf16.msra.mxu1 %v13997_v19  ;;  %10626 = vmatprep.subr.bf16.mxu0 %v14002_v40  ;;  %v14060_v40 = vld [vmem:[%s19533_s10 + $0x920] ss:$48 sps:$4 sm:$0xff]  }
 0xa02   : > { %10721 = vmatprep.subr.bf16.mxu1 %v14005_v33  ;;  %v14063_v33 = vld [vmem:[%s19533_s10 + $0xfe0] ss:$48 sps:$4 sm:$0xff]  }
 0xa04   : > { %10672 = vmatmul.mubr.bf16.vlgmr.msra.gmra.mrb[148].mxu1 %v17662_v36  ;;  %10627 = vmatpush1.bf16.msra.mxu0 %v14000_v42  ;;  %v14068_v42 = vld [vmem:[%s19533_s10 + $0x984] ss:$48 sps:$4 sm:$0xff]  }
 0xa05   : > { %10722 = vmatpush1.bf16.msra.mxu1 %v14003_v22  ;;  %10753 = vmatprep.mubr.bf16.mxu1 %v17916_v58  ;;  %v14066_v22 = vld [vmem:[%s19533_s10 + $0x980] ss:$48 sps:$4 sm:$0xff]  }
 0xa06   : > { %10628 = vmatprep.subr.bf16.mxu0 %v14008_v55  ;;  %10723 = vmatprep.subr.bf16.mxu1 %v14011_v60  ;;  %v14069_v55 = vld [vmem:[%s19533_s10 + $0x1040] ss:$48 sps:$4 sm:$0xff]   ;;  %v14074_v60 = vld [vmem:[%s19533_s10 + $0x9e4] ss:$48 sps:$4 sm:$0xff]  }
 0xa08   : > { %10629 = vmatpush1.bf16.msra.mxu0 %v14006_v51  ;;  %v14077_v51 = vld [vmem:[%s19533_s10 + $0x10a4] ss:$48 sps:$4 sm:$0xff]  }
 0xa09   : > { %10724 = vmatpush1.bf16.msra.mxu1 %v14009_v48  ;;  %10680 = vmatprep.subr.bf16.mxu0 %v14014_v63  ;;  %v14072_v48 = vld [vmem:[%s19533_s10 + $0x9e0] ss:$48 sps:$4 sm:$0xff]  }
 0xa0a   : > { %10725 = vmatprep.subr.bf16.mxu1 %v14017_v31  ;;  %v14075_v63 = vld [vmem:[%s19533_s10 + $0x10a0] ss:$48 sps:$4 sm:$0xff]   ;;  %v14080_v31 = vld [vmem:[%s19533_s10 + $0xa44] ss:$48 sps:$4 sm:$0xff]  }
 0xa0b   : > { %10631 = vmatmul.mubr.bf16.vlgmr.msra.gmra.mrb[148].mxu0 %v17914_v18 }
 0xa0c   : > { %10681 = vmatpush1.bf16.msra.mxu0 %v14012_v29  ;;  %10712 = vmatprep.mubr.bf16.mxu0 %v17938_v20  ;;  %v14083_v29 = vld [vmem:[%s19533_s10 + $0x1104] ss:$48 sps:$4 sm:$0xff]  }
 0xa0d   : > { %10726 = vmatpush1.bf16.msra.mxu1 %v14015_v43  ;;  %10682 = vmatprep.subr.bf16.mxu0 %v14020_v4  ;;  %v14078_v43 = vld [vmem:[%s19533_s10 + $0xa40] ss:$48 sps:$4 sm:$0xff]  }
 0xa0e   : > { %10727 = vmatprep.subr.bf16.mxu1 %v14023_v49  ;;  %v14081_v4 = vld [vmem:[%s19533_s10 + $0x1100] ss:$48 sps:$4 sm:$0xff]   ;;  %v14086_v49 = vld [vmem:[%s19533_s10 + $0xaa4] ss:$48 sps:$4 sm:$0xff]  }
 0xa10   : > { %10683 = vmatpush1.bf16.msra.mxu0 %v14018_v54  ;;  %v14089_v54 = vld [vmem:[%s19533_s10 + $0x1164] ss:$48 sps:$4 sm:$0xff]  }
 0xa11   : > { %10728 = vmatpush1.bf16.msra.mxu1 %v14021_v39  ;;  %10684 = vmatprep.subr.bf16.mxu0 %v14026_v10  ;;  %v14084_v39 = vld [vmem:[%s19533_s10 + $0xaa0] ss:$48 sps:$4 sm:$0xff]  }
 0xa12   : > { %10729 = vmatprep.subr.bf16.mxu1 %v14029_v56  ;;  %v14087_v10 = vld [vmem:[%s19533_s10 + $0x1160] ss:$48 sps:$4 sm:$0xff]   ;;  %v14092_v56 = vld [vmem:[%s19533_s10 + $0xb04] ss:$48 sps:$4 sm:$0xff]  }
 0xa14   : > { %10685 = vmatpush1.bf16.msra.mxu0 %v14024_v52  ;;  %v14095_v52 = vld [vmem:[%s19533_s10 + $0x11c4] ss:$48 sps:$4 sm:$0xff]  }
 0xa15   : > { %10730 = vmatpush1.bf16.msra.mxu1 %v14027_v34  ;;  %10686 = vmatprep.subr.bf16.mxu0 %v14032_v8  ;;  %v14090_v34 = vld [vmem:[%s19533_s10 + $0xb00] ss:$48 sps:$4 sm:$0xff]  }
 0xa16   : > { %10731 = vmatprep.subr.bf16.mxu1 %v14035_v47  ;;  %v14093_v8 = vld [vmem:[%s19533_s10 + $0x11c0] ss:$48 sps:$4 sm:$0xff]   ;;  %v14098_v47 = vld [vmem:[%s19533_s10 + $0xb64] ss:$48 sps:$4 sm:$0xff]  }
 0xa17   : > { %v18984_v41 = vpop.f32.mrb[136].mxu1 }
 0xa18   : > { %v18986_v7 = vpop.f32.mrb[137].mxu1  ;;  %10687 = vmatpush1.bf16.msra.mxu0 %v14030_v25  ;;  %v14101_v25 = vld [vmem:[%s19533_s10 + $0x62c] ss:$48 sps:$4 sm:$0xff]  }
 0xa19   : > { %v10431_v59 = vpop.f32.mrb[138].mxu1  ;;  %10732 = vmatpush1.bf16.msra.mxu1 %v14033_v9  ;;  %10688 = vmatprep.subr.bf16.mxu0 %v14038_v23  ;;  %v14096_v9 = vld [vmem:[%s19533_s10 + $0xb60] ss:$48 sps:$4 sm:$0xff]   ;;  %v14099_v23 = vld [vmem:[%s19533_s10 + $0x628] ss:$48 sps:$4 sm:$0xff]  }
 0xa1a   : > { %v10432_v1 = vpop.f32.mrb[139].mxu1  ;;  %10733 = vmatprep.subr.bf16.mxu1 %v14041_v5  ;;  %v14104_v5 = vld [vmem:[%s19533_s10 + $0xbc4] ss:$48 sps:$4 sm:$0xff]   ;;  %v14102_v59 = vld [vmem:[%s19533_s10 + $0xbc0] ss:$48 sps:$4 sm:$0xff]  }
 0xa1b   : > { %v14113_v1 = vld [vmem:[%s19533_s10 + $0x6ec] ss:$48 sps:$4 sm:$0xff]  }
 0xa1c   : > { %10689 = vmatpush1.bf16.msra.mxu0 %v14036_v27  ;;  %v14107_v27 = vld [vmem:[%s19533_s10 + $0x68c] ss:$48 sps:$4 sm:$0xff]  }
 0xa1d   : > { %10734 = vmatpush1.bf16.msra.mxu1 %v14039_v61  ;;  %10690 = vmatprep.subr.bf16.mxu0 %v14044_v38  ;;  %v14105_v61 = vld [vmem:[%s19533_s10 + $0x688] ss:$48 sps:$4 sm:$0xff]   ;;  %v14110_v38 = vld [vmem:[%s19533_s10 + $0x2c] ss:$48 sps:$4 sm:$0xff]  }
 0xa1e   : > { %v10386_v37 = vpop.f32.mrb[136].mxu0  ;;  %10735 = vmatprep.subr.bf16.mxu1 %v14047_v46  ;;  %v14108_v46 = vld [vmem:[%s19533_s10 + $0x28] ss:$48 sps:$4 sm:$0xff]  }
 0xa1f   : > { %v10387_v32 = vadd.f32 %v10386_v37, %v18808_v44  ;;  %v10388_v50 = vpop.f32.mrb[137].mxu0  ;;  %v14056_v44 = vld [vmem:[%s19533_s10 + $0x8c4] ss:$48 sps:$4 sm:$0xff]   ;;  %v14117_v37 = vld [vmem:[%s19533_s10 + $0x748] ss:$48 sps:$4 sm:$0xff]  }
 0xa20   : > { %v10389_v21 = vadd.f32 %v10388_v50, %v18810_v57  ;;  %v10390_v30 = vpop.f32.mrb[138].mxu0  ;;  %10691 = vmatpush1.bf16.msra.mxu0 %v14042_v17  ;;  %v14059_v57 = vld [vmem:[%s19533_s10 + $0xf84] ss:$48 sps:$4 sm:$0xff]   ;;  %v14116_v17 = vld [vmem:[%s19533_s10 + $0x8c] ss:$48 sps:$4 sm:$0xff]  }
 0xa21   : > { %10736 = vmatpush1.bf16.msra.mxu1 %v14045_v0  ;;  %v10391_v26 = vpop.f32.mrb[139].mxu0  ;;  %10692 = vmatprep.subr.bf16.mxu0 %v14050_v14  ;;  %v14119_v0 = vld [vmem:[%s19533_s10 + $0x74c] ss:$48 sps:$4 sm:$0xff]   ;;  %v14114_v14 = vld [vmem:[%s19533_s10 + $0x88] ss:$48 sps:$4 sm:$0xff]  }
 0xa22   : > { %v10890_v13 = vrot.slane %v10389_v21, 1  ;;  %10737 = vmatprep.subr.bf16.mxu1 %v14053_v12  ;;  %v14122_v12 = vld [vmem:[%s19533_s10 + $0xec] ss:$48 sps:$4 sm:$0xff]   ;;  %v14123_v50 = vld [vmem:[%s19533_s10 + $0x7a8] ss:$48 sps:$4 sm:$0xff]  }
 0xa23   : > { %v14128_v21 = vld [vmem:[%s19533_s10 + $0x14c] ss:$48 sps:$4 sm:$0xff]   ;;  %v14129_v26 = vld [vmem:[%s19533_s10 + $0x808] ss:$48 sps:$4 sm:$0xff]  }
 0xa24   : > { %v10892_v11 = vadd.f32 %v10890_v13, %v10387_v32  ;;  %10693 = vmatpush1.bf16.msra.mxu0 %v14048_v62  ;;  %v14125_v32 = vld [vmem:[%s19533_s10 + $0x7ac] ss:$48 sps:$4 sm:$0xff]   ;;  %v14126_v62 = vld [vmem:[%s19533_s10 + $0x148] ss:$48 sps:$4 sm:$0xff]  }
 0xa25   : > { %10738 = vmatpush1.bf16.msra.mxu1 %v14051_v2  ;;  %10694 = vmatprep.subr.bf16.mxu0 %v14056_v44  ;;  %v14131_v30 = vld [vmem:[%s19533_s10 + $0x80c] ss:$48 sps:$4 sm:$0xff]  }
 0xa26   : > { %v10910_v28 = vrot.slane %v10892_v11, 2  ;;  %10739 = vmatprep.subr.bf16.mxu1 %v14059_v57  ;;  %v14134_v2 = vld [vmem:[%s19533_s10 + $0x1ac] ss:$48 sps:$4 sm:$0xff]   ;;  %v14132_v11 = vld [vmem:[%s19533_s10 + $0x1a8] ss:$48 sps:$4 sm:$0xff]  }
 0xa27   : > { %v14137_v44 = vld [vmem:[%s19533_s10 + $0x86c] ss:$48 sps:$4 sm:$0xff]  }
 0xa28   : > { %v19039_v19 = vadd.f32 %v10910_v28, %v18631_v45  ;;  %10695 = vmatpush1.bf16.msra.mxu0 %v14054_v3  ;;  %v14071_v45 = vld [vmem:[%s19533_s10 + $0x1044] ss:$48 sps:$4 sm:$0xff]  }
 0xa29   : > { %10740 = vmatpush1.bf16.msra.mxu1 %v14057_v15  ;;  %10696 = vmatprep.subr.bf16.mxu0 %v14062_v16  ;;  %v14135_v15 = vld [vmem:[%s19533_s10 + $0x868] ss:$48 sps:$4 sm:$0xff]   ;;  %v14140_v16 = vld [vmem:[%s19533_s10 + $0x20c] ss:$48 sps:$4 sm:$0xff]  }
 0xa2a   : > { %10741 = vmatprep.subr.bf16.mxu1 %v14065_v24  ;;  %v14143_v24 = vld [vmem:[%s19533_s10 + $0x8cc] ss:$48 sps:$4 sm:$0xff]  }
 0xa2c   : > { %10697 = vmatpush1.bf16.msra.mxu0 %v14060_v40  ;;  %v14138_v40 = vld [vmem:[%s19533_s10 + $0x208] ss:$48 sps:$4 sm:$0xff]  }
 0xa2d   : > { %10742 = vmatpush1.bf16.msra.mxu1 %v14063_v33  ;;  %10698 = vmatprep.subr.bf16.mxu0 %v14068_v42  ;;  %v14141_v33 = vld [vmem:[%s19533_s10 + $0x8c8] ss:$48 sps:$4 sm:$0xff]   ;;  %v14146_v42 = vld [vmem:[%s19533_s10 + $0x26c] ss:$48 sps:$4 sm:$0xff]  }
 0xa2e   : > { %10743 = vmatprep.subr.bf16.mxu1 %v14071_v45 }
 0xa30   : > { %10699 = vmatpush1.bf16.msra.mxu0 %v14066_v22  ;;  %v14149_v22 = vld [vmem:[%s19533_s10 + $0x92c] ss:$48 sps:$4 sm:$0xff]  }
 0xa31   : > { %10744 = vmatpush1.bf16.msra.mxu1 %v14069_v55  ;;  %10700 = vmatprep.subr.bf16.mxu0 %v14074_v60 }
 0xa32   : > { %10745 = vmatprep.subr.bf16.mxu1 %v14077_v51 }
 0xa34   : > { %10701 = vmatpush1.bf16.msra.mxu0 %v14072_v48 }
 0xa35   : > { %10746 = vmatpush1.bf16.msra.mxu1 %v14075_v63  ;;  %10702 = vmatprep.subr.bf16.mxu0 %v14080_v31  ;;  %v14144_v63 = vld [vmem:[%s19533_s10 + $0x268] ss:$48 sps:$4 sm:$0xff]  }
 0xa36   : > { %10747 = vmatprep.subr.bf16.mxu1 %v14083_v29 }
 0xa38   : > { %10703 = vmatpush1.bf16.msra.mxu0 %v14078_v43  ;;  %v14147_v43 = vld [vmem:[%s19533_s10 + $0x928] ss:$48 sps:$4 sm:$0xff]  }
 0xa39   : > { %10748 = vmatpush1.bf16.msra.mxu1 %v14081_v4  ;;  %10704 = vmatprep.subr.bf16.mxu0 %v14086_v49 }
 0xa3a   : > { %10749 = vmatprep.subr.bf16.mxu1 %v14089_v54  ;;  %v14150_v54 = vld [vmem:[%s19533_s10 + $0x2c8] ss:$48 sps:$4 sm:$0xff]  }
 0xa3c   : > { %10705 = vmatpush1.bf16.msra.mxu0 %v14084_v39  ;;  %v14153_v39 = vld [vmem:[%s19533_s10 + $0x988] ss:$48 sps:$4 sm:$0xff]  }
 0xa3d   : > { %10750 = vmatpush1.bf16.msra.mxu1 %v14087_v10  ;;  %10706 = vmatprep.subr.bf16.mxu0 %v14092_v56  ;;  %v14158_v10 = vld [vmem:[%s19533_s10 + $0x32c] ss:$48 sps:$4 sm:$0xff]  }
 0xa3e   : > { %10751 = vmatprep.subr.bf16.mxu1 %v14095_v52  ;;  %v14161_v52 = vld [vmem:[%s19533_s10 + $0x9ec] ss:$48 sps:$4 sm:$0xff]  }
 0xa40   : > { %10707 = vmatpush1.bf16.msra.mxu0 %v14090_v34  ;;  %v14156_v34 = vld [vmem:[%s19533_s10 + $0x328] ss:$48 sps:$4 sm:$0xff]  }
 0xa41   : > { %10752 = vmatpush1.bf16.msra.mxu1 %v14093_v8  ;;  %10708 = vmatprep.subr.bf16.mxu0 %v14098_v47  ;;  %v14159_v8 = vld [vmem:[%s19533_s10 + $0x9e8] ss:$48 sps:$4 sm:$0xff]   ;;  %v14164_v47 = vld [vmem:[%s19533_s10 + $0x38c] ss:$48 sps:$4 sm:$0xff]  }
 0xa42   : > { %10803 = vmatprep.subr.bf16.mxu1 %v14101_v25  ;;  %v14167_v25 = vld [vmem:[%s19533_s10 + $0xa4c] ss:$48 sps:$4 sm:$0xff]  }
 0xa44   : > { %10754 = vmatmul.mubr.bf16.vlgmr.msra.gmra.mrb[152].mxu1 %v17914_v18  ;;  %10709 = vmatpush1.bf16.msra.mxu0 %v14096_v9  ;;  %v14162_v9 = vld [vmem:[%s19533_s10 + $0x388] ss:$48 sps:$4 sm:$0xff]  }
 0xa45   : > { %10804 = vmatpush1.bf16.msra.mxu1 %v14099_v23  ;;  %10835 = vmatprep.mubr.bf16.mxu1 %v17938_v20  ;;  %v14111_v20 = vld [vmem:[%s19533_s10 + $0x6e8] ss:$48 sps:$4 sm:$0xff]  }
 0xa46   : > { %10710 = vmatprep.subr.bf16.mxu0 %v14104_v5  ;;  %10805 = vmatprep.subr.bf16.mxu1 %v14107_v27  ;;  %v14165_v23 = vld [vmem:[%s19533_s10 + $0xa48] ss:$48 sps:$4 sm:$0xff]   ;;  %v14170_v5 = vld [vmem:[%s19533_s10 + $0x3ec] ss:$48 sps:$4 sm:$0xff]  }
 0xa47   : > { %v14173_v27 = vld [vmem:[%s19533_s10 + $0xaac] ss:$48 sps:$4 sm:$0xff]  }
 0xa48   : > { %10711 = vmatpush1.bf16.msra.mxu0 %v14102_v59  ;;  %v14168_v59 = vld [vmem:[%s19533_s10 + $0x3e8] ss:$48 sps:$4 sm:$0xff]  }
 0xa49   : > { %10806 = vmatpush1.bf16.msra.mxu1 %v14105_v61  ;;  %10762 = vmatprep.subr.bf16.mxu0 %v14110_v38  ;;  %v14171_v61 = vld [vmem:[%s19533_s10 + $0xaa8] ss:$48 sps:$4 sm:$0xff]   ;;  %v14176_v38 = vld [vmem:[%s19533_s10 + $0x44c] ss:$48 sps:$4 sm:$0xff]  }
 0xa4a   : > { %10807 = vmatprep.subr.bf16.mxu1 %v14113_v1  ;;  %v14179_v1 = vld [vmem:[%s19533_s10 + $0xb0c] ss:$48 sps:$4 sm:$0xff]  }
 0xa4b   : > { %10713 = vmatmul.mubr.bf16.vlgmr.msra.gmra.mrb[152].mxu0 %v17936_v53 }
 0xa4c   : > { %10763 = vmatpush1.bf16.msra.mxu0 %v14108_v46  ;;  %10794 = vmatprep.mubr.bf16.mxu0 %v17670_v6  ;;  %v14120_v6 = vld [vmem:[%s19533_s10 + $0xe8] ss:$48 sps:$4 sm:$0xff]  }
 0xa4d   : > { %10808 = vmatpush1.bf16.msra.mxu1 %v14111_v20  ;;  %10764 = vmatprep.subr.bf16.mxu0 %v14116_v17  ;;  %v14174_v46 = vld [vmem:[%s19533_s10 + $0x448] ss:$48 sps:$4 sm:$0xff]   ;;  %v14182_v17 = vld [vmem:[%s19533_s10 + $0x4ac] ss:$48 sps:$4 sm:$0xff]  }
 0xa4e   : > { %10809 = vmatprep.subr.bf16.mxu1 %v14119_v0  ;;  %v14177_v20 = vld [vmem:[%s19533_s10 + $0xb08] ss:$48 sps:$4 sm:$0xff]   ;;  %v14185_v0 = vld [vmem:[%s19533_s10 + $0xb6c] ss:$48 sps:$4 sm:$0xff]  }
 0xa50   : > { %10765 = vmatpush1.bf16.msra.mxu0 %v14114_v14  ;;  %v14180_v14 = vld [vmem:[%s19533_s10 + $0x4a8] ss:$48 sps:$4 sm:$0xff]  }
 0xa51   : > { %10810 = vmatpush1.bf16.msra.mxu1 %v14117_v37  ;;  %10766 = vmatprep.subr.bf16.mxu0 %v14122_v12  ;;  %v14183_v37 = vld [vmem:[%s19533_s10 + $0xb68] ss:$48 sps:$4 sm:$0xff]   ;;  %v14188_v12 = vld [vmem:[%s19533_s10 + $0x50c] ss:$48 sps:$4 sm:$0xff]  }
 0xa52   : > { %10811 = vmatprep.subr.bf16.mxu1 %v14125_v32  ;;  %v14191_v32 = vld [vmem:[%s19533_s10 + $0xbcc] ss:$48 sps:$4 sm:$0xff]  }
 0xa54   : > { %10767 = vmatpush1.bf16.msra.mxu0 %v14120_v6  ;;  %v14186_v6 = vld [vmem:[%s19533_s10 + $0x508] ss:$48 sps:$4 sm:$0xff]  }
 0xa55   : > { %10812 = vmatpush1.bf16.msra.mxu1 %v14123_v50  ;;  %10768 = vmatprep.subr.bf16.mxu0 %v14128_v21  ;;  %v14189_v50 = vld [vmem:[%s19533_s10 + $0xbc8] ss:$48 sps:$4 sm:$0xff]   ;;  %v14194_v21 = vld [vmem:[%s19533_s10 + $0x56c] ss:$48 sps:$4 sm:$0xff]  }
 0xa56   : > { %10813 = vmatprep.subr.bf16.mxu1 %v14131_v30  ;;  %v14192_v30 = vld [vmem:[%s19533_s10 + $0x568] ss:$48 sps:$4 sm:$0xff]  }
 0xa57   : > { %v10509_v13 = vpop.f32.mrb[140].mxu1 }
 0xa58   : > { %v10511_v57 = vpop.f32.mrb[141].mxu1  ;;  %10769 = vmatpush1.bf16.msra.mxu0 %v14126_v62  ;;  %v14197_v62 = vld [vmem:[%s19533_s10 + $0x5cc] ss:$48 sps:$4 sm:$0xff]  }
 0xa59   : > { %v10513_v3 = vpop.f32.mrb[142].mxu1  ;;  %10814 = vmatpush1.bf16.msra.mxu1 %v14129_v26  ;;  %10770 = vmatprep.subr.bf16.mxu0 %v14134_v2  ;;  %v14195_v26 = vld [vmem:[%s19533_s10 + $0x5c8] ss:$48 sps:$4 sm:$0xff]   ;;  %v14200_v2 = vld [vmem:[%s19533_s10 + $0xc2c] ss:$48 sps:$4 sm:$0xff]  }
 0xa5a   : > { %v10514_v28 = vpop.f32.mrb[143].mxu1  ;;  %10815 = vmatprep.subr.bf16.mxu1 %v14137_v44  ;;  %v14198_v44 = vld [vmem:[%s19533_s10 + $0xc28] ss:$48 sps:$4 sm:$0xff]   ;;  %v14212_v3 = vld [vmem:[%s19533_s10 + $0xdac] ss:$48 sps:$4 sm:$0xff]  }
 0xa5b   : > { %v14210_v28 = vld [vmem:[%s19533_s10 + $0xda8] ss:$48 sps:$4 sm:$0xff]  }
 0xa5c   : > { %10771 = vmatpush1.bf16.msra.mxu0 %v14132_v11  ;;  %v14204_v11 = vld [vmem:[%s19533_s10 + $0xce8] ss:$48 sps:$4 sm:$0xff]  }
 0xa5d   : > { %10816 = vmatpush1.bf16.msra.mxu1 %v14135_v15  ;;  %10772 = vmatprep.subr.bf16.mxu0 %v14140_v16 }
 0xa5e   : > { %v10468_v45 = vpop.f32.mrb[140].mxu0  ;;  %10817 = vmatprep.subr.bf16.mxu1 %v14143_v24 }
 0xa5f   : > { %v10469_v55 = vadd.f32 %v10468_v45, %v18984_v41  ;;  %v10470_v60 = vpop.f32.mrb[141].mxu0  ;;  %v14152_v41 = vld [vmem:[%s19533_s10 + $0x2cc] ss:$48 sps:$4 sm:$0xff]  }
 0xa60   : > { %v10471_v51 = vadd.f32 %v10470_v60, %v18986_v7  ;;  %v10472_v48 = vpop.f32.mrb[142].mxu0  ;;  %10773 = vmatpush1.bf16.msra.mxu0 %v14138_v40  ;;  %v14155_v7 = vld [vmem:[%s19533_s10 + $0x98c] ss:$48 sps:$4 sm:$0xff]  }
 0xa61   : > { %v10510_v31 = vadd.f32 %v10509_v13, %v10469_v55  ;;  %10818 = vmatpush1.bf16.msra.mxu1 %v14141_v33  ;;  %v10473_v29 = vpop.f32.mrb[143].mxu0  ;;  %10774 = vmatprep.subr.bf16.mxu0 %v14146_v42  ;;  %v14201_v13 = vld [vmem:[%s19533_s10 + $0xc88] ss:$48 sps:$4 sm:$0xff]   ;;  %v14215_v40 = vld [vmem:[%s19533_s10 + $0xe0c] ss:$48 sps:$4 sm:$0xff]  }
 0xa62   : > { %v10512_v4 = vadd.f32 %v10511_v57, %v10471_v51  ;;  %10819 = vmatprep.subr.bf16.mxu1 %v14149_v22  ;;  %v14206_v57 = vld [vmem:[%s19533_s10 + $0xcec] ss:$48 sps:$4 sm:$0xff]   ;;  %v14213_v42 = vld [vmem:[%s19533_s10 + $0xe08] ss:$48 sps:$4 sm:$0xff]  }
 0xa63   : > { %v14218_v45 = vld [vmem:[%s19533_s10 + $0xe6c] ss:$48 sps:$4 sm:$0xff]  }
 0xa64   : > { %v10894_v49 = vrot.slane %v10512_v4, 1  ;;  %10775 = vmatpush1.bf16.msra.mxu0 %v14144_v63  ;;  %v14216_v63 = vld [vmem:[%s19533_s10 + $0xe68] ss:$48 sps:$4 sm:$0xff]   ;;  %v14221_v29 = vld [vmem:[%s19533_s10 + $0xecc] ss:$48 sps:$4 sm:$0xff]  }
 0xa65   : > { %10820 = vmatpush1.bf16.msra.mxu1 %v14147_v43  ;;  %10776 = vmatprep.subr.bf16.mxu0 %v14152_v41  ;;  %v14219_v43 = vld [vmem:[%s19533_s10 + $0xec8] ss:$48 sps:$4 sm:$0xff]   ;;  %v14224_v41 = vld [vmem:[%s19533_s10 + $0xf2c] ss:$48 sps:$4 sm:$0xff]  }
 0xa66   : > { %v19236_v56 = vadd.f32 %v10894_v49, %v10510_v31  ;;  %10821 = vmatprep.subr.bf16.mxu1 %v14155_v7  ;;  %v14222_v4 = vld [vmem:[%s19533_s10 + $0xf28] ss:$48 sps:$4 sm:$0xff]   ;;  %v14227_v7 = vld [vmem:[%s19533_s10 + $0xf8c] ss:$48 sps:$4 sm:$0xff]  }
 0xa67   : > { %v14225_v49 = vld [vmem:[%s19533_s10 + $0xf88] ss:$48 sps:$4 sm:$0xff]  }
 0xa68   : > { %10777 = vmatpush1.bf16.msra.mxu0 %v14150_v54  ;;  %v14230_v54 = vld [vmem:[%s19533_s10 + $0xfec] ss:$48 sps:$4 sm:$0xff]  }
 0xa69   : > { %10822 = vmatpush1.bf16.msra.mxu1 %v14153_v39  ;;  %10778 = vmatprep.subr.bf16.mxu0 %v14158_v10  ;;  %v14228_v39 = vld [vmem:[%s19533_s10 + $0xfe8] ss:$48 sps:$4 sm:$0xff]   ;;  %v14233_v10 = vld [vmem:[%s19533_s10 + $0x104c] ss:$48 sps:$4 sm:$0xff]  }
 0xa6a   : > { %10823 = vmatprep.subr.bf16.mxu1 %v14161_v52  ;;  %v14231_v52 = vld [vmem:[%s19533_s10 + $0x1048] ss:$48 sps:$4 sm:$0xff]  }
 0xa6c   : > { %10779 = vmatpush1.bf16.msra.mxu0 %v14156_v34  ;;  %v14236_v34 = vld [vmem:[%s19533_s10 + $0x10ac] ss:$48 sps:$4 sm:$0xff]  }
 0xa6d   : > { %10824 = vmatpush1.bf16.msra.mxu1 %v14159_v8  ;;  %10780 = vmatprep.subr.bf16.mxu0 %v14164_v47  ;;  %v14234_v8 = vld [vmem:[%s19533_s10 + $0x10a8] ss:$48 sps:$4 sm:$0xff]   ;;  %v14239_v47 = vld [vmem:[%s19533_s10 + $0x110c] ss:$48 sps:$4 sm:$0xff]  }
 0xa6e   : > { %10825 = vmatprep.subr.bf16.mxu1 %v14167_v25  ;;  %v14237_v25 = vld [vmem:[%s19533_s10 + $0x1108] ss:$48 sps:$4 sm:$0xff]  }
 0xa70   : > { %10781 = vmatpush1.bf16.msra.mxu0 %v14162_v9  ;;  %v14242_v9 = vld [vmem:[%s19533_s10 + $0x116c] ss:$48 sps:$4 sm:$0xff]  }
 0xa71   : > { %10826 = vmatpush1.bf16.msra.mxu1 %v14165_v23  ;;  %10782 = vmatprep.subr.bf16.mxu0 %v14170_v5  ;;  %v14240_v23 = vld [vmem:[%s19533_s10 + $0x1168] ss:$48 sps:$4 sm:$0xff]   ;;  %v14245_v5 = vld [vmem:[%s19533_s10 + $0x11cc] ss:$48 sps:$4 sm:$0xff]  }
 0xa72   : > { %10827 = vmatprep.subr.bf16.mxu1 %v14173_v27  ;;  %v14243_v27 = vld [vmem:[%s19533_s10 + $0x11c8] ss:$48 sps:$4 sm:$0xff]  }
 0xa74   : > { %10783 = vmatpush1.bf16.msra.mxu0 %v14168_v59 }
 0xa75   : > { %10828 = vmatpush1.bf16.msra.mxu1 %v14171_v61  ;;  %10784 = vmatprep.subr.bf16.mxu0 %v14176_v38 }
 0xa76   : > { %10829 = vmatprep.subr.bf16.mxu1 %v14179_v1 }
 0xa78   : > { %10785 = vmatpush1.bf16.msra.mxu0 %v14174_v46 }
 0xa79   : > { %10830 = vmatpush1.bf16.msra.mxu1 %v14177_v20  ;;  %10786 = vmatprep.subr.bf16.mxu0 %v14182_v17 }
 0xa7a   : > { %10831 = vmatprep.subr.bf16.mxu1 %v14185_v0 }
 0xa7c   : > { %10787 = vmatpush1.bf16.msra.mxu0 %v14180_v14 }
 0xa7d   : > { %10832 = vmatpush1.bf16.msra.mxu1 %v14183_v37  ;;  %10788 = vmatprep.subr.bf16.mxu0 %v14188_v12 }
 0xa7e   : > { %10833 = vmatprep.subr.bf16.mxu1 %v14191_v32  ;;  %v10929_v32 = vld [vmem:[%s19535_s12] sm:$0xff] }
 0xa80   : > { %10789 = vmatpush1.bf16.msra.mxu0 %v14186_v6  ;;  %v10930_v6 = vld [vmem:[%s19535_s12 + $0x8] sm:$0xff] }
 0xa81   : > { %10834 = vmatpush1.bf16.msra.mxu1 %v14189_v50  ;;  %10790 = vmatprep.subr.bf16.mxu0 %v14194_v21  ;;  %v14843_v50 = vmov 0.0|0.0   ;;  %v12512_v21 = vpack.c.bf16 %v10930_v6, %v10929_v32  ;;  %v10926_v32 = vld [vmem:[#allocation14] sm:$0x1] }
 0xa82   : > { %12511 = vmatprep.subr.bf16.mxu1 %v14843_v50 }
 0xa84   : > { %10836 = vmatmul.mubr.bf16.vlgmr.msra.gmra.mrb[156].mxu1 %v17936_v53  ;;  %10791 = vmatpush1.bf16.msra.mxu0 %v14192_v30  ;;  %v14203_v53 = vld [vmem:[%s19533_s10 + $0xc8c] ss:$48 sps:$4 sm:$0xff]  }
 0xa85   : > { %10792 = vmatprep.subr.bf16.mxu0 %v14197_v62  ;;  %v10932_v30 = vld [vmem:[%s19535_s12 + $0x18] sm:$0xff]  ;;  %12513 = vmatpush3.bf16.msra.mxu1 %v12512_v21  ;;  %v10945_v21 = vld [vmem:[#allocation16] sm:$0x1] }
 0xa86   : > { %12514 = vmatprep.subr.bf16.mxu1 %v14843_v50  ;;  %12484 = vmatprep.mubr.msk.f32.mxu1 %vm14844_vm7, %v14842_v35 }
 0xa88   : > { %10793 = vmatpush1.bf16.msra.mxu0 %v14195_v26 }
 0xa89   : > { %10844 = vmatprep.subr.bf16.mxu0 %v14200_v2 }
 0xa8b   : > { %10795 = vmatmul.mubr.bf16.vlgmr.msra.gmra.mrb[156].mxu0 %v17662_v36  ;;  %v14209_v36 = vld [vmem:[%s19533_s10 + $0xd4c] ss:$48 sps:$4 sm:$0xff]  }
 0xa8c   : > { %10845 = vmatpush1.bf16.msra.mxu0 %v14198_v44  ;;  %10876 = vmatprep.mubr.bf16.mxu0 %v17916_v58  ;;  %v14207_v58 = vld [vmem:[%s19533_s10 + $0xd48] ss:$48 sps:$4 sm:$0xff]   ;;  %v10933_v44 = vld [vmem:[%s19535_s12 + $0x20] sm:$0xff] }
 0xa8d   : > { %10846 = vmatprep.subr.bf16.mxu0 %v14203_v53  ;;  %v10934_v53 = vld [vmem:[%s19535_s12 + $0x28] sm:$0xff] }
 0xa90   : > { %10847 = vmatpush1.bf16.msra.mxu0 %v14201_v13 }
 0xa91   : > { %10848 = vmatprep.subr.bf16.mxu0 %v14206_v57  ;;  %v12518_v57 = vpack.c.bf16 %v10934_v53, %v10933_v44 }
 0xa94   : > { %10849 = vmatpush1.bf16.msra.mxu0 %v14204_v11 }
 0xa95   : > { %10850 = vmatprep.subr.bf16.mxu0 %v14209_v36 }
 0xa97   : > { %v10591_v15 = vpop.f32.mrb[144].mxu1 }
 0xa98   : > { %v10593_v16 = vpop.f32.mrb[145].mxu1  ;;  %10851 = vmatpush1.bf16.msra.mxu0 %v14207_v58 }
 0xa99   : > { %v10595_v24 = vpop.f32.mrb[146].mxu1  ;;  %10852 = vmatprep.subr.bf16.mxu0 %v14212_v3 }
 0xa9a   : > { %v10596_v33 = vpop.f32.mrb[147].mxu1 }
 0xa9c   : > { %10853 = vmatpush1.bf16.msra.mxu0 %v14210_v28  ;;  %v10935_v28 = vld [vmem:[%s19535_s12 + $0x30] sm:$0xff] }
 0xa9d   : > { %10854 = vmatprep.subr.bf16.mxu0 %v14215_v40 }
 0xa9e   : > { %v10550_v22 = vpop.f32.mrb[144].mxu0 }
 0xa9f   : > { %v10592_v55 = vadd.f32 %v10591_v15, %v10550_v22  ;;  %v10552_v60 = vpop.f32.mrb[145].mxu0  ;;  %v10937_v22 = vld [vmem:[%s19535_s12 + $0x40] sm:$0xff] }
 0xaa0   : > { %v10594_v51 = vadd.f32 %v10593_v16, %v10552_v60  ;;  %v10554_v48 = vpop.f32.mrb[146].mxu0  ;;  %10855 = vmatpush1.bf16.msra.mxu0 %v14213_v42 }
 0xaa1   : > { %v10555_v31 = vpop.f32.mrb[147].mxu0  ;;  %10856 = vmatprep.subr.bf16.mxu0 %v14218_v45 }
 0xaa2   : > { %v10939_v31 = vld [vmem:[%s19535_s12 + $0x50] sm:$0xff] }
 0xaa4   : > { %10857 = vmatpush1.bf16.msra.mxu0 %v14216_v63 }
 0xaa5   : > { %10858 = vmatprep.subr.bf16.mxu0 %v14221_v29  ;;  %v10940_v29 = vld [vmem:[%s19535_s12 + $0x58] sm:$0xff] }
 0xaa8   : > { %10859 = vmatpush1.bf16.msra.mxu0 %v14219_v43 }
 0xaa9   : > { %10860 = vmatprep.subr.bf16.mxu0 %v14224_v41  ;;  %v12527_v41 = vpack.c.bf16 %v10940_v29, %v10939_v31 }
 0xaac   : > { %10861 = vmatpush1.bf16.msra.mxu0 %v14222_v4 }
 0xaad   : > { %10862 = vmatprep.subr.bf16.mxu0 %v14227_v7  ;;  %v10941_v7 = vld [vmem:[%s19535_s12 + $0x60] sm:$0xff] }
 0xab0   : > { %10863 = vmatpush1.bf16.msra.mxu0 %v14225_v49  ;;  %v10942_v49 = vld [vmem:[%s19535_s12 + $0x68] sm:$0xff] }
 0xab1   : > { %10864 = vmatprep.subr.bf16.mxu0 %v14230_v54  ;;  %v12530_v54 = vpack.c.bf16 %v10942_v49, %v10941_v7 }
 0xab4   : > { %10865 = vmatpush1.bf16.msra.mxu0 %v14228_v39  ;;  %v10943_v39 = vld [vmem:[%s19535_s12 + $0x70] sm:$0xff] }
 0xab5   : > { %10866 = vmatprep.subr.bf16.mxu0 %v14233_v10  ;;  %v10944_v10 = vld [vmem:[%s19535_s12 + $0x78] sm:$0xff] }
 0xab8   : > { %10867 = vmatpush1.bf16.msra.mxu0 %v14231_v52  ;;  %v12533_v52 = vpack.c.bf16 %v10944_v10, %v10943_v39 }
 0xab9   : > { %10868 = vmatprep.subr.bf16.mxu0 %v14236_v34 }
 0xabc   : > { %10869 = vmatpush1.bf16.msra.mxu0 %v14234_v8 }
 0xabd   : > { %10870 = vmatprep.subr.bf16.mxu0 %v14239_v47 }
 0xac0   : > { %10871 = vmatpush1.bf16.msra.mxu0 %v14237_v25 }
 0xac1   : > { %10872 = vmatprep.subr.bf16.mxu0 %v14242_v9 }
 0xac4   : > { %10873 = vmatpush1.bf16.msra.mxu0 %v14240_v23 }
 0xac5   : > { %10874 = vmatprep.subr.bf16.mxu0 %v14245_v5 }
 0xac8   : > { %10875 = vmatpush1.bf16.msra.mxu0 %v14243_v27 }
 0xacb   : > { %10877 = vmatmul.mubr.bf16.vlgmr.msra.gmra.mrb[160].mxu0 %v17914_v18  ;;  %v10931_v18 = vld [vmem:[%s19535_s12 + $0x10] sm:$0xff] }
 0xacc   : > { %v12515_v26 = vpack.c.bf16 %v10932_v30, %v10931_v18 }
 0xace   : > { %12516 = vmatpush3.bf16.msra.mxu1 %v12515_v26 }
 0xacf   : > { %12517 = vmatprep.subr.bf16.mxu1 %v14843_v50 }
 0xad2   : > { %12519 = vmatpush3.bf16.msra.mxu1 %v12518_v57 }
 0xad3   : > { %12520 = vmatprep.subr.bf16.mxu1 %v14843_v50 }
 0xad7   : > { %v10673_v59 = vpop.f32.mrb[148].mxu1 }
 0xad8   : > { %v10674_v61 = vpop.f32.mrb[149].mxu1 }
 0xad9   : > { %v10675_v38 = vpop.f32.mrb[150].mxu1 }
 0xada   : > { %v10677_v1 = vpop.f32.mrb[151].mxu1 }
 0xade   : > { %v10632_v46 = vpop.f32.mrb[148].mxu0 }
 0xadf   : > { %v10633_v20 = vadd.f32 %v10632_v46, %v10592_v55  ;;  %v10634_v17 = vpop.f32.mrb[149].mxu0  ;;  %v10938_v55 = vld [vmem:[%s19535_s12 + $0x48] sm:$0xff] }
 0xae0   : > { %v10635_v0 = vadd.f32 %v10634_v17, %v10594_v51  ;;  %v10636_v14 = vpop.f32.mrb[150].mxu0  ;;  %v12524_v51 = vpack.c.bf16 %v10938_v55, %v10937_v22 }
 0xae1   : > { %v10637_v37 = vpop.f32.mrb[151].mxu0 }
 0xae2   : > { %v10898_v12 = vrot.slane %v10635_v0, 1 }
 0xae4   : > { %v10900_v62 = vadd.f32 %v10898_v12, %v10633_v20 }
 0xae6   : > { %v10914_v2 = vrot.slane %v10900_v62, 2 }
 0xae8   : > { %v10916_v13 = vadd.f32 %v10914_v2, %v19236_v56  ;;  %v10936_v56 = vld [vmem:[%s19535_s12 + $0x38] sm:$0xff] }
 0xae9   : > { %v12521_v40 = vpack.c.bf16 %v10936_v56, %v10935_v28 }
 0xaea   : > { %v10922_v11 = vrot.slane %v10916_v13, 4 }
 0xaeb   : > { %12522 = vmatpush3.bf16.msra.mxu1 %v12521_v40 }
 0xaec   : > { %v19439_v36 = vadd.f32 %v10922_v11, %v19039_v19  ;;  %12523 = vmatprep.subr.bf16.mxu1 %v14843_v50 }
 0xaef   : > { %12525 = vmatpush3.bf16.msra.mxu1 %v12524_v51 }
 0xaf0   : > { %12526 = vmatprep.subr.bf16.mxu1 %v14843_v50 }
 0xaf3   : > { %12528 = vmatpush3.bf16.msra.mxu1 %v12527_v41 }
 0xaf4   : > { %12529 = vmatprep.subr.bf16.mxu1 %v14843_v50 }
 0xaf7   : > { %12531 = vmatpush3.bf16.msra.mxu1 %v12530_v54 }
 0xaf8   : > { %12532 = vmatprep.subr.bf16.mxu1 %v14843_v50 }
 0xafb   : > { %12534 = vmatpush3.bf16.msra.mxu1 %v12533_v52 }
 0xb17   : > { %v10755_v58 = vpop.f32.mrb[152].mxu1 }
 0xb18   : > { %v10756_v3 = vpop.f32.mrb[153].mxu1 }
 0xb19   : > { %v10757_v15 = vpop.f32.mrb[154].mxu1 }
 0xb1a   : > { %v10759_v16 = vpop.f32.mrb[155].mxu1 }
 0xb1e   : > { %v10714_v24 = vpop.f32.mrb[152].mxu0 }
 0xb1f   : > { %v10715_v33 = vpop.f32.mrb[153].mxu0 }
 0xb20   : > { %v10716_v42 = vpop.f32.mrb[154].mxu0 }
 0xb21   : > { %v10717_v19 = vadd.f32 %v10716_v42, %v10675_v38  ;;  %v10718_v45 = vpop.f32.mrb[155].mxu0 }
 0xb22   : > { %v10719_v60 = vadd.f32 %v10718_v45, %v10677_v1 }
 0xb23   : > { %v10758_v48 = vadd.f32 %v10757_v15, %v10717_v19 }
 0xb24   : > { %v10760_v63 = vadd.f32 %v10759_v16, %v10719_v60 }
 0xb26   : > { %v10902_v43 = vrot.slane %v10760_v63, 1 }
 0xb28   : > { %v10904_v4 = vadd.f32 %v10902_v43, %v10758_v48 }
 0xb57   : > { %v10837_v34 = vpop.f32.mrb[156].mxu1 }
 0xb58   : > { %v10838_v8 = vpop.f32.mrb[157].mxu1 }
 0xb59   : > { %v10839_v47 = vpop.f32.mrb[158].mxu1 }
 0xb5a   : > { %v10841_v25 = vpop.f32.mrb[159].mxu1 }
 0xb5e   : > { %v10796_v9 = vpop.f32.mrb[156].mxu0 }
 0xb5f   : > { %v10797_v23 = vpop.f32.mrb[157].mxu0 }
 0xb60   : > { %v10798_v5 = vpop.f32.mrb[158].mxu0 }
 0xb61   : > { %v10840_v27 = vadd.f32 %v10839_v47, %v10798_v5  ;;  %v10800_v59 = vpop.f32.mrb[159].mxu0 }
 0xb62   : > { %v10842_v61 = vadd.f32 %v10841_v25, %v10800_v59 }
 0xb9e   : > { %v10878_v38 = vpop.f32.mrb[160].mxu0 }
 0xb9f   : > { %v10879_v1 = vpop.f32.mrb[161].mxu0 }
 0xba0   : > { %v10880_v46 = vpop.f32.mrb[162].mxu0 }
 0xba1   : > { %v10881_v20 = vadd.f32 %v10880_v46, %v10840_v27  ;;  %v10882_v17 = vpop.f32.mrb[163].mxu0 }
 0xba2   : > { %v10883_v0 = vadd.f32 %v10882_v17, %v10842_v61 }
 0xba4   : > { %v10906_v14 = vrot.slane %v10883_v0, 1 }
 0xba6   : > { %v10908_v37 = vadd.f32 %v10906_v14, %v10881_v20 }
 0xba8   : > { %v10918_v35 = vrot.slane %v10908_v37, 2 }
 0xbaa   : > { %v10920_v12 = vadd.f32 %v10918_v35, %v10904_v4 }
 0xbac   : > { %v10925_v6 = vadd.f32 %v19439_v36, %v10920_v12 }
 0xbae   : > { %v10927_v18 = vadd.f32 %v10926_v32, %v10925_v6 }
 0xbb0   : > { %v10928_v50 = vmax.f32 %v10927_v18, 0.0 }
 0xbb2   : > { %12485 = vmatmul.mubr.f32.vlgmr.msra.gmra.mrb[160].mxu1 %v10928_v50 }
 0xc85   : > { %v11012_v30 = vpop.f32.mrb[160].mxu1 }
 0xc86   : > { %v11013_v62 = vadd.f32 %v11012_v30, %v10945_v21  ;;  %v12486_v26 = vpop.f32.mrb[161].mxu1 }
 0xc88   : > { %v11017_v2 = vsel %vm11016_vm8, %v11013_v62, -inf }
 0xc89   : > { %11018 = vmax.xlane.f32.xlu0 %v11017_v2 }
 0xd16   : > { %v11019_v44 = vpop.xlane.xlu0 %11018 }
 0xd17   : > { %v11020_v53 = vsub.f32 %v11013_v62, %v11019_v44 }
 0xd19   : > { %v11021_v13 = vmul.f32 1.442695, %v11020_v53 }
 0xd1b   : > { %14246 = vpow2.f32 %v11021_v13 }
 0xd25   : > { %v14247_v57 = vpop.eup %14246 }
 0xd26   : > { %v11023_v11 = vsel %vm11016_vm8, %v14247_v57, 0.0 }
 0xd27   : > { %11024 = vadd.xlane.f32.xlu0 %v11023_v11 }
 0xdb4   : > { %v11025_v36 = vpop.xlane.xlu0 %11024 }
 0xdb5   : > { %14248 = vrcp.f32 %v11025_v36 }
 0xdbf   : > { %v14249_v58 = vpop.eup %14248 }
 0xdc0   : > { %v11027_v3 = vmul.f32 %v14249_v58, %v14247_v57 }
 0xdc2   : > { %11028 = vst.msk [vmem:[%s582_s20] sm:$0x1] %vm11016_vm8, %v11027_v3 }
 0xdc3   : > { %14755 = shalt.err (!%p14752_p10)
}
 0xdc4   : > { %s14756_s30 = scalar_lea.hbm %s19480_s24, 16  ;;  %s14760_s19 = scalar_lea.hbm %s20200_s14, 32 }
 0xdc5   : > { %p14757_p12 = scmp.ne.s32.totalorder %s19480_s24, %s14756_s30  ;;  %p14761_p3 = scmp.lt.u32.totalorder %s19480_s24, %s20200_s14 }
 0xdc6   : > { %p14762_p4 = scmp.lt.u32.totalorder %s14760_s19, %s14756_s30  ;;  %p14764_p8 = scmp.lt.u32.totalorder %s14756_s30, %s19480_s24 }
 0xdc7   : > { %p14758_p1 = pnand %p14757_p12, %p20201_p11 }
 0xdc8   : > { %p14763_p7 = por %p14762_p4, %p14761_p3 }
 0xdc9   : > { %p14759_p2 = pneg %p14758_p1 }
 0xdca   : > { %p14765_p13 = por %p14764_p8, %p14763_p7 }
 0xdcc   : > { %p14766_p5 = pnand %p14765_p13, %p14759_p2 }
 0xdce   : > { %14769 = shalt.err (!%p14766_p5)
}
 0xdcf   : > { %12761 = dma.vmem_to_hbm [thread:$0]  (%p20201_p11), %s19482_s25, 16, %s19480_s24, %s11030_s27  }
 0xdd0 PF: > { %s20202_s21 = sld [smem:[#allocation27_spill]]  ;;  %s20203_s22 = sld [smem:[#allocation24_spill]] }
 0xdd1   : > { %s20204_s20 = sld [smem:[#allocation31_spill]] }
 0xdd6   : > { %p12813_p0 = scmp.ge.s32.totalorder %s20202_s21, 2  ;;  %s11054_s28 = sand.u32 1, %s20203_s22  }
 0xdd7   : > { %p20205_p6 = scmp.ne.s32.totalorder %s20204_s20, 0  ;;  %s11055_s26 = scalar_lea.sflag [#allocation4], %s11054_s28 }
 0xdd9   : > { %p12792_p9 = pnand %p12813_p0, %p20205_p6 }
 0xddb   : > { %14807 = dma.done.wait (!%p12792_p9), %s11055_s26, 16  }
 0xddc   : > { %14809 = vsyncadd (!%p12792_p9), %s11055_s26, 4294967280  ;;  %s20206_s16 = sld [smem:[#allocation28_spill]]  ;;  %s20207_s29 = sld [smem:[#allocation25_spill]] }
 0xddd   : > { %s20208_s30 = sld [smem:[#allocation26_spill]]  ;;  %s20209_s15 = sld [smem:[#allocation29_spill]] }
 0xde2   : > { %p29_p10 = scmp.ge.s32.totalorder %s20206_s16, 4  }
 0xde4   :  { %31 = sbr.rel (!%p29_p10) target bundleno = 13 (0xd), region = 154 }
 0xdeb   :  { %11059 = vsyncpa [#allocation3], 1 }
 0xdec   :  { %11061 = vsyncpa [#allocation3 + $0x1], 1 }
 0xded   :  { %11062 = vsyncpa [#allocation6], 1 }
 0xdee   :  { %11063 = vsyncpa [#allocation9], 1 }
 0xdef   :  { %11064 = vsyncpa [#allocation12], 1 }
 0xdf0   :  { %11065 = vsyncpa [#allocation15], 1 }
 0xdf1   :  { %11066 = vsyncpa [#allocation4], 1 }
 0xdf2   :  { %11068 = vsyncpa [#allocation4 + $0x1], 1 }

</bundles_post_ra>
